<compile_context>
chip_gen: v7x
topology: tpu7x:2x2x1
jax: 0.10.0
libtpu: 0.0.40
codegen_flags: <defaults>
</compile_context>

<pallas_src>
import functools

import jax
import jax.numpy as jnp
from jax.experimental import pallas as pl
from jax.experimental.pallas import tpu as pltpu

PATCH = 4  # stride of the stand-in backbone stem (see TODO below)


# ---------------------------------------------------------------------------
# Fused head kernel: stem (1x1) -> conv3x3+BN+ReLU -> conv3x3+BN+ReLU ->
# conv1x1 -> soft_argmax, one batch element per grid step.
# ---------------------------------------------------------------------------
def _head_kernel(patch_ref, stem_w_ref, stem_b_ref,
                 w1_ref, shift1_ref, w2_ref, shift2_ref,
                 w3_ref, b3_ref, xc_ref, yc_ref,
                 hm_ref, xs_ref, ys_ref,
                 pad1_ref, pad2_ref, *, H, W, PAD):
    HW = H * W

    # ---- stem: patch-embed projection + ReLU (bf16 MXU, f32 accumulate) ----
    feat = jnp.dot(patch_ref[0], stem_w_ref[...],
                   preferred_element_type=jnp.float32)
    feat = jnp.maximum(feat + stem_b_ref[...], 0.0)            # (HW, 1024) f32

    # column index of every flattened pixel, used for the 3x3 x-boundary mask
    fx = jax.lax.broadcasted_iota(jnp.int32, (HW, 1), 0) % W

    def conv3x3_relu(x_f32, w_ref, shift_ref, pad_ref):
        # SAME 3x3 conv as 9 shifted matmuls.  The shifted views are produced
        # in-kernel from a zero-padded VMEM tile with static slices (row
        # wrap-around across image rows lands in the zero pad; the remaining
        # column wrap is masked).  BN scale is pre-folded into w.
        cout = w_ref.shape[-1]
        pad_ref[...] = jnp.zeros_like(pad_ref)
        pad_ref[PAD:PAD + HW, :] = x_f32                       # aligned store
        acc = jnp.zeros((HW, cout), jnp.float32)
        for t in range(9):                                     # unrolled taps
            dy, dx = t // 3 - 1, t % 3 - 1
            start = PAD + dy * W + dx                          # static offset
            tap = pad_ref[start:start + HW, :]                 # (HW, Cin) f32
            if dx != 0:
                ok = (fx + dx >= 0) & (fx + dx < W)
                tap = jnp.where(ok, tap, 0.0)
            acc = acc + jnp.dot(tap.astype(jnp.bfloat16), w_ref[t],
                                preferred_element_type=jnp.float32)
        return jnp.maximum(acc + shift_ref[...], 0.0)          # f32 epilogue

    h1 = conv3x3_relu(feat, w1_ref, shift1_ref, pad1_ref)      # (HW, 256)
    h2 = conv3x3_relu(h1, w2_ref, shift2_ref, pad2_ref)        # (HW, 256)

    # ---- final 1x1 conv (heatmaps), fused with soft-argmax ----
    hm = jnp.dot(h2.astype(jnp.bfloat16), w3_ref[...],
                 preferred_element_type=jnp.float32) + b3_ref[...]  # (HW, L)
    hm_ref[0] = hm

    m = jnp.max(hm, axis=0, keepdims=True)                     # (1, L)
    e = jnp.exp(hm - m)                                        # (HW, L) f32
    denom = jnp.sum(e, axis=0, keepdims=True)                  # (1, L)
    r = pl.reciprocal(denom, approx=True)
    r = r * (2.0 - denom * r)      # one Newton step -> ~f32-exact 1/denom
    # expectations with host-precomputed coordinate tables (xc/yc: (HW, 1))
    xs_ref[0] = jnp.sum(e * xc_ref[...], axis=0, keepdims=True) * r
    ys_ref[0] = jnp.sum(e * yc_ref[...], axis=0, keepdims=True) * r


# ---------------------------------------------------------------------------
# DepthStream forward (wrapper: layout plumbing + weight prep + pallas_call)
# ---------------------------------------------------------------------------
def depth_stream_forward(x_nchw, params):
    B, C, H, W = x_nchw.shape
    x = jnp.transpose(x_nchw, (0, 2, 3, 1))  # NCHW -> NHWC

    # TODO(synk): the pretrained timm HRNet-W32 backbone has no clean Pallas
    # equivalent; it is replaced by a deterministic stride-4 patch-embed
    # projection to 1024 channels (same 1024-channel feature-map contract
    # that HeatmapHead consumes).
    Hf, Wf = H // PATCH, W // PATCH
    HW = Hf * Wf
    p2c = PATCH * PATCH * C
    patches = x.reshape(B, Hf, PATCH, Wf, PATCH, C)
    patches = patches.transpose(0, 1, 3, 2, 4, 5).reshape(B, HW, p2c)
    patches = patches.astype(jnp.bfloat16)

    # fold eval-mode BN scale into conv weights; cast matmul weights to bf16
    stem_w = params['stem_w'].astype(jnp.bfloat16)
    w1 = (params['w1'] * params['scale1']).reshape(9, -1, 256).astype(jnp.bfloat16)
    w2 = (params['w2'] * params['scale2']).reshape(9, -1, 256).astype(jnp.bfloat16)
    w3 = params['w3'].astype(jnp.bfloat16)
    L = w3.shape[-1]
    c1, c2 = w1.shape[1], w2.shape[1]

    # host-precomputed soft-argmax coordinate tables
    idx = jnp.arange(HW, dtype=jnp.int32)
    xc = (idx % Wf).astype(jnp.float32).reshape(HW, 1)
    yc = (idx // Wf).astype(jnp.float32).reshape(HW, 1)

    # zero-padding rows for the in-kernel 3x3 halo (>= Wf+1, 8-aligned)
    pad_rows = max(8, -(-(Wf + 1) // 8) * 8)

    kern = functools.partial(_head_kernel, H=Hf, W=Wf, PAD=pad_rows)
    hm, xs, ys = pl.pallas_call(
        kern,
        out_shape=(jax.ShapeDtypeStruct((B, HW, L), jnp.float32),
                   jax.ShapeDtypeStruct((B, 1, L), jnp.float32),
                   jax.ShapeDtypeStruct((B, 1, L), jnp.float32)),
        grid=(B,),
        in_specs=[
            pl.BlockSpec((1, HW, p2c), lambda b: (b, 0, 0)),
            pl.BlockSpec(stem_w.shape, lambda b: (0, 0)),
            pl.BlockSpec(params['stem_b'].shape, lambda b: (0, 0)),
            pl.BlockSpec(w1.shape, lambda b: (0, 0, 0)),
            pl.BlockSpec(params['shift1'].shape, lambda b: (0, 0)),
            pl.BlockSpec(w2.shape, lambda b: (0, 0, 0)),
            pl.BlockSpec(params['shift2'].shape, lambda b: (0, 0)),
            pl.BlockSpec(w3.shape, lambda b: (0, 0)),
            pl.BlockSpec(params['b3'].shape, lambda b: (0, 0)),
            pl.BlockSpec((HW, 1), lambda b: (0, 0)),
            pl.BlockSpec((HW, 1), lambda b: (0, 0)),
        ],
        out_specs=(pl.BlockSpec((1, HW, L), lambda b: (b, 0, 0)),
                   pl.BlockSpec((1, 1, L), lambda b: (b, 0, 0)),
                   pl.BlockSpec((1, 1, L), lambda b: (b, 0, 0))),
        scratch_shapes=[pltpu.VMEM((HW + 2 * pad_rows, c1), jnp.float32),
                        pltpu.VMEM((HW + 2 * pad_rows, c2), jnp.float32)],
        compiler_params=pltpu.CompilerParams(
            dimension_semantics=("parallel",),
            # ~12 MiB actually used; keep well below v7x's 64 MiB physical
            # VMEM (v5e/v6e have 128 MiB and could go higher if tiles grow).
            vmem_limit_bytes=40 * 1024 * 1024),
    )(patches, stem_w, params['stem_b'], w1, params['shift1'],
      w2, params['shift2'], w3, params['b3'], xc, yc)

    heatmaps = jnp.transpose(hm.reshape(B, Hf, Wf, L), (0, 3, 1, 2))  # NCHW
    coords = jnp.stack([xs[:, 0, :], ys[:, 0, :]], axis=-1)           # (B, L, 2)
    return heatmaps, coords


# ---------------------------------------------------------------------------
# Deterministic parameter init (synthetic weights, eval-mode BN folded later)
# ---------------------------------------------------------------------------
def init_params(key, num_landmarks):
    ks = jax.random.split(key, 14)
    eps = 1e-5

    def bn_fold(kg, kb, km, kv, c):
        gamma = 1.0 + 0.1 * jax.random.normal(kg, (1, c), jnp.float32)
        beta = 0.1 * jax.random.normal(kb, (1, c), jnp.float32)
        mean = 0.1 * jax.random.normal(km, (1, c), jnp.float32)
        var = 1.0 + 0.1 * jax.random.uniform(kv, (1, c), jnp.float32)
        scale = gamma / jnp.sqrt(var + eps)
        shift = beta - mean * scale
        return scale, shift

    p = {}
    p['stem_w'] = 0.05 * jax.random.normal(ks[0], (PATCH * PATCH * 1, 1024),
                                           jnp.float32)
    p['stem_b'] = 0.05 * jax.random.normal(ks[1], (1, 1024), jnp.float32)
    p['w1'] = 0.02 * jax.random.normal(ks[2], (3, 3, 1024, 256), jnp.float32)
    p['scale1'], p['shift1'] = bn_fold(ks[3], ks[4], ks[5], ks[6], 256)
    p['w2'] = 0.02 * jax.random.normal(ks[7], (3, 3, 256, 256), jnp.float32)
    p['scale2'], p['shift2'] = bn_fold(ks[8], ks[9], ks[10], ks[11], 256)
    p['w3'] = 0.05 * jax.random.normal(ks[12], (256, num_landmarks), jnp.float32)
    p['b3'] = 0.05 * jax.random.normal(ks[13], (1, num_landmarks), jnp.float32)
    return p


# ---------------------------------------------------------------------------
# Pure-JAX reference with the same inference numerics (bf16 MXU, f32 accum)
# ---------------------------------------------------------------------------
def ref_forward(x_nchw, params, num_landmarks):
    x = jnp.transpose(x_nchw, (0, 2, 3, 1))
    B, H, W, C = x.shape
    Hf, Wf = H // PATCH, W // PATCH
    patches = x.reshape(B, Hf, PATCH, Wf, PATCH, C)
    patches = patches.transpose(0, 1, 3, 2, 4, 5).reshape(
        B, Hf, Wf, PATCH * PATCH * C).astype(jnp.bfloat16)

    feat = jnp.maximum(
        jnp.dot(patches, params['stem_w'].astype(jnp.bfloat16),
                preferred_element_type=jnp.float32) + params['stem_b'], 0.0)

    def conv3(h, w_folded_bf16, shift):
        y = jax.lax.conv_general_dilated(
            h.astype(jnp.bfloat16), w_folded_bf16, (1, 1), 'SAME',
            dimension_numbers=('NHWC', 'HWIO', 'NHWC'),
            preferred_element_type=jnp.float32)
        return jnp.maximum(y + shift, 0.0)

    w1 = (params['w1'] * params['scale1']).astype(jnp.bfloat16)
    w2 = (params['w2'] * params['scale2']).astype(jnp.bfloat16)
    h1 = conv3(feat, w1, params['shift1'])
    h2 = conv3(h1, w2, params['shift2'])
    hm = jnp.dot(h2.astype(jnp.bfloat16), params['w3'].astype(jnp.bfloat16),
                 preferred_element_type=jnp.float32) + params['b3']

    heatmaps = jnp.transpose(hm, (0, 3, 1, 2))
    flat = hm.reshape(B, Hf * Wf, num_landmarks)
    prob = jax.nn.softmax(flat, axis=1)
    idx = jnp.arange(Hf * Wf)
    xc = (idx % Wf).astype(jnp.float32)[None, :, None]
    yc = (idx // Wf).astype(jnp.float32)[None, :, None]
    coords = jnp.stack([jnp.sum(prob * xc, axis=1),
                        jnp.sum(prob * yc, axis=1)], axis=-1)
    return heatmaps, coords


if __name__ == "__main__":
    num_landmarks = 16
    key = jax.random.PRNGKey(0)
    k_x, k_p = jax.random.split(key)
    # single-channel (depth) image, NCHW like the PyTorch module
    x = jax.random.normal(k_x, (2, 1, 16, 16), jnp.float32)
    params = init_params(k_p, num_landmarks)

    heatmaps, coords = depth_stream_forward(x, params)
    heatmaps = jax.block_until_ready(heatmaps)
    coords = jax.block_until_ready(coords)

    ref_hm, ref_coords = ref_forward(x, params, num_landmarks)
    assert heatmaps.shape == (2, num_landmarks, 4, 4)
    assert coords.shape == (2, num_landmarks, 2)
    assert bool(jnp.all(jnp.isfinite(heatmaps)))
    assert bool(jnp.all(jnp.isfinite(coords)))
    assert bool(jnp.allclose(heatmaps, ref_hm, atol=2e-3, rtol=2e-3))
    assert bool(jnp.allclose(coords, ref_coords, atol=2e-3, rtol=2e-3))
    print("KERNEL_OK")
</pallas_src>

<mosaic_0001>
module attributes {stable_mosaic.version = 11 : i64} {
  func.func @_head_kernel(%arg0: i32, %arg1: memref<1x16x16xbf16, #tpu.memory_space<vmem>>, %arg2: memref<16x1024xbf16, #tpu.memory_space<vmem>>, %arg3: memref<1x1024xf32, #tpu.memory_space<vmem>>, %arg4: memref<9x1024x256xbf16, #tpu.memory_space<vmem>>, %arg5: memref<1x256xf32, #tpu.memory_space<vmem>>, %arg6: memref<9x256x256xbf16, #tpu.memory_space<vmem>>, %arg7: memref<1x256xf32, #tpu.memory_space<vmem>>, %arg8: memref<256x16xbf16, #tpu.memory_space<vmem>>, %arg9: memref<1x16xf32, #tpu.memory_space<vmem>>, %arg10: memref<16x1xf32, #tpu.memory_space<vmem>>, %arg11: memref<16x1xf32, #tpu.memory_space<vmem>>, %arg12: memref<1x16x16xf32, #tpu.memory_space<vmem>>, %arg13: memref<1x1x16xf32, #tpu.memory_space<vmem>>, %arg14: memref<1x1x16xf32, #tpu.memory_space<vmem>>, %arg15: memref<32x1024xf32, #tpu.memory_space<vmem>>, %arg16: memref<32x256xf32, #tpu.memory_space<vmem>>) attributes {dimension_semantics = [#tpu.dimension_semantics<parallel>], iteration_bounds = array<i64: 2>, scalar_prefetch = 0 : i64, scratch_operands = 2 : i64, tpu.core_type = #tpu.core_type<tc>, window_params = [{transform_indices = @transform_0, window_bounds = array<i64: 1, 16, 16>}, {pipeline_mode = #tpu.pipeline_mode<synchronous>, transform_indices = @transform_1, window_bounds = array<i64: 16, 1024>}, {pipeline_mode = #tpu.pipeline_mode<synchronous>, transform_indices = @transform_2, window_bounds = array<i64: 1, 1024>}, {pipeline_mode = #tpu.pipeline_mode<synchronous>, transform_indices = @transform_3, window_bounds = array<i64: 9, 1024, 256>}, {pipeline_mode = #tpu.pipeline_mode<synchronous>, transform_indices = @transform_4, window_bounds = array<i64: 1, 256>}, {pipeline_mode = #tpu.pipeline_mode<synchronous>, transform_indices = @transform_5, window_bounds = array<i64: 9, 256, 256>}, {pipeline_mode = #tpu.pipeline_mode<synchronous>, transform_indices = @transform_6, window_bounds = array<i64: 1, 256>}, {pipeline_mode = #tpu.pipeline_mode<synchronous>, transform_indices = @transform_7, window_bounds = array<i64: 256, 16>}, {pipeline_mode = #tpu.pipeline_mode<synchronous>, transform_indices = @transform_8, window_bounds = array<i64: 1, 16>}, {pipeline_mode = #tpu.pipeline_mode<synchronous>, transform_indices = @transform_9, window_bounds = array<i64: 16, 1>}, {pipeline_mode = #tpu.pipeline_mode<synchronous>, transform_indices = @transform_10, window_bounds = array<i64: 16, 1>}, {transform_indices = @transform_11, window_bounds = array<i64: 1, 16, 16>}, {transform_indices = @transform_12, window_bounds = array<i64: 1, 1, 16>}, {transform_indices = @transform_13, window_bounds = array<i64: 1, 1, 16>}]} {
    %c0 = arith.constant 0 : index
    %c0_0 = arith.constant 0 : index
    %c0_1 = arith.constant 0 : index
    %0 = vector.load %arg1[%c0, %c0_0, %c0_1] : memref<1x16x16xbf16, #tpu.memory_space<vmem>>, vector<1x16x16xbf16>
    %1 = vector.shape_cast %0 : vector<1x16x16xbf16> to vector<16x16xbf16>
    %c0_2 = arith.constant 0 : index
    %c0_3 = arith.constant 0 : index
    %2 = vector.load %arg2[%c0_2, %c0_3] : memref<16x1024xbf16, #tpu.memory_space<vmem>>, vector<16x1024xbf16>
    %cst = arith.constant dense<0.000000e+00> : vector<16x1024xf32>
    %3 = tpu.matmul %1, %2, %cst {dimension_numbers = #tpu.dot_dimension_numbers<[1], [0], [0], [1], [0, 0, 1, 1], [], []>} : vector<16x16xbf16>, vector<16x1024xbf16>, vector<16x1024xf32> -> vector<16x1024xf32>
    %c0_4 = arith.constant 0 : index
    %c0_5 = arith.constant 0 : index
    %4 = vector.load %arg3[%c0_4, %c0_5] : memref<1x1024xf32, #tpu.memory_space<vmem>>, vector<1x1024xf32>
    %5 = vector.broadcast %4 : vector<1x1024xf32> to vector<16x1024xf32>
    %6 = arith.addf %3, %5 : vector<16x1024xf32>
    %cst_6 = arith.constant 0.000000e+00 : f32
    %7 = vector.broadcast %cst_6 : f32 to vector<16x1024xf32>
    %8 = arith.maximumf %6, %7 : vector<16x1024xf32>
    %9 = tpu.iota {dimensions = array<i32: 0>} : vector<16x1xi32>
    %c4_i32 = arith.constant 4 : i32
    %c0_i32 = arith.constant 0 : i32
    %10 = arith.cmpi eq, %c4_i32, %c0_i32 : i32
    %c1_i32 = arith.constant 1 : i32
    %11 = arith.select %10, %c1_i32, %c4_i32 : i32
    %12 = vector.broadcast %11 : i32 to vector<16x1xi32>
    %13 = arith.remsi %9, %12 : vector<16x1xi32>
    %c0_i32_7 = arith.constant 0 : i32
    %14 = vector.broadcast %c0_i32_7 : i32 to vector<16x1xi32>
    %15 = arith.cmpi ne, %13, %14 : vector<16x1xi32>
    %c0_i32_8 = arith.constant 0 : i32
    %16 = vector.broadcast %c0_i32_8 : i32 to vector<16x1xi32>
    %17 = arith.cmpi slt, %13, %16 : vector<16x1xi32>
    %c0_i32_9 = arith.constant 0 : i32
    %18 = arith.cmpi slt, %11, %c0_i32_9 : i32
    %19 = vector.broadcast %18 : i1 to vector<16x1xi1>
    %20 = vector.broadcast %19 : vector<16x1xi1> to vector<16x1xi1>
    %21 = arith.xori %17, %20 : vector<16x1xi1>
    %22 = arith.andi %21, %15 : vector<16x1xi1>
    %23 = vector.broadcast %11 : i32 to vector<16x1xi32>
    %24 = arith.addi %13, %23 : vector<16x1xi32>
    %25 = arith.select %22, %24, %13 : vector<16x1xi1>, vector<16x1xi32>
    %cst_10 = arith.constant 0.000000e+00 : f32
    %26 = vector.broadcast %cst_10 : f32 to vector<32x1024xf32>
    %c0_11 = arith.constant 0 : index
    %c0_12 = arith.constant 0 : index
    %27 = vector.load %arg15[%c0_11, %c0_12] : memref<32x1024xf32, #tpu.memory_space<vmem>>, vector<32x1024xf32>
    tpu.vector_store %arg15[%c0_11, %c0_12], %26 {strides = array<i32>} : memref<32x1024xf32, #tpu.memory_space<vmem>>, vector<32x1024xf32>,
    %c8 = arith.constant 8 : index
    %c0_13 = arith.constant 0 : index
    %28 = vector.load %arg15[%c8, %c0_13] : memref<32x1024xf32, #tpu.memory_space<vmem>>, vector<16x1024xf32>
    tpu.vector_store %arg15[%c8, %c0_13], %8 {strides = array<i32>} : memref<32x1024xf32, #tpu.memory_space<vmem>>, vector<16x1024xf32>,
    %cst_14 = arith.constant 0.000000e+00 : f32
    %29 = vector.broadcast %cst_14 : f32 to vector<16x256xf32>
    %c3 = arith.constant 3 : index
    %c0_15 = arith.constant 0 : index
    %30 = vector.load %arg15[%c3, %c0_15] : memref<32x1024xf32, #tpu.memory_space<vmem>>, vector<16x1024xf32>
    %c-1_i32 = arith.constant -1 : i32
    %31 = vector.broadcast %c-1_i32 : i32 to vector<16x1xi32>
    %32 = arith.addi %25, %31 : vector<16x1xi32>
    %c0_i32_16 = arith.constant 0 : i32
    %33 = vector.broadcast %c0_i32_16 : i32 to vector<16x1xi32>
    %34 = arith.cmpi sge, %32, %33 : vector<16x1xi32>
    %c-1_i32_17 = arith.constant -1 : i32
    %35 = vector.broadcast %c-1_i32_17 : i32 to vector<16x1xi32>
    %36 = arith.addi %25, %35 : vector<16x1xi32>
    %c4_i32_18 = arith.constant 4 : i32
    %37 = vector.broadcast %c4_i32_18 : i32 to vector<16x1xi32>
    %38 = arith.cmpi slt, %36, %37 : vector<16x1xi32>
    %39 = arith.andi %34, %38 : vector<16x1xi1>
    %cst_19 = arith.constant 0.000000e+00 : f32
    %40 = vector.shape_cast %39 : vector<16x1xi1> to vector<16x1xi1>
    %41 = vector.broadcast %40 : vector<16x1xi1> to vector<16x1024xi1>
    %42 = vector.broadcast %cst_19 : f32 to vector<16x1024xf32>
    %43 = arith.select %41, %30, %42 : vector<16x1024xi1>, vector<16x1024xf32>
    %44 = arith.truncf %43 : vector<16x1024xf32> to vector<16x1024xbf16>
    %c0_20 = arith.constant 0 : index
    %c0_21 = arith.constant 0 : index
    %c0_22 = arith.constant 0 : index
    %45 = vector.load %arg4[%c0_20, %c0_21, %c0_22] : memref<9x1024x256xbf16, #tpu.memory_space<vmem>>, vector<1x1024x256xbf16>
    %46 = vector.shape_cast %45 : vector<1x1024x256xbf16> to vector<1024x256xbf16>
    %cst_23 = arith.constant dense<0.000000e+00> : vector<16x256xf32>
    %47 = tpu.matmul %44, %46, %cst_23 {dimension_numbers = #tpu.dot_dimension_numbers<[1], [0], [0], [1], [0, 0, 1, 1], [], []>} : vector<16x1024xbf16>, vector<1024x256xbf16>, vector<16x256xf32> -> vector<16x256xf32>
    %48 = arith.addf %29, %47 : vector<16x256xf32>
    %c4 = arith.constant 4 : index
    %c0_24 = arith.constant 0 : index
    %49 = vector.load %arg15[%c4, %c0_24] : memref<32x1024xf32, #tpu.memory_space<vmem>>, vector<16x1024xf32>
    %50 = arith.truncf %49 : vector<16x1024xf32> to vector<16x1024xbf16>
    %c1 = arith.constant 1 : index
    %c0_25 = arith.constant 0 : index
    %c0_26 = arith.constant 0 : index
    %51 = vector.load %arg4[%c1, %c0_25, %c0_26] : memref<9x1024x256xbf16, #tpu.memory_space<vmem>>, vector<1x1024x256xbf16>
    %52 = vector.shape_cast %51 : vector<1x1024x256xbf16> to vector<1024x256xbf16>
    %cst_27 = arith.constant dense<0.000000e+00> : vector<16x256xf32>
    %53 = tpu.matmul %50, %52, %cst_27 {dimension_numbers = #tpu.dot_dimension_numbers<[1], [0], [0], [1], [0, 0, 1, 1], [], []>} : vector<16x1024xbf16>, vector<1024x256xbf16>, vector<16x256xf32> -> vector<16x256xf32>
    %54 = arith.addf %48, %53 : vector<16x256xf32>
    %c5 = arith.constant 5 : index
    %c0_28 = arith.constant 0 : index
    %55 = vector.load %arg15[%c5, %c0_28] : memref<32x1024xf32, #tpu.memory_space<vmem>>, vector<16x1024xf32>
    %c1_i32_29 = arith.constant 1 : i32
    %56 = vector.broadcast %c1_i32_29 : i32 to vector<16x1xi32>
    %57 = arith.addi %25, %56 : vector<16x1xi32>
    %c0_i32_30 = arith.constant 0 : i32
    %58 = vector.broadcast %c0_i32_30 : i32 to vector<16x1xi32>
    %59 = arith.cmpi sge, %57, %58 : vector<16x1xi32>
    %c1_i32_31 = arith.constant 1 : i32
    %60 = vector.broadcast %c1_i32_31 : i32 to vector<16x1xi32>
    %61 = arith.addi %25, %60 : vector<16x1xi32>
    %c4_i32_32 = arith.constant 4 : i32
    %62 = vector.broadcast %c4_i32_32 : i32 to vector<16x1xi32>
    %63 = arith.cmpi slt, %61, %62 : vector<16x1xi32>
    %64 = arith.andi %59, %63 : vector<16x1xi1>
    %cst_33 = arith.constant 0.000000e+00 : f32
    %65 = vector.shape_cast %64 : vector<16x1xi1> to vector<16x1xi1>
    %66 = vector.broadcast %65 : vector<16x1xi1> to vector<16x1024xi1>
    %67 = vector.broadcast %cst_33 : f32 to vector<16x1024xf32>
    %68 = arith.select %66, %55, %67 : vector<16x1024xi1>, vector<16x1024xf32>
    %69 = arith.truncf %68 : vector<16x1024xf32> to vector<16x1024xbf16>
    %c2 = arith.constant 2 : index
    %c0_34 = arith.constant 0 : index
    %c0_35 = arith.constant 0 : index
    %70 = vector.load %arg4[%c2, %c0_34, %c0_35] : memref<9x1024x256xbf16, #tpu.memory_space<vmem>>, vector<1x1024x256xbf16>
    %71 = vector.shape_cast %70 : vector<1x1024x256xbf16> to vector<1024x256xbf16>
    %cst_36 = arith.constant dense<0.000000e+00> : vector<16x256xf32>
    %72 = tpu.matmul %69, %71, %cst_36 {dimension_numbers = #tpu.dot_dimension_numbers<[1], [0], [0], [1], [0, 0, 1, 1], [], []>} : vector<16x1024xbf16>, vector<1024x256xbf16>, vector<16x256xf32> -> vector<16x256xf32>
    %73 = arith.addf %54, %72 : vector<16x256xf32>
    %c7 = arith.constant 7 : index
    %c0_37 = arith.constant 0 : index
    %74 = vector.load %arg15[%c7, %c0_37] : memref<32x1024xf32, #tpu.memory_space<vmem>>, vector<16x1024xf32>
    %c-1_i32_38 = arith.constant -1 : i32
    %75 = vector.broadcast %c-1_i32_38 : i32 to vector<16x1xi32>
    %76 = arith.addi %25, %75 : vector<16x1xi32>
    %c0_i32_39 = arith.constant 0 : i32
    %77 = vector.broadcast %c0_i32_39 : i32 to vector<16x1xi32>
    %78 = arith.cmpi sge, %76, %77 : vector<16x1xi32>
    %c-1_i32_40 = arith.constant -1 : i32
    %79 = vector.broadcast %c-1_i32_40 : i32 to vector<16x1xi32>
    %80 = arith.addi %25, %79 : vector<16x1xi32>
    %c4_i32_41 = arith.constant 4 : i32
    %81 = vector.broadcast %c4_i32_41 : i32 to vector<16x1xi32>
    %82 = arith.cmpi slt, %80, %81 : vector<16x1xi32>
    %83 = arith.andi %78, %82 : vector<16x1xi1>
    %cst_42 = arith.constant 0.000000e+00 : f32
    %84 = vector.shape_cast %83 : vector<16x1xi1> to vector<16x1xi1>
    %85 = vector.broadcast %84 : vector<16x1xi1> to vector<16x1024xi1>
    %86 = vector.broadcast %cst_42 : f32 to vector<16x1024xf32>
    %87 = arith.select %85, %74, %86 : vector<16x1024xi1>, vector<16x1024xf32>
    %88 = arith.truncf %87 : vector<16x1024xf32> to vector<16x1024xbf16>
    %c3_43 = arith.constant 3 : index
    %c0_44 = arith.constant 0 : index
    %c0_45 = arith.constant 0 : index
    %89 = vector.load %arg4[%c3_43, %c0_44, %c0_45] : memref<9x1024x256xbf16, #tpu.memory_space<vmem>>, vector<1x1024x256xbf16>
    %90 = vector.shape_cast %89 : vector<1x1024x256xbf16> to vector<1024x256xbf16>
    %cst_46 = arith.constant dense<0.000000e+00> : vector<16x256xf32>
    %91 = tpu.matmul %88, %90, %cst_46 {dimension_numbers = #tpu.dot_dimension_numbers<[1], [0], [0], [1], [0, 0, 1, 1], [], []>} : vector<16x1024xbf16>, vector<1024x256xbf16>, vector<16x256xf32> -> vector<16x256xf32>
    %92 = arith.addf %73, %91 : vector<16x256xf32>
    %c8_47 = arith.constant 8 : index
    %c0_48 = arith.constant 0 : index
    %93 = vector.load %arg15[%c8_47, %c0_48] : memref<32x1024xf32, #tpu.memory_space<vmem>>, vector<16x1024xf32>
    %94 = arith.truncf %93 : vector<16x1024xf32> to vector<16x1024xbf16>
    %c4_49 = arith.constant 4 : index
    %c0_50 = arith.constant 0 : index
    %c0_51 = arith.constant 0 : index
    %95 = vector.load %arg4[%c4_49, %c0_50, %c0_51] : memref<9x1024x256xbf16, #tpu.memory_space<vmem>>, vector<1x1024x256xbf16>
    %96 = vector.shape_cast %95 : vector<1x1024x256xbf16> to vector<1024x256xbf16>
    %cst_52 = arith.constant dense<0.000000e+00> : vector<16x256xf32>
    %97 = tpu.matmul %94, %96, %cst_52 {dimension_numbers = #tpu.dot_dimension_numbers<[1], [0], [0], [1], [0, 0, 1, 1], [], []>} : vector<16x1024xbf16>, vector<1024x256xbf16>, vector<16x256xf32> -> vector<16x256xf32>
    %98 = arith.addf %92, %97 : vector<16x256xf32>
    %c9 = arith.constant 9 : index
    %c0_53 = arith.constant 0 : index
    %99 = vector.load %arg15[%c9, %c0_53] : memref<32x1024xf32, #tpu.memory_space<vmem>>, vector<16x1024xf32>
    %c1_i32_54 = arith.constant 1 : i32
    %100 = vector.broadcast %c1_i32_54 : i32 to vector<16x1xi32>
    %101 = arith.addi %25, %100 : vector<16x1xi32>
    %c0_i32_55 = arith.constant 0 : i32
    %102 = vector.broadcast %c0_i32_55 : i32 to vector<16x1xi32>
    %103 = arith.cmpi sge, %101, %102 : vector<16x1xi32>
    %c1_i32_56 = arith.constant 1 : i32
    %104 = vector.broadcast %c1_i32_56 : i32 to vector<16x1xi32>
    %105 = arith.addi %25, %104 : vector<16x1xi32>
    %c4_i32_57 = arith.constant 4 : i32
    %106 = vector.broadcast %c4_i32_57 : i32 to vector<16x1xi32>
    %107 = arith.cmpi slt, %105, %106 : vector<16x1xi32>
    %108 = arith.andi %103, %107 : vector<16x1xi1>
    %cst_58 = arith.constant 0.000000e+00 : f32
    %109 = vector.shape_cast %108 : vector<16x1xi1> to vector<16x1xi1>
    %110 = vector.broadcast %109 : vector<16x1xi1> to vector<16x1024xi1>
    %111 = vector.broadcast %cst_58 : f32 to vector<16x1024xf32>
    %112 = arith.select %110, %99, %111 : vector<16x1024xi1>, vector<16x1024xf32>
    %113 = arith.truncf %112 : vector<16x1024xf32> to vector<16x1024xbf16>
    %c5_59 = arith.constant 5 : index
    %c0_60 = arith.constant 0 : index
    %c0_61 = arith.constant 0 : index
    %114 = vector.load %arg4[%c5_59, %c0_60, %c0_61] : memref<9x1024x256xbf16, #tpu.memory_space<vmem>>, vector<1x1024x256xbf16>
    %115 = vector.shape_cast %114 : vector<1x1024x256xbf16> to vector<1024x256xbf16>
    %cst_62 = arith.constant dense<0.000000e+00> : vector<16x256xf32>
    %116 = tpu.matmul %113, %115, %cst_62 {dimension_numbers = #tpu.dot_dimension_numbers<[1], [0], [0], [1], [0, 0, 1, 1], [], []>} : vector<16x1024xbf16>, vector<1024x256xbf16>, vector<16x256xf32> -> vector<16x256xf32>
    %117 = arith.addf %98, %116 : vector<16x256xf32>
    %c11 = arith.constant 11 : index
    %c0_63 = arith.constant 0 : index
    %118 = vector.load %arg15[%c11, %c0_63] : memref<32x1024xf32, #tpu.memory_space<vmem>>, vector<16x1024xf32>
    %c-1_i32_64 = arith.constant -1 : i32
    %119 = vector.broadcast %c-1_i32_64 : i32 to vector<16x1xi32>
    %120 = arith.addi %25, %119 : vector<16x1xi32>
    %c0_i32_65 = arith.constant 0 : i32
    %121 = vector.broadcast %c0_i32_65 : i32 to vector<16x1xi32>
    %122 = arith.cmpi sge, %120, %121 : vector<16x1xi32>
    %c-1_i32_66 = arith.constant -1 : i32
    %123 = vector.broadcast %c-1_i32_66 : i32 to vector<16x1xi32>
    %124 = arith.addi %25, %123 : vector<16x1xi32>
    %c4_i32_67 = arith.constant 4 : i32
    %125 = vector.broadcast %c4_i32_67 : i32 to vector<16x1xi32>
    %126 = arith.cmpi slt, %124, %125 : vector<16x1xi32>
    %127 = arith.andi %122, %126 : vector<16x1xi1>
    %cst_68 = arith.constant 0.000000e+00 : f32
    %128 = vector.shape_cast %127 : vector<16x1xi1> to vector<16x1xi1>
    %129 = vector.broadcast %128 : vector<16x1xi1> to vector<16x1024xi1>
    %130 = vector.broadcast %cst_68 : f32 to vector<16x1024xf32>
    %131 = arith.select %129, %118, %130 : vector<16x1024xi1>, vector<16x1024xf32>
    %132 = arith.truncf %131 : vector<16x1024xf32> to vector<16x1024xbf16>
    %c6 = arith.constant 6 : index
    %c0_69 = arith.constant 0 : index
    %c0_70 = arith.constant 0 : index
    %133 = vector.load %arg4[%c6, %c0_69, %c0_70] : memref<9x1024x256xbf16, #tpu.memory_space<vmem>>, vector<1x1024x256xbf16>
    %134 = vector.shape_cast %133 : vector<1x1024x256xbf16> to vector<1024x256xbf16>
    %cst_71 = arith.constant dense<0.000000e+00> : vector<16x256xf32>
    %135 = tpu.matmul %132, %134, %cst_71 {dimension_numbers = #tpu.dot_dimension_numbers<[1], [0], [0], [1], [0, 0, 1, 1], [], []>} : vector<16x1024xbf16>, vector<1024x256xbf16>, vector<16x256xf32> -> vector<16x256xf32>
    %136 = arith.addf %117, %135 : vector<16x256xf32>
    %c12 = arith.constant 12 : index
    %c0_72 = arith.constant 0 : index
    %137 = vector.load %arg15[%c12, %c0_72] : memref<32x1024xf32, #tpu.memory_space<vmem>>, vector<16x1024xf32>
    %138 = arith.truncf %137 : vector<16x1024xf32> to vector<16x1024xbf16>
    %c7_73 = arith.constant 7 : index
    %c0_74 = arith.constant 0 : index
    %c0_75 = arith.constant 0 : index
    %139 = vector.load %arg4[%c7_73, %c0_74, %c0_75] : memref<9x1024x256xbf16, #tpu.memory_space<vmem>>, vector<1x1024x256xbf16>
    %140 = vector.shape_cast %139 : vector<1x1024x256xbf16> to vector<1024x256xbf16>
    %cst_76 = arith.constant dense<0.000000e+00> : vector<16x256xf32>
    %141 = tpu.matmul %138, %140, %cst_76 {dimension_numbers = #tpu.dot_dimension_numbers<[1], [0], [0], [1], [0, 0, 1, 1], [], []>} : vector<16x1024xbf16>, vector<1024x256xbf16>, vector<16x256xf32> -> vector<16x256xf32>
    %142 = arith.addf %136, %141 : vector<16x256xf32>
    %c13 = arith.constant 13 : index
    %c0_77 = arith.constant 0 : index
    %143 = vector.load %arg15[%c13, %c0_77] : memref<32x1024xf32, #tpu.memory_space<vmem>>, vector<16x1024xf32>
    %c1_i32_78 = arith.constant 1 : i32
    %144 = vector.broadcast %c1_i32_78 : i32 to vector<16x1xi32>
    %145 = arith.addi %25, %144 : vector<16x1xi32>
    %c0_i32_79 = arith.constant 0 : i32
    %146 = vector.broadcast %c0_i32_79 : i32 to vector<16x1xi32>
    %147 = arith.cmpi sge, %145, %146 : vector<16x1xi32>
    %c1_i32_80 = arith.constant 1 : i32
    %148 = vector.broadcast %c1_i32_80 : i32 to vector<16x1xi32>
    %149 = arith.addi %25, %148 : vector<16x1xi32>
    %c4_i32_81 = arith.constant 4 : i32
    %150 = vector.broadcast %c4_i32_81 : i32 to vector<16x1xi32>
    %151 = arith.cmpi slt, %149, %150 : vector<16x1xi32>
    %152 = arith.andi %147, %151 : vector<16x1xi1>
    %cst_82 = arith.constant 0.000000e+00 : f32
    %153 = vector.shape_cast %152 : vector<16x1xi1> to vector<16x1xi1>
    %154 = vector.broadcast %153 : vector<16x1xi1> to vector<16x1024xi1>
    %155 = vector.broadcast %cst_82 : f32 to vector<16x1024xf32>
    %156 = arith.select %154, %143, %155 : vector<16x1024xi1>, vector<16x1024xf32>
    %157 = arith.truncf %156 : vector<16x1024xf32> to vector<16x1024xbf16>
    %c8_83 = arith.constant 8 : index
    %c0_84 = arith.constant 0 : index
    %c0_85 = arith.constant 0 : index
    %158 = vector.load %arg4[%c8_83, %c0_84, %c0_85] : memref<9x1024x256xbf16, #tpu.memory_space<vmem>>, vector<1x1024x256xbf16>
    %159 = vector.shape_cast %158 : vector<1x1024x256xbf16> to vector<1024x256xbf16>
    %cst_86 = arith.constant dense<0.000000e+00> : vector<16x256xf32>
    %160 = tpu.matmul %157, %159, %cst_86 {dimension_numbers = #tpu.dot_dimension_numbers<[1], [0], [0], [1], [0, 0, 1, 1], [], []>} : vector<16x1024xbf16>, vector<1024x256xbf16>, vector<16x256xf32> -> vector<16x256xf32>
    %161 = arith.addf %142, %160 : vector<16x256xf32>
    %c0_87 = arith.constant 0 : index
    %c0_88 = arith.constant 0 : index
    %162 = vector.load %arg5[%c0_87, %c0_88] : memref<1x256xf32, #tpu.memory_space<vmem>>, vector<1x256xf32>
    %163 = vector.broadcast %162 : vector<1x256xf32> to vector<16x256xf32>
    %164 = arith.addf %161, %163 : vector<16x256xf32>
    %cst_89 = arith.constant 0.000000e+00 : f32
    %165 = vector.broadcast %cst_89 : f32 to vector<16x256xf32>
    %166 = arith.maximumf %164, %165 : vector<16x256xf32>
    %cst_90 = arith.constant 0.000000e+00 : f32
    %167 = vector.broadcast %cst_90 : f32 to vector<32x256xf32>
    %c0_91 = arith.constant 0 : index
    %c0_92 = arith.constant 0 : index
    %168 = vector.load %arg16[%c0_91, %c0_92] : memref<32x256xf32, #tpu.memory_space<vmem>>, vector<32x256xf32>
    tpu.vector_store %arg16[%c0_91, %c0_92], %167 {strides = array<i32>} : memref<32x256xf32, #tpu.memory_space<vmem>>, vector<32x256xf32>,
    %c8_93 = arith.constant 8 : index
    %c0_94 = arith.constant 0 : index
    %169 = vector.load %arg16[%c8_93, %c0_94] : memref<32x256xf32, #tpu.memory_space<vmem>>, vector<16x256xf32>
    tpu.vector_store %arg16[%c8_93, %c0_94], %166 {strides = array<i32>} : memref<32x256xf32, #tpu.memory_space<vmem>>, vector<16x256xf32>,
    %cst_95 = arith.constant 0.000000e+00 : f32
    %170 = vector.broadcast %cst_95 : f32 to vector<16x256xf32>
    %c3_96 = arith.constant 3 : index
    %c0_97 = arith.constant 0 : index
    %171 = vector.load %arg16[%c3_96, %c0_97] : memref<32x256xf32, #tpu.memory_space<vmem>>, vector<16x256xf32>
    %c-1_i32_98 = arith.constant -1 : i32
    %172 = vector.broadcast %c-1_i32_98 : i32 to vector<16x1xi32>
    %173 = arith.addi %25, %172 : vector<16x1xi32>
    %c0_i32_99 = arith.constant 0 : i32
    %174 = vector.broadcast %c0_i32_99 : i32 to vector<16x1xi32>
    %175 = arith.cmpi sge, %173, %174 : vector<16x1xi32>
    %c-1_i32_100 = arith.constant -1 : i32
    %176 = vector.broadcast %c-1_i32_100 : i32 to vector<16x1xi32>
    %177 = arith.addi %25, %176 : vector<16x1xi32>
    %c4_i32_101 = arith.constant 4 : i32
    %178 = vector.broadcast %c4_i32_101 : i32 to vector<16x1xi32>
    %179 = arith.cmpi slt, %177, %178 : vector<16x1xi32>
    %180 = arith.andi %175, %179 : vector<16x1xi1>
    %cst_102 = arith.constant 0.000000e+00 : f32
    %181 = vector.shape_cast %180 : vector<16x1xi1> to vector<16x1xi1>
    %182 = vector.broadcast %181 : vector<16x1xi1> to vector<16x256xi1>
    %183 = vector.broadcast %cst_102 : f32 to vector<16x256xf32>
    %184 = arith.select %182, %171, %183 : vector<16x256xi1>, vector<16x256xf32>
    %185 = arith.truncf %184 : vector<16x256xf32> to vector<16x256xbf16>
    %c0_103 = arith.constant 0 : index
    %c0_104 = arith.constant 0 : index
    %c0_105 = arith.constant 0 : index
    %186 = vector.load %arg6[%c0_103, %c0_104, %c0_105] : memref<9x256x256xbf16, #tpu.memory_space<vmem>>, vector<1x256x256xbf16>
    %187 = vector.shape_cast %186 : vector<1x256x256xbf16> to vector<256x256xbf16>
    %cst_106 = arith.constant dense<0.000000e+00> : vector<16x256xf32>
    %188 = tpu.matmul %185, %187, %cst_106 {dimension_numbers = #tpu.dot_dimension_numbers<[1], [0], [0], [1], [0, 0, 1, 1], [], []>} : vector<16x256xbf16>, vector<256x256xbf16>, vector<16x256xf32> -> vector<16x256xf32>
    %189 = arith.addf %170, %188 : vector<16x256xf32>
    %c4_107 = arith.constant 4 : index
    %c0_108 = arith.constant 0 : index
    %190 = vector.load %arg16[%c4_107, %c0_108] : memref<32x256xf32, #tpu.memory_space<vmem>>, vector<16x256xf32>
    %191 = arith.truncf %190 : vector<16x256xf32> to vector<16x256xbf16>
    %c1_109 = arith.constant 1 : index
    %c0_110 = arith.constant 0 : index
    %c0_111 = arith.constant 0 : index
    %192 = vector.load %arg6[%c1_109, %c0_110, %c0_111] : memref<9x256x256xbf16, #tpu.memory_space<vmem>>, vector<1x256x256xbf16>
    %193 = vector.shape_cast %192 : vector<1x256x256xbf16> to vector<256x256xbf16>
    %cst_112 = arith.constant dense<0.000000e+00> : vector<16x256xf32>
    %194 = tpu.matmul %191, %193, %cst_112 {dimension_numbers = #tpu.dot_dimension_numbers<[1], [0], [0], [1], [0, 0, 1, 1], [], []>} : vector<16x256xbf16>, vector<256x256xbf16>, vector<16x256xf32> -> vector<16x256xf32>
    %195 = arith.addf %189, %194 : vector<16x256xf32>
    %c5_113 = arith.constant 5 : index
    %c0_114 = arith.constant 0 : index
    %196 = vector.load %arg16[%c5_113, %c0_114] : memref<32x256xf32, #tpu.memory_space<vmem>>, vector<16x256xf32>
    %c1_i32_115 = arith.constant 1 : i32
    %197 = vector.broadcast %c1_i32_115 : i32 to vector<16x1xi32>
    %198 = arith.addi %25, %197 : vector<16x1xi32>
    %c0_i32_116 = arith.constant 0 : i32
    %199 = vector.broadcast %c0_i32_116 : i32 to vector<16x1xi32>
    %200 = arith.cmpi sge, %198, %199 : vector<16x1xi32>
    %c1_i32_117 = arith.constant 1 : i32
    %201 = vector.broadcast %c1_i32_117 : i32 to vector<16x1xi32>
    %202 = arith.addi %25, %201 : vector<16x1xi32>
    %c4_i32_118 = arith.constant 4 : i32
    %203 = vector.broadcast %c4_i32_118 : i32 to vector<16x1xi32>
    %204 = arith.cmpi slt, %202, %203 : vector<16x1xi32>
    %205 = arith.andi %200, %204 : vector<16x1xi1>
    %cst_119 = arith.constant 0.000000e+00 : f32
    %206 = vector.shape_cast %205 : vector<16x1xi1> to vector<16x1xi1>
    %207 = vector.broadcast %206 : vector<16x1xi1> to vector<16x256xi1>
    %208 = vector.broadcast %cst_119 : f32 to vector<16x256xf32>
    %209 = arith.select %207, %196, %208 : vector<16x256xi1>, vector<16x256xf32>
    %210 = arith.truncf %209 : vector<16x256xf32> to vector<16x256xbf16>
    %c2_120 = arith.constant 2 : index
    %c0_121 = arith.constant 0 : index
    %c0_122 = arith.constant 0 : index
    %211 = vector.load %arg6[%c2_120, %c0_121, %c0_122] : memref<9x256x256xbf16, #tpu.memory_space<vmem>>, vector<1x256x256xbf16>
    %212 = vector.shape_cast %211 : vector<1x256x256xbf16> to vector<256x256xbf16>
    %cst_123 = arith.constant dense<0.000000e+00> : vector<16x256xf32>
    %213 = tpu.matmul %210, %212, %cst_123 {dimension_numbers = #tpu.dot_dimension_numbers<[1], [0], [0], [1], [0, 0, 1, 1], [], []>} : vector<16x256xbf16>, vector<256x256xbf16>, vector<16x256xf32> -> vector<16x256xf32>
    %214 = arith.addf %195, %213 : vector<16x256xf32>
    %c7_124 = arith.constant 7 : index
    %c0_125 = arith.constant 0 : index
    %215 = vector.load %arg16[%c7_124, %c0_125] : memref<32x256xf32, #tpu.memory_space<vmem>>, vector<16x256xf32>
    %c-1_i32_126 = arith.constant -1 : i32
    %216 = vector.broadcast %c-1_i32_126 : i32 to vector<16x1xi32>
    %217 = arith.addi %25, %216 : vector<16x1xi32>
    %c0_i32_127 = arith.constant 0 : i32
    %218 = vector.broadcast %c0_i32_127 : i32 to vector<16x1xi32>
    %219 = arith.cmpi sge, %217, %218 : vector<16x1xi32>
    %c-1_i32_128 = arith.constant -1 : i32
    %220 = vector.broadcast %c-1_i32_128 : i32 to vector<16x1xi32>
    %221 = arith.addi %25, %220 : vector<16x1xi32>
    %c4_i32_129 = arith.constant 4 : i32
    %222 = vector.broadcast %c4_i32_129 : i32 to vector<16x1xi32>
    %223 = arith.cmpi slt, %221, %222 : vector<16x1xi32>
    %224 = arith.andi %219, %223 : vector<16x1xi1>
    %cst_130 = arith.constant 0.000000e+00 : f32
    %225 = vector.shape_cast %224 : vector<16x1xi1> to vector<16x1xi1>
    %226 = vector.broadcast %225 : vector<16x1xi1> to vector<16x256xi1>
    %227 = vector.broadcast %cst_130 : f32 to vector<16x256xf32>
    %228 = arith.select %226, %215, %227 : vector<16x256xi1>, vector<16x256xf32>
    %229 = arith.truncf %228 : vector<16x256xf32> to vector<16x256xbf16>
    %c3_131 = arith.constant 3 : index
    %c0_132 = arith.constant 0 : index
    %c0_133 = arith.constant 0 : index
    %230 = vector.load %arg6[%c3_131, %c0_132, %c0_133] : memref<9x256x256xbf16, #tpu.memory_space<vmem>>, vector<1x256x256xbf16>
    %231 = vector.shape_cast %230 : vector<1x256x256xbf16> to vector<256x256xbf16>
    %cst_134 = arith.constant dense<0.000000e+00> : vector<16x256xf32>
    %232 = tpu.matmul %229, %231, %cst_134 {dimension_numbers = #tpu.dot_dimension_numbers<[1], [0], [0], [1], [0, 0, 1, 1], [], []>} : vector<16x256xbf16>, vector<256x256xbf16>, vector<16x256xf32> -> vector<16x256xf32>
    %233 = arith.addf %214, %232 : vector<16x256xf32>
    %c8_135 = arith.constant 8 : index
    %c0_136 = arith.constant 0 : index
    %234 = vector.load %arg16[%c8_135, %c0_136] : memref<32x256xf32, #tpu.memory_space<vmem>>, vector<16x256xf32>
    %235 = arith.truncf %234 : vector<16x256xf32> to vector<16x256xbf16>
    %c4_137 = arith.constant 4 : index
    %c0_138 = arith.constant 0 : index
    %c0_139 = arith.constant 0 : index
    %236 = vector.load %arg6[%c4_137, %c0_138, %c0_139] : memref<9x256x256xbf16, #tpu.memory_space<vmem>>, vector<1x256x256xbf16>
    %237 = vector.shape_cast %236 : vector<1x256x256xbf16> to vector<256x256xbf16>
    %cst_140 = arith.constant dense<0.000000e+00> : vector<16x256xf32>
    %238 = tpu.matmul %235, %237, %cst_140 {dimension_numbers = #tpu.dot_dimension_numbers<[1], [0], [0], [1], [0, 0, 1, 1], [], []>} : vector<16x256xbf16>, vector<256x256xbf16>, vector<16x256xf32> -> vector<16x256xf32>
    %239 = arith.addf %233, %238 : vector<16x256xf32>
    %c9_141 = arith.constant 9 : index
    %c0_142 = arith.constant 0 : index
    %240 = vector.load %arg16[%c9_141, %c0_142] : memref<32x256xf32, #tpu.memory_space<vmem>>, vector<16x256xf32>
    %c1_i32_143 = arith.constant 1 : i32
    %241 = vector.broadcast %c1_i32_143 : i32 to vector<16x1xi32>
    %242 = arith.addi %25, %241 : vector<16x1xi32>
    %c0_i32_144 = arith.constant 0 : i32
    %243 = vector.broadcast %c0_i32_144 : i32 to vector<16x1xi32>
    %244 = arith.cmpi sge, %242, %243 : vector<16x1xi32>
    %c1_i32_145 = arith.constant 1 : i32
    %245 = vector.broadcast %c1_i32_145 : i32 to vector<16x1xi32>
    %246 = arith.addi %25, %245 : vector<16x1xi32>
    %c4_i32_146 = arith.constant 4 : i32
    %247 = vector.broadcast %c4_i32_146 : i32 to vector<16x1xi32>
    %248 = arith.cmpi slt, %246, %247 : vector<16x1xi32>
    %249 = arith.andi %244, %248 : vector<16x1xi1>
    %cst_147 = arith.constant 0.000000e+00 : f32
    %250 = vector.shape_cast %249 : vector<16x1xi1> to vector<16x1xi1>
    %251 = vector.broadcast %250 : vector<16x1xi1> to vector<16x256xi1>
    %252 = vector.broadcast %cst_147 : f32 to vector<16x256xf32>
    %253 = arith.select %251, %240, %252 : vector<16x256xi1>, vector<16x256xf32>
    %254 = arith.truncf %253 : vector<16x256xf32> to vector<16x256xbf16>
    %c5_148 = arith.constant 5 : index
    %c0_149 = arith.constant 0 : index
    %c0_150 = arith.constant 0 : index
    %255 = vector.load %arg6[%c5_148, %c0_149, %c0_150] : memref<9x256x256xbf16, #tpu.memory_space<vmem>>, vector<1x256x256xbf16>
    %256 = vector.shape_cast %255 : vector<1x256x256xbf16> to vector<256x256xbf16>
    %cst_151 = arith.constant dense<0.000000e+00> : vector<16x256xf32>
    %257 = tpu.matmul %254, %256, %cst_151 {dimension_numbers = #tpu.dot_dimension_numbers<[1], [0], [0], [1], [0, 0, 1, 1], [], []>} : vector<16x256xbf16>, vector<256x256xbf16>, vector<16x256xf32> -> vector<16x256xf32>
    %258 = arith.addf %239, %257 : vector<16x256xf32>
    %c11_152 = arith.constant 11 : index
    %c0_153 = arith.constant 0 : index
    %259 = vector.load %arg16[%c11_152, %c0_153] : memref<32x256xf32, #tpu.memory_space<vmem>>, vector<16x256xf32>
    %c-1_i32_154 = arith.constant -1 : i32
    %260 = vector.broadcast %c-1_i32_154 : i32 to vector<16x1xi32>
    %261 = arith.addi %25, %260 : vector<16x1xi32>
    %c0_i32_155 = arith.constant 0 : i32
    %262 = vector.broadcast %c0_i32_155 : i32 to vector<16x1xi32>
    %263 = arith.cmpi sge, %261, %262 : vector<16x1xi32>
    %c-1_i32_156 = arith.constant -1 : i32
    %264 = vector.broadcast %c-1_i32_156 : i32 to vector<16x1xi32>
    %265 = arith.addi %25, %264 : vector<16x1xi32>
    %c4_i32_157 = arith.constant 4 : i32
    %266 = vector.broadcast %c4_i32_157 : i32 to vector<16x1xi32>
    %267 = arith.cmpi slt, %265, %266 : vector<16x1xi32>
    %268 = arith.andi %263, %267 : vector<16x1xi1>
    %cst_158 = arith.constant 0.000000e+00 : f32
    %269 = vector.shape_cast %268 : vector<16x1xi1> to vector<16x1xi1>
    %270 = vector.broadcast %269 : vector<16x1xi1> to vector<16x256xi1>
    %271 = vector.broadcast %cst_158 : f32 to vector<16x256xf32>
    %272 = arith.select %270, %259, %271 : vector<16x256xi1>, vector<16x256xf32>
    %273 = arith.truncf %272 : vector<16x256xf32> to vector<16x256xbf16>
    %c6_159 = arith.constant 6 : index
    %c0_160 = arith.constant 0 : index
    %c0_161 = arith.constant 0 : index
    %274 = vector.load %arg6[%c6_159, %c0_160, %c0_161] : memref<9x256x256xbf16, #tpu.memory_space<vmem>>, vector<1x256x256xbf16>
    %275 = vector.shape_cast %274 : vector<1x256x256xbf16> to vector<256x256xbf16>
    %cst_162 = arith.constant dense<0.000000e+00> : vector<16x256xf32>
    %276 = tpu.matmul %273, %275, %cst_162 {dimension_numbers = #tpu.dot_dimension_numbers<[1], [0], [0], [1], [0, 0, 1, 1], [], []>} : vector<16x256xbf16>, vector<256x256xbf16>, vector<16x256xf32> -> vector<16x256xf32>
    %277 = arith.addf %258, %276 : vector<16x256xf32>
    %c12_163 = arith.constant 12 : index
    %c0_164 = arith.constant 0 : index
    %278 = vector.load %arg16[%c12_163, %c0_164] : memref<32x256xf32, #tpu.memory_space<vmem>>, vector<16x256xf32>
    %279 = arith.truncf %278 : vector<16x256xf32> to vector<16x256xbf16>
    %c7_165 = arith.constant 7 : index
    %c0_166 = arith.constant 0 : index
    %c0_167 = arith.constant 0 : index
    %280 = vector.load %arg6[%c7_165, %c0_166, %c0_167] : memref<9x256x256xbf16, #tpu.memory_space<vmem>>, vector<1x256x256xbf16>
    %281 = vector.shape_cast %280 : vector<1x256x256xbf16> to vector<256x256xbf16>
    %cst_168 = arith.constant dense<0.000000e+00> : vector<16x256xf32>
    %282 = tpu.matmul %279, %281, %cst_168 {dimension_numbers = #tpu.dot_dimension_numbers<[1], [0], [0], [1], [0, 0, 1, 1], [], []>} : vector<16x256xbf16>, vector<256x256xbf16>, vector<16x256xf32> -> vector<16x256xf32>
    %283 = arith.addf %277, %282 : vector<16x256xf32>
    %c13_169 = arith.constant 13 : index
    %c0_170 = arith.constant 0 : index
    %284 = vector.load %arg16[%c13_169, %c0_170] : memref<32x256xf32, #tpu.memory_space<vmem>>, vector<16x256xf32>
    %c1_i32_171 = arith.constant 1 : i32
    %285 = vector.broadcast %c1_i32_171 : i32 to vector<16x1xi32>
    %286 = arith.addi %25, %285 : vector<16x1xi32>
    %c0_i32_172 = arith.constant 0 : i32
    %287 = vector.broadcast %c0_i32_172 : i32 to vector<16x1xi32>
    %288 = arith.cmpi sge, %286, %287 : vector<16x1xi32>
    %c1_i32_173 = arith.constant 1 : i32
    %289 = vector.broadcast %c1_i32_173 : i32 to vector<16x1xi32>
    %290 = arith.addi %25, %289 : vector<16x1xi32>
    %c4_i32_174 = arith.constant 4 : i32
    %291 = vector.broadcast %c4_i32_174 : i32 to vector<16x1xi32>
    %292 = arith.cmpi slt, %290, %291 : vector<16x1xi32>
    %293 = arith.andi %288, %292 : vector<16x1xi1>
    %cst_175 = arith.constant 0.000000e+00 : f32
    %294 = vector.shape_cast %293 : vector<16x1xi1> to vector<16x1xi1>
    %295 = vector.broadcast %294 : vector<16x1xi1> to vector<16x256xi1>
    %296 = vector.broadcast %cst_175 : f32 to vector<16x256xf32>
    %297 = arith.select %295, %284, %296 : vector<16x256xi1>, vector<16x256xf32>
    %298 = arith.truncf %297 : vector<16x256xf32> to vector<16x256xbf16>
    %c8_176 = arith.constant 8 : index
    %c0_177 = arith.constant 0 : index
    %c0_178 = arith.constant 0 : index
    %299 = vector.load %arg6[%c8_176, %c0_177, %c0_178] : memref<9x256x256xbf16, #tpu.memory_space<vmem>>, vector<1x256x256xbf16>
    %300 = vector.shape_cast %299 : vector<1x256x256xbf16> to vector<256x256xbf16>
    %cst_179 = arith.constant dense<0.000000e+00> : vector<16x256xf32>
    %301 = tpu.matmul %298, %300, %cst_179 {dimension_numbers = #tpu.dot_dimension_numbers<[1], [0], [0], [1], [0, 0, 1, 1], [], []>} : vector<16x256xbf16>, vector<256x256xbf16>, vector<16x256xf32> -> vector<16x256xf32>
    %302 = arith.addf %283, %301 : vector<16x256xf32>
    %c0_180 = arith.constant 0 : index
    %c0_181 = arith.constant 0 : index
    %303 = vector.load %arg7[%c0_180, %c0_181] : memref<1x256xf32, #tpu.memory_space<vmem>>, vector<1x256xf32>
    %304 = vector.broadcast %303 : vector<1x256xf32> to vector<16x256xf32>
    %305 = arith.addf %302, %304 : vector<16x256xf32>
    %cst_182 = arith.constant 0.000000e+00 : f32
    %306 = vector.broadcast %cst_182 : f32 to vector<16x256xf32>
    %307 = arith.maximumf %305, %306 : vector<16x256xf32>
    %308 = arith.truncf %307 : vector<16x256xf32> to vector<16x256xbf16>
    %c0_183 = arith.constant 0 : index
    %c0_184 = arith.constant 0 : index
    %309 = vector.load %arg8[%c0_183, %c0_184] : memref<256x16xbf16, #tpu.memory_space<vmem>>, vector<256x16xbf16>
    %cst_185 = arith.constant dense<0.000000e+00> : vector<16x16xf32>
    %310 = tpu.matmul %308, %309, %cst_185 {dimension_numbers = #tpu.dot_dimension_numbers<[1], [0], [0], [1], [0, 0, 1, 1], [], []>} : vector<16x256xbf16>, vector<256x16xbf16>, vector<16x16xf32> -> vector<16x16xf32>
    %c0_186 = arith.constant 0 : index
    %c0_187 = arith.constant 0 : index
    %311 = vector.load %arg9[%c0_186, %c0_187] : memref<1x16xf32, #tpu.memory_space<vmem>>, vector<1x16xf32>
    %312 = vector.broadcast %311 : vector<1x16xf32> to vector<16x16xf32>
    %313 = arith.addf %310, %312 : vector<16x16xf32>
    %c0_188 = arith.constant 0 : index
    %c0_189 = arith.constant 0 : index
    %c0_190 = arith.constant 0 : index
    %314 = vector.load %arg12[%c0_188, %c0_189, %c0_190] : memref<1x16x16xf32, #tpu.memory_space<vmem>>, vector<1x16x16xf32>
    %315 = vector.shape_cast %314 : vector<1x16x16xf32> to vector<16x16xf32>
    %316 = vector.shape_cast %313 : vector<16x16xf32> to vector<1x16x16xf32>
    tpu.vector_store %arg12[%c0_188, %c0_189, %c0_190], %316 {strides = array<i32>} : memref<1x16x16xf32, #tpu.memory_space<vmem>>, vector<1x16x16xf32>,
    %cst_191 = arith.constant dense<0xFF800000> : vector<16xf32>
    %317 = vector.multi_reduction <maximumf>, %313, %cst_191 [0] : vector<16x16xf32> to vector<16xf32>
    %318 = vector.shape_cast %317 : vector<16xf32> to vector<1x16xf32>
    %319 = vector.broadcast %318 : vector<1x16xf32> to vector<16x16xf32>
    %320 = arith.subf %313, %319 : vector<16x16xf32>
    %321 = math.exp %320 : vector<16x16xf32>
    %cst_192 = arith.constant dense<0.000000e+00> : vector<16xf32>
    %322 = vector.multi_reduction <add>, %321, %cst_192 [0] : vector<16x16xf32> to vector<16xf32>
    %323 = vector.shape_cast %322 : vector<16xf32> to vector<1x16xf32>
    %324 = tpu.reciprocal %323 {approx = true} : vector<1x16xf32> -> vector<1x16xf32>
    %325 = arith.mulf %323, %324 : vector<1x16xf32>
    %cst_193 = arith.constant 2.000000e+00 : f32
    %326 = vector.broadcast %cst_193 : f32 to vector<1x16xf32>
    %327 = arith.subf %326, %325 : vector<1x16xf32>
    %328 = arith.mulf %324, %327 : vector<1x16xf32>
    %c0_194 = arith.constant 0 : index
    %c0_195 = arith.constant 0 : index
    %329 = vector.load %arg10[%c0_194, %c0_195] : memref<16x1xf32, #tpu.memory_space<vmem>>, vector<16x1xf32>
    %330 = vector.broadcast %329 : vector<16x1xf32> to vector<16x16xf32>
    %331 = arith.mulf %321, %330 : vector<16x16xf32>
    %cst_196 = arith.constant dense<0.000000e+00> : vector<16xf32>
    %332 = vector.multi_reduction <add>, %331, %cst_196 [0] : vector<16x16xf32> to vector<16xf32>
    %333 = vector.shape_cast %332 : vector<16xf32> to vector<1x16xf32>
    %334 = arith.mulf %333, %328 : vector<1x16xf32>
    %c0_197 = arith.constant 0 : index
    %c0_198 = arith.constant 0 : index
    %c0_199 = arith.constant 0 : index
    %335 = vector.load %arg13[%c0_197, %c0_198, %c0_199] : memref<1x1x16xf32, #tpu.memory_space<vmem>>, vector<1x1x16xf32>
    %336 = vector.shape_cast %335 : vector<1x1x16xf32> to vector<1x16xf32>
    %337 = vector.shape_cast %334 : vector<1x16xf32> to vector<1x1x16xf32>
    tpu.vector_store %arg13[%c0_197, %c0_198, %c0_199], %337 {strides = array<i32>} : memref<1x1x16xf32, #tpu.memory_space<vmem>>, vector<1x1x16xf32>,
    %c0_200 = arith.constant 0 : index
    %c0_201 = arith.constant 0 : index
    %338 = vector.load %arg11[%c0_200, %c0_201] : memref<16x1xf32, #tpu.memory_space<vmem>>, vector<16x1xf32>
    %339 = vector.broadcast %338 : vector<16x1xf32> to vector<16x16xf32>
    %340 = arith.mulf %321, %339 : vector<16x16xf32>
    %cst_202 = arith.constant dense<0.000000e+00> : vector<16xf32>
    %341 = vector.multi_reduction <add>, %340, %cst_202 [0] : vector<16x16xf32> to vector<16xf32>
    %342 = vector.shape_cast %341 : vector<16xf32> to vector<1x16xf32>
    %343 = arith.mulf %342, %328 : vector<1x16xf32>
    %c0_203 = arith.constant 0 : index
    %c0_204 = arith.constant 0 : index
    %c0_205 = arith.constant 0 : index
    %344 = vector.load %arg14[%c0_203, %c0_204, %c0_205] : memref<1x1x16xf32, #tpu.memory_space<vmem>>, vector<1x1x16xf32>
    %345 = vector.shape_cast %344 : vector<1x1x16xf32> to vector<1x16xf32>
    %346 = vector.shape_cast %343 : vector<1x16xf32> to vector<1x1x16xf32>
    tpu.vector_store %arg14[%c0_203, %c0_204, %c0_205], %346 {strides = array<i32>} : memref<1x1x16xf32, #tpu.memory_space<vmem>>, vector<1x1x16xf32>,
    return
  }
  func.func @transform_0(%arg0: i32) -> (i32, i32, i32) {
    %c0_i32 = arith.constant 0 : i32
    %c0_i32_0 = arith.constant 0 : i32
    %c0_i32_1 = arith.constant 0 : i32
    return %arg0, %c0_i32, %c0_i32_0 : i32, i32, i32
  }
  func.func @transform_1(%arg0: i32) -> (i32, i32) {
    %c0_i32 = arith.constant 0 : i32
    %c0_i32_0 = arith.constant 0 : i32
    %c0_i32_1 = arith.constant 0 : i32
    return %c0_i32, %c0_i32_0 : i32, i32
  }
  func.func @transform_2(%arg0: i32) -> (i32, i32) {
    %c0_i32 = arith.constant 0 : i32
    %c0_i32_0 = arith.constant 0 : i32
    %c0_i32_1 = arith.constant 0 : i32
    return %c0_i32, %c0_i32_0 : i32, i32
  }
  func.func @transform_3(%arg0: i32) -> (i32, i32, i32) {
    %c0_i32 = arith.constant 0 : i32
    %c0_i32_0 = arith.constant 0 : i32
    %c0_i32_1 = arith.constant 0 : i32
    %c0_i32_2 = arith.constant 0 : i32
    return %c0_i32, %c0_i32_0, %c0_i32_1 : i32, i32, i32
  }
  func.func @transform_4(%arg0: i32) -> (i32, i32) {
    %c0_i32 = arith.constant 0 : i32
    %c0_i32_0 = arith.constant 0 : i32
    %c0_i32_1 = arith.constant 0 : i32
    return %c0_i32, %c0_i32_0 : i32, i32
  }
  func.func @transform_5(%arg0: i32) -> (i32, i32, i32) {
    %c0_i32 = arith.constant 0 : i32
    %c0_i32_0 = arith.constant 0 : i32
    %c0_i32_1 = arith.constant 0 : i32
    %c0_i32_2 = arith.constant 0 : i32
    return %c0_i32, %c0_i32_0, %c0_i32_1 : i32, i32, i32
  }
  func.func @transform_6(%arg0: i32) -> (i32, i32) {
    %c0_i32 = arith.constant 0 : i32
    %c0_i32_0 = arith.constant 0 : i32
    %c0_i32_1 = arith.constant 0 : i32
    return %c0_i32, %c0_i32_0 : i32, i32
  }
  func.func @transform_7(%arg0: i32) -> (i32, i32) {
    %c0_i32 = arith.constant 0 : i32
    %c0_i32_0 = arith.constant 0 : i32
    %c0_i32_1 = arith.constant 0 : i32
    return %c0_i32, %c0_i32_0 : i32, i32
  }
  func.func @transform_8(%arg0: i32) -> (i32, i32) {
    %c0_i32 = arith.constant 0 : i32
    %c0_i32_0 = arith.constant 0 : i32
    %c0_i32_1 = arith.constant 0 : i32
    return %c0_i32, %c0_i32_0 : i32, i32
  }
  func.func @transform_9(%arg0: i32) -> (i32, i32) {
    %c0_i32 = arith.constant 0 : i32
    %c0_i32_0 = arith.constant 0 : i32
    %c0_i32_1 = arith.constant 0 : i32
    return %c0_i32, %c0_i32_0 : i32, i32
  }
  func.func @transform_10(%arg0: i32) -> (i32, i32) {
    %c0_i32 = arith.constant 0 : i32
    %c0_i32_0 = arith.constant 0 : i32
    %c0_i32_1 = arith.constant 0 : i32
    return %c0_i32, %c0_i32_0 : i32, i32
  }
  func.func @transform_11(%arg0: i32) -> (i32, i32, i32) {
    %c0_i32 = arith.constant 0 : i32
    %c0_i32_0 = arith.constant 0 : i32
    %c0_i32_1 = arith.constant 0 : i32
    return %arg0, %c0_i32, %c0_i32_0 : i32, i32, i32
  }
  func.func @transform_12(%arg0: i32) -> (i32, i32, i32) {
    %c0_i32 = arith.constant 0 : i32
    %c0_i32_0 = arith.constant 0 : i32
    %c0_i32_1 = arith.constant 0 : i32
    return %arg0, %c0_i32, %c0_i32_0 : i32, i32, i32
  }
  func.func @transform_13(%arg0: i32) -> (i32, i32, i32) {
    %c0_i32 = arith.constant 0 : i32
    %c0_i32_0 = arith.constant 0 : i32
    %c0_i32_1 = arith.constant 0 : i32
    return %arg0, %c0_i32, %c0_i32_0 : i32, i32, i32
  }
}

</mosaic_0001>

<bundles_post_ra>
// kernel: tpu_custom_call.1
= control target key start
LH: loop header
LB: loop body
LE: loop exit
PB: predicated region body
PF: predicated region fallthrough
CT: control target
= control target key end

     0   :  { %s18914_s0 = inlined_call_operand.hbm [shape: bf16[2,16,16], index: 0, kind: input, shape index: {}]   ;;  %s18915_s1 = inlined_call_operand.hbm [shape: bf16[16,1024], index: 1, kind: input, shape index: {}]   ;;  %s18916_s2 = inlined_call_operand.hbm [shape: f32[1,1024], index: 2, kind: input, shape index: {}]   ;;  %s18917_s3 = inlined_call_operand.hbm [shape: bf16[9,1024,256], index: 3, kind: input, shape index: {}]   ;;  %s18918_s4 = inlined_call_operand.hbm [shape: f32[1,256], index: 4, kind: input, shape index: {}]   ;;  %s18919_s5 = inlined_call_operand.hbm [shape: bf16[9,256,256], index: 5, kind: input, shape index: {}]   ;;  %s18920_s6 = inlined_call_operand.hbm [shape: f32[1,256], index: 6, kind: input, shape index: {}]   ;;  %s18921_s7 = inlined_call_operand.vmem [shape: bf16[256,16], index: 7, kind: input, shape index: {}]   ;;  %s18922_s8 = inlined_call_operand.hbm [shape: f32[1,16], index: 8, kind: input, shape index: {}]   ;;  %s18923_s9 = inlined_call_operand.vmem [shape: f32[16,1], index: 9, kind: input, shape index: {}]   ;;  %s18924_s10 = inlined_call_operand.vmem [shape: f32[16,1], index: 10, kind: input, shape index: {}]   ;;  %s18925_s11 = inlined_call_operand.hbm [shape: f32[2,16,16], index: 11, kind: output, shape index: {0}]   ;;  %s18926_s12 = inlined_call_operand.hbm [shape: f32[2,1,16], index: 12, kind: output, shape index: {1}]   ;;  %s18927_s13 = inlined_call_operand.hbm [shape: f32[2,1,16], index: 13, kind: output, shape index: {2}]  }
   0x1   :  { %18938 = sst [smem:[#allocation29_spill]] %s18914_s0 }
   0x2   :  { %18939 = sst [smem:[#allocation30_spill]] %s18915_s1 }
   0x3   :  { %18940 = sst [smem:[#allocation31_spill]] %s18916_s2 }
   0x4   :  { %18941 = sst [smem:[#allocation32_spill]] %s18917_s3 }
   0x5   :  { %18942 = sst [smem:[#allocation33_spill]] %s18923_s9 }
   0x6   :  { %18943 = sst [smem:[#allocation34_spill]] %s18924_s10 }
   0x7   :  { %18944 = sst [smem:[#allocation35_spill]] %s18925_s11 }
   0x8   :  { %18945 = sst [smem:[#allocation36_spill]] %s18926_s12 }
   0x9   :  { %18946 = sst [smem:[#allocation37_spill]] %s18927_s13 }
   0xa   :  { %19 = vsyncpa [#allocation5], 0 }
   0xb   :  { %21 = vsyncpa [#allocation5 + $0x1], 0 }
   0xc   :  { %22 = vsyncpa [#allocation8], 0 }
   0xd   :  { %23 = vsyncpa [#allocation11], 0 }
   0xe   :  { %24 = vsyncpa [#allocation14], 0 }
   0xf   :  { %25 = vsyncpa [#allocation17], 0 }
  0x10   :  { %26 = vsyncpa [#allocation6], 0 }
  0x11   :  { %28 = vsyncpa [#allocation6 + $0x1], 0 }
  0x12   :  { %29 = vsyncpa [#allocation20], 0 }
  0x13   :  { %31 = vsyncpa [#allocation20 + $0x1], 0  ;;  %s17956_s25 = smov 0   ;;  %s17958_s26 = smov 0  }
  0x14   :  { %s17960_s27 = smov 0   ;;  %s17962_s28 = smov 0  }
  0x15 LB: > { %s17865_s29 = smov [#allocation7]   ;;  %s17977_s14 = sadd.s32 4294967295, %s17863_s28   ;;  %s17863_s28 = sphi %s17962_s28, %s18985_s28   ;;  %s17859_s27 = sphi %s17960_s27, %s18984_s27   ;;  %s17855_s26 = sphi %s17958_s26, %s18983_s26   ;;  %s17851_s25 = sphi %s17956_s25, %s18982_s25  }
  0x16   : > { %s368_s30 = sshll.u32 %s17865_s29, 4  ;;  %p13263_p0 = scmp.ge.s32.totalorder %s17863_s28, 1  ;;  %s17982_s30 = int_to_ptr.vmem [resolvable:$true] %s368_s30 }
  0x17   : > { %p18933_p1 = scmp.eq.s32.totalorder %s17977_s14, 0  ;;  %p356_p2 = scmp.lt.s32.totalorder %s17863_s28, 3 }
  0x18   : > { %s17866_s16 = smov [#allocation10]   ;;  %s17867_s19 = smov [#allocation13]  }
  0x19   : > { %p17984_p3 = pnand %p13263_p0, %p356_p2  ;;  %s392_s17 = sshll.u32 %s17866_s16, 4  ;;  %s17997_s17 = int_to_ptr.vmem [resolvable:$true] %s392_s17 }
  0x1a   : > { %s17999_s20 = sshll.u32 %s17867_s19, 4  ;;  %s18949_s1 = sld [smem:[#allocation30_spill]]  ;;  %s417_s20 = int_to_ptr.vmem [resolvable:$true] %s17999_s20 }
  0x1b   : > { %s18947_s15 = scalar_select %p17984_p3, 1, 0 }
  0x1c   : > { %p15174_p5 = pneg %p17984_p3 }
  0x1e   : > { %p17993_p6 = pnand %p15174_p5, %p18933_p1 }
  0x20   : > { %s17495_s23 = scalar_lea.hbm %s18949_s1, 1024  ;;  %p18009_p8 = pneg %p17993_p6 }
  0x21   : > { %p17496_p7 = scmp.ne.s32.totalorder %s18949_s1, %s17495_s23  ;;  %p17502_p11 = scmp.lt.u32.totalorder %s17495_s23, %s18949_s1 }
  0x23   : > { %p17498_p9 = pnand %p18009_p8, %p17496_p7 }
  0x25   : > { %p17499_p10 = pneg %p17498_p9 }
  0x27   : > { %p17504_p12 = pnand %p17502_p11, %p17499_p10 }
  0x29   : > { %17507 = shalt.err (!%p17504_p12)
}
  0x2a   : > { %s17508_s21 = scalar_lea.vmem %s17982_s30, 1024  ;;  %p17516_p5 = scmp.lt.s32.totalorder %s17982_s30, %s17982_s30 }
  0x2b   : > { %p17509_p13 = scmp.ne.s32.totalorder %s17982_s30, %s17508_s21  ;;  %p17517_p4 = scmp.lt.s32.totalorder %s17508_s21, %s17508_s21 }
  0x2d   : > { %p17511_p0 = pnand %p17509_p13, %p18009_p8  ;;  %p17518_p7 = por %p17517_p4, %p17516_p5 }
  0x2f   : > { %p17512_p2 = pneg %p17511_p0 }
  0x31   : > { %p17519_p9 = pnand %p17518_p7, %p17512_p2 }
  0x33   : > { %17522 = shalt.err (!%p17519_p9)
}
  0x34   : > { %s17868_s22 = smov 512   ;;  %s17869_s13 = smov 32  }
  0x35   : > { %15177 = dma.hbm_to_vmem [thread:$0]  (!%p17993_p6), %s18949_s1, 1024, %s17982_s30, [#allocation8], %s17868_s22, %s17868_s22, %s17869_s13  }
  0x36   : > { %s18951_s3 = sld [smem:[#allocation32_spill]] }
  0x3c   : > { %s17523_s12 = scalar_lea.hbm %s18951_s3, 147456 }
  0x3d   : > { %p17524_p4 = scmp.ne.s32.totalorder %s18951_s3, %s17523_s12  ;;  %p17530_p12 = scmp.lt.u32.totalorder %s17523_s12, %s18951_s3 }
  0x3f   : > { %p17526_p10 = pnand %p17524_p4, %p18009_p8 }
  0x41   : > { %p17527_p11 = pneg %p17526_p10 }
  0x43   : > { %p17532_p13 = pnand %p17530_p12, %p17527_p11 }
  0x45   : > { %17535 = shalt.err (!%p17532_p13)
}
  0x46   : > { %s17536_s30 = scalar_lea.vmem %s17997_s17, 147456  ;;  %p17544_p7 = scmp.lt.s32.totalorder %s17997_s17, %s17997_s17 }
  0x47   : > { %p17537_p0 = scmp.ne.s32.totalorder %s17997_s17, %s17536_s30  ;;  %p17545_p9 = scmp.lt.s32.totalorder %s17536_s30, %s17536_s30 }
  0x49   : > { %p17539_p2 = pnand %p17537_p0, %p18009_p8  ;;  %p17546_p4 = por %p17545_p9, %p17544_p7 }
  0x4b   : > { %p17540_p5 = pneg %p17539_p2 }
  0x4d   : > { %p17547_p10 = pnand %p17546_p4, %p17540_p5 }
  0x4f   : > { %17550 = shalt.err (!%p17547_p10)
}
  0x50   : > { %s17870_s9 = smov 128   ;;  %s17871_s10 = smov 8  }
  0x51   : > { %15183 = dma.hbm_to_vmem [thread:$0]  (!%p17993_p6), %s18951_s3, 147456, %s17997_s17, [#allocation11], %s17870_s9, %s17870_s9, %s17871_s10  }
  0x52   : > { %s17551_s23 = scalar_lea.hbm %s18919_s5, 36864 }
  0x53   : > { %p17552_p11 = scmp.ne.s32.totalorder %s18919_s5, %s17551_s23  ;;  %p17558_p0 = scmp.lt.u32.totalorder %s17551_s23, %s18919_s5 }
  0x55   : > { %p17554_p12 = pnand %p17552_p11, %p18009_p8 }
  0x57   : > { %p17555_p13 = pneg %p17554_p12 }
  0x59   : > { %p17560_p2 = pnand %p17558_p0, %p17555_p13 }
  0x5b   : > { %17563 = shalt.err (!%p17560_p2)
}
  0x5c   : > { %s17564_s30 = scalar_lea.vmem %s417_s20, 36864  ;;  %p17572_p4 = scmp.lt.s32.totalorder %s417_s20, %s417_s20 }
  0x5d   : > { %p17565_p5 = scmp.ne.s32.totalorder %s417_s20, %s17564_s30  ;;  %p17573_p10 = scmp.lt.s32.totalorder %s17564_s30, %s17564_s30 }
  0x5f   : > { %p17567_p7 = pnand %p17565_p5, %p18009_p8  ;;  %p17574_p1 = por %p17573_p10, %p17572_p4 }
  0x61   : > { %p17568_p9 = pneg %p17567_p7 }
  0x63   : > { %p17575_p3 = pnand %p17574_p1, %p17568_p9 }
  0x65   : > { %17578 = shalt.err (!%p17575_p3)
}
  0x66   : > { %15189 = dma.hbm_to_vmem [thread:$0]  (!%p17993_p6), %s18919_s5, 36864, %s417_s20, [#allocation14], %s17870_s9, %s17870_s9, %s17871_s10  }
  0x67   : > { %s17872_s12 = smov [#allocation9]   ;;  %s17873_s13 = smov [#allocation12]  }
  0x68   : > { %s382_s22 = sshll.u32 %s17872_s12, 4  ;;  %s406_s23 = sshll.u32 %s17873_s13, 4  ;;  %s383_s22 = int_to_ptr.vmem [resolvable:$true] %s382_s22  ;;  %s407_s23 = int_to_ptr.vmem [resolvable:$true] %s406_s23 }
  0x69   : > { %s18952_s2 = sld [smem:[#allocation31_spill]] }
  0x6f   : > { %s17579_s19 = scalar_lea.hbm %s18952_s2, 128 }
  0x70   : > { %p17580_p1 = scmp.ne.s32.totalorder %s18952_s2, %s17579_s19  ;;  %p17586_p12 = scmp.lt.u32.totalorder %s17579_s19, %s18952_s2 }
  0x72   : > { %p17582_p3 = pnand %p17580_p1, %p18009_p8 }
  0x74   : > { %p17583_p11 = pneg %p17582_p3 }
  0x76   : > { %p17588_p13 = pnand %p17586_p12, %p17583_p11 }
  0x78   : > { %17591 = shalt.err (!%p17588_p13)
}
  0x79   : > { %s17592_s20 = scalar_lea.vmem %s383_s22, 128  ;;  %p17600_p7 = scmp.lt.s32.totalorder %s383_s22, %s383_s22 }
  0x7a   : > { %p17593_p0 = scmp.ne.s32.totalorder %s383_s22, %s17592_s20  ;;  %p17601_p9 = scmp.lt.s32.totalorder %s17592_s20, %s17592_s20 }
  0x7c   : > { %p17595_p2 = pnand %p17593_p0, %p18009_p8  ;;  %p17602_p4 = por %p17601_p9, %p17600_p7 }
  0x7e   : > { %p17596_p5 = pneg %p17595_p2 }
  0x80   : > { %p17603_p10 = pnand %p17602_p4, %p17596_p5 }
  0x82   : > { %17606 = shalt.err (!%p17603_p10)
}
  0x83   : > { %15180 = dma.hbm_to_vmem [thread:$0]  (!%p17993_p6), %s18952_s2, 128, %s383_s22, [#allocation8]  }
  0x84   : > { %s17607_s12 = scalar_lea.hbm %s18918_s4, 32 }
  0x85   : > { %p17608_p1 = scmp.ne.s32.totalorder %s18918_s4, %s17607_s12  ;;  %p17614_p12 = scmp.lt.u32.totalorder %s17607_s12, %s18918_s4 }
  0x87   : > { %p17610_p3 = pnand %p17608_p1, %p18009_p8 }
  0x89   : > { %p17611_p11 = pneg %p17610_p3 }
  0x8b   : > { %p17616_p13 = pnand %p17614_p12, %p17611_p11 }
  0x8d   : > { %17619 = shalt.err (!%p17616_p13)
}
  0x8e   : > { %s17620_s21 = scalar_lea.vmem %s407_s23, 32  ;;  %p17628_p7 = scmp.lt.s32.totalorder %s407_s23, %s407_s23 }
  0x8f   : > { %p17621_p0 = scmp.ne.s32.totalorder %s407_s23, %s17620_s21  ;;  %p17629_p9 = scmp.lt.s32.totalorder %s17620_s21, %s17620_s21 }
  0x91   : > { %p17623_p2 = pnand %p17621_p0, %p18009_p8  ;;  %p17630_p4 = por %p17629_p9, %p17628_p7 }
  0x93   : > { %p17624_p5 = pneg %p17623_p2 }
  0x95   : > { %p17631_p10 = pnand %p17630_p4, %p17624_p5 }
  0x97   : > { %17634 = shalt.err (!%p17631_p10)
}
  0x98   : > { %15186 = dma.hbm_to_vmem [thread:$0]  (!%p17993_p6), %s18918_s4, 32, %s407_s23, [#allocation11]  }
  0x99   : > { %s17874_s17 = smov [#allocation15]   ;;  %s17875_s9 = smov [#allocation16]  }
  0x9a   : > { %s430_s20 = sshll.u32 %s17874_s17, 4  ;;  %s444_s10 = sshll.u32 %s17875_s9, 4  ;;  %s431_s20 = int_to_ptr.vmem [resolvable:$true] %s430_s20  ;;  %s445_s10 = int_to_ptr.vmem [resolvable:$true] %s444_s10 }
  0x9b   : > { %s17635_s12 = scalar_lea.hbm %s18920_s6, 32 }
  0x9c   : > { %p17636_p1 = scmp.ne.s32.totalorder %s18920_s6, %s17635_s12  ;;  %p17642_p12 = scmp.lt.u32.totalorder %s17635_s12, %s18920_s6 }
  0x9e   : > { %p17638_p3 = pnand %p17636_p1, %p18009_p8 }
  0xa0   : > { %p17639_p11 = pneg %p17638_p3 }
  0xa2   : > { %p17644_p13 = pnand %p17642_p12, %p17639_p11 }
  0xa4   : > { %17647 = shalt.err (!%p17644_p13)
}
  0xa5   : > { %s17648_s23 = scalar_lea.vmem %s431_s20, 32  ;;  %p17656_p7 = scmp.lt.s32.totalorder %s431_s20, %s431_s20 }
  0xa6   : > { %p17649_p0 = scmp.ne.s32.totalorder %s431_s20, %s17648_s23  ;;  %p17657_p9 = scmp.lt.s32.totalorder %s17648_s23, %s17648_s23 }
  0xa8   : > { %p17651_p2 = pnand %p17649_p0, %p18009_p8  ;;  %p17658_p4 = por %p17657_p9, %p17656_p7 }
  0xaa   : > { %p17652_p5 = pneg %p17651_p2 }
  0xac   : > { %p17659_p10 = pnand %p17658_p4, %p17652_p5 }
  0xae   : > { %17662 = shalt.err (!%p17659_p10)
}
  0xaf   : > { %15192 = dma.hbm_to_vmem [thread:$0]  (!%p17993_p6), %s18920_s6, 32, %s431_s20, [#allocation14]  }
  0xb0   : > { %s17663_s9 = scalar_lea.hbm %s18922_s8, 16 }
  0xb1   : > { %p17664_p1 = scmp.ne.s32.totalorder %s18922_s8, %s17663_s9  ;;  %p17670_p12 = scmp.lt.u32.totalorder %s17663_s9, %s18922_s8 }
  0xb3   : > { %p17666_p3 = pnand %p17664_p1, %p18009_p8 }
  0xb5   : > { %p17667_p11 = pneg %p17666_p3 }
  0xb7   : > { %p17672_p13 = pnand %p17670_p12, %p17667_p11 }
  0xb9   : > { %17675 = shalt.err (!%p17672_p13)
}
  0xba   : > { %s17676_s24 = scalar_lea.vmem %s445_s10, 16  ;;  %s17683_s20 = scalar_lea.vmem %s445_s10, 32 }
  0xbb   : > { %p17677_p0 = scmp.ne.s32.totalorder %s445_s10, %s17676_s24  ;;  %p17684_p7 = scmp.lt.s32.totalorder %s445_s10, %s445_s10 }
  0xbc   : > { %p17685_p9 = scmp.lt.s32.totalorder %s17683_s20, %s17676_s24 }
  0xbd   : > { %p17679_p2 = pnand %p17677_p0, %p18009_p8 }
  0xbe   : > { %p17686_p4 = por %p17685_p9, %p17684_p7 }
  0xbf   : > { %p17680_p5 = pneg %p17679_p2 }
  0xc1   : > { %p17687_p10 = pnand %p17686_p4, %p17680_p5 }
  0xc3   : > { %17690 = shalt.err (!%p17687_p10)
}
  0xc4   : > { %15195 = dma.hbm_to_vmem [thread:$0]  (!%p17993_p6), %s18922_s8, 16, %s445_s10, [#allocation17]  }
  0xc5   : > { %s18936_s18 = sadd.s32 4294967294, %s17863_s28   ;;  %s18146_s16 = sadd.s32 1, %s17863_s28  }
  0xc6   : > { %s44_s23 = sadd.s32 1, %s17859_s27  ;;  %s41_s21 = ssub.s32 %s17863_s28, %s18146_s16 }
  0xc7   : > { %p51_p8 = scmp.ne.s32.totalorder %s17859_s27, %s17855_s26  ;;  %p42_p1 = scmp.eq.s32.totalorder %s41_s21, 0 }
  0xc8   : > { %p52_p3 = scmp.eq.s32.totalorder %s17863_s28, 0  ;;  %p57_p11 = scmp.ne.s32.totalorder %s17855_s26, %s17851_s25 }
  0xc9   : > { %p291_p12 = scmp.eq.s32.totalorder %s17977_s14, 1  ;;  %p18953_p0 = scmp.eq.s32.totalorder %s17977_s14, 0 }
  0xca   : > { %s18158_s22 = scalar_select %p42_p1, %s17859_s27, %s44_s23  }
  0xcb   : > { %p53_p13 = por %p52_p3, %p51_p8  ;;  %p18162_p2 = por %p18953_p0, %p57_p11 }
  0xcc   : > { %p18166_p6 = por %p291_p12, %p51_p8  ;;  %p297_p5 = scmp.eq.s32.totalorder %s18936_s18, 1 }
  0xcd   : > { %p15217_p7 = scmp.lt.s32.totalorder %s17863_s28, 2  ;;  %s461_s17 = sand.u32 1, %s17859_s27  }
  0xce   : > { %s18955_s10 = scalar_select %p18166_p6, 1, 0 }
  0xcf   : > { %p18174_p9 = por %p297_p5, %p57_p11  ;;  %s13272_s1 = sshll.u32 %s461_s17, 3 }
  0xd0   : > { %s14942_s11 = sshll.u32 %s17863_s28, 7  ;;  %s18957_s0 = sld [smem:[#allocation29_spill]] }
  0xd1   : > { %s18956_s9 = scalar_select %p18174_p9, 1, 0 }
  0xd2   : > { %s465_s20 = scalar_lea.vmem [#allocation4], %s13272_s1  ;;  %p18184_p4 = pnand %p15217_p7, %p53_p13 }
  0xd3   : > { %s472_s29 = sshll.u32 %s465_s20, 4  ;;  %s18190_s23 = scalar_lea.sflag [#allocation5], %s461_s17  ;;  %s18188_s29 = int_to_ptr.vmem [resolvable:$true] %s472_s29 }
  0xd4   : > { %p17693_p8 = pneg %p18184_p4 }
  0xd6   : > { %s18182_s24 = scalar_lea.hbm %s18957_s0, %s14942_s11  ;;  %s17696_s12 = scalar_lea.hbm %s18957_s0, 256 }
  0xd7   : > { %s17691_s21 = scalar_lea.hbm %s18182_s24, 128  ;;  %p17697_p11 = scmp.lt.u32.totalorder %s18182_s24, %s18957_s0 }
  0xd8   : > { %p17692_p10 = scmp.ne.s32.totalorder %s18182_s24, %s17691_s21  ;;  %p17698_p12 = scmp.lt.u32.totalorder %s17696_s12, %s17691_s21 }
  0xd9   : > { %p17700_p0 = scmp.lt.u32.totalorder %s17691_s21, %s18182_s24 }
  0xda   : > { %p17694_p1 = pnand %p17693_p8, %p17692_p10  ;;  %p17699_p13 = por %p17698_p12, %p17697_p11 }
  0xdc   : > { %p17695_p3 = pneg %p17694_p1  ;;  %p17701_p5 = por %p17700_p0, %p17699_p13 }
  0xde   : > { %p17702_p7 = pnand %p17701_p5, %p17695_p3 }
  0xe0   : > { %17705 = shalt.err (!%p17702_p7)
}
  0xe1   : > { %s17706_s17 = scalar_lea.vmem %s18188_s29, 128  ;;  %s17876_s1 = smov [#allocation4]  }
  0xe2   : > { %p17707_p10 = scmp.ne.s32.totalorder %s18188_s29, %s17706_s17  ;;  %s17711_s11 = sshll.u32 %s17876_s1, 4  ;;  %s17712_s11 = int_to_ptr.vmem [resolvable:$false] %s17711_s11 }
  0xe3   : > { %s17713_s13 = scalar_lea.vmem %s17712_s11, 256  ;;  %p17714_p6 = scmp.lt.s32.totalorder %s18188_s29, %s17712_s11 }
  0xe4   : > { %p17709_p1 = pnand %p17707_p10, %p17693_p8  ;;  %p17715_p11 = scmp.lt.s32.totalorder %s17713_s13, %s17706_s17 }
  0xe6   : > { %p17710_p9 = pneg %p17709_p1  ;;  %p17716_p12 = por %p17715_p11, %p17714_p6 }
  0xe8   : > { %p17717_p13 = pnand %p17716_p12, %p17710_p9 }
  0xea   : > { %17720 = shalt.err (!%p17717_p13)
}
  0xeb   : > { %s17877_s21 = smov 64   ;;  %s17878_s12 = smov 4  }
  0xec   : > { %15199 = dma.hbm_to_vmem [thread:$0]  (!%p18184_p4), %s18182_s24, 128, %s18188_s29, %s18190_s23, %s17877_s21, %s17877_s21, %s17878_s12  }
  0xed   : > { %p18959_p8 = scmp.ne.s32.totalorder %s18947_s15, 0 }
  0xee   : > { %s18221_s20 = sand.u32 (!%p18959_p8), 1, %s17855_s26  }
  0xef   : > { %484 = sbr.rel (%p18959_p8) target bundleno = 3218 (0xc92), region = 64  ;;  %s13276_s17 = sshll.u32 (!%p18959_p8), %s18221_s20, 3 }
  0xf0   : > { %s487_s1 = scalar_lea.sflag (!%p18959_p8), [#allocation5], %s18221_s20  ;;  %s490_s11 = scalar_lea.vmem (!%p18959_p8), [#allocation4], %s13276_s17 }
  0xf6   : > { %17822 = dma.done.wait (%p18162_p2), %s487_s1, 128  }
  0xf7   : > { %17824 = vsyncadd (%p18162_p2), %s487_s1, 4294967168  ;;  %p18960_p6 = scmp.eq.s32.totalorder %s17977_s14, 0 }
  0xf9   : > { %17826 = dma.done.wait (%p18960_p6), [#allocation8], 1152   ;;  %p18961_p9 = pmov %p18960_p6 }
  0xfa   : > { %p18962_p4 = pmov %p18960_p6 }
  0xfb   : > { %17828 = vsyncadd (%p18961_p9), [#allocation8], 4294966144 }
  0xfc   : > { %17830 = dma.done.wait (%p18962_p4), [#allocation11], 147488   ;;  %p18963_p3 = pmov %p18962_p4 }
  0xfe   : > { %17832 = vsyncadd (%p18963_p3), [#allocation11], 4294819808  ;;  %p18964_p0 = pmov %p18963_p3 }
 0x100   : > { %17834 = dma.done.wait (%p18964_p0), [#allocation14], 36896   ;;  %p18965_p5 = pmov %p18964_p0 }
 0x101   : > { %p18966_p2 = pmov %p18964_p0 }
 0x102   : > { %17836 = vsyncadd (%p18965_p5), [#allocation14], 4294930400 }
 0x103   : > { %17838 = dma.done.wait (%p18966_p2), [#allocation17], 16   ;;  %p18967_p7 = pmov %p18964_p0 }
 0x104   : > { %v17879_v0 = vmov 0   ;;  %v572_v1 = vld [vmem:[#allocation7] sm:$0xff]  ;;  %v573_v5 = vld [vmem:[#allocation7 + $0x8] sm:$0xff]  ;;  %v574_v7 = vld [vmem:[#allocation7 + $0x10] sm:$0xff]  ;;  %vm667_vm0 = vcmask 130048   ;;  %v582_v58 = vlaneseq  ;;  %v17880_v59 = vmov 0.0  }
 0x105   : > { %17840 = vsyncadd (%p18967_p7), [#allocation17], 4294967280  ;;  %703 = vmatprep.mubr.bf16.mxu1 %v17879_v0  ;;  %15276 = vset.pattern.permute.xlu1 %v17879_v0  ;;  %v576_v2 = vld [vmem:[#allocation7 + $0x20] sm:$0xff]  ;;  %v577_v6 = vld [vmem:[#allocation7 + $0x28] sm:$0xff]  ;;  %886 = vst [vmem:[#allocation2] sm:$0xff] %v17880_v59  ;;  %vm1380_vm6 = vcmask 1045504  }
 0x106   : > { %15275 = vset.pattern.permute.xlu0 %v17879_v0  ;;  %v13287_v3 = vcombine.high %v572_v1, %v576_v2  ;;  %v13286_v4 = vcombine.low %v572_v1, %v576_v2  ;;  %v578_v8 = vld [vmem:[#allocation7 + $0x30] sm:$0xff]  ;;  %v13289_v10 = vcombine.high %v573_v5, %v577_v6  ;;  %v13288_v11 = vcombine.low %v573_v5, %v577_v6  ;;  %v575_v15 = vld [vmem:[#allocation7 + $0x18] sm:$0xff]  ;;  %s18972_s1 = sld [smem:[#allocation34_spill]]  ;;  %s18973_s30 = sld [smem:[#allocation33_spill]] }
 0x107   : > { %v15277_v9 = vld [vmem:[%s490_s11] sm:$0xff]   ;;  %v13291_v12 = vcombine.high %v574_v7, %v578_v8  ;;  %v13290_v19 = vcombine.low %v574_v7, %v578_v8  ;;  %887 = vst [vmem:[#allocation2 + $0x8] sm:$0xff] %v17880_v59  ;;  %888 = vst [vmem:[#allocation2 + $0x10] sm:$0xff] %v17880_v59  ;;  %vm4139_vm7 = vcmask 1040384   ;;  %vm994_vm9 = vcmask 1044480   ;;  %s13284_s13 = sshll.u32 %s18221_s20, 4 }
 0x108   : > { %671 = vmatprep.subr.bf16.mxu1 %v13287_v3  ;;  %v15287_v13 = vld [vmem:[#allocation10 + $0xd04] ss:$8 sps:$4 sm:$0xff]   ;;  %v15289_v14 = vld [vmem:[#allocation10 + $0xd00] ss:$8 sps:$4 sm:$0xff]   ;;  %v579_v16 = vld [vmem:[#allocation7 + $0x38] sm:$0xff]  ;;  %889 = vst [vmem:[#allocation2 + $0x18] sm:$0xff] %v17880_v59 }
 0x109   : > { %672 = vmatpush1.bf16.msra.mxu1 %v13286_v4  ;;  %5032 = vmatprep.subr.bf16.mxu0 %v15287_v13  ;;  %v15293_v17 = vld [vmem:[#allocation10 + $0xd14] ss:$8 sps:$4 sm:$0xff]   ;;  %v15295_v18 = vld [vmem:[#allocation10 + $0xd10] ss:$8 sps:$4 sm:$0xff]   ;;  %v13293_v20 = vcombine.high %v575_v15, %v579_v16  ;;  %v15299_v21 = vld [vmem:[#allocation10 + $0xd24] ss:$8 sps:$4 sm:$0xff]   ;;  %v13292_v25 = vcombine.low %v575_v15, %v579_v16 }
 0x10a   : > { %714 = vmatprep.subr.bf16.mxu1 %v13289_v10  ;;  %5033 = vmatpush1.bf16.msra.mxu0 %v15289_v14  ;;  %v15301_v22 = vld [vmem:[#allocation10 + $0xd20] ss:$8 sps:$4 sm:$0xff]   ;;  %v15305_v23 = vld [vmem:[#allocation10 + $0xd34] ss:$8 sps:$4 sm:$0xff]   ;;  %v15307_v24 = vld [vmem:[#allocation10 + $0xd30] ss:$8 sps:$4 sm:$0xff]  }
 0x10b   : > { %5034 = vmatprep.subr.bf16.mxu0 %v15293_v17  ;;  %v15280_v26 = vld [vmem:[#allocation10 + $0x404] ss:$8 sps:$4 sm:$0xff]   ;;  %v15313_v28 = vld [vmem:[#allocation10 + $0xd40] ss:$8 sps:$4 sm:$0xff]   ;;  %v15317_v29 = vld [vmem:[#allocation10 + $0xd54] ss:$8 sps:$4 sm:$0xff]  }
 0x10c   : > { %13294 = vmatmul.mubr.msk.bf16.vlgmr.msra.gmra.mrb[0].mxu1 %vm667_vm0, %v15277_v9  ;;  %v15311_v27 = vld [vmem:[#allocation10 + $0xd44] ss:$8 sps:$4 sm:$0xff]   ;;  %v15319_v30 = vld [vmem:[#allocation10 + $0xd50] ss:$8 sps:$4 sm:$0xff]   ;;  %v15278_v31 = vld [vmem:[#allocation10 + $0x400] ss:$8 sps:$4 sm:$0xff]  }
 0x10d   : > { %715 = vmatpush1.bf16.msra.mxu1 %v13288_v11  ;;  %746 = vmatprep.mubr.bf16.mxu1 %v17879_v0  ;;  %v15323_v32 = vld [vmem:[#allocation10 + $0xd64] ss:$8 sps:$4 sm:$0xff]   ;;  %v15283_v33 = vld [vmem:[#allocation10 + $0x414] ss:$8 sps:$4 sm:$0xff]   ;;  %v15281_v34 = vld [vmem:[#allocation10 + $0x410] ss:$8 sps:$4 sm:$0xff]  }
 0x10e   : > { %757 = vmatprep.subr.bf16.mxu1 %v13291_v12  ;;  %5035 = vmatpush1.bf16.msra.mxu0 %v15295_v18  ;;  %v15325_v35 = vld [vmem:[#allocation10 + $0xd60] ss:$8 sps:$4 sm:$0xff]   ;;  %v15329_v36 = vld [vmem:[#allocation10 + $0xd74] ss:$8 sps:$4 sm:$0xff]   ;;  %v15286_v37 = vld [vmem:[#allocation10 + $0x424] ss:$8 sps:$4 sm:$0xff]  }
 0x10f   : > { %5036 = vmatprep.subr.bf16.mxu0 %v15299_v21  ;;  %v15331_v38 = vld [vmem:[#allocation10 + $0xd70] ss:$8 sps:$4 sm:$0xff]   ;;  %v15284_v39 = vld [vmem:[#allocation10 + $0x420] ss:$8 sps:$4 sm:$0xff]   ;;  %v15335_v40 = vld [vmem:[#allocation10 + $0xd84] ss:$8 sps:$4 sm:$0xff]  }
 0x110   : > { %v15292_v41 = vld [vmem:[#allocation10 + $0x434] ss:$8 sps:$4 sm:$0xff]   ;;  %v15337_v42 = vld [vmem:[#allocation10 + $0xd80] ss:$8 sps:$4 sm:$0xff]   ;;  %v15290_v43 = vld [vmem:[#allocation10 + $0x430] ss:$8 sps:$4 sm:$0xff]  }
 0x111   : > { %v15298_v44 = vld [vmem:[#allocation10 + $0x444] ss:$8 sps:$4 sm:$0xff]   ;;  %v15296_v45 = vld [vmem:[#allocation10 + $0x440] ss:$8 sps:$4 sm:$0xff]   ;;  %v15304_v46 = vld [vmem:[#allocation10 + $0x454] ss:$8 sps:$4 sm:$0xff]  }
 0x112   : > { %5037 = vmatpush1.bf16.msra.mxu0 %v15301_v22  ;;  %v15302_v47 = vld [vmem:[#allocation10 + $0x450] ss:$8 sps:$4 sm:$0xff]   ;;  %v15310_v48 = vld [vmem:[#allocation10 + $0x464] ss:$8 sps:$4 sm:$0xff]   ;;  %v15308_v49 = vld [vmem:[#allocation10 + $0x460] ss:$8 sps:$4 sm:$0xff]  }
 0x113   : > { %5038 = vmatprep.subr.bf16.mxu0 %v15305_v23  ;;  %v15316_v50 = vld [vmem:[#allocation10 + $0x474] ss:$8 sps:$4 sm:$0xff]   ;;  %v15314_v51 = vld [vmem:[#allocation10 + $0x470] ss:$8 sps:$4 sm:$0xff]   ;;  %v15322_v52 = vld [vmem:[#allocation10 + $0x484] ss:$8 sps:$4 sm:$0xff]  }
 0x114   : > { %13295 = vmatmul.mubr.msk.bf16.vlgmr.msra.gmra.mrb[4].mxu1 %vm667_vm0, %v15277_v9  ;;  %v15320_v53 = vld [vmem:[#allocation10 + $0x480] ss:$8 sps:$4 sm:$0xff]   ;;  %v15328_v54 = vld [vmem:[#allocation10 + $0x494] ss:$8 sps:$4 sm:$0xff]   ;;  %v15326_v55 = vld [vmem:[#allocation10 + $0x490] ss:$8 sps:$4 sm:$0xff]  }
 0x115   : > { %758 = vmatpush1.bf16.msra.mxu1 %v13290_v19  ;;  %789 = vmatprep.mubr.bf16.mxu1 %v17879_v0  ;;  %v15334_v56 = vld [vmem:[#allocation10 + $0x4a4] ss:$8 sps:$4 sm:$0xff]   ;;  %v15332_v57 = vld [vmem:[#allocation10 + $0x4a0] ss:$8 sps:$4 sm:$0xff]   ;;  %890 = vst [vmem:[#allocation2 + $0x20] sm:$0xff] %v17880_v59  ;;  %891 = vst [vmem:[#allocation2 + $0x28] sm:$0xff] %v17880_v59 }
 0x116   : > { %800 = vmatprep.subr.bf16.mxu1 %v13293_v20  ;;  %5039 = vmatpush1.bf16.msra.mxu0 %v15307_v24  ;;  %892 = vst [vmem:[#allocation2 + $0x30] sm:$0xff] %v17880_v59  ;;  %893 = vst [vmem:[#allocation2 + $0x38] sm:$0xff] %v17880_v59  ;;  %v15340_v60 = vld [vmem:[#allocation10 + $0x4b4] ss:$8 sps:$4 sm:$0xff]   ;;  %v15338_v62 = vld [vmem:[#allocation10 + $0x4b0] ss:$8 sps:$4 sm:$0xff]  }
 0x117   : > { %5040 = vmatprep.subr.bf16.mxu0 %v15311_v27  ;;  %910 = vst [vmem:[#allocation2 + $0xc0] sm:$0xff] %v17880_v59  ;;  %911 = vst [vmem:[#allocation2 + $0xc8] sm:$0xff] %v17880_v59  ;;  %v15341_v61 = vld [vmem:[#allocation10 + $0xd94] ss:$8 sps:$4 sm:$0xff]   ;;  %v15343_v63 = vld [vmem:[#allocation10 + $0xd90] ss:$8 sps:$4 sm:$0xff]  }
 0x118   : > { %912 = vst [vmem:[#allocation2 + $0xd0] sm:$0xff] %v17880_v59  ;;  %913 = vst [vmem:[#allocation2 + $0xd8] sm:$0xff] %v17880_v59  ;;  %v15346_v3 = vld [vmem:[#allocation10 + $0x4c4] ss:$8 sps:$4 sm:$0xff]   ;;  %v15344_v5 = vld [vmem:[#allocation10 + $0x4c0] ss:$8 sps:$4 sm:$0xff]  }
 0x119   : > { %914 = vst [vmem:[#allocation2 + $0xe0] sm:$0xff] %v17880_v59  ;;  %915 = vst [vmem:[#allocation2 + $0xe8] sm:$0xff] %v17880_v59  ;;  %v15347_v4 = vld [vmem:[#allocation10 + $0xda4] ss:$8 sps:$4 sm:$0xff]   ;;  %v15349_v6 = vld [vmem:[#allocation10 + $0xda0] ss:$8 sps:$4 sm:$0xff]  }
 0x11a   : > { %5041 = vmatpush1.bf16.msra.mxu0 %v15313_v28  ;;  %916 = vst [vmem:[#allocation2 + $0xf0] sm:$0xff] %v17880_v59  ;;  %917 = vst [vmem:[#allocation2 + $0xf8] sm:$0xff] %v17880_v59  ;;  %v15352_v10 = vld [vmem:[#allocation10 + $0x4d4] ss:$8 sps:$4 sm:$0xff]   ;;  %v15350_v11 = vld [vmem:[#allocation10 + $0x4d0] ss:$8 sps:$4 sm:$0xff]  }
 0x11b   : > { %5042 = vmatprep.subr.bf16.mxu0 %v15317_v29  ;;  %10359 = vst [vmem:[#allocation3] sm:$0xff] %v17880_v59  ;;  %10360 = vst [vmem:[#allocation3 + $0x8] sm:$0xff] %v17880_v59  ;;  %v15353_v12 = vld [vmem:[#allocation10 + $0xdb4] ss:$8 sps:$4 sm:$0xff]   ;;  %v15355_v13 = vld [vmem:[#allocation10 + $0xdb0] ss:$8 sps:$4 sm:$0xff]  }
 0x11c   : > { %13296 = vmatmul.mubr.msk.bf16.vlgmr.msra.gmra.mrb[8].mxu1 %vm667_vm0, %v15277_v9  ;;  %10365 = vst [vmem:[#allocation3 + $0x30] sm:$0xff] %v17880_v59  ;;  %10366 = vst [vmem:[#allocation3 + $0x38] sm:$0xff] %v17880_v59  ;;  %v15358_v15 = vld [vmem:[#allocation10 + $0x4e4] ss:$8 sps:$4 sm:$0xff]   ;;  %v15356_v17 = vld [vmem:[#allocation10 + $0x4e0] ss:$8 sps:$4 sm:$0xff]  }
 0x11d   : > { %801 = vmatpush1.bf16.msra.mxu1 %v13292_v25  ;;  %832 = vmatprep.mubr.bf16.mxu1 %v17879_v0  ;;  %v18249_v0 = vshrl.u32 %v582_v58, 7  ;;  %v15359_v16 = vld [vmem:[#allocation10 + $0xdc4] ss:$8 sps:$4 sm:$0xff]   ;;  %v15361_v18 = vld [vmem:[#allocation10 + $0xdc0] ss:$8 sps:$4 sm:$0xff]   ;;  %v18264_v29 = vld [vmem:[#allocation9] sm:$0xff] }
 0x11e   : > { %2053 = vmatprep.subr.bf16.mxu1 %v15280_v26  ;;  %5043 = vmatpush1.bf16.msra.mxu0 %v15319_v30  ;;  %v15364_v19 = vld [vmem:[#allocation10 + $0x4f4] ss:$8 sps:$4 sm:$0xff]   ;;  %v15362_v21 = vld [vmem:[#allocation10 + $0x4f0] ss:$8 sps:$4 sm:$0xff]   ;;  %v15370_v23 = vld [vmem:[#allocation10 + $0x504] ss:$8 sps:$4 sm:$0xff]  }
 0x11f   : > { %5044 = vmatprep.subr.bf16.mxu0 %v15323_v32  ;;  %v18252_v1 = vadd.s32 8, %v18249_v0  ;;  %v866_v2 = vand.u32 3, %v18249_v0  ;;  %v15365_v20 = vld [vmem:[#allocation10 + $0xdd4] ss:$8 sps:$4 sm:$0xff]   ;;  %v15367_v22 = vld [vmem:[#allocation10 + $0xdd0] ss:$8 sps:$4 sm:$0xff]  }
 0x120   : > { %v15371_v24 = vld [vmem:[#allocation10 + $0xde4] ss:$8 sps:$4 sm:$0xff]   ;;  %v15373_v25 = vld [vmem:[#allocation10 + $0xde0] ss:$8 sps:$4 sm:$0xff]   ;;  %v15377_v26 = vld [vmem:[#allocation10 + $0xdf4] ss:$8 sps:$4 sm:$0xff]  }
 0x121   : > { %v873_v7 = vand.u32 3, %v18252_v1  ;;  %v3053_v8 = vadd.s32 1, %v866_v2  ;;  %v15379_v27 = vld [vmem:[#allocation10 + $0xdf0] ss:$8 sps:$4 sm:$0xff]   ;;  %v15385_v28 = vld [vmem:[#allocation10 + $0xe04] ss:$8 sps:$4 sm:$0xff]  }
 0x122   : > { %5045 = vmatpush1.bf16.msra.mxu0 %v15325_v35  ;;  %v18267_v30 = vsub.s32 0, %v18249_v0  ;;  %v1204_v59 = vld [vmem:[#allocation2 + $0x8] sm:$0xf0]  ;;  %vm6174_vm10 = vcmask 1046528   ;;  %vm3081_vm11 = vcmask 1042432   ;;  %v17444_v14 = vld [vmem:[%s18921_s7 + $0x58] sm:$0xff]  }
 0x123   : > { %5046 = vmatprep.subr.bf16.mxu0 %v15329_v36  ;;  %vm3057_vm1 = vcmp.lt.s32.totalorder %v3053_v8, 4  ;;  %s14943_s21 = sshll.u32 %s17977_s14, 8  ;;  %s556_s12 = scalar_lea.vmem [#allocation18], %s13284_s13 }
 0x124   : > { %13297 = vmatmul.mubr.msk.bf16.vlgmr.msra.gmra.mrb[12].mxu1 %vm667_vm0, %v15277_v9  ;;  %v3054_v9 = vadd.s32 1, %v873_v7  ;;  %v585_v32 = vrot.slane %v18264_v29, %v18267_v30  ;;  %s13043_s17 = sshll.u32 %s556_s12, 4  ;;  %s18974_s24 = sld [smem:[#allocation35_spill]]  ;;  %s18794_s17 = int_to_ptr.vmem [resolvable:$true] %s13043_s17 }
 0x125   : > { %2054 = vmatpush1.bf16.msra.mxu1 %v15278_v31  ;;  %v18270_v31 = vsub.s32 1, %v18249_v0  ;;  %s17721_s23 = scalar_lea.vmem %s18794_s17, 256  ;;  %p18975_p1 = scmp.ne.s32.totalorder %s18955_s10, 0 }
 0x126   : > { %2055 = vmatprep.subr.bf16.mxu1 %v15283_v33  ;;  %5047 = vmatpush1.bf16.msra.mxu0 %v15331_v38  ;;  %vm3058_vm2 = vcmp.lt.s32.totalorder %v3054_v9, 4  ;;  %v18296_v9 = vld [vmem:[#allocation2 + $0x10] sm:$0x80]  ;;  %p17722_p10 = scmp.ne.s32.totalorder %s18794_s17, %s17721_s23  ;;  %s17881_s13 = smov [#allocation18]  }
 0x127   : > { %5048 = vmatprep.subr.bf16.mxu0 %v15335_v40  ;;  %vm18260_vm3 = vmpackc.low %vm3058_vm2, %vm3057_vm1  ;;  %v589_v33 = vrot.slane %v18264_v29, %v18270_v31  ;;  %v596_v40 = vsub.s32 3, %v18249_v0 }
 0x128   : > { %p17723_p11 = pnand %p17722_p10, %p18975_p1 }
 0x129   : > { %2056 = vmatpush1.bf16.msra.mxu1 %v15281_v34 }
 0x12a   : > { %2057 = vmatprep.subr.bf16.mxu1 %v15286_v37  ;;  %5049 = vmatpush1.bf16.msra.mxu0 %v15337_v42  ;;  %v592_v37 = vsub.s32 2, %v18249_v0  ;;  %s18792_s29 = scalar_lea.hbm %s18974_s24, %s14943_s21  ;;  %p17724_p12 = pneg %p17723_p11 }
 0x12b   : > { %5050 = vmatprep.subr.bf16.mxu0 %v15341_v61  ;;  %v18289_v61 = vadd.s32 4294967295, %v873_v7  ;;  %s17725_s21 = sshll.u32 %s17881_s13, 4  ;;  %s17726_s21 = int_to_ptr.vmem [resolvable:$false] %s17725_s21 }
 0x12c   : > { %s17727_s11 = scalar_lea.vmem %s17726_s21, 512  ;;  %p17728_p13 = scmp.lt.s32.totalorder %s18794_s17, %s17726_s21 }
 0x12d   : > { %2058 = vmatpush1.bf16.msra.mxu1 %v15284_v39  ;;  %vm961_vm5 = vcmp.ge.s32.totalorder %v18289_v61, 0  ;;  %p17729_p8 = scmp.lt.s32.totalorder %s17727_s11, %s17721_s23 }
 0x12e   : > { %2059 = vmatprep.subr.bf16.mxu1 %v15292_v41  ;;  %5051 = vmatpush1.bf16.msra.mxu0 %v15343_v63 }
 0x12f   : > { %5052 = vmatprep.subr.bf16.mxu0 %v15347_v4  ;;  %v604_v4 = vsub.s32 5, %v18249_v0  ;;  %p17730_p6 = por %p17729_p8, %p17728_p13 }
 0x131   : > { %2060 = vmatpush1.bf16.msra.mxu1 %v15290_v43  ;;  %p17731_p9 = pnand %p17730_p6, %p17724_p12 }
 0x132   : > { %2061 = vmatprep.subr.bf16.mxu1 %v15298_v44  ;;  %5053 = vmatpush1.bf16.msra.mxu0 %v15349_v6 }
 0x133   : > { %5054 = vmatprep.subr.bf16.mxu0 %v15353_v12 }
 0x135   : > { %2062 = vmatpush1.bf16.msra.mxu1 %v15296_v45 }
 0x136   : > { %2063 = vmatprep.subr.bf16.mxu1 %v15304_v46  ;;  %5055 = vmatpush1.bf16.msra.mxu0 %v15355_v13 }
 0x137   : > { %5056 = vmatprep.subr.bf16.mxu0 %v15359_v16  ;;  %v605_v16 = vrot.slane %v18264_v29, %v604_v4 }
 0x139   : > { %2064 = vmatpush1.bf16.msra.mxu1 %v15302_v47  ;;  %v593_v47 = vrot.slane %v18264_v29, %v592_v37  ;;  %v15376_v37 = vld [vmem:[#allocation10 + $0x514] ss:$8 sps:$4 sm:$0xff]  }
 0x13a   : > { %2065 = vmatprep.subr.bf16.mxu1 %v15310_v48  ;;  %5057 = vmatpush1.bf16.msra.mxu0 %v15361_v18  ;;  %v4146_v18 = vrot.slane %v18296_v9, 7 }
 0x13b   : > { %5058 = vmatprep.subr.bf16.mxu0 %v15365_v20 }
 0x13d   : > { %2066 = vmatpush1.bf16.msra.mxu1 %v15308_v49  ;;  %v597_v49 = vrot.slane %v18264_v29, %v596_v40  ;;  %v18312_v40 = vld [vmem:[#allocation2 + $0x28] sm:$0x80] }
 0x13e   : > { %2067 = vmatprep.subr.bf16.mxu1 %v15316_v50  ;;  %5059 = vmatpush1.bf16.msra.mxu0 %v15367_v22 }
 0x13f   : > { %5060 = vmatprep.subr.bf16.mxu0 %v15371_v24 }
 0x141   : > { %2068 = vmatpush1.bf16.msra.mxu1 %v15314_v51 }
 0x142   : > { %2069 = vmatprep.subr.bf16.mxu1 %v15322_v52  ;;  %5061 = vmatpush1.bf16.msra.mxu0 %v15373_v25 }
 0x143   : > { %5062 = vmatprep.subr.bf16.mxu0 %v15377_v26 }
 0x145   : > { %2070 = vmatpush1.bf16.msra.mxu1 %v15320_v53 }
 0x146   : > { %2071 = vmatprep.subr.bf16.mxu1 %v15328_v54  ;;  %5063 = vmatpush1.bf16.msra.mxu0 %v15379_v27  ;;  %v15368_v27 = vld [vmem:[#allocation10 + $0x500] ss:$8 sps:$4 sm:$0xff]  }
 0x147   : > { %5075 = vmatprep.subr.bf16.mxu0 %v15385_v28 }
 0x149   : > { %2072 = vmatpush1.bf16.msra.mxu1 %v15326_v55  ;;  %v18282_v55 = vadd.s32 4294967295, %v866_v2 }
 0x14a   : > { %2073 = vmatprep.subr.bf16.mxu1 %v15334_v56 }
 0x14b   : > { %vm960_vm4 = vcmp.ge.s32.totalorder %v18282_v55, 0 }
 0x14c   : > { %vm18332_vm8 = vmpackc.low %vm961_vm5, %vm960_vm4 }
 0x14d   : > { %2074 = vmatpush1.bf16.msra.mxu1 %v15332_v57 }
 0x14e   : > { %2075 = vmatprep.subr.bf16.mxu1 %v15340_v60  ;;  %v600_v60 = vsub.s32 4, %v18249_v0 }
 0x150   : > { %v601_v12 = vrot.slane %v18264_v29, %v600_v60 }
 0x151   : > { %2076 = vmatpush1.bf16.msra.mxu1 %v15338_v62 }
 0x152   : > { %2077 = vmatprep.subr.bf16.mxu1 %v15346_v3  ;;  %v1203_v3 = vld [vmem:[#allocation2] sm:$0xf0] }
 0x155   : > { %2078 = vmatpush1.bf16.msra.mxu1 %v15344_v5 }
 0x156   : > { %2079 = vmatprep.subr.bf16.mxu1 %v15352_v10 }
 0x159   : > { %2080 = vmatpush1.bf16.msra.mxu1 %v15350_v11  ;;  %v18298_v11 = vld [vmem:[#allocation2 + $0x18] sm:$0x80] }
 0x15a   : > { %2081 = vmatprep.subr.bf16.mxu1 %v15358_v15  ;;  %v4149_v24 = vrot.slane %v18298_v11, 7  ;;  %v15383_v11 = vld [vmem:[#allocation10 + $0xe00] ss:$8 sps:$4 sm:$0xff]  }
 0x15d   : > { %2082 = vmatpush1.bf16.msra.mxu1 %v15356_v17 }
 0x15e   : > { %2083 = vmatprep.subr.bf16.mxu1 %v15364_v19 }
 0x161   : > { %2084 = vmatpush1.bf16.msra.mxu1 %v15362_v21 }
 0x162   : > { %2096 = vmatprep.subr.bf16.mxu1 %v15370_v23  ;;  %v1206_v23 = vld [vmem:[#allocation2 + $0x18] sm:$0xf0] }
 0x1df   : > { %v705_v34 = vpop.f32.mrb[0].mxu1 }
 0x1e0   : > { %v706_v35 = vadd.f32 %v705_v34, %v585_v32  ;;  %v707_v36 = vpop.f32.mrb[1].mxu1 }
 0x1e1   : > { %v708_v38 = vadd.f32 %v707_v36, %v589_v33  ;;  %v709_v39 = vpop.f32.mrb[2].mxu1 }
 0x1e2   : > { %v843_v41 = vmax.f32 %v706_v35, 0.0  ;;  %v710_v42 = vadd.f32 %v709_v39, %v585_v32  ;;  %v711_v43 = vpop.f32.mrb[3].mxu1  ;;  %v608_v35 = vsub.s32 6, %v18249_v0 }
 0x1e3   : > { %v844_v44 = vmax.f32 %v708_v38, 0.0  ;;  %v712_v45 = vadd.f32 %v711_v43, %v589_v33 }
 0x1e4   : > { %918 = vst [vmem:[#allocation2 + $0x40] sm:$0xff] %v843_v41  ;;  %v851_v46 = vmax.f32 %v710_v42, 0.0  ;;  %v1219_v7 = vpack.c.bf16 %v843_v41, %v1203_v3  ;;  %v612_v41 = vsub.s32 7, %v18249_v0 }
 0x1e5   : > { %919 = vst [vmem:[#allocation2 + $0x48] sm:$0xff] %v844_v44  ;;  %v852_v48 = vmax.f32 %v712_v45, 0.0  ;;  %v1220_v6 = vpack.c.bf16 %v844_v44, %v1204_v59 }
 0x1e6   : > { %926 = vst [vmem:[#allocation2 + $0x80] sm:$0xff] %v851_v46  ;;  %v1381_v28 = vrot.slane %v1219_v7, 2  ;;  %v15374_v46 = vld [vmem:[#allocation10 + $0x510] ss:$8 sps:$4 sm:$0xff]   ;;  %v613_v60 = vrot.slane %v18264_v29, %v612_v41 }
 0x1e7   : > { %927 = vst [vmem:[#allocation2 + $0x88] sm:$0xff] %v852_v48  ;;  %v748_v50 = vpop.f32.mrb[4].mxu1  ;;  %v1384_v21 = vrot.slane %v1220_v6, 2  ;;  %v15380_v6 = vld [vmem:[#allocation10 + $0x520] ss:$8 sps:$4 sm:$0xff]  }
 0x1e8   : > { %v749_v51 = vadd.f32 %v748_v50, %v593_v47  ;;  %v750_v52 = vpop.f32.mrb[5].mxu1  ;;  %v15398_v41 = vld [vmem:[#allocation10 + $0x550] ss:$8 sps:$4 sm:$0xff]  }
 0x1e9   : > { %v751_v53 = vadd.f32 %v750_v52, %v597_v49  ;;  %v752_v54 = vpop.f32.mrb[6].mxu1  ;;  %v609_v52 = vrot.slane %v18264_v29, %v608_v35  ;;  %v15392_v35 = vld [vmem:[#allocation10 + $0x540] ss:$8 sps:$4 sm:$0xff]  }
 0x1ea   : > { %v18284_v56 = vmax.f32 %v749_v51, 0.0  ;;  %v753_v57 = vadd.f32 %v752_v54, %v593_v47  ;;  %v754_v58 = vpop.f32.mrb[7].mxu1 }
 0x1eb   : > { %v18291_v62 = vmax.f32 %v751_v53, 0.0  ;;  %v755_v63 = vadd.f32 %v754_v58, %v597_v49  ;;  %v15382_v53 = vld [vmem:[#allocation10 + $0x524] ss:$8 sps:$4 sm:$0xff]   ;;  %v4155_v58 = vrot.slane %v18312_v40, 7  ;;  %v15403_v40 = vld [vmem:[#allocation10 + $0xe34] ss:$8 sps:$4 sm:$0xff]  }
 0x1ec   : > { %920 = vst [vmem:[#allocation2 + $0x50] sm:$0xff] %v18284_v56  ;;  %v853_v2 = vmax.f32 %v753_v57, 0.0  ;;  %v4147_v44 = vrot.slane %v18284_v56, 7 }
 0x1ed   : > { %921 = vst [vmem:[#allocation2 + $0x58] sm:$0xff] %v18291_v62  ;;  %v854_v5 = vmax.f32 %v755_v63, 0.0  ;;  %v1211_v8 = vld [vmem:[#allocation2 + $0x80] sm:$0xf]  ;;  %v1222_v43 = vpack.c.bf16 %v18291_v62, %v1206_v23  ;;  %v4150_v47 = vrot.slane %v18291_v62, 7 }
 0x1ee   : > { %928 = vst [vmem:[#allocation2 + $0x90] sm:$0xff] %v853_v2  ;;  %v1212_v1 = vld [vmem:[#allocation2 + $0x88] sm:$0xf]  ;;  %v1227_v10 = vpack.c.bf16 %v1211_v8, %v1211_v8  ;;  %v4148_v63 = vsel %vm4139_vm7, %v4146_v18, %v4147_v44  ;;  %v15391_v18 = vld [vmem:[#allocation10 + $0xe14] ss:$8 sps:$4 sm:$0xff]  }
 0x1ef   : > { %929 = vst [vmem:[#allocation2 + $0x98] sm:$0xff] %v854_v5  ;;  %v1228_v13 = vpack.c.bf16 %v1212_v1, %v1212_v1  ;;  %v791_v15 = vpop.f32.mrb[8].mxu1  ;;  %v1390_v62 = vrot.slane %v1222_v43, 2  ;;  %v4151_v29 = vsel %vm4139_vm7, %v4149_v24, %v4150_v47  ;;  %v15386_v23 = vld [vmem:[#allocation10 + $0x530] ss:$8 sps:$4 sm:$0xff]  }
 0x1f0   : > { %v1382_v17 = vrot.slane %v1227_v10, 2  ;;  %v792_v19 = vadd.f32 %v791_v15, %v601_v12  ;;  %v793_v20 = vpop.f32.mrb[9].mxu1  ;;  %v15389_v24 = vld [vmem:[#allocation10 + $0xe10] ss:$8 sps:$4 sm:$0xff]   ;;  %v15406_v43 = vld [vmem:[#allocation10 + $0x564] ss:$8 sps:$4 sm:$0xff]  }
 0x1f1   : > { %v1385_v22 = vrot.slane %v1228_v13, 2  ;;  %v794_v25 = vadd.f32 %v793_v20, %v605_v16  ;;  %v795_v26 = vpop.f32.mrb[10].mxu1  ;;  %v17359_v5 = vld [vmem:[#allocation13 + $0x754] ss:$8 sps:$4 sm:$0xff]  }
 0x1f2   : > { %v18306_v32 = vmax.f32 %v792_v19, 0.0  ;;  %v796_v33 = vadd.f32 %v795_v26, %v601_v12  ;;  %v797_v34 = vpop.f32.mrb[11].mxu1  ;;  %v1383_v42 = vsel %vm1380_vm6, %v1381_v28, %v1382_v17  ;;  %v15388_v17 = vld [vmem:[#allocation10 + $0x534] ss:$8 sps:$4 sm:$0xff]   ;;  %v15394_v26 = vld [vmem:[#allocation10 + $0x544] ss:$8 sps:$4 sm:$0xff]  }
 0x1f3   : > { %v1386_v36 = vsel %vm1380_vm6, %v1384_v21, %v1385_v22  ;;  %v18310_v38 = vmax.f32 %v794_v25, 0.0  ;;  %v798_v39 = vadd.f32 %v797_v34, %v605_v16 }
 0x1f4   : > { %2085 = vmatprep.mubr.bf16.mxu1 %v1386_v36  ;;  %922 = vst [vmem:[#allocation2 + $0x60] sm:$0xff] %v18306_v32  ;;  %v855_v45 = vmax.f32 %v796_v33, 0.0  ;;  %v15395_v36 = vld [vmem:[#allocation10 + $0xe20] ss:$8 sps:$4 sm:$0xff]  }
 0x1f5   : > { %2086 = vmatmul.mubr.bf16.vlgmr.msra.gmra.mrb[16].mxu1 %v1383_v42  ;;  %v4117_v48 = vld [vmem:[#allocation2 + $0x90] sm:$0x7f]  ;;  %923 = vst [vmem:[#allocation2 + $0x68] sm:$0xff] %v18310_v38  ;;  %v856_v49 = vmax.f32 %v798_v39, 0.0  ;;  %v4156_v12 = vrot.slane %v18310_v38, 7 }
 0x1f6   : > { %2097 = vmatpush1.bf16.msra.mxu1 %v15368_v27  ;;  %v1214_v0 = vld [vmem:[#allocation2 + $0x98] sm:$0xf]  ;;  %v4168_v51 = vrot.slane %v4117_v48, 7  ;;  %930 = vst [vmem:[#allocation2 + $0xa0] sm:$0xff] %v855_v45  ;;  %v15397_v27 = vld [vmem:[#allocation10 + $0xe24] ss:$8 sps:$4 sm:$0xff]  }
 0x1f7   : > { %v4118_v50 = vld [vmem:[#allocation2 + $0x98] sm:$0x7f]  ;;  %2098 = vmatprep.subr.bf16.mxu1 %v15376_v37  ;;  %v1230_v54 = vpack.c.bf16 %v1214_v0, %v1214_v0  ;;  %931 = vst [vmem:[#allocation2 + $0xa8] sm:$0xff] %v856_v49  ;;  %v834_v59 = vpop.f32.mrb[12].mxu1  ;;  %v4157_v28 = vsel %vm4139_vm7, %v4155_v58, %v4156_v12  ;;  %v15400_v39 = vld [vmem:[#allocation10 + $0x554] ss:$8 sps:$4 sm:$0xff]  }
 0x1f8   : > { %v4170_v57 = vrot.slane %v4118_v50, 7  ;;  %v4169_v3 = vsel %vm4139_vm7, %v4147_v44, %v4168_v51  ;;  %v18326_v4 = vadd.f32 %v834_v59, %v609_v52  ;;  %v836_v2 = vpop.f32.mrb[13].mxu1  ;;  %v15401_v42 = vld [vmem:[#allocation10 + $0xe30] ss:$8 sps:$4 sm:$0xff]   ;;  %v15409_v44 = vld [vmem:[#allocation10 + $0xe44] ss:$8 sps:$4 sm:$0xff]  }
 0x1f9   : > { %v1391_v8 = vrot.slane %v1230_v54, 2  ;;  %v837_v1 = vadd.f32 %v836_v2, %v613_v60  ;;  %v838_v7 = vpop.f32.mrb[14].mxu1  ;;  %v13868_v16 = vpack.c.bf16 %v4169_v3, %v4148_v63  ;;  %v15404_v45 = vld [vmem:[#allocation10 + $0x560] ss:$8 sps:$4 sm:$0xff]   ;;  %v15415_v48 = vld [vmem:[#allocation10 + $0xe54] ss:$8 sps:$4 sm:$0xff]  }
 0x1fa   : > { %v4171_v9 = vsel %vm4139_vm7, %v4150_v47, %v4170_v57  ;;  %2099 = vmatpush1.bf16.msra.mxu1 %v15374_v46  ;;  %v849_v55 = vmax.f32 %v18326_v4, 0.0  ;;  %v839_v61 = vadd.f32 %v838_v7, %v609_v52  ;;  %v840_v13 = vpop.f32.mrb[15].mxu1  ;;  %v15407_v46 = vld [vmem:[#allocation10 + $0xe40] ss:$8 sps:$4 sm:$0xff]   ;;  %v15412_v47 = vld [vmem:[#allocation10 + $0x574] ss:$8 sps:$4 sm:$0xff]  }
 0x1fb   : > { %v13865_v10 = vpack.c.bf16 %v4171_v9, %v4151_v29  ;;  %2100 = vmatprep.subr.bf16.mxu1 %v15382_v53  ;;  %v1392_v15 = vsel %vm1380_vm6, %v1390_v62, %v1391_v8  ;;  %v18341_v19 = vmax.f32 %v837_v1, 0.0  ;;  %v841_v20 = vadd.f32 %v840_v13, %v613_v60  ;;  %v15410_v49 = vld [vmem:[#allocation10 + $0x570] ss:$8 sps:$4 sm:$0xff]   ;;  %v15418_v50 = vld [vmem:[#allocation10 + $0x584] ss:$8 sps:$4 sm:$0xff]  }
 0x1fc   : > { %2128 = vmatprep.mubr.bf16.mxu1 %v1392_v15  ;;  %924 = vst [vmem:[#allocation2 + $0x70] sm:$0xff] %v849_v55  ;;  %v857_v21 = vmax.f32 %v839_v61, 0.0  ;;  %v15413_v0 = vld [vmem:[#allocation10 + $0xe50] ss:$8 sps:$4 sm:$0xff]   ;;  %v15421_v51 = vld [vmem:[#allocation10 + $0xe64] ss:$8 sps:$4 sm:$0xff]  }
 0x1fd   : > { %13866 = vmatprep.mubr.msk.bf16.mxu0 %vm18332_vm8, %v13865_v10  ;;  %925 = vst [vmem:[#allocation2 + $0x78] sm:$0xff] %v18341_v19  ;;  %v858_v22 = vmax.f32 %v841_v20, 0.0  ;;  %v15416_v52 = vld [vmem:[#allocation10 + $0x580] ss:$8 sps:$4 sm:$0xff]   ;;  %v15424_v54 = vld [vmem:[#allocation10 + $0x594] ss:$8 sps:$4 sm:$0xff]  }
 0x1fe   : > { %13869 = vmatmul.mubr.msk.bf16.vlgmr.msra.gmra.mrb[0].mxu0 %vm18332_vm8, %v13868_v16  ;;  %2101 = vmatpush1.bf16.msra.mxu1 %v15380_v6  ;;  %v4120_v25 = vld [vmem:[#allocation2 + $0xa8] sm:$0x7f]  ;;  %932 = vst [vmem:[#allocation2 + $0xb0] sm:$0xff] %v857_v21  ;;  %v15419_v53 = vld [vmem:[#allocation10 + $0xe60] ss:$8 sps:$4 sm:$0xff]  }
 0x1ff   : > { %5076 = vmatpush1.bf16.msra.mxu0 %v15383_v11  ;;  %2102 = vmatprep.subr.bf16.mxu1 %v15388_v17  ;;  %v4174_v33 = vrot.slane %v4120_v25, 7  ;;  %933 = vst [vmem:[#allocation2 + $0xb8] sm:$0xff] %v858_v22  ;;  %v15427_v57 = vld [vmem:[#allocation10 + $0xe74] ss:$8 sps:$4 sm:$0xff]   ;;  %v15422_v58 = vld [vmem:[#allocation10 + $0x590] ss:$8 sps:$4 sm:$0xff]  }
 0x200   : > { %5077 = vmatprep.subr.bf16.mxu0 %v15391_v18  ;;  %v15425_v59 = vld [vmem:[#allocation10 + $0xe70] ss:$8 sps:$4 sm:$0xff]   ;;  %v15430_v60 = vld [vmem:[#allocation10 + $0x5a4] ss:$8 sps:$4 sm:$0xff]   ;;  %v15428_v63 = vld [vmem:[#allocation10 + $0x5a0] ss:$8 sps:$4 sm:$0xff]  }
 0x201   : > { %v4175_v34 = vsel %vm4139_vm7, %v4156_v12, %v4174_v33  ;;  %v15433_v62 = vld [vmem:[#allocation10 + $0xe84] ss:$8 sps:$4 sm:$0xff]   ;;  %v15431_v3 = vld [vmem:[#allocation10 + $0xe80] ss:$8 sps:$4 sm:$0xff]   ;;  %v15436_v2 = vld [vmem:[#allocation10 + $0x5b4] ss:$8 sps:$4 sm:$0xff]  }
 0x202   : > { %2103 = vmatpush1.bf16.msra.mxu1 %v15386_v23  ;;  %v13871_v37 = vpack.c.bf16 %v4175_v34, %v4157_v28  ;;  %v15439_v6 = vld [vmem:[#allocation10 + $0xe94] ss:$8 sps:$4 sm:$0xff]   ;;  %v15434_v8 = vld [vmem:[#allocation10 + $0x5b0] ss:$8 sps:$4 sm:$0xff]   ;;  %v15442_v9 = vld [vmem:[#allocation10 + $0x5c4] ss:$8 sps:$4 sm:$0xff]  }
 0x203   : > { %5078 = vmatpush1.bf16.msra.mxu0 %v15389_v24  ;;  %2104 = vmatprep.subr.bf16.mxu1 %v15394_v26  ;;  %v15437_v29 = vld [vmem:[#allocation10 + $0xe90] ss:$8 sps:$4 sm:$0xff]   ;;  %v15445_v1 = vld [vmem:[#allocation10 + $0xea4] ss:$8 sps:$4 sm:$0xff]   ;;  %v15440_v7 = vld [vmem:[#allocation10 + $0x5c0] ss:$8 sps:$4 sm:$0xff]  }
 0x204   : > { %5079 = vmatprep.subr.bf16.mxu0 %v15397_v27  ;;  %13872 = vmatprep.mubr.msk.bf16.mxu0 %vm18332_vm8, %v13871_v37  ;;  %v15443_v10 = vld [vmem:[#allocation10 + $0xea0] ss:$8 sps:$4 sm:$0xff]   ;;  %v15448_v11 = vld [vmem:[#allocation10 + $0x5d4] ss:$8 sps:$4 sm:$0xff]   ;;  %v15446_v61 = vld [vmem:[#allocation10 + $0x5d0] ss:$8 sps:$4 sm:$0xff]  }
 0x205   : > { %v15451_v12 = vld [vmem:[#allocation10 + $0xeb4] ss:$8 sps:$4 sm:$0xff]   ;;  %v15449_v13 = vld [vmem:[#allocation10 + $0xeb0] ss:$8 sps:$4 sm:$0xff]   ;;  %v15454_v15 = vld [vmem:[#allocation10 + $0x5e4] ss:$8 sps:$4 sm:$0xff]  }
 0x206   : > { %2105 = vmatpush1.bf16.msra.mxu1 %v15392_v35  ;;  %v15457_v16 = vld [vmem:[#allocation10 + $0xec4] ss:$8 sps:$4 sm:$0xff]   ;;  %v1213_v17 = vld [vmem:[#allocation2 + $0x90] sm:$0xf]  ;;  %v15452_v18 = vld [vmem:[#allocation10 + $0x5e0] ss:$8 sps:$4 sm:$0xff]  }
 0x207   : > { %5080 = vmatpush1.bf16.msra.mxu0 %v15395_v36  ;;  %2106 = vmatprep.subr.bf16.mxu1 %v15400_v39  ;;  %v15455_v20 = vld [vmem:[#allocation10 + $0xec0] ss:$8 sps:$4 sm:$0xff]   ;;  %v1205_v21 = vld [vmem:[#allocation2 + $0x10] sm:$0xf0]  ;;  %v1208_v23 = vld [vmem:[#allocation2 + $0x28] sm:$0xf0]  ;;  %v1229_v27 = vpack.c.bf16 %v1213_v17, %v1213_v17 }
 0x208   : > { %5081 = vmatprep.subr.bf16.mxu0 %v15403_v40  ;;  %v15460_v22 = vld [vmem:[#allocation10 + $0x5f4] ss:$8 sps:$4 sm:$0xff]   ;;  %v1216_v25 = vld [vmem:[#allocation2 + $0xa8] sm:$0xf]  ;;  %v1221_v33 = vpack.c.bf16 %v18284_v56, %v1205_v21  ;;  %v15466_v34 = vld [vmem:[#allocation10 + $0x604] ss:$8 sps:$4 sm:$0xff]   ;;  %v1224_v36 = vpack.c.bf16 %v18310_v38, %v1208_v23 }
 0x209   : > { %v15463_v24 = vld [vmem:[#allocation10 + $0xed4] ss:$8 sps:$4 sm:$0xff]   ;;  %v15458_v26 = vld [vmem:[#allocation10 + $0x5f0] ss:$8 sps:$4 sm:$0xff]   ;;  %v15469_v35 = vld [vmem:[#allocation10 + $0xee4] ss:$8 sps:$4 sm:$0xff]   ;;  %v1232_v37 = vpack.c.bf16 %v1216_v25, %v1216_v25 }
 0x20a   : > { %2107 = vmatpush1.bf16.msra.mxu1 %v15398_v41  ;;  %v15461_v28 = vld [vmem:[#allocation10 + $0xed0] ss:$8 sps:$4 sm:$0xff]   ;;  %v4111_v39 = vld [vmem:[#allocation2 + $0x20] sm:$0x80]  ;;  %v4119_v40 = vld [vmem:[#allocation2 + $0xa0] sm:$0x7f] }
 0x20b   : > { %5082 = vmatpush1.bf16.msra.mxu0 %v15401_v42  ;;  %2108 = vmatprep.subr.bf16.mxu1 %v15406_v43  ;;  %v1388_v41 = vrot.slane %v1229_v27, 2  ;;  %v15464_v42 = vld [vmem:[#allocation10 + $0x600] ss:$8 sps:$4 sm:$0xff]   ;;  %v1396_v56 = vrot.slane %v1224_v36, 2  ;;  %v4152_v38 = vrot.slane %v4111_v39, 7 }
 0x20c   : > { %5083 = vmatprep.subr.bf16.mxu0 %v15409_v44  ;;  %v15467_v43 = vld [vmem:[#allocation10 + $0xee0] ss:$8 sps:$4 sm:$0xff]   ;;  %v4114_v44 = vld [vmem:[#allocation2 + $0x38] sm:$0x80]  ;;  %v15496_v17 = vld [vmem:[#allocation10 + $0x654] ss:$8 sps:$4 sm:$0xff]  }
 0x20d   : > { %v15497_v21 = vld [vmem:[#allocation10 + $0xf30] ss:$8 sps:$4 sm:$0xff]   ;;  %v15505_v23 = vld [vmem:[#allocation10 + $0xf44] ss:$8 sps:$4 sm:$0xff]   ;;  %v15503_v25 = vld [vmem:[#allocation10 + $0xf40] ss:$8 sps:$4 sm:$0xff]  }
 0x20e   : > { %2109 = vmatpush1.bf16.msra.mxu1 %v15404_v45  ;;  %v4122_v45 = vld [vmem:[#allocation2 + $0xb8] sm:$0x7f]  ;;  %v15511_v27 = vld [vmem:[#allocation10 + $0xf54] ss:$8 sps:$4 sm:$0xff]  }
 0x20f   : > { %5084 = vmatpush1.bf16.msra.mxu0 %v15407_v46  ;;  %2110 = vmatprep.subr.bf16.mxu1 %v15412_v47  ;;  %v15472_v46 = vld [vmem:[#allocation10 + $0x614] ss:$8 sps:$4 sm:$0xff]   ;;  %v15512_v36 = vld [vmem:[#allocation10 + $0x680] ss:$8 sps:$4 sm:$0xff]  }
 0x210   : > { %5085 = vmatprep.subr.bf16.mxu0 %v15415_v48  ;;  %v15475_v47 = vld [vmem:[#allocation10 + $0xef4] ss:$8 sps:$4 sm:$0xff]   ;;  %v1387_v48 = vrot.slane %v1221_v33, 2  ;;  %v15509_v33 = vld [vmem:[#allocation10 + $0xf50] ss:$8 sps:$4 sm:$0xff]  }
 0x211   : > { %v15520_v39 = vld [vmem:[#allocation10 + $0x694] ss:$8 sps:$4 sm:$0xff]   ;;  %v15575_v4 = vld [vmem:[#allocation10 + $0x1000] ss:$8 sps:$4 sm:$0xff]  }
 0x212   : > { %2111 = vmatpush1.bf16.msra.mxu1 %v15410_v49  ;;  %v1397_v49 = vrot.slane %v1232_v37, 2  ;;  %v15515_v37 = vld [vmem:[#allocation10 + $0xf60] ss:$8 sps:$4 sm:$0xff]  }
 0x213   : > { %5086 = vmatpush1.bf16.msra.mxu0 %v15413_v0  ;;  %2112 = vmatprep.subr.bf16.mxu1 %v15418_v50  ;;  %v1389_v0 = vsel %vm1380_vm6, %v1387_v48, %v1388_v41  ;;  %v4153_v50 = vrot.slane %v18306_v32, 7  ;;  %v15518_v41 = vld [vmem:[#allocation10 + $0x690] ss:$8 sps:$4 sm:$0xff]   ;;  %v15535_v48 = vld [vmem:[#allocation10 + $0xf94] ss:$8 sps:$4 sm:$0xff]  }
 0x214   : > { %5087 = vmatprep.subr.bf16.mxu0 %v15421_v51  ;;  %v4172_v51 = vrot.slane %v4119_v40, 7  ;;  %v15523_v40 = vld [vmem:[#allocation10 + $0xf74] ss:$8 sps:$4 sm:$0xff]  }
 0x216   : > { %2113 = vmatpush1.bf16.msra.mxu1 %v15416_v52  ;;  %v15470_v52 = vld [vmem:[#allocation10 + $0x610] ss:$8 sps:$4 sm:$0xff]  }
 0x217   : > { %5088 = vmatpush1.bf16.msra.mxu0 %v15419_v53  ;;  %2114 = vmatprep.subr.bf16.mxu1 %v15424_v54  ;;  %v4161_v53 = vrot.slane %v4114_v44, 7  ;;  %v4162_v54 = vrot.slane %v18341_v19, 7  ;;  %v15529_v44 = vld [vmem:[#allocation10 + $0xf84] ss:$8 sps:$4 sm:$0xff]  }
 0x218   : > { %5089 = vmatprep.subr.bf16.mxu0 %v15427_v57  ;;  %v4178_v57 = vrot.slane %v4122_v45, 7  ;;  %v15524_v45 = vld [vmem:[#allocation10 + $0x6a0] ss:$8 sps:$4 sm:$0xff]  }
 0x21a   : > { %2115 = vmatpush1.bf16.msra.mxu1 %v15422_v58  ;;  %v15473_v58 = vld [vmem:[#allocation10 + $0xef0] ss:$8 sps:$4 sm:$0xff]  }
 0x21b   : > { %5090 = vmatpush1.bf16.msra.mxu0 %v15425_v59  ;;  %2116 = vmatprep.subr.bf16.mxu1 %v15430_v60  ;;  %v1398_v59 = vsel %vm1380_vm6, %v1396_v56, %v1397_v49  ;;  %v15478_v60 = vld [vmem:[#allocation10 + $0x624] ss:$8 sps:$4 sm:$0xff]   ;;  %v15530_v56 = vld [vmem:[#allocation10 + $0x6b0] ss:$8 sps:$4 sm:$0xff]  }
 0x21c   : > { %5091 = vmatprep.subr.bf16.mxu0 %v15433_v62  ;;  %v15481_v62 = vld [vmem:[#allocation10 + $0xf04] ss:$8 sps:$4 sm:$0xff]   ;;  %v15533_v49 = vld [vmem:[#allocation10 + $0xf90] ss:$8 sps:$4 sm:$0xff]  }
 0x21e   : > { %2117 = vmatpush1.bf16.msra.mxu1 %v15428_v63  ;;  %v15476_v63 = vld [vmem:[#allocation10 + $0x620] ss:$8 sps:$4 sm:$0xff]  }
 0x21f   : > { %5092 = vmatpush1.bf16.msra.mxu0 %v15431_v3  ;;  %2118 = vmatprep.subr.bf16.mxu1 %v15436_v2  ;;  %v4154_v3 = vsel %vm4139_vm7, %v4152_v38, %v4153_v50  ;;  %v4173_v2 = vsel %vm4139_vm7, %v4153_v50, %v4172_v51  ;;  %v15541_v38 = vld [vmem:[#allocation10 + $0xfa4] ss:$8 sps:$4 sm:$0xff]   ;;  %v15536_v50 = vld [vmem:[#allocation10 + $0x6c0] ss:$8 sps:$4 sm:$0xff]  }
 0x220   : > { %5093 = vmatprep.subr.bf16.mxu0 %v15439_v6  ;;  %v15479_v6 = vld [vmem:[#allocation10 + $0xf00] ss:$8 sps:$4 sm:$0xff]  }
 0x221   : > { %v15539_v51 = vld [vmem:[#allocation10 + $0xfa0] ss:$8 sps:$4 sm:$0xff]  }
 0x222   : > { %2119 = vmatpush1.bf16.msra.mxu1 %v15434_v8  ;;  %v4163_v8 = vsel %vm4139_vm7, %v4161_v53, %v4162_v54  ;;  %v15547_v53 = vld [vmem:[#allocation10 + $0xfb4] ss:$8 sps:$4 sm:$0xff]  }
 0x223   : > { %5094 = vmatpush1.bf16.msra.mxu0 %v15437_v29  ;;  %2120 = vmatprep.subr.bf16.mxu1 %v15442_v9  ;;  %v4179_v29 = vsel %vm4139_vm7, %v4162_v54, %v4178_v57  ;;  %v13874_v9 = vpack.c.bf16 %v4173_v2, %v4154_v3  ;;  %v15542_v54 = vld [vmem:[#allocation10 + $0x6d0] ss:$8 sps:$4 sm:$0xff]   ;;  %v15551_v3 = vld [vmem:[#allocation10 + $0xfc0] ss:$8 sps:$4 sm:$0xff]   ;;  %v15556_v2 = vld [vmem:[#allocation10 + $0x6f4] ss:$8 sps:$4 sm:$0xff]  }
 0x224   : > { %5095 = vmatprep.subr.bf16.mxu0 %v15445_v1  ;;  %v15484_v1 = vld [vmem:[#allocation10 + $0x634] ss:$8 sps:$4 sm:$0xff]   ;;  %v15545_v57 = vld [vmem:[#allocation10 + $0xfb0] ss:$8 sps:$4 sm:$0xff]  }
 0x226   : > { %2121 = vmatpush1.bf16.msra.mxu1 %v15440_v7  ;;  %v15487_v7 = vld [vmem:[#allocation10 + $0xf14] ss:$8 sps:$4 sm:$0xff]  }
 0x227   : > { %5096 = vmatpush1.bf16.msra.mxu0 %v15443_v10  ;;  %2122 = vmatprep.subr.bf16.mxu1 %v15448_v11  ;;  %v13877_v10 = vpack.c.bf16 %v4179_v29, %v4163_v8  ;;  %v15482_v11 = vld [vmem:[#allocation10 + $0x630] ss:$8 sps:$4 sm:$0xff]   ;;  %v1210_v29 = vld [vmem:[#allocation2 + $0x38] sm:$0xf0] }
 0x228   : > { %5097 = vmatprep.subr.bf16.mxu0 %v15451_v12  ;;  %v15485_v12 = vld [vmem:[#allocation10 + $0xf10] ss:$8 sps:$4 sm:$0xff]  }
 0x22a   : > { %2123 = vmatpush1.bf16.msra.mxu1 %v15446_v61  ;;  %v15490_v61 = vld [vmem:[#allocation10 + $0x644] ss:$8 sps:$4 sm:$0xff]  }
 0x22b   : > { %5098 = vmatpush1.bf16.msra.mxu0 %v15449_v13  ;;  %2124 = vmatprep.subr.bf16.mxu1 %v15454_v15  ;;  %v15493_v13 = vld [vmem:[#allocation10 + $0xf24] ss:$8 sps:$4 sm:$0xff]   ;;  %v15488_v15 = vld [vmem:[#allocation10 + $0x640] ss:$8 sps:$4 sm:$0xff]  }
 0x22c   : > { %5099 = vmatprep.subr.bf16.mxu0 %v15457_v16  ;;  %v15491_v16 = vld [vmem:[#allocation10 + $0xf20] ss:$8 sps:$4 sm:$0xff]  }
 0x22e   : > { %2125 = vmatpush1.bf16.msra.mxu1 %v15452_v18  ;;  %v15499_v18 = vld [vmem:[#allocation10 + $0xf34] ss:$8 sps:$4 sm:$0xff]  }
 0x22f   : > { %5100 = vmatpush1.bf16.msra.mxu0 %v15455_v20  ;;  %2126 = vmatprep.subr.bf16.mxu1 %v15460_v22  ;;  %v15494_v20 = vld [vmem:[#allocation10 + $0x650] ss:$8 sps:$4 sm:$0xff]   ;;  %v15502_v22 = vld [vmem:[#allocation10 + $0x664] ss:$8 sps:$4 sm:$0xff]  }
 0x230   : > { %5101 = vmatprep.subr.bf16.mxu0 %v15463_v24  ;;  %v15500_v24 = vld [vmem:[#allocation10 + $0x660] ss:$8 sps:$4 sm:$0xff]  }
 0x232   : > { %2127 = vmatpush1.bf16.msra.mxu1 %v15458_v26  ;;  %v15508_v26 = vld [vmem:[#allocation10 + $0x674] ss:$8 sps:$4 sm:$0xff]  }
 0x233   : > { %5102 = vmatpush1.bf16.msra.mxu0 %v15461_v28  ;;  %2139 = vmatprep.subr.bf16.mxu1 %v15466_v34  ;;  %v15506_v28 = vld [vmem:[#allocation10 + $0x670] ss:$8 sps:$4 sm:$0xff]   ;;  %v15514_v34 = vld [vmem:[#allocation10 + $0x684] ss:$8 sps:$4 sm:$0xff]  }
 0x234   : > { %5103 = vmatprep.subr.bf16.mxu0 %v15469_v35  ;;  %v15517_v35 = vld [vmem:[#allocation10 + $0xf64] ss:$8 sps:$4 sm:$0xff]  }
 0x235   : > { %2129 = vmatmul.mubr.bf16.vlgmr.msra.gmra.mrb[16].mxu1 %v1389_v0  ;;  %v15538_v0 = vld [vmem:[#allocation10 + $0x6c4] ss:$8 sps:$4 sm:$0xff]  }
 0x236   : > { %2140 = vmatpush1.bf16.msra.mxu1 %v15464_v42  ;;  %2171 = vmatprep.mubr.bf16.mxu1 %v1398_v59  ;;  %v15521_v42 = vld [vmem:[#allocation10 + $0xf70] ss:$8 sps:$4 sm:$0xff]   ;;  %v15553_v59 = vld [vmem:[#allocation10 + $0xfc4] ss:$8 sps:$4 sm:$0xff]  }
 0x237   : > { %5104 = vmatpush1.bf16.msra.mxu0 %v15467_v43  ;;  %2141 = vmatprep.subr.bf16.mxu1 %v15472_v46  ;;  %v15526_v43 = vld [vmem:[#allocation10 + $0x6a4] ss:$8 sps:$4 sm:$0xff]   ;;  %v15527_v46 = vld [vmem:[#allocation10 + $0xf80] ss:$8 sps:$4 sm:$0xff]  }
 0x238   : > { %5105 = vmatprep.subr.bf16.mxu0 %v15475_v47  ;;  %v15532_v47 = vld [vmem:[#allocation10 + $0x6b4] ss:$8 sps:$4 sm:$0xff]  }
 0x23a   : > { %2142 = vmatpush1.bf16.msra.mxu1 %v15470_v52  ;;  %v15544_v52 = vld [vmem:[#allocation10 + $0x6d4] ss:$8 sps:$4 sm:$0xff]  }
 0x23b   : > { %5106 = vmatpush1.bf16.msra.mxu0 %v15473_v58  ;;  %2143 = vmatprep.subr.bf16.mxu1 %v15478_v60  ;;  %v15550_v58 = vld [vmem:[#allocation10 + $0x6e4] ss:$8 sps:$4 sm:$0xff]  }
 0x23c   : > { %5118 = vmatprep.subr.bf16.mxu0 %v15481_v62  ;;  %v1207_v60 = vld [vmem:[#allocation2 + $0x20] sm:$0xf0]  ;;  %v15548_v62 = vld [vmem:[#allocation10 + $0x6e0] ss:$8 sps:$4 sm:$0xff]  }
 0x23d   : > { %v1223_v8 = vpack.c.bf16 %v18306_v32, %v1207_v60  ;;  %v15568_v32 = vld [vmem:[#allocation10 + $0x714] ss:$8 sps:$4 sm:$0xff]  }
 0x23e   : > { %13875 = vmatmul.mubr.msk.bf16.vlgmr.msra.gmra.mrb[0].mxu0 %vm18332_vm8, %v13874_v9  ;;  %2144 = vmatpush1.bf16.msra.mxu1 %v15476_v63  ;;  %v1215_v63 = vld [vmem:[#allocation2 + $0xa0] sm:$0xf]  ;;  %v15607_v60 = vld [vmem:[#allocation10 + $0x1054] ss:$8 sps:$4 sm:$0xff]  }
 0x23f   : > { %5119 = vmatpush1.bf16.msra.mxu0 %v15479_v6  ;;  %2145 = vmatprep.subr.bf16.mxu1 %v15484_v1  ;;  %v15559_v6 = vld [vmem:[#allocation10 + $0xfd4] ss:$8 sps:$4 sm:$0xff]   ;;  %v1231_v9 = vpack.c.bf16 %v1215_v63, %v1215_v63  ;;  %v1218_v1 = vld [vmem:[#allocation2 + $0xb8] sm:$0xf]  ;;  %v15605_v63 = vld [vmem:[#allocation10 + $0x1050] ss:$8 sps:$4 sm:$0xff]  }
 0x240   : > { %5120 = vmatprep.subr.bf16.mxu0 %v15487_v7  ;;  %13878 = vmatprep.mubr.msk.bf16.mxu0 %vm18332_vm8, %v13877_v10  ;;  %v15554_v7 = vld [vmem:[#allocation10 + $0x6f0] ss:$8 sps:$4 sm:$0xff]  }
 0x241   : > { %v15557_v10 = vld [vmem:[#allocation10 + $0xfd0] ss:$8 sps:$4 sm:$0xff]  }
 0x242   : > { %2146 = vmatpush1.bf16.msra.mxu1 %v15482_v11  ;;  %v1393_v11 = vrot.slane %v1223_v8, 2  ;;  %v15611_v8 = vld [vmem:[#allocation10 + $0x1060] ss:$8 sps:$4 sm:$0xff]  }
 0x243   : > { %5121 = vmatpush1.bf16.msra.mxu0 %v15485_v12  ;;  %2147 = vmatprep.subr.bf16.mxu1 %v15490_v61  ;;  %v15562_v12 = vld [vmem:[#allocation10 + $0x704] ss:$8 sps:$4 sm:$0xff]  }
 0x244   : > { %5122 = vmatprep.subr.bf16.mxu0 %v15493_v13  ;;  %v15565_v61 = vld [vmem:[#allocation10 + $0xfe4] ss:$8 sps:$4 sm:$0xff]   ;;  %v1226_v13 = vpack.c.bf16 %v18341_v19, %v1210_v29  ;;  %v4159_v19 = vrot.slane %v849_v55, 7  ;;  %v5166_v55 = vld [vmem:[#allocation2 + $0x88] sm:$0xff] }
 0x245   : > { %v15616_v29 = vld [vmem:[#allocation10 + $0x794] ss:$8 sps:$4 sm:$0xff]  }
 0x246   : > { %2148 = vmatpush1.bf16.msra.mxu1 %v15488_v15  ;;  %v1234_v15 = vpack.c.bf16 %v1218_v1, %v1218_v1  ;;  %v15614_v1 = vld [vmem:[#allocation10 + $0x790] ss:$8 sps:$4 sm:$0xff]  }
 0x247   : > { %5123 = vmatpush1.bf16.msra.mxu0 %v15491_v16  ;;  %2149 = vmatprep.subr.bf16.mxu1 %v15496_v17  ;;  %v4113_v16 = vld [vmem:[#allocation2 + $0x30] sm:$0x80]  ;;  %v1394_v17 = vrot.slane %v1231_v9, 2 }
 0x248   : > { %5124 = vmatprep.subr.bf16.mxu0 %v15499_v18  ;;  %v15560_v18 = vld [vmem:[#allocation10 + $0x700] ss:$8 sps:$4 sm:$0xff]   ;;  %v15619_v9 = vld [vmem:[#allocation10 + $0x1074] ss:$8 sps:$4 sm:$0xff]  }
 0x24a   : > { %2150 = vmatpush1.bf16.msra.mxu1 %v15494_v20  ;;  %v15563_v20 = vld [vmem:[#allocation10 + $0xfe0] ss:$8 sps:$4 sm:$0xff]  }
 0x24b   : > { %5125 = vmatpush1.bf16.msra.mxu0 %v15497_v21  ;;  %2151 = vmatprep.subr.bf16.mxu1 %v15502_v22  ;;  %v15571_v21 = vld [vmem:[#allocation10 + $0xff4] ss:$8 sps:$4 sm:$0xff]  }
 0x24c   : > { %5126 = vmatprep.subr.bf16.mxu0 %v15505_v23  ;;  %v4121_v22 = vld [vmem:[#allocation2 + $0xb0] sm:$0x7f]  ;;  %v1402_v23 = vrot.slane %v1226_v13, 2 }
 0x24d   : > { %v15628_v13 = vld [vmem:[#allocation10 + $0x7b4] ss:$8 sps:$4 sm:$0xff]  }
 0x24e   : > { %2152 = vmatpush1.bf16.msra.mxu1 %v15500_v24  ;;  %v1403_v24 = vrot.slane %v1234_v15, 2  ;;  %v15631_v15 = vld [vmem:[#allocation10 + $0x1094] ss:$8 sps:$4 sm:$0xff]  }
 0x24f   : > { %5127 = vmatpush1.bf16.msra.mxu0 %v15503_v25  ;;  %2153 = vmatprep.subr.bf16.mxu1 %v15508_v26  ;;  %v1395_v25 = vsel %vm1380_vm6, %v1393_v11, %v1394_v17  ;;  %v4158_v26 = vrot.slane %v4113_v16, 7  ;;  %v15625_v11 = vld [vmem:[#allocation10 + $0x1084] ss:$8 sps:$4 sm:$0xff]   ;;  %v15626_v16 = vld [vmem:[#allocation10 + $0x7b0] ss:$8 sps:$4 sm:$0xff]  }
 0x250   : > { %5128 = vmatprep.subr.bf16.mxu0 %v15511_v27  ;;  %v4176_v27 = vrot.slane %v4121_v22, 7  ;;  %v15629_v17 = vld [vmem:[#allocation10 + $0x1090] ss:$8 sps:$4 sm:$0xff]   ;;  %v15640_v22 = vld [vmem:[#allocation10 + $0x7d4] ss:$8 sps:$4 sm:$0xff]  }
 0x252   : > { %2154 = vmatpush1.bf16.msra.mxu1 %v15506_v28  ;;  %v15566_v28 = vld [vmem:[#allocation10 + $0x710] ss:$8 sps:$4 sm:$0xff]  }
 0x253   : > { %5129 = vmatpush1.bf16.msra.mxu0 %v15509_v33  ;;  %2155 = vmatprep.subr.bf16.mxu1 %v15514_v34  ;;  %v15569_v33 = vld [vmem:[#allocation10 + $0xff0] ss:$8 sps:$4 sm:$0xff]   ;;  %v1404_v34 = vsel %vm1380_vm6, %v1402_v23, %v1403_v24  ;;  %v15643_v23 = vld [vmem:[#allocation10 + $0x10b4] ss:$8 sps:$4 sm:$0xff]  }
 0x254   : > { %5130 = vmatprep.subr.bf16.mxu0 %v15517_v35  ;;  %v15574_v35 = vld [vmem:[#allocation10 + $0x724] ss:$8 sps:$4 sm:$0xff]   ;;  %v15638_v24 = vld [vmem:[#allocation10 + $0x7d0] ss:$8 sps:$4 sm:$0xff]  }
 0x256   : > { %2156 = vmatpush1.bf16.msra.mxu1 %v15512_v36  ;;  %v15577_v36 = vld [vmem:[#allocation10 + $0x1004] ss:$8 sps:$4 sm:$0xff]  }
 0x257   : > { %5131 = vmatpush1.bf16.msra.mxu0 %v15515_v37  ;;  %2157 = vmatprep.subr.bf16.mxu1 %v15520_v39  ;;  %v15572_v37 = vld [vmem:[#allocation10 + $0x720] ss:$8 sps:$4 sm:$0xff]   ;;  %v4160_v39 = vsel %vm4139_vm7, %v4158_v26, %v4159_v19  ;;  %v15646_v26 = vld [vmem:[#allocation10 + $0x7e4] ss:$8 sps:$4 sm:$0xff]  }
 0x258   : > { %5132 = vmatprep.subr.bf16.mxu0 %v15523_v40  ;;  %v4177_v40 = vsel %vm4139_vm7, %v4159_v19, %v4176_v27  ;;  %v15649_v19 = vld [vmem:[#allocation10 + $0x10c4] ss:$8 sps:$4 sm:$0xff]   ;;  %v1209_v27 = vld [vmem:[#allocation2 + $0x30] sm:$0xf0] }
 0x25a   : > { %2158 = vmatpush1.bf16.msra.mxu1 %v15518_v41  ;;  %v13880_v41 = vpack.c.bf16 %v4177_v40, %v4160_v39  ;;  %v935_v39 = vld [vmem:[#allocation2 + $0x8] sm:$0xf8] }
 0x25b   : > { %5133 = vmatpush1.bf16.msra.mxu0 %v15521_v42  ;;  %2159 = vmatprep.subr.bf16.mxu1 %v15526_v43  ;;  %v15580_v42 = vld [vmem:[#allocation10 + $0x734] ss:$8 sps:$4 sm:$0xff]   ;;  %v15650_v40 = vld [vmem:[#allocation10 + $0x7f0] ss:$8 sps:$4 sm:$0xff]  }
 0x25c   : > { %5134 = vmatprep.subr.bf16.mxu0 %v15529_v44  ;;  %v15583_v43 = vld [vmem:[#allocation10 + $0x1014] ss:$8 sps:$4 sm:$0xff]  }
 0x25d   : > { %v18378_v44 = vld [vmem:[#allocation2 + $0x48] sm:$0xff] }
 0x25e   : > { %2160 = vmatpush1.bf16.msra.mxu1 %v15524_v45  ;;  %v5174_v45 = vpack.c.bf16 %v5166_v55, %v18378_v44  ;;  %v17461_v55 = vld [vmem:[#allocation2 + $0x70] sm:$0xff] }
 0x25f   : > { %5135 = vmatpush1.bf16.msra.mxu0 %v15527_v46  ;;  %2161 = vmatprep.subr.bf16.mxu1 %v15532_v47  ;;  %v15578_v46 = vld [vmem:[#allocation10 + $0x730] ss:$8 sps:$4 sm:$0xff]  }
 0x260   : > { %5136 = vmatprep.subr.bf16.mxu0 %v15535_v48  ;;  %v15581_v47 = vld [vmem:[#allocation10 + $0x1010] ss:$8 sps:$4 sm:$0xff]   ;;  %v15586_v48 = vld [vmem:[#allocation10 + $0x744] ss:$8 sps:$4 sm:$0xff]  }
 0x262   : > { %2162 = vmatpush1.bf16.msra.mxu1 %v15530_v56  ;;  %v15589_v56 = vld [vmem:[#allocation10 + $0x1024] ss:$8 sps:$4 sm:$0xff]  }
 0x263   : > { %5137 = vmatpush1.bf16.msra.mxu0 %v15533_v49  ;;  %2163 = vmatprep.subr.bf16.mxu1 %v15538_v0  ;;  %v15584_v49 = vld [vmem:[#allocation10 + $0x740] ss:$8 sps:$4 sm:$0xff]  }
 0x264   : > { %5138 = vmatprep.subr.bf16.mxu0 %v15541_v38  ;;  %v15587_v0 = vld [vmem:[#allocation10 + $0x1020] ss:$8 sps:$4 sm:$0xff]   ;;  %v15592_v38 = vld [vmem:[#allocation10 + $0x754] ss:$8 sps:$4 sm:$0xff]  }
 0x266   : > { %2164 = vmatpush1.bf16.msra.mxu1 %v15536_v50  ;;  %v15595_v50 = vld [vmem:[#allocation10 + $0x1034] ss:$8 sps:$4 sm:$0xff]  }
 0x267   : > { %5139 = vmatpush1.bf16.msra.mxu0 %v15539_v51  ;;  %2165 = vmatprep.subr.bf16.mxu1 %v15544_v52  ;;  %v15590_v51 = vld [vmem:[#allocation10 + $0x750] ss:$8 sps:$4 sm:$0xff]  }
 0x268   : > { %5140 = vmatprep.subr.bf16.mxu0 %v15547_v53  ;;  %v15593_v52 = vld [vmem:[#allocation10 + $0x1030] ss:$8 sps:$4 sm:$0xff]   ;;  %v15598_v53 = vld [vmem:[#allocation10 + $0x764] ss:$8 sps:$4 sm:$0xff]  }
 0x26a   : > { %2166 = vmatpush1.bf16.msra.mxu1 %v15542_v54  ;;  %v15601_v54 = vld [vmem:[#allocation10 + $0x1044] ss:$8 sps:$4 sm:$0xff]  }
 0x26b   : > { %5141 = vmatpush1.bf16.msra.mxu0 %v15545_v57  ;;  %2167 = vmatprep.subr.bf16.mxu1 %v15550_v58  ;;  %v15596_v57 = vld [vmem:[#allocation10 + $0x760] ss:$8 sps:$4 sm:$0xff]  }
 0x26c   : > { %5142 = vmatprep.subr.bf16.mxu0 %v15553_v59  ;;  %v15599_v58 = vld [vmem:[#allocation10 + $0x1040] ss:$8 sps:$4 sm:$0xff]   ;;  %v15604_v59 = vld [vmem:[#allocation10 + $0x774] ss:$8 sps:$4 sm:$0xff]  }
 0x26e   : > { %2168 = vmatpush1.bf16.msra.mxu1 %v15548_v62  ;;  %v15602_v62 = vld [vmem:[#allocation10 + $0x770] ss:$8 sps:$4 sm:$0xff]  }
 0x26f   : > { %5143 = vmatpush1.bf16.msra.mxu0 %v15551_v3  ;;  %2169 = vmatprep.subr.bf16.mxu1 %v15556_v2  ;;  %v15610_v3 = vld [vmem:[#allocation10 + $0x784] ss:$8 sps:$4 sm:$0xff]  }
 0x270   : > { %5144 = vmatprep.subr.bf16.mxu0 %v15559_v6  ;;  %v15613_v2 = vld [vmem:[#allocation10 + $0x1064] ss:$8 sps:$4 sm:$0xff]   ;;  %v15608_v6 = vld [vmem:[#allocation10 + $0x780] ss:$8 sps:$4 sm:$0xff]  }
 0x272   : > { %2170 = vmatpush1.bf16.msra.mxu1 %v15554_v7  ;;  %v15617_v7 = vld [vmem:[#allocation10 + $0x1070] ss:$8 sps:$4 sm:$0xff]  }
 0x273   : > { %5145 = vmatpush1.bf16.msra.mxu0 %v15557_v10  ;;  %2182 = vmatprep.subr.bf16.mxu1 %v15562_v12  ;;  %v15622_v10 = vld [vmem:[#allocation10 + $0x7a4] ss:$8 sps:$4 sm:$0xff]   ;;  %v15620_v12 = vld [vmem:[#allocation10 + $0x7a0] ss:$8 sps:$4 sm:$0xff]  }
 0x274   : > { %5146 = vmatprep.subr.bf16.mxu0 %v15565_v61  ;;  %v15623_v61 = vld [vmem:[#allocation10 + $0x1080] ss:$8 sps:$4 sm:$0xff]  }
 0x275   : > { %2172 = vmatmul.mubr.bf16.vlgmr.msra.gmra.mrb[16].mxu1 %v1395_v25  ;;  %v15641_v25 = vld [vmem:[#allocation10 + $0x10b0] ss:$8 sps:$4 sm:$0xff]  }
 0x276   : > { %2183 = vmatpush1.bf16.msra.mxu1 %v15560_v18  ;;  %2214 = vmatprep.mubr.bf16.mxu1 %v1404_v34  ;;  %v15634_v18 = vld [vmem:[#allocation10 + $0x7c4] ss:$8 sps:$4 sm:$0xff]   ;;  %v15647_v34 = vld [vmem:[#allocation10 + $0x10c0] ss:$8 sps:$4 sm:$0xff]  }
 0x277   : > { %5147 = vmatpush1.bf16.msra.mxu0 %v15563_v20  ;;  %2184 = vmatprep.subr.bf16.mxu1 %v15568_v32  ;;  %v15637_v20 = vld [vmem:[#allocation10 + $0x10a4] ss:$8 sps:$4 sm:$0xff]   ;;  %v15632_v32 = vld [vmem:[#allocation10 + $0x7c0] ss:$8 sps:$4 sm:$0xff]  }
 0x278   : > { %5148 = vmatprep.subr.bf16.mxu0 %v15571_v21  ;;  %v15635_v21 = vld [vmem:[#allocation10 + $0x10a0] ss:$8 sps:$4 sm:$0xff]  }
 0x27a   : > { %2185 = vmatpush1.bf16.msra.mxu1 %v15566_v28  ;;  %v1217_v28 = vld [vmem:[#allocation2 + $0xb0] sm:$0xf] }
 0x27b   : > { %5149 = vmatpush1.bf16.msra.mxu0 %v15569_v33  ;;  %2186 = vmatprep.subr.bf16.mxu1 %v15574_v35  ;;  %v15644_v33 = vld [vmem:[#allocation10 + $0x7e0] ss:$8 sps:$4 sm:$0xff]   ;;  %v951_v35 = vld [vmem:[#allocation2 + $0x88] sm:$0x7] }
 0x27c   : > { %5950 = vmatprep.subr.bf16.mxu0 %v15577_v36  ;;  %v15652_v36 = vld [vmem:[#allocation10 + $0x7f4] ss:$8 sps:$4 sm:$0xff]  }
 0x27e   : > { %13881 = vmatmul.mubr.msk.bf16.vlgmr.msra.gmra.mrb[0].mxu0 %vm18332_vm8, %v13880_v41  ;;  %2187 = vmatpush1.bf16.msra.mxu1 %v15572_v37  ;;  %v15655_v37 = vld [vmem:[#allocation10 + $0x10d4] ss:$8 sps:$4 sm:$0xff]   ;;  %v1225_v41 = vpack.c.bf16 %v17461_v55, %v1209_v27  ;;  %v15706_v27 = vld [vmem:[#allocation10 + $0x84] ss:$8 sps:$4 sm:$0xff]   ;;  %v15716_v55 = vld [vmem:[#allocation10 + $0xa0] ss:$8 sps:$4 sm:$0xff]  }
 0x27f   : > { %5951 = vmatpush1.bf16.msra.mxu0 %v15575_v4  ;;  %5982 = vmatprep.mubr.bf16.mxu0 %v5174_v45  ;;  %v15653_v4 = vld [vmem:[#allocation10 + $0x10d0] ss:$8 sps:$4 sm:$0xff]   ;;  %v15658_v45 = vld [vmem:[#allocation10 + $0x4] ss:$8 sps:$4 sm:$0xff]  }
 0x280   : > { %2188 = vmatprep.subr.bf16.mxu1 %v15580_v42  ;;  %5952 = vmatprep.subr.bf16.mxu0 %v15583_v43  ;;  %v1233_v42 = vpack.c.bf16 %v1217_v28, %v1217_v28  ;;  %v1021_v43 = vrot.slane %v951_v35, 3  ;;  %v15704_v28 = vld [vmem:[#allocation10 + $0x80] ss:$8 sps:$4 sm:$0xff]   ;;  %v15712_v35 = vld [vmem:[#allocation10 + $0x94] ss:$8 sps:$4 sm:$0xff]  }
 0x282   : > { %2189 = vmatpush1.bf16.msra.mxu1 %v15578_v46  ;;  %v15661_v46 = vld [vmem:[#allocation10 + $0x10e4] ss:$8 sps:$4 sm:$0xff]  }
 0x283   : > { %5953 = vmatpush1.bf16.msra.mxu0 %v15581_v47  ;;  %2190 = vmatprep.subr.bf16.mxu1 %v15586_v48  ;;  %v998_v47 = vrot.slane %v935_v39, 3  ;;  %v999_v48 = vrot.slane %v18378_v44, 3  ;;  %v15662_v44 = vld [vmem:[#allocation10 + $0x10] ss:$8 sps:$4 sm:$0xff]  }
 0x284   : > { %5954 = vmatprep.subr.bf16.mxu0 %v15589_v56  ;;  %v1399_v56 = vrot.slane %v1225_v41, 2  ;;  %v15713_v39 = vld [vmem:[#allocation10 + $0x1170] ss:$8 sps:$4 sm:$0xff]   ;;  %v15719_v41 = vld [vmem:[#allocation10 + $0x1180] ss:$8 sps:$4 sm:$0xff]  }
 0x286   : > { %2191 = vmatpush1.bf16.msra.mxu1 %v15584_v49  ;;  %v1400_v49 = vrot.slane %v1233_v42, 2  ;;  %v15724_v42 = vld [vmem:[#allocation10 + $0xb4] ss:$8 sps:$4 sm:$0xff]  }
 0x287   : > { %5955 = vmatpush1.bf16.msra.mxu0 %v15587_v0  ;;  %2192 = vmatprep.subr.bf16.mxu1 %v15592_v38  ;;  %v15656_v0 = vld [vmem:[#allocation10] ss:$8 sps:$4 sm:$0xff]  }
 0x288   : > { %5956 = vmatprep.subr.bf16.mxu0 %v15595_v50  ;;  %v15659_v38 = vld [vmem:[#allocation10 + $0x10e0] ss:$8 sps:$4 sm:$0xff]   ;;  %v1022_v50 = vsel %vm994_vm9, %v999_v48, %v1021_v43  ;;  %v15722_v43 = vld [vmem:[#allocation10 + $0xb0] ss:$8 sps:$4 sm:$0xff]  }
 0x28a   : > { %2193 = vmatpush1.bf16.msra.mxu1 %v15590_v51  ;;  %v1000_v51 = vsel %vm994_vm9, %v998_v47, %v999_v48  ;;  %v15730_v47 = vld [vmem:[#allocation10 + $0xc4] ss:$8 sps:$4 sm:$0xff]   ;;  %v15728_v48 = vld [vmem:[#allocation10 + $0xc0] ss:$8 sps:$4 sm:$0xff]  }
 0x28b   : > { %5957 = vmatpush1.bf16.msra.mxu0 %v15593_v52  ;;  %2194 = vmatprep.subr.bf16.mxu1 %v15598_v53  ;;  %v15664_v52 = vld [vmem:[#allocation10 + $0x14] ss:$8 sps:$4 sm:$0xff]  }
 0x28c   : > { %5958 = vmatprep.subr.bf16.mxu0 %v15601_v54  ;;  %v15667_v53 = vld [vmem:[#allocation10 + $0x10f4] ss:$8 sps:$4 sm:$0xff]   ;;  %v1401_v54 = vsel %vm1380_vm6, %v1399_v56, %v1400_v49  ;;  %v15733_v56 = vld [vmem:[#allocation10 + $0x11a4] ss:$8 sps:$4 sm:$0xff]   ;;  %v15731_v49 = vld [vmem:[#allocation10 + $0x11a0] ss:$8 sps:$4 sm:$0xff]  }
 0x28e   : > { %2195 = vmatpush1.bf16.msra.mxu1 %v15596_v57  ;;  %v13555_v57 = vpack.c.bf16 %v1022_v50, %v1000_v51  ;;  %v15739_v50 = vld [vmem:[#allocation10 + $0x11b4] ss:$8 sps:$4 sm:$0xff]   ;;  %v15737_v51 = vld [vmem:[#allocation10 + $0x11b0] ss:$8 sps:$4 sm:$0xff]  }
 0x28f   : > { %5959 = vmatpush1.bf16.msra.mxu0 %v15599_v58  ;;  %2196 = vmatprep.subr.bf16.mxu1 %v15604_v59  ;;  %v15665_v58 = vld [vmem:[#allocation10 + $0x10f0] ss:$8 sps:$4 sm:$0xff]   ;;  %v15670_v59 = vld [vmem:[#allocation10 + $0x24] ss:$8 sps:$4 sm:$0xff]  }
 0x290   : > { %5960 = vmatprep.subr.bf16.mxu0 %v15607_v60  ;;  %v5165_v60 = vld [vmem:[#allocation2 + $0x80] sm:$0xff] }
 0x292   : > { %2197 = vmatpush1.bf16.msra.mxu1 %v15602_v62  ;;  %v15673_v62 = vld [vmem:[#allocation10 + $0x1104] ss:$8 sps:$4 sm:$0xff]  }
 0x293   : > { %5961 = vmatpush1.bf16.msra.mxu0 %v15605_v63  ;;  %2198 = vmatprep.subr.bf16.mxu1 %v15610_v3  ;;  %v5168_v63 = vld [vmem:[#allocation2 + $0x98] sm:$0xff] }
 0x294   : > { %5962 = vmatprep.subr.bf16.mxu0 %v15613_v2  ;;  %v15668_v3 = vld [vmem:[#allocation10 + $0x20] ss:$8 sps:$4 sm:$0xff]  }
 0x295   : > { %v15671_v2 = vld [vmem:[#allocation10 + $0x1100] ss:$8 sps:$4 sm:$0xff]  }
 0x296   : > { %2199 = vmatpush1.bf16.msra.mxu1 %v15608_v6  ;;  %v15676_v6 = vld [vmem:[#allocation10 + $0x34] ss:$8 sps:$4 sm:$0xff]  }
 0x297   : > { %5963 = vmatpush1.bf16.msra.mxu0 %v15611_v8  ;;  %2200 = vmatprep.subr.bf16.mxu1 %v15616_v29  ;;  %v15679_v8 = vld [vmem:[#allocation10 + $0x1114] ss:$8 sps:$4 sm:$0xff]   ;;  %v18387_v29 = vld [vmem:[#allocation2 + $0x40] sm:$0xff] }
 0x298   : > { %5964 = vmatprep.subr.bf16.mxu0 %v15619_v9  ;;  %v5173_v9 = vpack.c.bf16 %v5165_v60, %v18387_v29  ;;  %v934_v60 = vld [vmem:[#allocation2] sm:$0xf8] }
 0x29a   : > { %2201 = vmatpush1.bf16.msra.mxu1 %v15614_v1  ;;  %v18390_v1 = vld [vmem:[#allocation2 + $0x58] sm:$0xff] }
 0x29b   : > { %5965 = vmatpush1.bf16.msra.mxu0 %v15617_v7  ;;  %2202 = vmatprep.subr.bf16.mxu1 %v15622_v10  ;;  %v5176_v7 = vpack.c.bf16 %v5168_v63, %v18390_v1  ;;  %v15674_v10 = vld [vmem:[#allocation10 + $0x30] ss:$8 sps:$4 sm:$0xff]  }
 0x29c   : > { %5966 = vmatprep.subr.bf16.mxu0 %v15625_v11  ;;  %v15677_v11 = vld [vmem:[#allocation10 + $0x1110] ss:$8 sps:$4 sm:$0xff]  }
 0x29e   : > { %2203 = vmatpush1.bf16.msra.mxu1 %v15620_v12  ;;  %v15682_v12 = vld [vmem:[#allocation10 + $0x44] ss:$8 sps:$4 sm:$0xff]  }
 0x29f   : > { %5967 = vmatpush1.bf16.msra.mxu0 %v15623_v61  ;;  %2204 = vmatprep.subr.bf16.mxu1 %v15628_v13  ;;  %v15680_v61 = vld [vmem:[#allocation10 + $0x40] ss:$8 sps:$4 sm:$0xff]   ;;  %v15685_v13 = vld [vmem:[#allocation10 + $0x1124] ss:$8 sps:$4 sm:$0xff]  }
 0x2a0   : > { %5968 = vmatprep.subr.bf16.mxu0 %v15631_v15  ;;  %v15683_v15 = vld [vmem:[#allocation10 + $0x1120] ss:$8 sps:$4 sm:$0xff]  }
 0x2a2   : > { %2205 = vmatpush1.bf16.msra.mxu1 %v15626_v16  ;;  %v15688_v16 = vld [vmem:[#allocation10 + $0x54] ss:$8 sps:$4 sm:$0xff]  }
 0x2a3   : > { %5969 = vmatpush1.bf16.msra.mxu0 %v15629_v17  ;;  %2206 = vmatprep.subr.bf16.mxu1 %v15634_v18  ;;  %v15686_v17 = vld [vmem:[#allocation10 + $0x50] ss:$8 sps:$4 sm:$0xff]   ;;  %v15691_v18 = vld [vmem:[#allocation10 + $0x1134] ss:$8 sps:$4 sm:$0xff]  }
 0x2a4   : > { %5970 = vmatprep.subr.bf16.mxu0 %v15637_v20  ;;  %v15689_v20 = vld [vmem:[#allocation10 + $0x1130] ss:$8 sps:$4 sm:$0xff]  }
 0x2a6   : > { %2207 = vmatpush1.bf16.msra.mxu1 %v15632_v32  ;;  %v15694_v32 = vld [vmem:[#allocation10 + $0x64] ss:$8 sps:$4 sm:$0xff]  }
 0x2a7   : > { %5971 = vmatpush1.bf16.msra.mxu0 %v15635_v21  ;;  %2208 = vmatprep.subr.bf16.mxu1 %v15640_v22  ;;  %v15692_v21 = vld [vmem:[#allocation10 + $0x60] ss:$8 sps:$4 sm:$0xff]   ;;  %v15697_v22 = vld [vmem:[#allocation10 + $0x1144] ss:$8 sps:$4 sm:$0xff]  }
 0x2a8   : > { %5972 = vmatprep.subr.bf16.mxu0 %v15643_v23  ;;  %v15695_v23 = vld [vmem:[#allocation10 + $0x1140] ss:$8 sps:$4 sm:$0xff]  }
 0x2aa   : > { %2209 = vmatpush1.bf16.msra.mxu1 %v15638_v24  ;;  %v15700_v24 = vld [vmem:[#allocation10 + $0x74] ss:$8 sps:$4 sm:$0xff]  }
 0x2ab   : > { %5973 = vmatpush1.bf16.msra.mxu0 %v15641_v25  ;;  %2210 = vmatprep.subr.bf16.mxu1 %v15646_v26  ;;  %v15698_v25 = vld [vmem:[#allocation10 + $0x70] ss:$8 sps:$4 sm:$0xff]   ;;  %v15703_v26 = vld [vmem:[#allocation10 + $0x1154] ss:$8 sps:$4 sm:$0xff]  }
 0x2ac   : > { %5974 = vmatprep.subr.bf16.mxu0 %v15649_v19  ;;  %v15701_v19 = vld [vmem:[#allocation10 + $0x1150] ss:$8 sps:$4 sm:$0xff]  }
 0x2ae   : > { %2211 = vmatpush1.bf16.msra.mxu1 %v15644_v33  ;;  %v15709_v33 = vld [vmem:[#allocation10 + $0x1164] ss:$8 sps:$4 sm:$0xff]  }
 0x2af   : > { %5975 = vmatpush1.bf16.msra.mxu0 %v15647_v34  ;;  %2212 = vmatprep.subr.bf16.mxu1 %v15652_v36  ;;  %v15707_v34 = vld [vmem:[#allocation10 + $0x1160] ss:$8 sps:$4 sm:$0xff]   ;;  %v15715_v36 = vld [vmem:[#allocation10 + $0x1174] ss:$8 sps:$4 sm:$0xff]  }
 0x2b0   : > { %5976 = vmatprep.subr.bf16.mxu0 %v15655_v37  ;;  %v15710_v37 = vld [vmem:[#allocation10 + $0x90] ss:$8 sps:$4 sm:$0xff]  }
 0x2b2   : > { %2213 = vmatpush1.bf16.msra.mxu1 %v15650_v40  ;;  %v15718_v40 = vld [vmem:[#allocation10 + $0xa4] ss:$8 sps:$4 sm:$0xff]  }
 0x2b3   : > { %5977 = vmatpush1.bf16.msra.mxu0 %v15653_v4  ;;  %2865 = vmatprep.subr.bf16.mxu1 %v15658_v45  ;;  %v15721_v4 = vld [vmem:[#allocation10 + $0x1184] ss:$8 sps:$4 sm:$0xff]   ;;  %v15727_v45 = vld [vmem:[#allocation10 + $0x1194] ss:$8 sps:$4 sm:$0xff]  }
 0x2b4   : > { %5978 = vmatprep.subr.bf16.mxu0 %v15661_v46  ;;  %v15725_v46 = vld [vmem:[#allocation10 + $0x1190] ss:$8 sps:$4 sm:$0xff]  }
 0x2b5   : > { %2215 = vmatmul.mubr.bf16.vlgmr.msra.gmra.mrb[16].mxu1 %v1401_v54  ;;  %v15745_v54 = vld [vmem:[#allocation10 + $0x11c4] ss:$8 sps:$4 sm:$0xff]  }
 0x2b6   : > { %2866 = vmatpush1.bf16.msra.mxu1 %v15656_v0  ;;  %13556 = vmatprep.mubr.msk.bf16.mxu1 %vm18332_vm8, %v13555_v57  ;;  %v15736_v0 = vld [vmem:[#allocation10 + $0xd4] ss:$8 sps:$4 sm:$0xff]   ;;  %v953_v57 = vld [vmem:[#allocation2 + $0x98] sm:$0x7] }
 0x2b7   : > { %5979 = vmatpush1.bf16.msra.mxu0 %v15659_v38  ;;  %2867 = vmatprep.subr.bf16.mxu1 %v15664_v52  ;;  %v15734_v38 = vld [vmem:[#allocation10 + $0xd0] ss:$8 sps:$4 sm:$0xff]   ;;  %v15742_v52 = vld [vmem:[#allocation10 + $0xe4] ss:$8 sps:$4 sm:$0xff]  }
 0x2b8   : > { %5980 = vmatprep.subr.bf16.mxu0 %v15667_v53  ;;  %v950_v53 = vld [vmem:[#allocation2 + $0x80] sm:$0x7] }
 0x2b9   : > { %v1019_v63 = vrot.slane %v950_v53, 3  ;;  %v15797_v53 = vld [vmem:[#allocation10 + $0x1250] ss:$8 sps:$4 sm:$0xff]  }
 0x2ba   : > { %2868 = vmatpush1.bf16.msra.mxu1 %v15662_v44  ;;  %v15740_v44 = vld [vmem:[#allocation10 + $0xe0] ss:$8 sps:$4 sm:$0xff]  }
 0x2bb   : > { %5981 = vmatpush1.bf16.msra.mxu0 %v15665_v58  ;;  %2869 = vmatprep.subr.bf16.mxu1 %v15670_v59  ;;  %v15743_v58 = vld [vmem:[#allocation10 + $0x11c0] ss:$8 sps:$4 sm:$0xff]   ;;  %v15748_v59 = vld [vmem:[#allocation10 + $0xf4] ss:$8 sps:$4 sm:$0xff]  }
 0x2bc   : > { %5993 = vmatprep.subr.bf16.mxu0 %v15673_v62  ;;  %v15751_v62 = vld [vmem:[#allocation10 + $0x11d4] ss:$8 sps:$4 sm:$0xff]  }
 0x2be   : > { %5983 = vmatmul.mubr.bf16.vlgmr.msra.gmra.mrb[0].mxu0 %v5173_v9  ;;  %2870 = vmatpush1.bf16.msra.mxu1 %v15668_v3  ;;  %v937_v3 = vld [vmem:[#allocation2 + $0x18] sm:$0xf8]  ;;  %v996_v9 = vrot.slane %v18387_v29, 3  ;;  %v15763_v29 = vld [vmem:[#allocation10 + $0x11f4] ss:$8 sps:$4 sm:$0xff]  }
 0x2bf   : > { %5994 = vmatpush1.bf16.msra.mxu0 %v15671_v2  ;;  %6025 = vmatprep.mubr.bf16.mxu0 %v5176_v7  ;;  %v15746_v2 = vld [vmem:[#allocation10 + $0xf0] ss:$8 sps:$4 sm:$0xff]  }
 0x2c0   : > { %2871 = vmatprep.subr.bf16.mxu1 %v15676_v6  ;;  %5995 = vmatprep.subr.bf16.mxu0 %v15679_v8  ;;  %v1025_v6 = vrot.slane %v953_v57, 3  ;;  %v995_v8 = vrot.slane %v934_v60, 3  ;;  %v15749_v7 = vld [vmem:[#allocation10 + $0x11d0] ss:$8 sps:$4 sm:$0xff]   ;;  %v15805_v57 = vld [vmem:[#allocation10 + $0x1264] ss:$8 sps:$4 sm:$0xff]  }
 0x2c1   : > { %v15806_v60 = vld [vmem:[#allocation10 + $0x190] ss:$8 sps:$4 sm:$0xff]  }
 0x2c2   : > { %2872 = vmatpush1.bf16.msra.mxu1 %v15674_v10  ;;  %v15754_v10 = vld [vmem:[#allocation10 + $0x104] ss:$8 sps:$4 sm:$0xff]  }
 0x2c3   : > { %5996 = vmatpush1.bf16.msra.mxu0 %v15677_v11  ;;  %2873 = vmatprep.subr.bf16.mxu1 %v15682_v12  ;;  %v1004_v11 = vrot.slane %v937_v3, 3  ;;  %v1005_v12 = vrot.slane %v18390_v1, 3  ;;  %v15814_v3 = vld [vmem:[#allocation10 + $0x1a4] ss:$8 sps:$4 sm:$0xff]  }
 0x2c4   : > { %5997 = vmatprep.subr.bf16.mxu0 %v15685_v13  ;;  %v15752_v13 = vld [vmem:[#allocation10 + $0x100] ss:$8 sps:$4 sm:$0xff]  }
 0x2c6   : > { %2874 = vmatpush1.bf16.msra.mxu1 %v15680_v61  ;;  %v1020_v61 = vsel %vm994_vm9, %v996_v9, %v1019_v63  ;;  %v15809_v63 = vld [vmem:[#allocation10 + $0x1270] ss:$8 sps:$4 sm:$0xff]  }
 0x2c7   : > { %5998 = vmatpush1.bf16.msra.mxu0 %v15683_v15  ;;  %2875 = vmatprep.subr.bf16.mxu1 %v15688_v16  ;;  %v15757_v15 = vld [vmem:[#allocation10 + $0x11e4] ss:$8 sps:$4 sm:$0xff]   ;;  %v15755_v16 = vld [vmem:[#allocation10 + $0x11e0] ss:$8 sps:$4 sm:$0xff]  }
 0x2c8   : > { %5999 = vmatprep.subr.bf16.mxu0 %v15691_v18  ;;  %v15760_v18 = vld [vmem:[#allocation10 + $0x114] ss:$8 sps:$4 sm:$0xff]  }
 0x2ca   : > { %2876 = vmatpush1.bf16.msra.mxu1 %v15686_v17  ;;  %v1026_v17 = vsel %vm994_vm9, %v1005_v12, %v1025_v6  ;;  %v15817_v6 = vld [vmem:[#allocation10 + $0x1284] ss:$8 sps:$4 sm:$0xff]  }
 0x2cb   : > { %6000 = vmatpush1.bf16.msra.mxu0 %v15689_v20  ;;  %2877 = vmatprep.subr.bf16.mxu1 %v15694_v32  ;;  %v997_v20 = vsel %vm994_vm9, %v995_v8, %v996_v9  ;;  %v15815_v8 = vld [vmem:[#allocation10 + $0x1280] ss:$8 sps:$4 sm:$0xff]   ;;  %v15820_v9 = vld [vmem:[#allocation10 + $0x1b4] ss:$8 sps:$4 sm:$0xff]  }
 0x2cc   : > { %6001 = vmatprep.subr.bf16.mxu0 %v15697_v22  ;;  %v13558_v32 = vpack.c.bf16 %v1020_v61, %v997_v20  ;;  %v15758_v22 = vld [vmem:[#allocation10 + $0x110] ss:$8 sps:$4 sm:$0xff]   ;;  %v15829_v61 = vld [vmem:[#allocation10 + $0x12a4] ss:$8 sps:$4 sm:$0xff]  }
 0x2cd   : > { %v15833_v20 = vld [vmem:[#allocation10 + $0x12b0] ss:$8 sps:$4 sm:$0xff]  }
 0x2ce   : > { %2878 = vmatpush1.bf16.msra.mxu1 %v15692_v21  ;;  %v1006_v21 = vsel %vm994_vm9, %v1004_v11, %v1005_v12  ;;  %v15821_v11 = vld [vmem:[#allocation10 + $0x1290] ss:$8 sps:$4 sm:$0xff]   ;;  %v15826_v12 = vld [vmem:[#allocation10 + $0x1c4] ss:$8 sps:$4 sm:$0xff]  }
 0x2cf   : > { %6002 = vmatpush1.bf16.msra.mxu0 %v15695_v23  ;;  %2879 = vmatprep.subr.bf16.mxu1 %v15700_v24  ;;  %v13561_v1 = vpack.c.bf16 %v1026_v17, %v1006_v21  ;;  %v15761_v23 = vld [vmem:[#allocation10 + $0x11f0] ss:$8 sps:$4 sm:$0xff]   ;;  %v15766_v24 = vld [vmem:[#allocation10 + $0x124] ss:$8 sps:$4 sm:$0xff]   ;;  %v15836_v21 = vld [vmem:[#allocation10 + $0x1e0] ss:$8 sps:$4 sm:$0xff]  }
 0x2d0   : > { %6003 = vmatprep.subr.bf16.mxu0 %v15703_v26  ;;  %v15764_v26 = vld [vmem:[#allocation10 + $0x120] ss:$8 sps:$4 sm:$0xff]   ;;  %v15830_v17 = vld [vmem:[#allocation10 + $0x1d0] ss:$8 sps:$4 sm:$0xff]  }
 0x2d2   : > { %2880 = vmatpush1.bf16.msra.mxu1 %v15698_v25  ;;  %v5167_v25 = vld [vmem:[#allocation2 + $0x90] sm:$0xff] }
 0x2d3   : > { %6004 = vmatpush1.bf16.msra.mxu0 %v15701_v19  ;;  %2881 = vmatprep.subr.bf16.mxu1 %v15706_v27  ;;  %v15769_v19 = vld [vmem:[#allocation10 + $0x1204] ss:$8 sps:$4 sm:$0xff]   ;;  %v5170_v27 = vld [vmem:[#allocation2 + $0xa8] sm:$0xff] }
 0x2d4   : > { %6005 = vmatprep.subr.bf16.mxu0 %v15709_v33  ;;  %v15772_v33 = vld [vmem:[#allocation10 + $0x134] ss:$8 sps:$4 sm:$0xff]  }
 0x2d6   : > { %2882 = vmatpush1.bf16.msra.mxu1 %v15704_v28  ;;  %v15767_v28 = vld [vmem:[#allocation10 + $0x1200] ss:$8 sps:$4 sm:$0xff]  }
 0x2d7   : > { %6006 = vmatpush1.bf16.msra.mxu0 %v15707_v34  ;;  %2883 = vmatprep.subr.bf16.mxu1 %v15712_v35  ;;  %v18403_v34 = vld [vmem:[#allocation2 + $0x50] sm:$0xff] }
 0x2d8   : > { %6007 = vmatprep.subr.bf16.mxu0 %v15715_v36  ;;  %v5175_v35 = vpack.c.bf16 %v5167_v25, %v18403_v34  ;;  %v15775_v36 = vld [vmem:[#allocation10 + $0x1214] ss:$8 sps:$4 sm:$0xff]  }
 0x2d9   : > { %v15844_v25 = vld [vmem:[#allocation10 + $0x1f4] ss:$8 sps:$4 sm:$0xff]  }
 0x2da   : > { %2884 = vmatpush1.bf16.msra.mxu1 %v15710_v37  ;;  %v18406_v37 = vld [vmem:[#allocation2 + $0x68] sm:$0xff] }
 0x2db   : > { %6008 = vmatpush1.bf16.msra.mxu0 %v15713_v39  ;;  %2885 = vmatprep.subr.bf16.mxu1 %v15718_v40  ;;  %v5178_v39 = vpack.c.bf16 %v5170_v27, %v18406_v37  ;;  %v15770_v40 = vld [vmem:[#allocation10 + $0x130] ss:$8 sps:$4 sm:$0xff]   ;;  %v15847_v27 = vld [vmem:[#allocation10 + $0x12d4] ss:$8 sps:$4 sm:$0xff]  }
 0x2dc   : > { %6009 = vmatprep.subr.bf16.mxu0 %v15721_v4  ;;  %v15773_v4 = vld [vmem:[#allocation10 + $0x1210] ss:$8 sps:$4 sm:$0xff]  }
 0x2de   : > { %2886 = vmatpush1.bf16.msra.mxu1 %v15716_v55  ;;  %v15778_v55 = vld [vmem:[#allocation10 + $0x144] ss:$8 sps:$4 sm:$0xff]  }
 0x2df   : > { %6010 = vmatpush1.bf16.msra.mxu0 %v15719_v41  ;;  %2887 = vmatprep.subr.bf16.mxu1 %v15724_v42  ;;  %v15776_v41 = vld [vmem:[#allocation10 + $0x140] ss:$8 sps:$4 sm:$0xff]   ;;  %v15781_v42 = vld [vmem:[#allocation10 + $0x1224] ss:$8 sps:$4 sm:$0xff]  }
 0x2e0   : > { %6011 = vmatprep.subr.bf16.mxu0 %v15727_v45  ;;  %v15784_v45 = vld [vmem:[#allocation10 + $0x154] ss:$8 sps:$4 sm:$0xff]  }
 0x2e2   : > { %2888 = vmatpush1.bf16.msra.mxu1 %v15722_v43  ;;  %v15779_v43 = vld [vmem:[#allocation10 + $0x1220] ss:$8 sps:$4 sm:$0xff]  }
 0x2e3   : > { %6012 = vmatpush1.bf16.msra.mxu0 %v15725_v46  ;;  %2889 = vmatprep.subr.bf16.mxu1 %v15730_v47  ;;  %v15782_v46 = vld [vmem:[#allocation10 + $0x150] ss:$8 sps:$4 sm:$0xff]   ;;  %v15787_v47 = vld [vmem:[#allocation10 + $0x1234] ss:$8 sps:$4 sm:$0xff]  }
 0x2e4   : > { %6013 = vmatprep.subr.bf16.mxu0 %v15733_v56  ;;  %v15790_v56 = vld [vmem:[#allocation10 + $0x164] ss:$8 sps:$4 sm:$0xff]  }
 0x2e6   : > { %2890 = vmatpush1.bf16.msra.mxu1 %v15728_v48  ;;  %v15785_v48 = vld [vmem:[#allocation10 + $0x1230] ss:$8 sps:$4 sm:$0xff]  }
 0x2e7   : > { %6014 = vmatpush1.bf16.msra.mxu0 %v15731_v49  ;;  %2891 = vmatprep.subr.bf16.mxu1 %v15736_v0  ;;  %v15788_v49 = vld [vmem:[#allocation10 + $0x160] ss:$8 sps:$4 sm:$0xff]   ;;  %v15793_v0 = vld [vmem:[#allocation10 + $0x1244] ss:$8 sps:$4 sm:$0xff]  }
 0x2e8   : > { %6015 = vmatprep.subr.bf16.mxu0 %v15739_v50  ;;  %v15796_v50 = vld [vmem:[#allocation10 + $0x174] ss:$8 sps:$4 sm:$0xff]  }
 0x2ea   : > { %2892 = vmatpush1.bf16.msra.mxu1 %v15734_v38  ;;  %v15791_v38 = vld [vmem:[#allocation10 + $0x1240] ss:$8 sps:$4 sm:$0xff]  }
 0x2eb   : > { %6016 = vmatpush1.bf16.msra.mxu0 %v15737_v51  ;;  %2893 = vmatprep.subr.bf16.mxu1 %v15742_v52  ;;  %v15799_v51 = vld [vmem:[#allocation10 + $0x1254] ss:$8 sps:$4 sm:$0xff]   ;;  %v15794_v52 = vld [vmem:[#allocation10 + $0x170] ss:$8 sps:$4 sm:$0xff]  }
 0x2ec   : > { %6017 = vmatprep.subr.bf16.mxu0 %v15745_v54  ;;  %v15802_v54 = vld [vmem:[#allocation10 + $0x184] ss:$8 sps:$4 sm:$0xff]  }
 0x2ee   : > { %2894 = vmatpush1.bf16.msra.mxu1 %v15740_v44  ;;  %v15800_v44 = vld [vmem:[#allocation10 + $0x180] ss:$8 sps:$4 sm:$0xff]  }
 0x2ef   : > { %6018 = vmatpush1.bf16.msra.mxu0 %v15743_v58  ;;  %2895 = vmatprep.subr.bf16.mxu1 %v15748_v59  ;;  %v15803_v58 = vld [vmem:[#allocation10 + $0x1260] ss:$8 sps:$4 sm:$0xff]   ;;  %v15808_v59 = vld [vmem:[#allocation10 + $0x194] ss:$8 sps:$4 sm:$0xff]  }
 0x2f0   : > { %6019 = vmatprep.subr.bf16.mxu0 %v15751_v62  ;;  %v15811_v62 = vld [vmem:[#allocation10 + $0x1274] ss:$8 sps:$4 sm:$0xff]  }
 0x2f2   : > { %2896 = vmatpush1.bf16.msra.mxu1 %v15746_v2  ;;  %v15812_v2 = vld [vmem:[#allocation10 + $0x1a0] ss:$8 sps:$4 sm:$0xff]  }
 0x2f3   : > { %6020 = vmatpush1.bf16.msra.mxu0 %v15749_v7  ;;  %2908 = vmatprep.subr.bf16.mxu1 %v15754_v10  ;;  %v15818_v7 = vld [vmem:[#allocation10 + $0x1b0] ss:$8 sps:$4 sm:$0xff]   ;;  %v15823_v10 = vld [vmem:[#allocation10 + $0x1294] ss:$8 sps:$4 sm:$0xff]  }
 0x2f4   : > { %6021 = vmatprep.subr.bf16.mxu0 %v15757_v15  ;;  %v15827_v15 = vld [vmem:[#allocation10 + $0x12a0] ss:$8 sps:$4 sm:$0xff]  }
 0x2f5   : > { %13559 = vmatmul.mubr.msk.bf16.vlgmr.msra.gmra.mrb[16].mxu1 %vm18332_vm8, %v13558_v32  ;;  %v952_v32 = vld [vmem:[#allocation2 + $0x90] sm:$0x7] }
 0x2f6   : > { %2909 = vmatpush1.bf16.msra.mxu1 %v15752_v13  ;;  %13562 = vmatprep.mubr.msk.bf16.mxu1 %vm18332_vm8, %v13561_v1  ;;  %v15824_v13 = vld [vmem:[#allocation10 + $0x1c0] ss:$8 sps:$4 sm:$0xff]   ;;  %v15841_v1 = vld [vmem:[#allocation10 + $0x12c4] ss:$8 sps:$4 sm:$0xff]  }
 0x2f7   : > { %6022 = vmatpush1.bf16.msra.mxu0 %v15755_v16  ;;  %2910 = vmatprep.subr.bf16.mxu1 %v15760_v18  ;;  %v15832_v16 = vld [vmem:[#allocation10 + $0x1d4] ss:$8 sps:$4 sm:$0xff]  }
 0x2f8   : > { %6023 = vmatprep.subr.bf16.mxu0 %v15763_v29  ;;  %v15835_v18 = vld [vmem:[#allocation10 + $0x12b4] ss:$8 sps:$4 sm:$0xff]   ;;  %v15838_v29 = vld [vmem:[#allocation10 + $0x1e4] ss:$8 sps:$4 sm:$0xff]  }
 0x2fa   : > { %2911 = vmatpush1.bf16.msra.mxu1 %v15758_v22  ;;  %v939_v22 = vld [vmem:[#allocation2 + $0x28] sm:$0xf8] }
 0x2fb   : > { %6024 = vmatpush1.bf16.msra.mxu0 %v15761_v23  ;;  %2912 = vmatprep.subr.bf16.mxu1 %v15766_v24  ;;  %v955_v23 = vld [vmem:[#allocation2 + $0xa8] sm:$0x7]  ;;  %v15839_v24 = vld [vmem:[#allocation10 + $0x12c0] ss:$8 sps:$4 sm:$0xff]  }
 0x2fc   : > { %6036 = vmatprep.subr.bf16.mxu0 %v15769_v19  ;;  %v15842_v19 = vld [vmem:[#allocation10 + $0x1f0] ss:$8 sps:$4 sm:$0xff]  }
 0x2fe   : > { %6026 = vmatmul.mubr.bf16.vlgmr.msra.gmra.mrb[0].mxu0 %v5175_v35  ;;  %2913 = vmatpush1.bf16.msra.mxu1 %v15764_v26  ;;  %v936_v26 = vld [vmem:[#allocation2 + $0x10] sm:$0xf8]  ;;  %v1011_v35 = vrot.slane %v18406_v37, 3 }
 0x2ff   : > { %6037 = vmatpush1.bf16.msra.mxu0 %v15767_v28  ;;  %6068 = vmatprep.mubr.bf16.mxu0 %v5178_v39  ;;  %v1023_v28 = vrot.slane %v952_v32, 3  ;;  %v1001_v39 = vrot.slane %v936_v26, 3  ;;  %v15893_v32 = vld [vmem:[#allocation10 + $0x1350] ss:$8 sps:$4 sm:$0xff]   ;;  %v15907_v26 = vld [vmem:[#allocation10 + $0x1374] ss:$8 sps:$4 sm:$0xff]  }
 0x300   : > { %2914 = vmatprep.subr.bf16.mxu1 %v15772_v33  ;;  %6038 = vmatprep.subr.bf16.mxu0 %v15775_v36  ;;  %v1010_v33 = vrot.slane %v939_v22, 3  ;;  %v1029_v36 = vrot.slane %v955_v23, 3  ;;  %v15901_v22 = vld [vmem:[#allocation10 + $0x1364] ss:$8 sps:$4 sm:$0xff]   ;;  %v15899_v23 = vld [vmem:[#allocation10 + $0x1360] ss:$8 sps:$4 sm:$0xff]  }
 0x302   : > { %2915 = vmatpush1.bf16.msra.mxu1 %v15770_v40  ;;  %v1002_v40 = vrot.slane %v18403_v34, 3  ;;  %v15856_v34 = vld [vmem:[#allocation10 + $0x214] ss:$8 sps:$4 sm:$0xff]  }
 0x303   : > { %6039 = vmatpush1.bf16.msra.mxu0 %v15773_v4  ;;  %2916 = vmatprep.subr.bf16.mxu1 %v15778_v55  ;;  %v15845_v4 = vld [vmem:[#allocation10 + $0x12d0] ss:$8 sps:$4 sm:$0xff]   ;;  %v15850_v55 = vld [vmem:[#allocation10 + $0x204] ss:$8 sps:$4 sm:$0xff]  }
 0x304   : > { %6040 = vmatprep.subr.bf16.mxu0 %v15781_v42  ;;  %v15853_v42 = vld [vmem:[#allocation10 + $0x12e4] ss:$8 sps:$4 sm:$0xff]   ;;  %v1003_v37 = vsel %vm994_vm9, %v1001_v39, %v1002_v40  ;;  %v15914_v39 = vld [vmem:[#allocation10 + $0x2b0] ss:$8 sps:$4 sm:$0xff]  }
 0x306   : > { %2917 = vmatpush1.bf16.msra.mxu1 %v15776_v41  ;;  %v1024_v41 = vsel %vm994_vm9, %v1002_v40, %v1023_v28  ;;  %v15913_v28 = vld [vmem:[#allocation10 + $0x1384] ss:$8 sps:$4 sm:$0xff]   ;;  %v15919_v40 = vld [vmem:[#allocation10 + $0x1394] ss:$8 sps:$4 sm:$0xff]  }
 0x307   : > { %6041 = vmatpush1.bf16.msra.mxu0 %v15779_v43  ;;  %2918 = vmatprep.subr.bf16.mxu1 %v15784_v45  ;;  %v1012_v43 = vsel %vm994_vm9, %v1010_v33, %v1011_v35  ;;  %v1030_v45 = vsel %vm994_vm9, %v1011_v35, %v1029_v36  ;;  %v15908_v33 = vld [vmem:[#allocation10 + $0x2a0] ss:$8 sps:$4 sm:$0xff]   ;;  %v15916_v36 = vld [vmem:[#allocation10 + $0x2b4] ss:$8 sps:$4 sm:$0xff]  }
 0x308   : > { %6042 = vmatprep.subr.bf16.mxu0 %v15787_v47  ;;  %v15851_v47 = vld [vmem:[#allocation10 + $0x12e0] ss:$8 sps:$4 sm:$0xff]  }
 0x309   : > { %v15911_v35 = vld [vmem:[#allocation10 + $0x1380] ss:$8 sps:$4 sm:$0xff]  }
 0x30a   : > { %2919 = vmatpush1.bf16.msra.mxu1 %v15782_v46  ;;  %v15848_v46 = vld [vmem:[#allocation10 + $0x200] ss:$8 sps:$4 sm:$0xff]  }
 0x30b   : > { %6043 = vmatpush1.bf16.msra.mxu0 %v15785_v48  ;;  %2920 = vmatprep.subr.bf16.mxu1 %v15790_v56  ;;  %v13564_v48 = vpack.c.bf16 %v1024_v41, %v1003_v37  ;;  %v15859_v56 = vld [vmem:[#allocation10 + $0x12f4] ss:$8 sps:$4 sm:$0xff]   ;;  %v15920_v41 = vld [vmem:[#allocation10 + $0x2c0] ss:$8 sps:$4 sm:$0xff]   ;;  %v15926_v37 = vld [vmem:[#allocation10 + $0x2d0] ss:$8 sps:$4 sm:$0xff]  }
 0x30c   : > { %6044 = vmatprep.subr.bf16.mxu0 %v15793_v0  ;;  %v15854_v0 = vld [vmem:[#allocation10 + $0x210] ss:$8 sps:$4 sm:$0xff]  }
 0x30e   : > { %2921 = vmatpush1.bf16.msra.mxu1 %v15788_v49  ;;  %v13567_v49 = vpack.c.bf16 %v1030_v45, %v1012_v43  ;;  %v15923_v43 = vld [vmem:[#allocation10 + $0x13a0] ss:$8 sps:$4 sm:$0xff]   ;;  %v15928_v45 = vld [vmem:[#allocation10 + $0x2d4] ss:$8 sps:$4 sm:$0xff]  }
 0x30f   : > { %6045 = vmatpush1.bf16.msra.mxu0 %v15791_v38  ;;  %2922 = vmatprep.subr.bf16.mxu1 %v15796_v50  ;;  %v15857_v38 = vld [vmem:[#allocation10 + $0x12f0] ss:$8 sps:$4 sm:$0xff]   ;;  %v15862_v50 = vld [vmem:[#allocation10 + $0x224] ss:$8 sps:$4 sm:$0xff]  }
 0x310   : > { %6046 = vmatprep.subr.bf16.mxu0 %v15799_v51  ;;  %v5169_v51 = vld [vmem:[#allocation2 + $0xa0] sm:$0xff] }
 0x312   : > { %2923 = vmatpush1.bf16.msra.mxu1 %v15794_v52  ;;  %v15860_v52 = vld [vmem:[#allocation10 + $0x220] ss:$8 sps:$4 sm:$0xff]  }
 0x313   : > { %6047 = vmatpush1.bf16.msra.mxu0 %v15797_v53  ;;  %2924 = vmatprep.subr.bf16.mxu1 %v15802_v54  ;;  %v15865_v53 = vld [vmem:[#allocation10 + $0x1304] ss:$8 sps:$4 sm:$0xff]  }
 0x314   : > { %6048 = vmatprep.subr.bf16.mxu0 %v15805_v57  ;;  %v5172_v54 = vld [vmem:[#allocation2 + $0xb8] sm:$0xff] }
 0x315   : > { %v15863_v57 = vld [vmem:[#allocation10 + $0x1300] ss:$8 sps:$4 sm:$0xff]  }
 0x316   : > { %2925 = vmatpush1.bf16.msra.mxu1 %v15800_v44  ;;  %v15868_v44 = vld [vmem:[#allocation10 + $0x234] ss:$8 sps:$4 sm:$0xff]  }
 0x317   : > { %6049 = vmatpush1.bf16.msra.mxu0 %v15803_v58  ;;  %2926 = vmatprep.subr.bf16.mxu1 %v15808_v59  ;;  %v15871_v58 = vld [vmem:[#allocation10 + $0x1314] ss:$8 sps:$4 sm:$0xff]   ;;  %v18419_v59 = vld [vmem:[#allocation2 + $0x60] sm:$0xff] }
 0x318   : > { %6050 = vmatprep.subr.bf16.mxu0 %v15811_v62  ;;  %v18422_v62 = vld [vmem:[#allocation2 + $0x78] sm:$0xff] }
 0x31a   : > { %2927 = vmatpush1.bf16.msra.mxu1 %v15806_v60  ;;  %v5177_v60 = vpack.c.bf16 %v5169_v51, %v18419_v59  ;;  %v15935_v51 = vld [vmem:[#allocation10 + $0x13c0] ss:$8 sps:$4 sm:$0xff]  }
 0x31b   : > { %6051 = vmatpush1.bf16.msra.mxu0 %v15809_v63  ;;  %2928 = vmatprep.subr.bf16.mxu1 %v15814_v3  ;;  %v5180_v63 = vpack.c.bf16 %v5172_v54, %v18422_v62  ;;  %v15866_v3 = vld [vmem:[#allocation10 + $0x230] ss:$8 sps:$4 sm:$0xff]   ;;  %v15943_v54 = vld [vmem:[#allocation10 + $0x13d4] ss:$8 sps:$4 sm:$0xff]  }
 0x31c   : > { %6052 = vmatprep.subr.bf16.mxu0 %v15817_v6  ;;  %v15874_v6 = vld [vmem:[#allocation10 + $0x244] ss:$8 sps:$4 sm:$0xff]  }
 0x31e   : > { %2929 = vmatpush1.bf16.msra.mxu1 %v15812_v2  ;;  %v15869_v2 = vld [vmem:[#allocation10 + $0x1310] ss:$8 sps:$4 sm:$0xff]  }
 0x31f   : > { %6053 = vmatpush1.bf16.msra.mxu0 %v15815_v8  ;;  %2930 = vmatprep.subr.bf16.mxu1 %v15820_v9  ;;  %v15872_v8 = vld [vmem:[#allocation10 + $0x240] ss:$8 sps:$4 sm:$0xff]   ;;  %v15877_v9 = vld [vmem:[#allocation10 + $0x1324] ss:$8 sps:$4 sm:$0xff]  }
 0x320   : > { %6054 = vmatprep.subr.bf16.mxu0 %v15823_v10  ;;  %v15880_v10 = vld [vmem:[#allocation10 + $0x254] ss:$8 sps:$4 sm:$0xff]  }
 0x322   : > { %2931 = vmatpush1.bf16.msra.mxu1 %v15818_v7  ;;  %v15875_v7 = vld [vmem:[#allocation10 + $0x1320] ss:$8 sps:$4 sm:$0xff]  }
 0x323   : > { %6055 = vmatpush1.bf16.msra.mxu0 %v15821_v11  ;;  %2932 = vmatprep.subr.bf16.mxu1 %v15826_v12  ;;  %v15883_v11 = vld [vmem:[#allocation10 + $0x1334] ss:$8 sps:$4 sm:$0xff]   ;;  %v15878_v12 = vld [vmem:[#allocation10 + $0x250] ss:$8 sps:$4 sm:$0xff]  }
 0x324   : > { %6056 = vmatprep.subr.bf16.mxu0 %v15829_v61  ;;  %v15881_v61 = vld [vmem:[#allocation10 + $0x1330] ss:$8 sps:$4 sm:$0xff]  }
 0x326   : > { %2933 = vmatpush1.bf16.msra.mxu1 %v15824_v13  ;;  %v15886_v13 = vld [vmem:[#allocation10 + $0x264] ss:$8 sps:$4 sm:$0xff]  }
 0x327   : > { %6057 = vmatpush1.bf16.msra.mxu0 %v15827_v15  ;;  %2934 = vmatprep.subr.bf16.mxu1 %v15832_v16  ;;  %v15884_v15 = vld [vmem:[#allocation10 + $0x260] ss:$8 sps:$4 sm:$0xff]   ;;  %v15889_v16 = vld [vmem:[#allocation10 + $0x1344] ss:$8 sps:$4 sm:$0xff]  }
 0x328   : > { %6058 = vmatprep.subr.bf16.mxu0 %v15835_v18  ;;  %v15892_v18 = vld [vmem:[#allocation10 + $0x274] ss:$8 sps:$4 sm:$0xff]  }
 0x32a   : > { %2935 = vmatpush1.bf16.msra.mxu1 %v15830_v17  ;;  %v15887_v17 = vld [vmem:[#allocation10 + $0x1340] ss:$8 sps:$4 sm:$0xff]  }
 0x32b   : > { %6059 = vmatpush1.bf16.msra.mxu0 %v15833_v20  ;;  %2936 = vmatprep.subr.bf16.mxu1 %v15838_v29  ;;  %v15890_v20 = vld [vmem:[#allocation10 + $0x270] ss:$8 sps:$4 sm:$0xff]   ;;  %v15895_v29 = vld [vmem:[#allocation10 + $0x1354] ss:$8 sps:$4 sm:$0xff]  }
 0x32c   : > { %6060 = vmatprep.subr.bf16.mxu0 %v15841_v1  ;;  %v15896_v1 = vld [vmem:[#allocation10 + $0x280] ss:$8 sps:$4 sm:$0xff]  }
 0x32e   : > { %2937 = vmatpush1.bf16.msra.mxu1 %v15836_v21  ;;  %v15898_v21 = vld [vmem:[#allocation10 + $0x284] ss:$8 sps:$4 sm:$0xff]  }
 0x32f   : > { %6061 = vmatpush1.bf16.msra.mxu0 %v15839_v24  ;;  %2938 = vmatprep.subr.bf16.mxu1 %v15844_v25  ;;  %v15904_v24 = vld [vmem:[#allocation10 + $0x294] ss:$8 sps:$4 sm:$0xff]   ;;  %v15902_v25 = vld [vmem:[#allocation10 + $0x290] ss:$8 sps:$4 sm:$0xff]  }
 0x330   : > { %6062 = vmatprep.subr.bf16.mxu0 %v15847_v27  ;;  %v15910_v27 = vld [vmem:[#allocation10 + $0x2a4] ss:$8 sps:$4 sm:$0xff]  }
 0x332   : > { %2939 = vmatpush1.bf16.msra.mxu1 %v15842_v19  ;;  %v15905_v19 = vld [vmem:[#allocation10 + $0x1370] ss:$8 sps:$4 sm:$0xff]  }
 0x333   : > { %6063 = vmatpush1.bf16.msra.mxu0 %v15845_v4  ;;  %2951 = vmatprep.subr.bf16.mxu1 %v15850_v55  ;;  %v15917_v4 = vld [vmem:[#allocation10 + $0x1390] ss:$8 sps:$4 sm:$0xff]   ;;  %v15922_v55 = vld [vmem:[#allocation10 + $0x2c4] ss:$8 sps:$4 sm:$0xff]  }
 0x334   : > { %6064 = vmatprep.subr.bf16.mxu0 %v15853_v42  ;;  %v15925_v42 = vld [vmem:[#allocation10 + $0x13a4] ss:$8 sps:$4 sm:$0xff]  }
 0x335   : > { %13565 = vmatmul.mubr.msk.bf16.vlgmr.msra.gmra.mrb[16].mxu1 %vm18332_vm8, %v13564_v48  ;;  %v15929_v48 = vld [vmem:[#allocation10 + $0x13b0] ss:$8 sps:$4 sm:$0xff]  }
 0x336   : > { %2952 = vmatpush1.bf16.msra.mxu1 %v15848_v46  ;;  %13568 = vmatprep.mubr.msk.bf16.mxu1 %vm18332_vm8, %v13567_v49  ;;  %v15931_v46 = vld [vmem:[#allocation10 + $0x13b4] ss:$8 sps:$4 sm:$0xff]   ;;  %v941_v49 = vld [vmem:[#allocation2 + $0x38] sm:$0xf8] }
 0x337   : > { %6065 = vmatpush1.bf16.msra.mxu0 %v15851_v47  ;;  %2953 = vmatprep.subr.bf16.mxu1 %v15856_v34  ;;  %v938_v47 = vld [vmem:[#allocation2 + $0x20] sm:$0xf8] }
 0x338   : > { %6066 = vmatprep.subr.bf16.mxu0 %v15859_v56  ;;  %v15934_v34 = vld [vmem:[#allocation10 + $0x2e4] ss:$8 sps:$4 sm:$0xff]   ;;  %v954_v56 = vld [vmem:[#allocation2 + $0xa0] sm:$0x7] }
 0x33a   : > { %2954 = vmatpush1.bf16.msra.mxu1 %v15854_v0  ;;  %v15937_v0 = vld [vmem:[#allocation10 + $0x13c4] ss:$8 sps:$4 sm:$0xff]  }
 0x33b   : > { %6067 = vmatpush1.bf16.msra.mxu0 %v15857_v38  ;;  %2955 = vmatprep.subr.bf16.mxu1 %v15862_v50  ;;  %v957_v38 = vld [vmem:[#allocation2 + $0xb8] sm:$0x7] }
 0x33c   : > { %6079 = vmatprep.subr.bf16.mxu0 %v15865_v53  ;;  %v15932_v50 = vld [vmem:[#allocation10 + $0x2e0] ss:$8 sps:$4 sm:$0xff]   ;;  %v1007_v53 = vrot.slane %v938_v47, 3  ;;  %v15977_v47 = vld [vmem:[#allocation10 + $0x1430] ss:$8 sps:$4 sm:$0xff]  }
 0x33e   : > { %6069 = vmatmul.mubr.bf16.vlgmr.msra.gmra.mrb[0].mxu0 %v5177_v60  ;;  %2956 = vmatpush1.bf16.msra.mxu1 %v15860_v52  ;;  %v15940_v52 = vld [vmem:[#allocation10 + $0x2f4] ss:$8 sps:$4 sm:$0xff]   ;;  %v15938_v60 = vld [vmem:[#allocation10 + $0x2f0] ss:$8 sps:$4 sm:$0xff]  }
 0x33f   : > { %6080 = vmatpush1.bf16.msra.mxu0 %v15863_v57  ;;  %6111 = vmatprep.mubr.bf16.mxu0 %v5180_v63  ;;  %v1008_v57 = vrot.slane %v18419_v59, 3  ;;  %v1017_v63 = vrot.slane %v18422_v62, 3  ;;  %v6135_v62 = vld [vmem:[#allocation2 + $0x88] sm:$0xff] }
 0x340   : > { %2957 = vmatprep.subr.bf16.mxu1 %v15868_v44  ;;  %6081 = vmatprep.subr.bf16.mxu0 %v15871_v58  ;;  %v1027_v44 = vrot.slane %v954_v56, 3  ;;  %v1016_v58 = vrot.slane %v941_v49, 3  ;;  %v15985_v56 = vld [vmem:[#allocation10 + $0x1444] ss:$8 sps:$4 sm:$0xff]   ;;  %v15983_v49 = vld [vmem:[#allocation10 + $0x1440] ss:$8 sps:$4 sm:$0xff]  }
 0x342   : > { %2958 = vmatpush1.bf16.msra.mxu1 %v15866_v3  ;;  %v1033_v3 = vrot.slane %v957_v38, 3  ;;  %v1018_v59 = vsel %vm994_vm9, %v1016_v58, %v1017_v63  ;;  %v15991_v38 = vld [vmem:[#allocation10 + $0x1454] ss:$8 sps:$4 sm:$0xff]   ;;  %v15998_v58 = vld [vmem:[#allocation10 + $0x390] ss:$8 sps:$4 sm:$0xff]  }
 0x343   : > { %6082 = vmatpush1.bf16.msra.mxu0 %v15869_v2  ;;  %2959 = vmatprep.subr.bf16.mxu1 %v15874_v6  ;;  %v15941_v2 = vld [vmem:[#allocation10 + $0x13d0] ss:$8 sps:$4 sm:$0xff]   ;;  %v15946_v6 = vld [vmem:[#allocation10 + $0x304] ss:$8 sps:$4 sm:$0xff]  }
 0x344   : > { %6083 = vmatprep.subr.bf16.mxu0 %v15877_v9  ;;  %v1028_v9 = vsel %vm994_vm9, %v1008_v57, %v1027_v44  ;;  %v16000_v44 = vld [vmem:[#allocation10 + $0x394] ss:$8 sps:$4 sm:$0xff]  }
 0x346   : > { %2960 = vmatpush1.bf16.msra.mxu1 %v15872_v8  ;;  %v1009_v8 = vsel %vm994_vm9, %v1007_v53, %v1008_v57  ;;  %v15992_v53 = vld [vmem:[#allocation10 + $0x380] ss:$8 sps:$4 sm:$0xff]  }
 0x347   : > { %6084 = vmatpush1.bf16.msra.mxu0 %v15875_v7  ;;  %2961 = vmatprep.subr.bf16.mxu1 %v15880_v10  ;;  %v15944_v7 = vld [vmem:[#allocation10 + $0x300] ss:$8 sps:$4 sm:$0xff]   ;;  %v15949_v10 = vld [vmem:[#allocation10 + $0x13e4] ss:$8 sps:$4 sm:$0xff]  }
 0x348   : > { %6085 = vmatprep.subr.bf16.mxu0 %v15883_v11  ;;  %v15947_v11 = vld [vmem:[#allocation10 + $0x13e0] ss:$8 sps:$4 sm:$0xff]  }
 0x349   : > { %v15995_v57 = vld [vmem:[#allocation10 + $0x1460] ss:$8 sps:$4 sm:$0xff]  }
 0x34a   : > { %2962 = vmatpush1.bf16.msra.mxu1 %v15878_v12  ;;  %v1034_v12 = vsel %vm994_vm9, %v1017_v63, %v1033_v3  ;;  %v16001_v63 = vld [vmem:[#allocation10 + $0x1470] ss:$8 sps:$4 sm:$0xff]   ;;  %v16006_v3 = vld [vmem:[#allocation10 + $0x3a4] ss:$8 sps:$4 sm:$0xff]  }
 0x34b   : > { %6086 = vmatpush1.bf16.msra.mxu0 %v15881_v61  ;;  %2963 = vmatprep.subr.bf16.mxu1 %v15886_v13  ;;  %v15952_v61 = vld [vmem:[#allocation10 + $0x314] ss:$8 sps:$4 sm:$0xff]   ;;  %v6143_v13 = vld [vmem:[#allocation2 + $0xc8] sm:$0x1] }
 0x34c   : > { %6087 = vmatprep.subr.bf16.mxu0 %v15889_v16  ;;  %v13570_v16 = vpack.c.bf16 %v1028_v9, %v1009_v8  ;;  %v16007_v8 = vld [vmem:[#allocation10 + $0x1480] ss:$8 sps:$4 sm:$0xff]   ;;  %v16012_v9 = vld [vmem:[#allocation10 + $0x3b4] ss:$8 sps:$4 sm:$0xff]  }
 0x34e   : > { %2964 = vmatpush1.bf16.msra.mxu1 %v15884_v15  ;;  %v15955_v15 = vld [vmem:[#allocation10 + $0x13f4] ss:$8 sps:$4 sm:$0xff]  }
 0x34f   : > { %6088 = vmatpush1.bf16.msra.mxu0 %v15887_v17  ;;  %2965 = vmatprep.subr.bf16.mxu1 %v15892_v18  ;;  %v13573_v17 = vpack.c.bf16 %v1034_v12, %v1018_v59  ;;  %v6127_v18 = vld [vmem:[#allocation2 + $0x48] sm:$0xfe]  ;;  %v16018_v59 = vld [vmem:[#allocation10 + $0x3c4] ss:$8 sps:$4 sm:$0xff]   ;;  %v16016_v12 = vld [vmem:[#allocation10 + $0x3c0] ss:$8 sps:$4 sm:$0xff]  }
 0x350   : > { %6089 = vmatprep.subr.bf16.mxu0 %v15895_v29  ;;  %v6179_v29 = vrot.slane %v6135_v62, 1  ;;  %v16019_v62 = vld [vmem:[#allocation10 + $0x14a0] ss:$8 sps:$4 sm:$0xff]  }
 0x352   : > { %2966 = vmatpush1.bf16.msra.mxu1 %v15890_v20  ;;  %v15950_v20 = vld [vmem:[#allocation10 + $0x310] ss:$8 sps:$4 sm:$0xff]  }
 0x353   : > { %6090 = vmatpush1.bf16.msra.mxu0 %v15893_v32  ;;  %2967 = vmatprep.subr.bf16.mxu1 %v15898_v21  ;;  %v6201_v32 = vrot.slane %v6143_v13, 1  ;;  %v15953_v21 = vld [vmem:[#allocation10 + $0x13f0] ss:$8 sps:$4 sm:$0xff]   ;;  %v16024_v13 = vld [vmem:[#allocation10 + $0x3d4] ss:$8 sps:$4 sm:$0xff]  }
 0x354   : > { %6091 = vmatprep.subr.bf16.mxu0 %v15901_v22  ;;  %v5171_v22 = vld [vmem:[#allocation2 + $0xb0] sm:$0xff] }
 0x356   : > { %2968 = vmatpush1.bf16.msra.mxu1 %v15896_v1  ;;  %v15958_v1 = vld [vmem:[#allocation10 + $0x324] ss:$8 sps:$4 sm:$0xff]  }
 0x357   : > { %6092 = vmatpush1.bf16.msra.mxu0 %v15899_v23  ;;  %2969 = vmatprep.subr.bf16.mxu1 %v15904_v24  ;;  %v15956_v23 = vld [vmem:[#allocation10 + $0x320] ss:$8 sps:$4 sm:$0xff]   ;;  %v15961_v24 = vld [vmem:[#allocation10 + $0x1404] ss:$8 sps:$4 sm:$0xff]  }
 0x358   : > { %6093 = vmatprep.subr.bf16.mxu0 %v15907_v26 }
 0x35a   : > { %2970 = vmatpush1.bf16.msra.mxu1 %v15902_v25  ;;  %v6178_v25 = vrot.slane %v6127_v18, 1  ;;  %v16030_v18 = vld [vmem:[#allocation10 + $0x3e4] ss:$8 sps:$4 sm:$0xff]  }
 0x35b   : > { %6094 = vmatpush1.bf16.msra.mxu0 %v15905_v19  ;;  %2971 = vmatprep.subr.bf16.mxu1 %v15910_v27  ;;  %v6202_v19 = vsel %vm6174_vm10, %v6179_v29, %v6201_v32  ;;  %v15959_v27 = vld [vmem:[#allocation10 + $0x1400] ss:$8 sps:$4 sm:$0xff]  }
 0x35c   : > { %6095 = vmatprep.subr.bf16.mxu0 %v15913_v28  ;;  %v6180_v26 = vsel %vm6174_vm10, %v6178_v25, %v6179_v29  ;;  %v15964_v28 = vld [vmem:[#allocation10 + $0x334] ss:$8 sps:$4 sm:$0xff]   ;;  %v956_v29 = vld [vmem:[#allocation2 + $0xb0] sm:$0x7]  ;;  %v16028_v32 = vld [vmem:[#allocation10 + $0x3e0] ss:$8 sps:$4 sm:$0xff]  }
 0x35d   : > { %v3038_v25 = vld [vmem:[#allocation2 + $0x8] sm:$0xe0] }
 0x35e   : > { %2972 = vmatpush1.bf16.msra.mxu1 %v15908_v33  ;;  %v18437_v33 = vld [vmem:[#allocation2 + $0x70] sm:$0xff] }
 0x35f   : > { %6096 = vmatpush1.bf16.msra.mxu0 %v15911_v35  ;;  %2973 = vmatprep.subr.bf16.mxu1 %v15916_v36  ;;  %v5179_v35 = vpack.c.bf16 %v5171_v22, %v18437_v33  ;;  %v15967_v36 = vld [vmem:[#allocation10 + $0x1414] ss:$8 sps:$4 sm:$0xff]   ;;  %v1014_v22 = vrot.slane %v18437_v33, 3 }
 0x360   : > { %6097 = vmatprep.subr.bf16.mxu0 %v15919_v40  ;;  %v15962_v40 = vld [vmem:[#allocation10 + $0x330] ss:$8 sps:$4 sm:$0xff]  }
 0x362   : > { %2974 = vmatpush1.bf16.msra.mxu1 %v15914_v39  ;;  %v14139_v39 = vpack.c.bf16 %v6202_v19, %v6180_v26  ;;  %v16034_v26 = vld [vmem:[#allocation10 + $0x3f0] ss:$8 sps:$4 sm:$0xff]   ;;  %v16039_v19 = vld [vmem:[#allocation10 + $0x14d4] ss:$8 sps:$4 sm:$0xff]  }
 0x363   : > { %6098 = vmatpush1.bf16.msra.mxu0 %v15917_v4  ;;  %2975 = vmatprep.subr.bf16.mxu1 %v15922_v55  ;;  %v15965_v4 = vld [vmem:[#allocation10 + $0x1410] ss:$8 sps:$4 sm:$0xff]   ;;  %v15970_v55 = vld [vmem:[#allocation10 + $0x344] ss:$8 sps:$4 sm:$0xff]  }
 0x364   : > { %6099 = vmatprep.subr.bf16.mxu0 %v15925_v42  ;;  %v15973_v42 = vld [vmem:[#allocation10 + $0x1424] ss:$8 sps:$4 sm:$0xff]  }
 0x366   : > { %2976 = vmatpush1.bf16.msra.mxu1 %v15920_v41  ;;  %v15968_v41 = vld [vmem:[#allocation10 + $0x340] ss:$8 sps:$4 sm:$0xff]  }
 0x367   : > { %6100 = vmatpush1.bf16.msra.mxu0 %v15923_v43  ;;  %2977 = vmatprep.subr.bf16.mxu1 %v15928_v45  ;;  %v15971_v43 = vld [vmem:[#allocation10 + $0x1420] ss:$8 sps:$4 sm:$0xff]   ;;  %v15976_v45 = vld [vmem:[#allocation10 + $0x354] ss:$8 sps:$4 sm:$0xff]  }
 0x368   : > { %6101 = vmatprep.subr.bf16.mxu0 %v15931_v46  ;;  %v15979_v46 = vld [vmem:[#allocation10 + $0x1434] ss:$8 sps:$4 sm:$0xff]  }
 0x36a   : > { %2978 = vmatpush1.bf16.msra.mxu1 %v15926_v37  ;;  %v15974_v37 = vld [vmem:[#allocation10 + $0x350] ss:$8 sps:$4 sm:$0xff]  }
 0x36b   : > { %6102 = vmatpush1.bf16.msra.mxu0 %v15929_v48  ;;  %2979 = vmatprep.subr.bf16.mxu1 %v15934_v34  ;;  %v15982_v48 = vld [vmem:[#allocation10 + $0x364] ss:$8 sps:$4 sm:$0xff]   ;;  %v15980_v34 = vld [vmem:[#allocation10 + $0x360] ss:$8 sps:$4 sm:$0xff]  }
 0x36c   : > { %6103 = vmatprep.subr.bf16.mxu0 %v15937_v0  ;;  %v15988_v0 = vld [vmem:[#allocation10 + $0x374] ss:$8 sps:$4 sm:$0xff]  }
 0x36e   : > { %2980 = vmatpush1.bf16.msra.mxu1 %v15932_v50  ;;  %v15986_v50 = vld [vmem:[#allocation10 + $0x370] ss:$8 sps:$4 sm:$0xff]  }
 0x36f   : > { %6104 = vmatpush1.bf16.msra.mxu0 %v15935_v51  ;;  %2981 = vmatprep.subr.bf16.mxu1 %v15940_v52  ;;  %v15989_v51 = vld [vmem:[#allocation10 + $0x1450] ss:$8 sps:$4 sm:$0xff]   ;;  %v15994_v52 = vld [vmem:[#allocation10 + $0x384] ss:$8 sps:$4 sm:$0xff]  }
 0x370   : > { %6105 = vmatprep.subr.bf16.mxu0 %v15943_v54  ;;  %v15997_v54 = vld [vmem:[#allocation10 + $0x1464] ss:$8 sps:$4 sm:$0xff]  }
 0x372   : > { %2982 = vmatpush1.bf16.msra.mxu1 %v15938_v60  ;;  %v16003_v60 = vld [vmem:[#allocation10 + $0x1474] ss:$8 sps:$4 sm:$0xff]  }
 0x373   : > { %6106 = vmatpush1.bf16.msra.mxu0 %v15941_v2  ;;  %2994 = vmatprep.subr.bf16.mxu1 %v15946_v6  ;;  %v16004_v2 = vld [vmem:[#allocation10 + $0x3a0] ss:$8 sps:$4 sm:$0xff]   ;;  %v16009_v6 = vld [vmem:[#allocation10 + $0x1484] ss:$8 sps:$4 sm:$0xff]  }
 0x374   : > { %6107 = vmatprep.subr.bf16.mxu0 %v15949_v10  ;;  %v16015_v10 = vld [vmem:[#allocation10 + $0x1494] ss:$8 sps:$4 sm:$0xff]  }
 0x375   : > { %13571 = vmatmul.mubr.msk.bf16.vlgmr.msra.gmra.mrb[16].mxu1 %vm18332_vm8, %v13570_v16  ;;  %v16027_v16 = vld [vmem:[#allocation10 + $0x14b4] ss:$8 sps:$4 sm:$0xff]  }
 0x376   : > { %2995 = vmatpush1.bf16.msra.mxu1 %v15944_v7  ;;  %13574 = vmatprep.mubr.msk.bf16.mxu1 %vm18332_vm8, %v13573_v17  ;;  %v16010_v7 = vld [vmem:[#allocation10 + $0x3b0] ss:$8 sps:$4 sm:$0xff]  }
 0x377   : > { %6108 = vmatpush1.bf16.msra.mxu0 %v15947_v11  ;;  %2996 = vmatprep.subr.bf16.mxu1 %v15952_v61  ;;  %v16013_v11 = vld [vmem:[#allocation10 + $0x1490] ss:$8 sps:$4 sm:$0xff]   ;;  %v16021_v61 = vld [vmem:[#allocation10 + $0x14a4] ss:$8 sps:$4 sm:$0xff]  }
 0x378   : > { %6109 = vmatprep.subr.bf16.mxu0 %v15955_v15  ;;  %v16022_v15 = vld [vmem:[#allocation10 + $0x3d0] ss:$8 sps:$4 sm:$0xff]  }
 0x379   : > { %v16025_v17 = vld [vmem:[#allocation10 + $0x14b0] ss:$8 sps:$4 sm:$0xff]  }
 0x37a   : > { %2997 = vmatpush1.bf16.msra.mxu1 %v15950_v20  ;;  %v940_v20 = vld [vmem:[#allocation2 + $0x30] sm:$0xf8] }
 0x37b   : > { %6110 = vmatpush1.bf16.msra.mxu0 %v15953_v21  ;;  %2998 = vmatprep.subr.bf16.mxu1 %v15958_v1  ;;  %v16033_v21 = vld [vmem:[#allocation10 + $0x14c4] ss:$8 sps:$4 sm:$0xff]   ;;  %v3046_v1 = vld [vmem:[#allocation2 + $0x88] sm:$0x1f] }
 0x37c   : > { %7024 = vmatprep.subr.bf16.mxu0 %v15961_v24  ;;  %v16036_v24 = vld [vmem:[#allocation10 + $0x3f4] ss:$8 sps:$4 sm:$0xff]  }
 0x37e   : > { %6112 = vmatmul.mubr.bf16.vlgmr.msra.gmra.mrb[0].mxu0 %v5179_v35  ;;  %2999 = vmatpush1.bf16.msra.mxu1 %v15956_v23  ;;  %v16031_v23 = vld [vmem:[#allocation10 + $0x14c0] ss:$8 sps:$4 sm:$0xff]   ;;  %v3108_v35 = vrot.slane %v3046_v1, 5  ;;  %v16075_v1 = vld [vmem:[#allocation10 + $0x1534] ss:$8 sps:$4 sm:$0xff]  }
 0x37f   : > { %7025 = vmatpush1.bf16.msra.mxu0 %v15959_v27  ;;  %14140 = vmatprep.mubr.msk.bf16.mxu0 %vm18260_vm3, %v14139_v39  ;;  %v1013_v27 = vrot.slane %v940_v20, 3  ;;  %v16042_v39 = vld [vmem:[#allocation10 + $0x804] ss:$8 sps:$4 sm:$0xff]  }
 0x380   : > { %3000 = vmatprep.subr.bf16.mxu1 %v15964_v28  ;;  %7026 = vmatprep.subr.bf16.mxu0 %v15967_v36  ;;  %v1031_v28 = vrot.slane %v956_v29, 3  ;;  %v16037_v36 = vld [vmem:[#allocation10 + $0x14d0] ss:$8 sps:$4 sm:$0xff]   ;;  %v16069_v20 = vld [vmem:[#allocation10 + $0x1524] ss:$8 sps:$4 sm:$0xff]  }
 0x381   : > { %v1015_v33 = vsel %vm994_vm9, %v1013_v27, %v1014_v22  ;;  %v16067_v29 = vld [vmem:[#allocation10 + $0x1520] ss:$8 sps:$4 sm:$0xff]   ;;  %v16082_v27 = vld [vmem:[#allocation10 + $0x870] ss:$8 sps:$4 sm:$0xff]  }
 0x382   : > { %3001 = vmatpush1.bf16.msra.mxu1 %v15962_v40  ;;  %v3085_v40 = vrot.slane %v3038_v25, 5  ;;  %v16081_v25 = vld [vmem:[#allocation10 + $0x1544] ss:$8 sps:$4 sm:$0xff]  }
 0x383   : > { %7027 = vmatpush1.bf16.msra.mxu0 %v15965_v4  ;;  %3002 = vmatprep.subr.bf16.mxu1 %v15970_v55  ;;  %v17469_v4 = vld [vmem:[#allocation2 + $0x48] sm:$0xff] }
 0x384   : > { %7028 = vmatprep.subr.bf16.mxu0 %v15973_v42  ;;  %v3086_v55 = vrot.slane %v17469_v4, 5  ;;  %v16040_v42 = vld [vmem:[#allocation10 + $0x800] ss:$8 sps:$4 sm:$0xff]  }
 0x385   : > { %v16091_v4 = vld [vmem:[#allocation10 + $0x1560] ss:$8 sps:$4 sm:$0xff]  }
 0x386   : > { %3003 = vmatpush1.bf16.msra.mxu1 %v15968_v41  ;;  %v1032_v41 = vsel %vm994_vm9, %v1014_v22, %v1031_v28  ;;  %v16073_v22 = vld [vmem:[#allocation10 + $0x1530] ss:$8 sps:$4 sm:$0xff]   ;;  %v16087_v28 = vld [vmem:[#allocation10 + $0x1554] ss:$8 sps:$4 sm:$0xff]  }
 0x387   : > { %7029 = vmatpush1.bf16.msra.mxu0 %v15971_v43  ;;  %3004 = vmatprep.subr.bf16.mxu1 %v15976_v45  ;;  %v16045_v43 = vld [vmem:[#allocation10 + $0x14e4] ss:$8 sps:$4 sm:$0xff]  }
 0x388   : > { %7030 = vmatprep.subr.bf16.mxu0 %v15979_v46  ;;  %v6134_v45 = vld [vmem:[#allocation2 + $0x80] sm:$0xff] }
 0x389   : > { %v16043_v46 = vld [vmem:[#allocation10 + $0x14e0] ss:$8 sps:$4 sm:$0xff]  }
 0x38a   : > { %3005 = vmatpush1.bf16.msra.mxu1 %v15974_v37  ;;  %v6142_v37 = vld [vmem:[#allocation2 + $0xc0] sm:$0x1] }
 0x38b   : > { %7031 = vmatpush1.bf16.msra.mxu0 %v15977_v47  ;;  %3006 = vmatprep.subr.bf16.mxu1 %v15982_v48  ;;  %v3109_v47 = vsel %vm3081_vm11, %v3086_v55, %v3108_v35  ;;  %v16048_v48 = vld [vmem:[#allocation10 + $0x814] ss:$8 sps:$4 sm:$0xff]   ;;  %v16085_v35 = vld [vmem:[#allocation10 + $0x1550] ss:$8 sps:$4 sm:$0xff]  }
 0x38c   : > { %7032 = vmatprep.subr.bf16.mxu0 %v15985_v56  ;;  %v6145_v56 = vld [vmem:[#allocation2 + $0xd8] sm:$0x1] }
 0x38e   : > { %3007 = vmatpush1.bf16.msra.mxu1 %v15980_v34  ;;  %v6137_v34 = vld [vmem:[#allocation2 + $0x98] sm:$0xff] }
 0x38f   : > { %7033 = vmatpush1.bf16.msra.mxu0 %v15983_v49  ;;  %3008 = vmatprep.subr.bf16.mxu1 %v15988_v0  ;;  %v16051_v49 = vld [vmem:[#allocation10 + $0x14f4] ss:$8 sps:$4 sm:$0xff]   ;;  %v6126_v0 = vld [vmem:[#allocation2 + $0x40] sm:$0xfe] }
 0x390   : > { %7034 = vmatprep.subr.bf16.mxu0 %v15991_v38  ;;  %v13576_v38 = vpack.c.bf16 %v1032_v41, %v1015_v33  ;;  %v16094_v33 = vld [vmem:[#allocation10 + $0x890] ss:$8 sps:$4 sm:$0xff]   ;;  %v16099_v41 = vld [vmem:[#allocation10 + $0x1574] ss:$8 sps:$4 sm:$0xff]  }
 0x392   : > { %3009 = vmatpush1.bf16.msra.mxu1 %v15986_v50  ;;  %v3087_v50 = vsel %vm3081_vm11, %v3085_v40, %v3086_v55  ;;  %v16093_v40 = vld [vmem:[#allocation10 + $0x1564] ss:$8 sps:$4 sm:$0xff]   ;;  %v16096_v55 = vld [vmem:[#allocation10 + $0x894] ss:$8 sps:$4 sm:$0xff]  }
 0x393   : > { %7035 = vmatpush1.bf16.msra.mxu0 %v15989_v51  ;;  %3010 = vmatprep.subr.bf16.mxu1 %v15994_v52  ;;  %v13707_v51 = vpack.c.bf16 %v3109_v47, %v3087_v50  ;;  %v6176_v52 = vrot.slane %v6134_v45, 1  ;;  %v16100_v45 = vld [vmem:[#allocation10 + $0x8a0] ss:$8 sps:$4 sm:$0xff]   ;;  %v16108_v47 = vld [vmem:[#allocation10 + $0x8b4] ss:$8 sps:$4 sm:$0xff]  }
 0x394   : > { %7036 = vmatprep.subr.bf16.mxu0 %v15997_v54  ;;  %v6129_v54 = vld [vmem:[#allocation2 + $0x58] sm:$0xfe] }
 0x395   : > { %v16115_v50 = vld [vmem:[#allocation10 + $0x15a0] ss:$8 sps:$4 sm:$0xff]  }
 0x396   : > { %3011 = vmatpush1.bf16.msra.mxu1 %v15992_v53  ;;  %v6199_v53 = vrot.slane %v6142_v37, 1  ;;  %v16105_v37 = vld [vmem:[#allocation10 + $0x1584] ss:$8 sps:$4 sm:$0xff]  }
 0x397   : > { %7037 = vmatpush1.bf16.msra.mxu0 %v15995_v57  ;;  %3012 = vmatprep.subr.bf16.mxu1 %v16000_v44  ;;  %v16046_v57 = vld [vmem:[#allocation10 + $0x810] ss:$8 sps:$4 sm:$0xff]   ;;  %v6185_v44 = vrot.slane %v6137_v34, 1  ;;  %v16111_v34 = vld [vmem:[#allocation10 + $0x1594] ss:$8 sps:$4 sm:$0xff]  }
 0x398   : > { %7038 = vmatprep.subr.bf16.mxu0 %v16003_v60  ;;  %v16049_v60 = vld [vmem:[#allocation10 + $0x14f0] ss:$8 sps:$4 sm:$0xff]  }
 0x39a   : > { %3013 = vmatpush1.bf16.msra.mxu1 %v15998_v58  ;;  %v6205_v58 = vrot.slane %v6145_v56, 1  ;;  %v16109_v56 = vld [vmem:[#allocation10 + $0x1590] ss:$8 sps:$4 sm:$0xff]  }
 0x39b   : > { %7039 = vmatpush1.bf16.msra.mxu0 %v16001_v63  ;;  %3014 = vmatprep.subr.bf16.mxu1 %v16006_v3  ;;  %v16054_v63 = vld [vmem:[#allocation10 + $0x824] ss:$8 sps:$4 sm:$0xff]   ;;  %v6175_v3 = vrot.slane %v6126_v0, 1  ;;  %v16112_v0 = vld [vmem:[#allocation10 + $0x8c0] ss:$8 sps:$4 sm:$0xff]  }
 0x39c   : > { %7040 = vmatprep.subr.bf16.mxu0 %v16009_v6  ;;  %v16057_v6 = vld [vmem:[#allocation10 + $0x1504] ss:$8 sps:$4 sm:$0xff]  }
 0x39e   : > { %3015 = vmatpush1.bf16.msra.mxu1 %v16004_v2  ;;  %v16052_v2 = vld [vmem:[#allocation10 + $0x820] ss:$8 sps:$4 sm:$0xff]  }
 0x39f   : > { %7041 = vmatpush1.bf16.msra.mxu0 %v16007_v8  ;;  %3016 = vmatprep.subr.bf16.mxu1 %v16012_v9  ;;  %v6184_v8 = vrot.slane %v6129_v54, 1  ;;  %v6177_v9 = vsel %vm6174_vm10, %v6175_v3, %v6176_v52  ;;  %v16121_v54 = vld [vmem:[#allocation10 + $0x15b0] ss:$8 sps:$4 sm:$0xff]   ;;  %v3037_v3 = vld [vmem:[#allocation2] sm:$0xe0] }
 0x3a0   : > { %7042 = vmatprep.subr.bf16.mxu0 %v16015_v10  ;;  %v16055_v10 = vld [vmem:[#allocation10 + $0x1500] ss:$8 sps:$4 sm:$0xff]  }
 0x3a2   : > { %3017 = vmatpush1.bf16.msra.mxu1 %v16010_v7  ;;  %v6200_v7 = vsel %vm6174_vm10, %v6176_v52, %v6199_v53  ;;  %v16118_v52 = vld [vmem:[#allocation10 + $0x8d0] ss:$8 sps:$4 sm:$0xff]   ;;  %v16123_v53 = vld [vmem:[#allocation10 + $0x15b4] ss:$8 sps:$4 sm:$0xff]  }
 0x3a3   : > { %7043 = vmatpush1.bf16.msra.mxu0 %v16013_v11  ;;  %3018 = vmatprep.subr.bf16.mxu1 %v16018_v59  ;;  %v6186_v11 = vsel %vm6174_vm10, %v6184_v8, %v6185_v44  ;;  %v6206_v59 = vsel %vm6174_vm10, %v6185_v44, %v6205_v58  ;;  %v3045_v44 = vld [vmem:[#allocation2 + $0x80] sm:$0x1f]  ;;  %v3040_v8 = vld [vmem:[#allocation2 + $0x18] sm:$0xe0] }
 0x3a4   : > { %7044 = vmatprep.subr.bf16.mxu0 %v16021_v61  ;;  %v16063_v61 = vld [vmem:[#allocation10 + $0x1514] ss:$8 sps:$4 sm:$0xff]   ;;  %v16124_v58 = vld [vmem:[#allocation10 + $0x8e0] ss:$8 sps:$4 sm:$0xff]  }
 0x3a6   : > { %3019 = vmatpush1.bf16.msra.mxu1 %v16016_v12  ;;  %v16060_v12 = vld [vmem:[#allocation10 + $0x834] ss:$8 sps:$4 sm:$0xff]  }
 0x3a7   : > { %7045 = vmatpush1.bf16.msra.mxu0 %v16019_v62  ;;  %3020 = vmatprep.subr.bf16.mxu1 %v16024_v13  ;;  %v14142_v62 = vpack.c.bf16 %v6200_v7, %v6177_v9  ;;  %v14145_v13 = vpack.c.bf16 %v6206_v59, %v6186_v11  ;;  %v16130_v9 = vld [vmem:[#allocation10 + $0x8f0] ss:$8 sps:$4 sm:$0xff]   ;;  %v16135_v7 = vld [vmem:[#allocation10 + $0x15d4] ss:$8 sps:$4 sm:$0xff]   ;;  %v3082_v59 = vrot.slane %v3037_v3, 5 }
 0x3a8   : > { %7046 = vmatprep.subr.bf16.mxu0 %v16027_v16  ;;  %v16061_v16 = vld [vmem:[#allocation10 + $0x1510] ss:$8 sps:$4 sm:$0xff]  }
 0x3a9   : > { %v16166_v3 = vld [vmem:[#allocation10 + $0x950] ss:$8 sps:$4 sm:$0xff]  }
 0x3aa   : > { %3021 = vmatpush1.bf16.msra.mxu1 %v16022_v15  ;;  %v16058_v15 = vld [vmem:[#allocation10 + $0x830] ss:$8 sps:$4 sm:$0xff]  }
 0x3ab   : > { %7047 = vmatpush1.bf16.msra.mxu0 %v16025_v17  ;;  %3022 = vmatprep.subr.bf16.mxu1 %v16030_v18  ;;  %v16066_v17 = vld [vmem:[#allocation10 + $0x844] ss:$8 sps:$4 sm:$0xff]   ;;  %v16064_v18 = vld [vmem:[#allocation10 + $0x840] ss:$8 sps:$4 sm:$0xff]  }
 0x3ac   : > { %7048 = vmatprep.subr.bf16.mxu0 %v16033_v21  ;;  %v16070_v21 = vld [vmem:[#allocation10 + $0x850] ss:$8 sps:$4 sm:$0xff]  }
 0x3ae   : > { %3023 = vmatpush1.bf16.msra.mxu1 %v16028_v32  ;;  %v16072_v32 = vld [vmem:[#allocation10 + $0x854] ss:$8 sps:$4 sm:$0xff]  }
 0x3af   : > { %7049 = vmatpush1.bf16.msra.mxu0 %v16031_v23  ;;  %3024 = vmatprep.subr.bf16.mxu1 %v16036_v24  ;;  %v16078_v23 = vld [vmem:[#allocation10 + $0x864] ss:$8 sps:$4 sm:$0xff]   ;;  %v16076_v24 = vld [vmem:[#allocation10 + $0x860] ss:$8 sps:$4 sm:$0xff]  }
 0x3b0   : > { %7050 = vmatprep.subr.bf16.mxu0 %v16039_v19  ;;  %v16084_v19 = vld [vmem:[#allocation10 + $0x874] ss:$8 sps:$4 sm:$0xff]  }
 0x3b2   : > { %3025 = vmatpush1.bf16.msra.mxu1 %v16034_v26  ;;  %v16079_v26 = vld [vmem:[#allocation10 + $0x1540] ss:$8 sps:$4 sm:$0xff]  }
 0x3b3   : > { %7051 = vmatpush1.bf16.msra.mxu0 %v16037_v36  ;;  %3931 = vmatprep.subr.bf16.mxu1 %v16042_v39  ;;  %v16090_v36 = vld [vmem:[#allocation10 + $0x884] ss:$8 sps:$4 sm:$0xff]   ;;  %v16088_v39 = vld [vmem:[#allocation10 + $0x880] ss:$8 sps:$4 sm:$0xff]  }
 0x3b4   : > { %7052 = vmatprep.subr.bf16.mxu0 %v16045_v43  ;;  %v16102_v43 = vld [vmem:[#allocation10 + $0x8a4] ss:$8 sps:$4 sm:$0xff]  }
 0x3b5   : > { %13577 = vmatmul.mubr.msk.bf16.vlgmr.msra.gmra.mrb[16].mxu1 %vm18332_vm8, %v13576_v38  ;;  %v16117_v38 = vld [vmem:[#allocation10 + $0x15a4] ss:$8 sps:$4 sm:$0xff]  }
 0x3b6   : > { %3932 = vmatpush1.bf16.msra.mxu1 %v16040_v42  ;;  %13708 = vmatprep.mubr.msk.bf16.mxu1 %vm18260_vm3, %v13707_v51  ;;  %v16097_v42 = vld [vmem:[#allocation10 + $0x1570] ss:$8 sps:$4 sm:$0xff]   ;;  %v16120_v51 = vld [vmem:[#allocation10 + $0x8d4] ss:$8 sps:$4 sm:$0xff]  }
 0x3b7   : > { %7053 = vmatpush1.bf16.msra.mxu0 %v16043_v46  ;;  %3933 = vmatprep.subr.bf16.mxu1 %v16048_v48  ;;  %v16103_v46 = vld [vmem:[#allocation10 + $0x1580] ss:$8 sps:$4 sm:$0xff]   ;;  %v16106_v48 = vld [vmem:[#allocation10 + $0x8b0] ss:$8 sps:$4 sm:$0xff]  }
 0x3b8   : > { %7054 = vmatprep.subr.bf16.mxu0 %v16051_v49  ;;  %v16114_v49 = vld [vmem:[#allocation10 + $0x8c4] ss:$8 sps:$4 sm:$0xff]  }
 0x3ba   : > { %3934 = vmatpush1.bf16.msra.mxu1 %v16046_v57  ;;  %v16126_v57 = vld [vmem:[#allocation10 + $0x8e4] ss:$8 sps:$4 sm:$0xff]  }
 0x3bb   : > { %7055 = vmatpush1.bf16.msra.mxu0 %v16049_v60  ;;  %3935 = vmatprep.subr.bf16.mxu1 %v16054_v63  ;;  %v16129_v60 = vld [vmem:[#allocation10 + $0x15c4] ss:$8 sps:$4 sm:$0xff]  }
 0x3bc   : > { %7067 = vmatprep.subr.bf16.mxu0 %v16057_v6  ;;  %v3048_v63 = vld [vmem:[#allocation2 + $0x98] sm:$0x1f]  ;;  %v16132_v6 = vld [vmem:[#allocation10 + $0x8f4] ss:$8 sps:$4 sm:$0xff]  }
 0x3bd   : > { %v3112_v11 = vrot.slane %v3048_v63, 5  ;;  %v16168_v63 = vld [vmem:[#allocation10 + $0x954] ss:$8 sps:$4 sm:$0xff]  }
 0x3be   : > { %14143 = vmatmul.mubr.msk.bf16.vlgmr.msra.gmra.mrb[0].mxu0 %vm18260_vm3, %v14142_v62  ;;  %3936 = vmatpush1.bf16.msra.mxu1 %v16052_v2  ;;  %v16127_v2 = vld [vmem:[#allocation10 + $0x15c0] ss:$8 sps:$4 sm:$0xff]   ;;  %v16133_v62 = vld [vmem:[#allocation10 + $0x15d0] ss:$8 sps:$4 sm:$0xff]  }
 0x3bf   : > { %7068 = vmatpush1.bf16.msra.mxu0 %v16055_v10  ;;  %14146 = vmatprep.mubr.msk.bf16.mxu0 %vm18260_vm3, %v14145_v13  ;;  %v3106_v10 = vrot.slane %v3045_v44, 5  ;;  %v16138_v13 = vld [vmem:[#allocation10 + $0x904] ss:$8 sps:$4 sm:$0xff]   ;;  %v16160_v44 = vld [vmem:[#allocation10 + $0x940] ss:$8 sps:$4 sm:$0xff]  }
 0x3c0   : > { %3937 = vmatprep.subr.bf16.mxu1 %v16060_v12  ;;  %7069 = vmatprep.subr.bf16.mxu0 %v16063_v61  ;;  %v17470_v12 = vld [vmem:[#allocation2 + $0x40] sm:$0xff] }
 0x3c1   : > { %v3083_v61 = vrot.slane %v17470_v12, 5  ;;  %v16183_v12 = vld [vmem:[#allocation10 + $0x1654] ss:$8 sps:$4 sm:$0xff]  }
 0x3c2   : > { %3938 = vmatpush1.bf16.msra.mxu1 %v16058_v15  ;;  %v3091_v15 = vrot.slane %v3040_v8, 5  ;;  %v16174_v8 = vld [vmem:[#allocation10 + $0x964] ss:$8 sps:$4 sm:$0xff]  }
 0x3c3   : > { %7070 = vmatpush1.bf16.msra.mxu0 %v16061_v16  ;;  %3939 = vmatprep.subr.bf16.mxu1 %v16066_v17  ;;  %v17471_v16 = vld [vmem:[#allocation2 + $0x58] sm:$0xff] }
 0x3c4   : > { %7071 = vmatprep.subr.bf16.mxu0 %v16069_v20  ;;  %v3092_v17 = vrot.slane %v17471_v16, 5  ;;  %v16136_v20 = vld [vmem:[#allocation10 + $0x900] ss:$8 sps:$4 sm:$0xff]  }
 0x3c5   : > { %v16187_v16 = vld [vmem:[#allocation10 + $0x1660] ss:$8 sps:$4 sm:$0xff]  }
 0x3c6   : > { %3940 = vmatpush1.bf16.msra.mxu1 %v16064_v18  ;;  %v3107_v18 = vsel %vm3081_vm11, %v3083_v61, %v3106_v10  ;;  %v16175_v10 = vld [vmem:[#allocation10 + $0x1640] ss:$8 sps:$4 sm:$0xff]  }
 0x3c7   : > { %7072 = vmatpush1.bf16.msra.mxu0 %v16067_v29  ;;  %3941 = vmatprep.subr.bf16.mxu1 %v16072_v32  ;;  %v16141_v29 = vld [vmem:[#allocation10 + $0x15e4] ss:$8 sps:$4 sm:$0xff]   ;;  %v6136_v32 = vld [vmem:[#allocation2 + $0x90] sm:$0xff] }
 0x3c8   : > { %7073 = vmatprep.subr.bf16.mxu0 %v16075_v1  ;;  %v6131_v1 = vld [vmem:[#allocation2 + $0x68] sm:$0xfe] }
 0x3ca   : > { %3942 = vmatpush1.bf16.msra.mxu1 %v16070_v21  ;;  %v6144_v21 = vld [vmem:[#allocation2 + $0xd0] sm:$0x1] }
 0x3cb   : > { %7074 = vmatpush1.bf16.msra.mxu0 %v16073_v22  ;;  %3943 = vmatprep.subr.bf16.mxu1 %v16078_v23  ;;  %v16139_v22 = vld [vmem:[#allocation10 + $0x15e0] ss:$8 sps:$4 sm:$0xff]   ;;  %v3113_v23 = vsel %vm3081_vm11, %v3092_v17, %v3112_v11  ;;  %v16180_v11 = vld [vmem:[#allocation10 + $0x974] ss:$8 sps:$4 sm:$0xff]  }
 0x3cc   : > { %7075 = vmatprep.subr.bf16.mxu0 %v16081_v25  ;;  %v6139_v25 = vld [vmem:[#allocation2 + $0xa8] sm:$0xff] }
 0x3ce   : > { %3944 = vmatpush1.bf16.msra.mxu1 %v16076_v24  ;;  %v16144_v24 = vld [vmem:[#allocation10 + $0x914] ss:$8 sps:$4 sm:$0xff]  }
 0x3cf   : > { %7076 = vmatpush1.bf16.msra.mxu0 %v16079_v26  ;;  %3945 = vmatprep.subr.bf16.mxu1 %v16084_v19  ;;  %v6147_v26 = vld [vmem:[#allocation2 + $0xe8] sm:$0x1]  ;;  %v3084_v19 = vsel %vm3081_vm11, %v3082_v59, %v3083_v61 }
 0x3d0   : > { %7077 = vmatprep.subr.bf16.mxu0 %v16087_v28  ;;  %v6128_v28 = vld [vmem:[#allocation2 + $0x50] sm:$0xfe] }
 0x3d1   : > { %v16178_v59 = vld [vmem:[#allocation10 + $0x970] ss:$8 sps:$4 sm:$0xff]  }
 0x3d2   : > { %3946 = vmatpush1.bf16.msra.mxu1 %v16082_v27  ;;  %v16147_v27 = vld [vmem:[#allocation10 + $0x15f4] ss:$8 sps:$4 sm:$0xff]   ;;  %v16181_v61 = vld [vmem:[#allocation10 + $0x1650] ss:$8 sps:$4 sm:$0xff]  }
 0x3d3   : > { %7078 = vmatpush1.bf16.msra.mxu0 %v16085_v35  ;;  %3947 = vmatprep.subr.bf16.mxu1 %v16090_v36  ;;  %v13710_v35 = vpack.c.bf16 %v3107_v18, %v3084_v19  ;;  %v3093_v36 = vsel %vm3081_vm11, %v3091_v15, %v3092_v17  ;;  %v16189_v15 = vld [vmem:[#allocation10 + $0x1664] ss:$8 sps:$4 sm:$0xff]   ;;  %v16192_v17 = vld [vmem:[#allocation10 + $0x994] ss:$8 sps:$4 sm:$0xff]   ;;  %v16190_v18 = vld [vmem:[#allocation10 + $0x990] ss:$8 sps:$4 sm:$0xff]  }
 0x3d4   : > { %7079 = vmatprep.subr.bf16.mxu0 %v16093_v40  ;;  %v6182_v40 = vrot.slane %v6136_v32, 1  ;;  %v16198_v32 = vld [vmem:[#allocation10 + $0x9a4] ss:$8 sps:$4 sm:$0xff]   ;;  %v17472_v19 = vld [vmem:[#allocation2 + $0x50] sm:$0xff] }
 0x3d6   : > { %3948 = vmatpush1.bf16.msra.mxu1 %v16088_v39  ;;  %v13713_v39 = vpack.c.bf16 %v3113_v23, %v3093_v36  ;;  %v16204_v23 = vld [vmem:[#allocation10 + $0x9b4] ss:$8 sps:$4 sm:$0xff]   ;;  %v16205_v36 = vld [vmem:[#allocation10 + $0x1690] ss:$8 sps:$4 sm:$0xff]  }
 0x3d7   : > { %7080 = vmatpush1.bf16.msra.mxu0 %v16091_v4  ;;  %3949 = vmatprep.subr.bf16.mxu1 %v16096_v55  ;;  %v6203_v4 = vrot.slane %v6144_v21, 1  ;;  %v6190_v55 = vrot.slane %v6131_v1, 1  ;;  %v16196_v21 = vld [vmem:[#allocation10 + $0x9a0] ss:$8 sps:$4 sm:$0xff]   ;;  %v16201_v1 = vld [vmem:[#allocation10 + $0x1684] ss:$8 sps:$4 sm:$0xff]  }
 0x3d8   : > { %7081 = vmatprep.subr.bf16.mxu0 %v16099_v41  ;;  %v6191_v41 = vrot.slane %v6139_v25, 1  ;;  %v16207_v25 = vld [vmem:[#allocation10 + $0x1694] ss:$8 sps:$4 sm:$0xff]  }
 0x3da   : > { %3950 = vmatpush1.bf16.msra.mxu1 %v16094_v33  ;;  %v16142_v33 = vld [vmem:[#allocation10 + $0x910] ss:$8 sps:$4 sm:$0xff]  }
 0x3db   : > { %7082 = vmatpush1.bf16.msra.mxu0 %v16097_v42  ;;  %3951 = vmatprep.subr.bf16.mxu1 %v16102_v43  ;;  %v6209_v42 = vrot.slane %v6147_v26, 1  ;;  %v16145_v43 = vld [vmem:[#allocation10 + $0x15f0] ss:$8 sps:$4 sm:$0xff]   ;;  %v3039_v26 = vld [vmem:[#allocation2 + $0x10] sm:$0xe0] }
 0x3dc   : > { %7083 = vmatprep.subr.bf16.mxu0 %v16105_v37  ;;  %v6181_v37 = vrot.slane %v6128_v28, 1  ;;  %v17473_v28 = vld [vmem:[#allocation2 + $0x68] sm:$0xff] }
 0x3de   : > { %3952 = vmatpush1.bf16.msra.mxu1 %v16100_v45  ;;  %v16150_v45 = vld [vmem:[#allocation10 + $0x924] ss:$8 sps:$4 sm:$0xff]  }
 0x3df   : > { %7084 = vmatpush1.bf16.msra.mxu0 %v16103_v46  ;;  %3953 = vmatprep.subr.bf16.mxu1 %v16108_v47  ;;  %v16148_v46 = vld [vmem:[#allocation10 + $0x920] ss:$8 sps:$4 sm:$0xff]   ;;  %v16153_v47 = vld [vmem:[#allocation10 + $0x1604] ss:$8 sps:$4 sm:$0xff]  }
 0x3e0   : > { %7085 = vmatprep.subr.bf16.mxu0 %v16111_v34  ;;  %v6204_v34 = vsel %vm6174_vm10, %v6182_v40, %v6203_v4  ;;  %v16208_v4 = vld [vmem:[#allocation10 + $0x9c0] ss:$8 sps:$4 sm:$0xff]  }
 0x3e2   : > { %3954 = vmatpush1.bf16.msra.mxu1 %v16106_v48  ;;  %v6183_v48 = vsel %vm6174_vm10, %v6181_v37, %v6182_v40  ;;  %v3047_v40 = vld [vmem:[#allocation2 + $0x90] sm:$0x1f] }
 0x3e3   : > { %7086 = vmatpush1.bf16.msra.mxu0 %v16109_v56  ;;  %3955 = vmatprep.subr.bf16.mxu1 %v16114_v49  ;;  %v16151_v56 = vld [vmem:[#allocation10 + $0x1600] ss:$8 sps:$4 sm:$0xff]   ;;  %v6192_v49 = vsel %vm6174_vm10, %v6190_v55, %v6191_v41  ;;  %v16213_v55 = vld [vmem:[#allocation10 + $0x16a4] ss:$8 sps:$4 sm:$0xff]   ;;  %v16219_v37 = vld [vmem:[#allocation10 + $0x16b4] ss:$8 sps:$4 sm:$0xff]  }
 0x3e4   : > { %7087 = vmatprep.subr.bf16.mxu0 %v16117_v38  ;;  %v16156_v38 = vld [vmem:[#allocation10 + $0x934] ss:$8 sps:$4 sm:$0xff]  }
 0x3e6   : > { %3956 = vmatpush1.bf16.msra.mxu1 %v16112_v0  ;;  %v6210_v0 = vsel %vm6174_vm10, %v6191_v41, %v6209_v42  ;;  %v16216_v41 = vld [vmem:[#allocation10 + $0x9d4] ss:$8 sps:$4 sm:$0xff]   ;;  %v3088_v42 = vrot.slane %v3039_v26, 5 }
 0x3e7   : > { %7088 = vmatpush1.bf16.msra.mxu0 %v16115_v50  ;;  %3957 = vmatprep.subr.bf16.mxu1 %v16120_v51  ;;  %v16159_v50 = vld [vmem:[#allocation10 + $0x1614] ss:$8 sps:$4 sm:$0xff]   ;;  %v14148_v51 = vpack.c.bf16 %v6204_v34, %v6183_v48  ;;  %v16222_v48 = vld [vmem:[#allocation10 + $0x9e4] ss:$8 sps:$4 sm:$0xff]  }
 0x3e8   : > { %7089 = vmatprep.subr.bf16.mxu0 %v16123_v53  ;;  %v16154_v53 = vld [vmem:[#allocation10 + $0x930] ss:$8 sps:$4 sm:$0xff]  }
 0x3e9   : > { %v3050_v34 = vld [vmem:[#allocation2 + $0xa8] sm:$0x1f] }
 0x3ea   : > { %3958 = vmatpush1.bf16.msra.mxu1 %v16118_v52  ;;  %v14151_v52 = vpack.c.bf16 %v6210_v0, %v6192_v49  ;;  %v16225_v49 = vld [vmem:[#allocation10 + $0x16c4] ss:$8 sps:$4 sm:$0xff]   ;;  %v16223_v0 = vld [vmem:[#allocation10 + $0x16c0] ss:$8 sps:$4 sm:$0xff]  }
 0x3eb   : > { %7090 = vmatpush1.bf16.msra.mxu0 %v16121_v54  ;;  %3959 = vmatprep.subr.bf16.mxu1 %v16126_v57  ;;  %v16157_v54 = vld [vmem:[#allocation10 + $0x1610] ss:$8 sps:$4 sm:$0xff]   ;;  %v16162_v57 = vld [vmem:[#allocation10 + $0x944] ss:$8 sps:$4 sm:$0xff]  }
 0x3ec   : > { %7091 = vmatprep.subr.bf16.mxu0 %v16129_v60  ;;  %v16163_v60 = vld [vmem:[#allocation10 + $0x1620] ss:$8 sps:$4 sm:$0xff]  }
 0x3ee   : > { %3960 = vmatpush1.bf16.msra.mxu1 %v16124_v58  ;;  %v16165_v58 = vld [vmem:[#allocation10 + $0x1624] ss:$8 sps:$4 sm:$0xff]  }
 0x3ef   : > { %7092 = vmatpush1.bf16.msra.mxu0 %v16127_v2  ;;  %3961 = vmatprep.subr.bf16.mxu1 %v16132_v6  ;;  %v16171_v2 = vld [vmem:[#allocation10 + $0x1634] ss:$8 sps:$4 sm:$0xff]   ;;  %v16169_v6 = vld [vmem:[#allocation10 + $0x1630] ss:$8 sps:$4 sm:$0xff]  }
 0x3f0   : > { %7093 = vmatprep.subr.bf16.mxu0 %v16135_v7  ;;  %v16177_v7 = vld [vmem:[#allocation10 + $0x1644] ss:$8 sps:$4 sm:$0xff]  }
 0x3f2   : > { %3962 = vmatpush1.bf16.msra.mxu1 %v16130_v9  ;;  %v16172_v9 = vld [vmem:[#allocation10 + $0x960] ss:$8 sps:$4 sm:$0xff]  }
 0x3f3   : > { %7094 = vmatpush1.bf16.msra.mxu0 %v16133_v62  ;;  %3974 = vmatprep.subr.bf16.mxu1 %v16138_v13  ;;  %v16186_v62 = vld [vmem:[#allocation10 + $0x984] ss:$8 sps:$4 sm:$0xff]   ;;  %v16184_v13 = vld [vmem:[#allocation10 + $0x980] ss:$8 sps:$4 sm:$0xff]  }
 0x3f4   : > { %7095 = vmatprep.subr.bf16.mxu0 %v16141_v29  ;;  %v16193_v29 = vld [vmem:[#allocation10 + $0x1670] ss:$8 sps:$4 sm:$0xff]  }
 0x3f5   : > { %13711 = vmatmul.mubr.msk.bf16.vlgmr.msra.gmra.mrb[16].mxu1 %vm18260_vm3, %v13710_v35  ;;  %v3098_v35 = vrot.slane %v17473_v28, 5 }
 0x3f6   : > { %3975 = vmatpush1.bf16.msra.mxu1 %v16136_v20  ;;  %13714 = vmatprep.mubr.msk.bf16.mxu1 %vm18260_vm3, %v13713_v39  ;;  %v16195_v20 = vld [vmem:[#allocation10 + $0x1674] ss:$8 sps:$4 sm:$0xff]   ;;  %v16210_v39 = vld [vmem:[#allocation10 + $0x9c4] ss:$8 sps:$4 sm:$0xff]  }
 0x3f7   : > { %7096 = vmatpush1.bf16.msra.mxu0 %v16139_v22  ;;  %3976 = vmatprep.subr.bf16.mxu1 %v16144_v24  ;;  %v16199_v22 = vld [vmem:[#allocation10 + $0x1680] ss:$8 sps:$4 sm:$0xff]   ;;  %v16202_v24 = vld [vmem:[#allocation10 + $0x9b0] ss:$8 sps:$4 sm:$0xff]  }
 0x3f8   : > { %7097 = vmatprep.subr.bf16.mxu0 %v16147_v27  ;;  %v3089_v27 = vrot.slane %v17472_v19, 5 }
 0x3fa   : > { %3977 = vmatpush1.bf16.msra.mxu1 %v16142_v33  ;;  %v16211_v33 = vld [vmem:[#allocation10 + $0x16a0] ss:$8 sps:$4 sm:$0xff]  }
 0x3fb   : > { %7098 = vmatpush1.bf16.msra.mxu0 %v16145_v43  ;;  %3978 = vmatprep.subr.bf16.mxu1 %v16150_v45  ;;  %v3110_v43 = vrot.slane %v3047_v40, 5  ;;  %v16214_v45 = vld [vmem:[#allocation10 + $0x9d0] ss:$8 sps:$4 sm:$0xff]  }
 0x3fc   : > { %7110 = vmatprep.subr.bf16.mxu0 %v16153_v47  ;;  %v16217_v47 = vld [vmem:[#allocation10 + $0x16b0] ss:$8 sps:$4 sm:$0xff]  }
 0x3fd   : > { %v16250_v40 = vld [vmem:[#allocation10 + $0xa30] ss:$8 sps:$4 sm:$0xff]  }
 0x3fe   : > { %14149 = vmatmul.mubr.msk.bf16.vlgmr.msra.gmra.mrb[0].mxu0 %vm18260_vm3, %v14148_v51  ;;  %3979 = vmatpush1.bf16.msra.mxu1 %v16148_v46  ;;  %v3042_v46 = vld [vmem:[#allocation2 + $0x28] sm:$0xe0]  ;;  %v3116_v51 = vrot.slane %v3050_v34, 5  ;;  %v16268_v34 = vld [vmem:[#allocation10 + $0xa60] ss:$8 sps:$4 sm:$0xff]  }
 0x3ff   : > { %7111 = vmatpush1.bf16.msra.mxu0 %v16151_v56  ;;  %14152 = vmatprep.mubr.msk.bf16.mxu0 %vm18260_vm3, %v14151_v52  ;;  %v16220_v56 = vld [vmem:[#allocation10 + $0x9e0] ss:$8 sps:$4 sm:$0xff]   ;;  %v16231_v52 = vld [vmem:[#allocation10 + $0x16d4] ss:$8 sps:$4 sm:$0xff]  }
 0x400   : > { %3980 = vmatprep.subr.bf16.mxu1 %v16156_v38  ;;  %7112 = vmatprep.subr.bf16.mxu0 %v16159_v50  ;;  %v16228_v38 = vld [vmem:[#allocation10 + $0x9f4] ss:$8 sps:$4 sm:$0xff]   ;;  %v3097_v50 = vrot.slane %v3042_v46, 5  ;;  %v16265_v46 = vld [vmem:[#allocation10 + $0x1730] ss:$8 sps:$4 sm:$0xff]  }
 0x402   : > { %3981 = vmatpush1.bf16.msra.mxu1 %v16154_v53  ;;  %v16226_v53 = vld [vmem:[#allocation10 + $0x9f0] ss:$8 sps:$4 sm:$0xff]  }
 0x403   : > { %7113 = vmatpush1.bf16.msra.mxu0 %v16157_v54  ;;  %3982 = vmatprep.subr.bf16.mxu1 %v16162_v57  ;;  %v16229_v54 = vld [vmem:[#allocation10 + $0x16d0] ss:$8 sps:$4 sm:$0xff]   ;;  %v16234_v57 = vld [vmem:[#allocation10 + $0xa04] ss:$8 sps:$4 sm:$0xff]  }
 0x404   : > { %7114 = vmatprep.subr.bf16.mxu0 %v16165_v58  ;;  %v16237_v58 = vld [vmem:[#allocation10 + $0x16e4] ss:$8 sps:$4 sm:$0xff]  }
 0x406   : > { %3983 = vmatpush1.bf16.msra.mxu1 %v16160_v44  ;;  %v3111_v44 = vsel %vm3081_vm11, %v3089_v27, %v3110_v43  ;;  %v16264_v43 = vld [vmem:[#allocation10 + $0xa54] ss:$8 sps:$4 sm:$0xff]  }
 0x407   : > { %7115 = vmatpush1.bf16.msra.mxu0 %v16163_v60  ;;  %3984 = vmatprep.subr.bf16.mxu1 %v16168_v63  ;;  %v3099_v60 = vsel %vm3081_vm11, %v3097_v50, %v3098_v35  ;;  %v3117_v63 = vsel %vm3081_vm11, %v3098_v35, %v3116_v51  ;;  %v16252_v35 = vld [vmem:[#allocation10 + $0xa34] ss:$8 sps:$4 sm:$0xff]   ;;  %v16277_v50 = vld [vmem:[#allocation10 + $0x1750] ss:$8 sps:$4 sm:$0xff]   ;;  %v16282_v51 = vld [vmem:[#allocation10 + $0xa84] ss:$8 sps:$4 sm:$0xff]  }
 0x408   : > { %7116 = vmatprep.subr.bf16.mxu0 %v16171_v2  ;;  %v6138_v2 = vld [vmem:[#allocation2 + $0xa0] sm:$0xff] }
 0x40a   : > { %3985 = vmatpush1.bf16.msra.mxu1 %v16166_v3  ;;  %v6130_v3 = vld [vmem:[#allocation2 + $0x60] sm:$0xfe] }
 0x40b   : > { %7117 = vmatpush1.bf16.msra.mxu0 %v16169_v6  ;;  %3986 = vmatprep.subr.bf16.mxu1 %v16174_v8  ;;  %v6146_v6 = vld [vmem:[#allocation2 + $0xe0] sm:$0x1]  ;;  %v3090_v8 = vsel %vm3081_vm11, %v3088_v42, %v3089_v27 }
 0x40c   : > { %7118 = vmatprep.subr.bf16.mxu0 %v16177_v7  ;;  %v6133_v7 = vld [vmem:[#allocation2 + $0x78] sm:$0xfe] }
 0x40d   : > { %v16247_v27 = vld [vmem:[#allocation10 + $0x1700] ss:$8 sps:$4 sm:$0xff]  }
 0x40e   : > { %3987 = vmatpush1.bf16.msra.mxu1 %v16172_v9  ;;  %v16232_v9 = vld [vmem:[#allocation10 + $0xa00] ss:$8 sps:$4 sm:$0xff]  }
 0x40f   : > { %7119 = vmatpush1.bf16.msra.mxu0 %v16175_v10  ;;  %3988 = vmatprep.subr.bf16.mxu1 %v16180_v11  ;;  %v6141_v10 = vld [vmem:[#allocation2 + $0xb8] sm:$0xff]  ;;  %v13716_v11 = vpack.c.bf16 %v3111_v44, %v3090_v8  ;;  %v16291_v44 = vld [vmem:[#allocation10 + $0x1774] ss:$8 sps:$4 sm:$0xff]  }
 0x410   : > { %7120 = vmatprep.subr.bf16.mxu0 %v16183_v12  ;;  %v16240_v12 = vld [vmem:[#allocation10 + $0xa14] ss:$8 sps:$4 sm:$0xff]   ;;  %v16259_v42 = vld [vmem:[#allocation10 + $0x1720] ss:$8 sps:$4 sm:$0xff]  }
 0x411   : > { %v16300_v8 = vld [vmem:[#allocation10 + $0xab4] ss:$8 sps:$4 sm:$0xff]  }
 0x412   : > { %3989 = vmatpush1.bf16.msra.mxu1 %v16178_v59  ;;  %v16235_v59 = vld [vmem:[#allocation10 + $0x16e0] ss:$8 sps:$4 sm:$0xff]  }
 0x413   : > { %7121 = vmatpush1.bf16.msra.mxu0 %v16181_v61  ;;  %3990 = vmatprep.subr.bf16.mxu1 %v16186_v62  ;;  %v6149_v61 = vld [vmem:[#allocation2 + $0xf8] sm:$0x1]  ;;  %v13719_v62 = vpack.c.bf16 %v3117_v63, %v3099_v60  ;;  %v16289_v60 = vld [vmem:[#allocation10 + $0x1770] ss:$8 sps:$4 sm:$0xff]   ;;  %v16294_v63 = vld [vmem:[#allocation10 + $0xaa4] ss:$8 sps:$4 sm:$0xff]  }
 0x414   : > { %7122 = vmatprep.subr.bf16.mxu0 %v16189_v15  ;;  %v6187_v15 = vrot.slane %v6130_v3, 1  ;;  %v16297_v3 = vld [vmem:[#allocation10 + $0x1784] ss:$8 sps:$4 sm:$0xff]  }
 0x416   : > { %3991 = vmatpush1.bf16.msra.mxu1 %v16184_v13  ;;  %v16243_v13 = vld [vmem:[#allocation10 + $0x16f4] ss:$8 sps:$4 sm:$0xff]  }
 0x417   : > { %7123 = vmatpush1.bf16.msra.mxu0 %v16187_v16  ;;  %3992 = vmatprep.subr.bf16.mxu1 %v16192_v17  ;;  %v6188_v16 = vrot.slane %v6138_v2, 1  ;;  %v6207_v17 = vrot.slane %v6146_v6, 1  ;;  %v16292_v2 = vld [vmem:[#allocation10 + $0xaa0] ss:$8 sps:$4 sm:$0xff]  }
 0x418   : > { %7124 = vmatprep.subr.bf16.mxu0 %v16195_v20  ;;  %v6196_v20 = vrot.slane %v6133_v7, 1  ;;  %v16295_v6 = vld [vmem:[#allocation10 + $0x1780] ss:$8 sps:$4 sm:$0xff]   ;;  %v16298_v7 = vld [vmem:[#allocation10 + $0xab0] ss:$8 sps:$4 sm:$0xff]  }
 0x41a   : > { %3993 = vmatpush1.bf16.msra.mxu1 %v16190_v18  ;;  %v16238_v18 = vld [vmem:[#allocation10 + $0xa10] ss:$8 sps:$4 sm:$0xff]  }
 0x41b   : > { %7125 = vmatpush1.bf16.msra.mxu0 %v16193_v29  ;;  %3994 = vmatprep.subr.bf16.mxu1 %v16198_v32  ;;  %v6197_v29 = vrot.slane %v6141_v10, 1  ;;  %v6213_v32 = vrot.slane %v6149_v61, 1  ;;  %v16301_v10 = vld [vmem:[#allocation10 + $0x1790] ss:$8 sps:$4 sm:$0xff]   ;;  %v16307_v61 = vld [vmem:[#allocation10 + $0x17a0] ss:$8 sps:$4 sm:$0xff]  }
 0x41c   : > { %7126 = vmatprep.subr.bf16.mxu0 %v16201_v1  ;;  %v16246_v1 = vld [vmem:[#allocation10 + $0xa24] ss:$8 sps:$4 sm:$0xff]  }
 0x41d   : > { %v6198_v26 = vsel %vm6174_vm10, %v6196_v20, %v6197_v29  ;;  %v6214_v19 = vsel %vm6174_vm10, %v6197_v29, %v6213_v32  ;;  %v3041_v20 = vld [vmem:[#allocation2 + $0x20] sm:$0xe0]  ;;  %v3049_v29 = vld [vmem:[#allocation2 + $0xa0] sm:$0x1f] }
 0x41e   : > { %3995 = vmatpush1.bf16.msra.mxu1 %v16196_v21  ;;  %v16241_v21 = vld [vmem:[#allocation10 + $0x16f0] ss:$8 sps:$4 sm:$0xff]   ;;  %v16316_v32 = vld [vmem:[#allocation10 + $0xae0] ss:$8 sps:$4 sm:$0xff]  }
 0x41f   : > { %7127 = vmatpush1.bf16.msra.mxu0 %v16199_v22  ;;  %3996 = vmatprep.subr.bf16.mxu1 %v16204_v23  ;;  %v16249_v22 = vld [vmem:[#allocation10 + $0x1704] ss:$8 sps:$4 sm:$0xff]   ;;  %v6189_v23 = vsel %vm6174_vm10, %v6187_v15, %v6188_v16  ;;  %v16310_v15 = vld [vmem:[#allocation10 + $0xad0] ss:$8 sps:$4 sm:$0xff]  }
 0x420   : > { %7128 = vmatprep.subr.bf16.mxu0 %v16207_v25  ;;  %v16244_v25 = vld [vmem:[#allocation10 + $0xa20] ss:$8 sps:$4 sm:$0xff]  }
 0x422   : > { %3997 = vmatpush1.bf16.msra.mxu1 %v16202_v24  ;;  %v6208_v24 = vsel %vm6174_vm10, %v6188_v16, %v6207_v17  ;;  %v16313_v16 = vld [vmem:[#allocation10 + $0x17b0] ss:$8 sps:$4 sm:$0xff]   ;;  %v16318_v17 = vld [vmem:[#allocation10 + $0xae4] ss:$8 sps:$4 sm:$0xff]  }
 0x423   : > { %7129 = vmatpush1.bf16.msra.mxu0 %v16205_v36  ;;  %3998 = vmatprep.subr.bf16.mxu1 %v16210_v39  ;;  %v14154_v28 = vpack.c.bf16 %v6208_v24, %v6189_v23  ;;  %v16255_v36 = vld [vmem:[#allocation10 + $0x1714] ss:$8 sps:$4 sm:$0xff]   ;;  %v14157_v39 = vpack.c.bf16 %v6214_v19, %v6198_v26  ;;  %v17474_v26 = vld [vmem:[#allocation2 + $0x60] sm:$0xff] }
 0x424   : > { %7130 = vmatprep.subr.bf16.mxu0 %v16213_v55  ;;  %v16258_v55 = vld [vmem:[#allocation10 + $0xa44] ss:$8 sps:$4 sm:$0xff]   ;;  %v16324_v23 = vld [vmem:[#allocation10 + $0xaf4] ss:$8 sps:$4 sm:$0xff]   ;;  %v3095_v19 = vrot.slane %v17474_v26, 5 }
 0x425   : > { %v16327_v24 = vld [vmem:[#allocation10 + $0x17d4] ss:$8 sps:$4 sm:$0xff]   ;;  %v16367_v26 = vld [vmem:[#allocation10 + $0x1840] ss:$8 sps:$4 sm:$0xff]  }
 0x426   : > { %3999 = vmatpush1.bf16.msra.mxu1 %v16208_v4  ;;  %v16253_v4 = vld [vmem:[#allocation10 + $0x1710] ss:$8 sps:$4 sm:$0xff]  }
 0x427   : > { %7131 = vmatpush1.bf16.msra.mxu0 %v16211_v33  ;;  %4000 = vmatprep.subr.bf16.mxu1 %v16216_v41  ;;  %v16261_v33 = vld [vmem:[#allocation10 + $0x1724] ss:$8 sps:$4 sm:$0xff]   ;;  %v16256_v41 = vld [vmem:[#allocation10 + $0xa40] ss:$8 sps:$4 sm:$0xff]  }
 0x428   : > { %7132 = vmatprep.subr.bf16.mxu0 %v16219_v37  ;;  %v16262_v37 = vld [vmem:[#allocation10 + $0xa50] ss:$8 sps:$4 sm:$0xff]  }
 0x42a   : > { %4001 = vmatpush1.bf16.msra.mxu1 %v16214_v45  ;;  %v16267_v45 = vld [vmem:[#allocation10 + $0x1734] ss:$8 sps:$4 sm:$0xff]  }
 0x42b   : > { %7133 = vmatpush1.bf16.msra.mxu0 %v16217_v47  ;;  %4002 = vmatprep.subr.bf16.mxu1 %v16222_v48  ;;  %v16270_v47 = vld [vmem:[#allocation10 + $0xa64] ss:$8 sps:$4 sm:$0xff]  }
 0x42c   : > { %7134 = vmatprep.subr.bf16.mxu0 %v16225_v49  ;;  %v16273_v48 = vld [vmem:[#allocation10 + $0x1744] ss:$8 sps:$4 sm:$0xff]   ;;  %v16276_v49 = vld [vmem:[#allocation10 + $0xa74] ss:$8 sps:$4 sm:$0xff]  }
 0x42e   : > { %4003 = vmatpush1.bf16.msra.mxu1 %v16220_v56  ;;  %v16271_v56 = vld [vmem:[#allocation10 + $0x1740] ss:$8 sps:$4 sm:$0xff]  }
 0x42f   : > { %7135 = vmatpush1.bf16.msra.mxu0 %v16223_v0  ;;  %4004 = vmatprep.subr.bf16.mxu1 %v16228_v38  ;;  %v16279_v0 = vld [vmem:[#allocation10 + $0x1754] ss:$8 sps:$4 sm:$0xff]   ;;  %v16274_v38 = vld [vmem:[#allocation10 + $0xa70] ss:$8 sps:$4 sm:$0xff]  }
 0x430   : > { %7136 = vmatprep.subr.bf16.mxu0 %v16231_v52  ;;  %v16285_v52 = vld [vmem:[#allocation10 + $0x1764] ss:$8 sps:$4 sm:$0xff]  }
 0x432   : > { %4005 = vmatpush1.bf16.msra.mxu1 %v16226_v53  ;;  %v16280_v53 = vld [vmem:[#allocation10 + $0xa80] ss:$8 sps:$4 sm:$0xff]  }
 0x433   : > { %7137 = vmatpush1.bf16.msra.mxu0 %v16229_v54  ;;  %4017 = vmatprep.subr.bf16.mxu1 %v16234_v57  ;;  %v16283_v54 = vld [vmem:[#allocation10 + $0x1760] ss:$8 sps:$4 sm:$0xff]   ;;  %v16288_v57 = vld [vmem:[#allocation10 + $0xa94] ss:$8 sps:$4 sm:$0xff]  }
 0x434   : > { %7138 = vmatprep.subr.bf16.mxu0 %v16237_v58  ;;  %v16286_v58 = vld [vmem:[#allocation10 + $0xa90] ss:$8 sps:$4 sm:$0xff]  }
 0x435   : > { %13717 = vmatmul.mubr.msk.bf16.vlgmr.msra.gmra.mrb[16].mxu1 %vm18260_vm3, %v13716_v11  ;;  %v16306_v11 = vld [vmem:[#allocation10 + $0xac4] ss:$8 sps:$4 sm:$0xff]  }
 0x436   : > { %4018 = vmatpush1.bf16.msra.mxu1 %v16232_v9  ;;  %13720 = vmatprep.mubr.msk.bf16.mxu1 %vm18260_vm3, %v13719_v62  ;;  %v16303_v9 = vld [vmem:[#allocation10 + $0x1794] ss:$8 sps:$4 sm:$0xff]  }
 0x437   : > { %7139 = vmatpush1.bf16.msra.mxu0 %v16235_v59  ;;  %4019 = vmatprep.subr.bf16.mxu1 %v16240_v12  ;;  %v16309_v59 = vld [vmem:[#allocation10 + $0x17a4] ss:$8 sps:$4 sm:$0xff]   ;;  %v16304_v12 = vld [vmem:[#allocation10 + $0xac0] ss:$8 sps:$4 sm:$0xff]   ;;  %v16312_v62 = vld [vmem:[#allocation10 + $0xad4] ss:$8 sps:$4 sm:$0xff]  }
 0x438   : > { %7140 = vmatprep.subr.bf16.mxu0 %v16243_v13  ;;  %v16315_v13 = vld [vmem:[#allocation10 + $0x17b4] ss:$8 sps:$4 sm:$0xff]  }
 0x43a   : > { %4020 = vmatpush1.bf16.msra.mxu1 %v16238_v18  ;;  %v16321_v18 = vld [vmem:[#allocation10 + $0x17c4] ss:$8 sps:$4 sm:$0xff]  }
 0x43b   : > { %7141 = vmatpush1.bf16.msra.mxu0 %v16241_v21  ;;  %4021 = vmatprep.subr.bf16.mxu1 %v16246_v1  ;;  %v3044_v21 = vld [vmem:[#allocation2 + $0x38] sm:$0xe0]  ;;  %v3052_v1 = vld [vmem:[#allocation2 + $0xb8] sm:$0x1f] }
 0x43c   : > { %7153 = vmatprep.subr.bf16.mxu0 %v16249_v22  ;;  %v16319_v22 = vld [vmem:[#allocation10 + $0x17c0] ss:$8 sps:$4 sm:$0xff]  }
 0x43e   : > { %14155 = vmatmul.mubr.msk.bf16.vlgmr.msra.gmra.mrb[0].mxu0 %vm18260_vm3, %v14154_v28  ;;  %4022 = vmatpush1.bf16.msra.mxu1 %v16244_v25  ;;  %v3094_v25 = vrot.slane %v3041_v20, 5  ;;  %v3103_v28 = vrot.slane %v3044_v21, 5  ;;  %v16352_v20 = vld [vmem:[#allocation10 + $0xb40] ss:$8 sps:$4 sm:$0xff]   ;;  %v16363_v21 = vld [vmem:[#allocation10 + $0x1834] ss:$8 sps:$4 sm:$0xff]  }
 0x43f   : > { %7154 = vmatpush1.bf16.msra.mxu0 %v16247_v27  ;;  %14158 = vmatprep.mubr.msk.bf16.mxu0 %vm18260_vm3, %v14157_v39  ;;  %v3114_v27 = vrot.slane %v3049_v29, 5  ;;  %v3120_v39 = vrot.slane %v3052_v1, 5  ;;  %v16355_v29 = vld [vmem:[#allocation10 + $0x1820] ss:$8 sps:$4 sm:$0xff]   ;;  %v16358_v1 = vld [vmem:[#allocation10 + $0xb50] ss:$8 sps:$4 sm:$0xff]  }
 0x440   : > { %4023 = vmatprep.subr.bf16.mxu1 %v16252_v35  ;;  %7155 = vmatprep.subr.bf16.mxu0 %v16255_v36  ;;  %v17475_v35 = vld [vmem:[#allocation2 + $0x78] sm:$0xff] }
 0x441   : > { %v3104_v36 = vrot.slane %v17475_v35, 5  ;;  %v16373_v35 = vld [vmem:[#allocation10 + $0x1850] ss:$8 sps:$4 sm:$0xff]  }
 0x442   : > { %4024 = vmatpush1.bf16.msra.mxu1 %v16250_v40  ;;  %v16322_v40 = vld [vmem:[#allocation10 + $0xaf0] ss:$8 sps:$4 sm:$0xff]  }
 0x443   : > { %7156 = vmatpush1.bf16.msra.mxu0 %v16253_v4  ;;  %4025 = vmatprep.subr.bf16.mxu1 %v16258_v55  ;;  %v16325_v4 = vld [vmem:[#allocation10 + $0x17d0] ss:$8 sps:$4 sm:$0xff]   ;;  %v16330_v55 = vld [vmem:[#allocation10 + $0xb04] ss:$8 sps:$4 sm:$0xff]  }
 0x444   : > { %7157 = vmatprep.subr.bf16.mxu0 %v16261_v33  ;;  %v3096_v33 = vsel %vm3081_vm11, %v3094_v25, %v3095_v19  ;;  %v16364_v25 = vld [vmem:[#allocation10 + $0xb60] ss:$8 sps:$4 sm:$0xff]  }
 0x446   : > { %4026 = vmatpush1.bf16.msra.mxu1 %v16256_v41  ;;  %v3115_v41 = vsel %vm3081_vm11, %v3095_v19, %v3114_v27  ;;  %v16372_v19 = vld [vmem:[#allocation10 + $0xb74] ss:$8 sps:$4 sm:$0xff]  }
 0x447   : > { %7158 = vmatpush1.bf16.msra.mxu0 %v16259_v42  ;;  %4027 = vmatprep.subr.bf16.mxu1 %v16264_v43  ;;  %v16333_v42 = vld [vmem:[#allocation10 + $0x17e4] ss:$8 sps:$4 sm:$0xff]   ;;  %v3105_v43 = vsel %vm3081_vm11, %v3103_v28, %v3104_v36  ;;  %v16375_v27 = vld [vmem:[#allocation10 + $0x1854] ss:$8 sps:$4 sm:$0xff]   ;;  %v16370_v28 = vld [vmem:[#allocation10 + $0xb70] ss:$8 sps:$4 sm:$0xff]  }
 0x448   : > { %7159 = vmatprep.subr.bf16.mxu0 %v16267_v45  ;;  %v3121_v45 = vsel %vm3081_vm11, %v3104_v36, %v3120_v39  ;;  %v16378_v36 = vld [vmem:[#allocation10 + $0xb84] ss:$8 sps:$4 sm:$0xff]  }
 0x449   : > { %v16381_v39 = vld [vmem:[#allocation10 + $0x1864] ss:$8 sps:$4 sm:$0xff]  }
 0x44a   : > { %4028 = vmatpush1.bf16.msra.mxu1 %v16262_v37  ;;  %v6132_v37 = vld [vmem:[#allocation2 + $0x70] sm:$0xfe] }
 0x44b   : > { %7160 = vmatpush1.bf16.msra.mxu0 %v16265_v46  ;;  %4029 = vmatprep.subr.bf16.mxu1 %v16270_v47  ;;  %v16328_v46 = vld [vmem:[#allocation10 + $0xb00] ss:$8 sps:$4 sm:$0xff]   ;;  %v18495_v47 = vld [vmem:[#allocation2 + $0xb0] sm:$0xff] }
 0x44c   : > { %7161 = vmatprep.subr.bf16.mxu0 %v16273_v48  ;;  %v6148_v48 = vld [vmem:[#allocation2 + $0xf0] sm:$0x1] }
 0x44e   : > { %4030 = vmatpush1.bf16.msra.mxu1 %v16268_v34  ;;  %v13722_v34 = vpack.c.bf16 %v3115_v41, %v3096_v33  ;;  %v16387_v33 = vld [vmem:[#allocation10 + $0x1874] ss:$8 sps:$4 sm:$0xff]   ;;  %v16382_v41 = vld [vmem:[#allocation10 + $0xb90] ss:$8 sps:$4 sm:$0xff]  }
 0x44f   : > { %7162 = vmatpush1.bf16.msra.mxu0 %v16271_v56  ;;  %4031 = vmatprep.subr.bf16.mxu1 %v16276_v49  ;;  %v16331_v56 = vld [vmem:[#allocation10 + $0x17e0] ss:$8 sps:$4 sm:$0xff]   ;;  %v16336_v49 = vld [vmem:[#allocation10 + $0xb14] ss:$8 sps:$4 sm:$0xff]  }
 0x450   : > { %7163 = vmatprep.subr.bf16.mxu0 %v16279_v0  ;;  %v7209_v0 = vld [vmem:[#allocation2 + $0xc8] sm:$0x7] }
 0x452   : > { %4032 = vmatpush1.bf16.msra.mxu1 %v16274_v38  ;;  %v13725_v38 = vpack.c.bf16 %v3121_v45, %v3105_v43  ;;  %v16390_v43 = vld [vmem:[#allocation10 + $0xba4] ss:$8 sps:$4 sm:$0xff]  }
 0x453   : > { %7164 = vmatpush1.bf16.msra.mxu0 %v16277_v50  ;;  %4033 = vmatprep.subr.bf16.mxu1 %v16282_v51  ;;  %v16339_v50 = vld [vmem:[#allocation10 + $0x17f4] ss:$8 sps:$4 sm:$0xff]   ;;  %v6193_v51 = vrot.slane %v6132_v37, 1  ;;  %v16393_v45 = vld [vmem:[#allocation10 + $0x1884] ss:$8 sps:$4 sm:$0xff]  }
 0x454   : > { %7165 = vmatprep.subr.bf16.mxu0 %v16285_v52  ;;  %v6194_v52 = vrot.slane %v18495_v47, 1  ;;  %v16388_v37 = vld [vmem:[#allocation10 + $0xba0] ss:$8 sps:$4 sm:$0xff]  }
 0x456   : > { %4034 = vmatpush1.bf16.msra.mxu1 %v16280_v53  ;;  %v6211_v53 = vrot.slane %v6148_v48, 1  ;;  %v16396_v48 = vld [vmem:[#allocation10 + $0xbb4] ss:$8 sps:$4 sm:$0xff]  }
 0x457   : > { %7166 = vmatpush1.bf16.msra.mxu0 %v16283_v54  ;;  %4035 = vmatprep.subr.bf16.mxu1 %v16288_v57  ;;  %v7201_v54 = vld [vmem:[#allocation2 + $0x48] sm:$0xf8] }
 0x458   : > { %7167 = vmatprep.subr.bf16.mxu0 %v16291_v44  ;;  %v16334_v57 = vld [vmem:[#allocation10 + $0xb10] ss:$8 sps:$4 sm:$0xff]  }
 0x459   : > { %v18502_v44 = vld [vmem:[#allocation2 + $0x88] sm:$0xff] }
 0x45a   : > { %4036 = vmatpush1.bf16.msra.mxu1 %v16286_v58  ;;  %v7236_v58 = vrot.slane %v18502_v44, 3 }
 0x45b   : > { %7168 = vmatpush1.bf16.msra.mxu0 %v16289_v60  ;;  %4037 = vmatprep.subr.bf16.mxu1 %v16294_v63  ;;  %v7258_v60 = vrot.slane %v7209_v0, 3  ;;  %v16337_v63 = vld [vmem:[#allocation10 + $0x17f0] ss:$8 sps:$4 sm:$0xff]   ;;  %v16402_v0 = vld [vmem:[#allocation10 + $0xbc4] ss:$8 sps:$4 sm:$0xff]  }
 0x45c   : > { %7169 = vmatprep.subr.bf16.mxu0 %v16297_v3  ;;  %v16342_v3 = vld [vmem:[#allocation10 + $0xb24] ss:$8 sps:$4 sm:$0xff]  }
 0x45e   : > { %4038 = vmatpush1.bf16.msra.mxu1 %v16292_v2  ;;  %v16345_v2 = vld [vmem:[#allocation10 + $0x1804] ss:$8 sps:$4 sm:$0xff]  }
 0x45f   : > { %7170 = vmatpush1.bf16.msra.mxu0 %v16295_v6  ;;  %4039 = vmatprep.subr.bf16.mxu1 %v16300_v8  ;;  %v7235_v6 = vrot.slane %v7201_v54, 3  ;;  %v6195_v8 = vsel %vm6174_vm10, %v6193_v51, %v6194_v52  ;;  %v16403_v51 = vld [vmem:[#allocation10 + $0x18a0] ss:$8 sps:$4 sm:$0xff]   ;;  %v16406_v54 = vld [vmem:[#allocation10 + $0xbd0] ss:$8 sps:$4 sm:$0xff]  }
 0x460   : > { %7171 = vmatprep.subr.bf16.mxu0 %v16303_v9  ;;  %v6212_v9 = vsel %vm6174_vm10, %v6194_v52, %v6211_v53  ;;  %v16408_v52 = vld [vmem:[#allocation10 + $0xbd4] ss:$8 sps:$4 sm:$0xff]  }
 0x461   : > { %v16411_v53 = vld [vmem:[#allocation10 + $0x18b4] ss:$8 sps:$4 sm:$0xff]  }
 0x462   : > { %4040 = vmatpush1.bf16.msra.mxu1 %v16298_v7  ;;  %v16340_v7 = vld [vmem:[#allocation10 + $0xb20] ss:$8 sps:$4 sm:$0xff]  }
 0x463   : > { %7172 = vmatpush1.bf16.msra.mxu0 %v16301_v10  ;;  %4041 = vmatprep.subr.bf16.mxu1 %v16306_v11  ;;  %v7237_v10 = vsel %vm994_vm9, %v7235_v6, %v7236_v58  ;;  %v7259_v11 = vsel %vm994_vm9, %v7236_v58, %v7258_v60  ;;  %v16414_v58 = vld [vmem:[#allocation10 + $0xbe4] ss:$8 sps:$4 sm:$0xff]   ;;  %v4116_v6 = vld [vmem:[#allocation2 + $0x88] sm:$0x7f] }
 0x464   : > { %7173 = vmatprep.subr.bf16.mxu0 %v16309_v59  ;;  %v16343_v59 = vld [vmem:[#allocation10 + $0x1800] ss:$8 sps:$4 sm:$0xff]   ;;  %v16417_v60 = vld [vmem:[#allocation10 + $0x18c4] ss:$8 sps:$4 sm:$0xff]  }
 0x466   : > { %4042 = vmatpush1.bf16.msra.mxu1 %v16304_v12  ;;  %v14160_v12 = vpack.c.bf16 %v6212_v9, %v6195_v8  ;;  %v16415_v8 = vld [vmem:[#allocation10 + $0x18c0] ss:$8 sps:$4 sm:$0xff]   ;;  %v16420_v9 = vld [vmem:[#allocation10 + $0xbf4] ss:$8 sps:$4 sm:$0xff]  }
 0x467   : > { %7174 = vmatpush1.bf16.msra.mxu0 %v16307_v61  ;;  %4043 = vmatprep.subr.bf16.mxu1 %v16312_v62  ;;  %v16348_v61 = vld [vmem:[#allocation10 + $0xb34] ss:$8 sps:$4 sm:$0xff]  }
 0x468   : > { %7175 = vmatprep.subr.bf16.mxu0 %v16315_v13  ;;  %v16351_v62 = vld [vmem:[#allocation10 + $0x1814] ss:$8 sps:$4 sm:$0xff]   ;;  %v14291_v13 = vpack.c.bf16 %v7259_v11, %v7237_v10 }
 0x469   : > { %v16423_v11 = vld [vmem:[#allocation10 + $0x18d4] ss:$8 sps:$4 sm:$0xff]  }
 0x46a   : > { %4044 = vmatpush1.bf16.msra.mxu1 %v16310_v15  ;;  %v16346_v15 = vld [vmem:[#allocation10 + $0xb30] ss:$8 sps:$4 sm:$0xff]  }
 0x46b   : > { %7176 = vmatpush1.bf16.msra.mxu0 %v16313_v16  ;;  %4045 = vmatprep.subr.bf16.mxu1 %v16318_v17  ;;  %v16349_v16 = vld [vmem:[#allocation10 + $0x1810] ss:$8 sps:$4 sm:$0xff]   ;;  %v16354_v17 = vld [vmem:[#allocation10 + $0xb44] ss:$8 sps:$4 sm:$0xff]  }
 0x46c   : > { %7177 = vmatprep.subr.bf16.mxu0 %v16321_v18  ;;  %v16357_v18 = vld [vmem:[#allocation10 + $0x1824] ss:$8 sps:$4 sm:$0xff]  }
 0x46e   : > { %4046 = vmatpush1.bf16.msra.mxu1 %v16316_v32  ;;  %v16360_v32 = vld [vmem:[#allocation10 + $0xb54] ss:$8 sps:$4 sm:$0xff]  }
 0x46f   : > { %7178 = vmatpush1.bf16.msra.mxu0 %v16319_v22  ;;  %4047 = vmatprep.subr.bf16.mxu1 %v16324_v23  ;;  %v16361_v22 = vld [vmem:[#allocation10 + $0x1830] ss:$8 sps:$4 sm:$0xff]   ;;  %v16366_v23 = vld [vmem:[#allocation10 + $0xb64] ss:$8 sps:$4 sm:$0xff]  }
 0x470   : > { %7179 = vmatprep.subr.bf16.mxu0 %v16327_v24  ;;  %v16369_v24 = vld [vmem:[#allocation10 + $0x1844] ss:$8 sps:$4 sm:$0xff]  }
 0x472   : > { %4048 = vmatpush1.bf16.msra.mxu1 %v16322_v40  ;;  %v16376_v40 = vld [vmem:[#allocation10 + $0xb80] ss:$8 sps:$4 sm:$0xff]  }
 0x473   : > { %7180 = vmatpush1.bf16.msra.mxu0 %v16325_v4  ;;  %4060 = vmatprep.subr.bf16.mxu1 %v16330_v55  ;;  %v16379_v4 = vld [vmem:[#allocation10 + $0x1860] ss:$8 sps:$4 sm:$0xff]   ;;  %v16384_v55 = vld [vmem:[#allocation10 + $0xb94] ss:$8 sps:$4 sm:$0xff]  }
 0x474   : > { %7181 = vmatprep.subr.bf16.mxu0 %v16333_v42  ;;  %v16385_v42 = vld [vmem:[#allocation10 + $0x1870] ss:$8 sps:$4 sm:$0xff]  }
 0x475   : > { %13723 = vmatmul.mubr.msk.bf16.vlgmr.msra.gmra.mrb[16].mxu1 %vm18260_vm3, %v13722_v34  ;;  %v16399_v34 = vld [vmem:[#allocation10 + $0x1894] ss:$8 sps:$4 sm:$0xff]  }
 0x476   : > { %4061 = vmatpush1.bf16.msra.mxu1 %v16328_v46  ;;  %13726 = vmatprep.mubr.msk.bf16.mxu1 %vm18260_vm3, %v13725_v38  ;;  %v16391_v46 = vld [vmem:[#allocation10 + $0x1880] ss:$8 sps:$4 sm:$0xff]   ;;  %v16405_v38 = vld [vmem:[#allocation10 + $0x18a4] ss:$8 sps:$4 sm:$0xff]  }
 0x477   : > { %7182 = vmatpush1.bf16.msra.mxu0 %v16331_v56  ;;  %4062 = vmatprep.subr.bf16.mxu1 %v16336_v49  ;;  %v16394_v56 = vld [vmem:[#allocation10 + $0xbb0] ss:$8 sps:$4 sm:$0xff]  }
 0x478   : > { %7183 = vmatprep.subr.bf16.mxu0 %v16339_v50  ;;  %v16397_v49 = vld [vmem:[#allocation10 + $0x1890] ss:$8 sps:$4 sm:$0xff]   ;;  %v16400_v50 = vld [vmem:[#allocation10 + $0xbc0] ss:$8 sps:$4 sm:$0xff]  }
 0x47a   : > { %4063 = vmatpush1.bf16.msra.mxu1 %v16334_v57  ;;  %v16409_v57 = vld [vmem:[#allocation10 + $0x18b0] ss:$8 sps:$4 sm:$0xff]  }
 0x47b   : > { %7184 = vmatpush1.bf16.msra.mxu0 %v16337_v63  ;;  %4064 = vmatprep.subr.bf16.mxu1 %v16342_v3  ;;  %v3043_v63 = vld [vmem:[#allocation2 + $0x30] sm:$0xe0]  ;;  %v3051_v3 = vld [vmem:[#allocation2 + $0xb0] sm:$0x1f] }
 0x47c   : > { %8081 = vmatprep.subr.bf16.mxu0 %v16345_v2  ;;  %v16412_v2 = vld [vmem:[#allocation10 + $0xbe0] ss:$8 sps:$4 sm:$0xff]  }
 0x47e   : > { %14161 = vmatmul.mubr.msk.bf16.vlgmr.msra.gmra.mrb[0].mxu0 %vm18260_vm3, %v14160_v12  ;;  %4065 = vmatpush1.bf16.msra.mxu1 %v16340_v7  ;;  %v17477_v7 = vld [vmem:[#allocation2 + $0x70] sm:$0xff]  ;;  %v3118_v12 = vrot.slane %v3051_v3, 5  ;;  %v16453_v3 = vld [vmem:[#allocation10 + $0x1924] ss:$8 sps:$4 sm:$0xff]  }
 0x47f   : > { %8082 = vmatpush1.bf16.msra.mxu0 %v16343_v59  ;;  %14292 = vmatprep.mubr.msk.bf16.mxu0 %vm18332_vm8, %v14291_v13  ;;  %v3101_v10 = vrot.slane %v17477_v7, 5  ;;  %v3100_v59 = vrot.slane %v3043_v63, 5  ;;  %v16418_v13 = vld [vmem:[#allocation10 + $0xbf0] ss:$8 sps:$4 sm:$0xff]   ;;  %v16450_v63 = vld [vmem:[#allocation10 + $0xc44] ss:$8 sps:$4 sm:$0xff]  }
 0x480   : > { %4066 = vmatprep.subr.bf16.mxu1 %v16348_v61  ;;  %8083 = vmatprep.subr.bf16.mxu0 %v16351_v62  ;;  %v4108_v61 = vld [vmem:[#allocation2 + $0x8] sm:$0x80]  ;;  %v4166_v62 = vrot.slane %v4116_v6, 7  ;;  %v16451_v6 = vld [vmem:[#allocation10 + $0x1920] ss:$8 sps:$4 sm:$0xff]  }
 0x481   : > { %v16454_v7 = vld [vmem:[#allocation10 + $0xc50] ss:$8 sps:$4 sm:$0xff]  }
 0x482   : > { %4067 = vmatpush1.bf16.msra.mxu1 %v16346_v15  ;;  %v16421_v15 = vld [vmem:[#allocation10 + $0x18d0] ss:$8 sps:$4 sm:$0xff]  }
 0x483   : > { %8084 = vmatpush1.bf16.msra.mxu0 %v16349_v16  ;;  %4068 = vmatprep.subr.bf16.mxu1 %v16354_v17  ;;  %v16426_v16 = vld [vmem:[#allocation10 + $0xc04] ss:$8 sps:$4 sm:$0xff]   ;;  %v4143_v17 = vrot.slane %v4108_v61, 7  ;;  %v16463_v61 = vld [vmem:[#allocation10 + $0x1940] ss:$8 sps:$4 sm:$0xff]  }
 0x484   : > { %8085 = vmatprep.subr.bf16.mxu0 %v16357_v18  ;;  %v17478_v18 = vld [vmem:[#allocation2 + $0x48] sm:$0xff] }
 0x486   : > { %4069 = vmatpush1.bf16.msra.mxu1 %v16352_v20  ;;  %v4144_v20 = vrot.slane %v17478_v18, 7  ;;  %v16477_v18 = vld [vmem:[#allocation10 + $0x1964] ss:$8 sps:$4 sm:$0xff]  }
 0x487   : > { %8086 = vmatpush1.bf16.msra.mxu0 %v16355_v29  ;;  %4070 = vmatprep.subr.bf16.mxu1 %v16360_v32  ;;  %v3102_v29 = vsel %vm3081_vm11, %v3100_v59, %v3101_v10  ;;  %v3119_v32 = vsel %vm3081_vm11, %v3101_v10, %v3118_v12  ;;  %v16457_v10 = vld [vmem:[#allocation10 + $0x1930] ss:$8 sps:$4 sm:$0xff]   ;;  %v16465_v59 = vld [vmem:[#allocation10 + $0x1944] ss:$8 sps:$4 sm:$0xff]   ;;  %v16460_v12 = vld [vmem:[#allocation10 + $0xc60] ss:$8 sps:$4 sm:$0xff]  }
 0x488   : > { %8087 = vmatprep.subr.bf16.mxu0 %v16363_v21  ;;  %v16429_v21 = vld [vmem:[#allocation10 + $0x18e4] ss:$8 sps:$4 sm:$0xff]  }
 0x48a   : > { %4071 = vmatpush1.bf16.msra.mxu1 %v16358_v1  ;;  %v4167_v1 = vsel %vm4139_vm7, %v4144_v20, %v4166_v62  ;;  %v16468_v62 = vld [vmem:[#allocation10 + $0xc74] ss:$8 sps:$4 sm:$0xff]  }
 0x48b   : > { %8088 = vmatpush1.bf16.msra.mxu0 %v16361_v22  ;;  %4072 = vmatprep.subr.bf16.mxu1 %v16366_v23  ;;  %v16424_v22 = vld [vmem:[#allocation10 + $0xc00] ss:$8 sps:$4 sm:$0xff]  }
 0x48c   : > { %8089 = vmatprep.subr.bf16.mxu0 %v16369_v24  ;;  %v7208_v23 = vld [vmem:[#allocation2 + $0xc0] sm:$0x7]  ;;  %v13728_v24 = vpack.c.bf16 %v3119_v32, %v3102_v29  ;;  %v16480_v32 = vld [vmem:[#allocation10 + $0xc94] ss:$8 sps:$4 sm:$0xff]  }
 0x48d   : > { %v16475_v29 = vld [vmem:[#allocation10 + $0x1960] ss:$8 sps:$4 sm:$0xff]  }
 0x48e   : > { %4073 = vmatpush1.bf16.msra.mxu1 %v16364_v25  ;;  %v16427_v25 = vld [vmem:[#allocation10 + $0x18e0] ss:$8 sps:$4 sm:$0xff]  }
 0x48f   : > { %8090 = vmatpush1.bf16.msra.mxu0 %v16367_v26  ;;  %4074 = vmatprep.subr.bf16.mxu1 %v16372_v19  ;;  %v4145_v26 = vsel %vm4139_vm7, %v4143_v17, %v4144_v20  ;;  %v16432_v19 = vld [vmem:[#allocation10 + $0xc14] ss:$8 sps:$4 sm:$0xff]   ;;  %v16474_v17 = vld [vmem:[#allocation10 + $0xc84] ss:$8 sps:$4 sm:$0xff]   ;;  %v16472_v20 = vld [vmem:[#allocation10 + $0xc80] ss:$8 sps:$4 sm:$0xff]  }
 0x490   : > { %8091 = vmatprep.subr.bf16.mxu0 %v16375_v27  ;;  %v7211_v27 = vld [vmem:[#allocation2 + $0xd8] sm:$0x7] }
 0x492   : > { %4075 = vmatpush1.bf16.msra.mxu1 %v16370_v28  ;;  %v13859_v28 = vpack.c.bf16 %v4167_v1, %v4145_v26  ;;  %v16478_v1 = vld [vmem:[#allocation10 + $0xc90] ss:$8 sps:$4 sm:$0xff]   ;;  %v16487_v26 = vld [vmem:[#allocation10 + $0x1980] ss:$8 sps:$4 sm:$0xff]  }
 0x493   : > { %8092 = vmatpush1.bf16.msra.mxu0 %v16373_v35  ;;  %4076 = vmatprep.subr.bf16.mxu1 %v16378_v36  ;;  %v16435_v35 = vld [vmem:[#allocation10 + $0x18f4] ss:$8 sps:$4 sm:$0xff]   ;;  %v7200_v36 = vld [vmem:[#allocation2 + $0x40] sm:$0xf8] }
 0x494   : > { %8093 = vmatprep.subr.bf16.mxu0 %v16381_v39  ;;  %v18519_v39 = vld [vmem:[#allocation2 + $0x80] sm:$0xff] }
 0x496   : > { %4077 = vmatpush1.bf16.msra.mxu1 %v16376_v40  ;;  %v7233_v40 = vrot.slane %v18519_v39, 3 }
 0x497   : > { %8094 = vmatpush1.bf16.msra.mxu0 %v16379_v4  ;;  %4078 = vmatprep.subr.bf16.mxu1 %v16384_v55  ;;  %v7256_v4 = vrot.slane %v7208_v23, 3  ;;  %v7203_v55 = vld [vmem:[#allocation2 + $0x58] sm:$0xf8] }
 0x498   : > { %8095 = vmatprep.subr.bf16.mxu0 %v16387_v33  ;;  %v16430_v33 = vld [vmem:[#allocation10 + $0xc10] ss:$8 sps:$4 sm:$0xff]   ;;  %v16486_v23 = vld [vmem:[#allocation10 + $0xca4] ss:$8 sps:$4 sm:$0xff]  }
 0x49a   : > { %4079 = vmatpush1.bf16.msra.mxu1 %v16382_v41  ;;  %v18524_v41 = vld [vmem:[#allocation2 + $0x98] sm:$0xff] }
 0x49b   : > { %8096 = vmatpush1.bf16.msra.mxu0 %v16385_v42  ;;  %4080 = vmatprep.subr.bf16.mxu1 %v16390_v43  ;;  %v7242_v42 = vrot.slane %v18524_v41, 3  ;;  %v7262_v43 = vrot.slane %v7211_v27, 3  ;;  %v16495_v27 = vld [vmem:[#allocation10 + $0x1994] ss:$8 sps:$4 sm:$0xff]  }
 0x49c   : > { %8097 = vmatprep.subr.bf16.mxu0 %v16393_v45  ;;  %v16433_v45 = vld [vmem:[#allocation10 + $0x18f0] ss:$8 sps:$4 sm:$0xff]  }
 0x49e   : > { %4081 = vmatpush1.bf16.msra.mxu1 %v16388_v37  ;;  %v16438_v37 = vld [vmem:[#allocation10 + $0xc24] ss:$8 sps:$4 sm:$0xff]  }
 0x49f   : > { %8098 = vmatpush1.bf16.msra.mxu0 %v16391_v46  ;;  %4082 = vmatprep.subr.bf16.mxu1 %v16396_v48  ;;  %v7232_v46 = vrot.slane %v7200_v36, 3  ;;  %v16441_v48 = vld [vmem:[#allocation10 + $0x1904] ss:$8 sps:$4 sm:$0xff]  }
 0x4a0   : > { %8099 = vmatprep.subr.bf16.mxu0 %v16399_v34  ;;  %v7241_v34 = vrot.slane %v7203_v55, 3  ;;  %v16498_v36 = vld [vmem:[#allocation10 + $0xcc4] ss:$8 sps:$4 sm:$0xff]   ;;  %v16499_v55 = vld [vmem:[#allocation10 + $0x19a0] ss:$8 sps:$4 sm:$0xff]  }
 0x4a2   : > { %4083 = vmatpush1.bf16.msra.mxu1 %v16394_v56  ;;  %v7234_v56 = vsel %vm994_vm9, %v7232_v46, %v7233_v40  ;;  %v16513_v46 = vld [vmem:[#allocation10 + $0x19c4] ss:$8 sps:$4 sm:$0xff]  }
 0x4a3   : > { %8100 = vmatpush1.bf16.msra.mxu0 %v16397_v49  ;;  %4084 = vmatprep.subr.bf16.mxu1 %v16402_v0  ;;  %v7257_v49 = vsel %vm994_vm9, %v7233_v40, %v7256_v4  ;;  %v16436_v0 = vld [vmem:[#allocation10 + $0xc20] ss:$8 sps:$4 sm:$0xff]   ;;  %v16501_v40 = vld [vmem:[#allocation10 + $0x19a4] ss:$8 sps:$4 sm:$0xff]  }
 0x4a4   : > { %8101 = vmatprep.subr.bf16.mxu0 %v16405_v38  ;;  %v7243_v38 = vsel %vm994_vm9, %v7241_v34, %v7242_v42  ;;  %v16496_v4 = vld [vmem:[#allocation10 + $0xcc0] ss:$8 sps:$4 sm:$0xff]  }
 0x4a5   : > { %v16508_v34 = vld [vmem:[#allocation10 + $0xce0] ss:$8 sps:$4 sm:$0xff]  }
 0x4a6   : > { %4085 = vmatpush1.bf16.msra.mxu1 %v16400_v50  ;;  %v7263_v50 = vsel %vm994_vm9, %v7242_v42, %v7262_v43  ;;  %v16507_v42 = vld [vmem:[#allocation10 + $0x19b4] ss:$8 sps:$4 sm:$0xff]   ;;  %v16502_v43 = vld [vmem:[#allocation10 + $0xcd0] ss:$8 sps:$4 sm:$0xff]  }
 0x4a7   : > { %8102 = vmatpush1.bf16.msra.mxu0 %v16403_v51  ;;  %4086 = vmatprep.subr.bf16.mxu1 %v16408_v52  ;;  %v16439_v51 = vld [vmem:[#allocation10 + $0x1900] ss:$8 sps:$4 sm:$0xff]   ;;  %v14294_v52 = vpack.c.bf16 %v7257_v49, %v7234_v56  ;;  %v16516_v49 = vld [vmem:[#allocation10 + $0xcf4] ss:$8 sps:$4 sm:$0xff]  }
 0x4a8   : > { %8103 = vmatprep.subr.bf16.mxu0 %v16411_v53  ;;  %v16444_v53 = vld [vmem:[#allocation10 + $0xc34] ss:$8 sps:$4 sm:$0xff]   ;;  %v16511_v56 = vld [vmem:[#allocation10 + $0x19c0] ss:$8 sps:$4 sm:$0xff]  }
 0x4aa   : > { %4087 = vmatpush1.bf16.msra.mxu1 %v16406_v54  ;;  %v16447_v54 = vld [vmem:[#allocation10 + $0x1914] ss:$8 sps:$4 sm:$0xff]  }
 0x4ab   : > { %8104 = vmatpush1.bf16.msra.mxu0 %v16409_v57  ;;  %4088 = vmatprep.subr.bf16.mxu1 %v16414_v58  ;;  %v14297_v57 = vpack.c.bf16 %v7263_v50, %v7243_v38  ;;  %v16442_v58 = vld [vmem:[#allocation10 + $0xc30] ss:$8 sps:$4 sm:$0xff]   ;;  %v16519_v38 = vld [vmem:[#allocation10 + $0x19d4] ss:$8 sps:$4 sm:$0xff]  }
 0x4ac   : > { %8105 = vmatprep.subr.bf16.mxu0 %v16417_v60  ;;  %v16445_v60 = vld [vmem:[#allocation10 + $0x1910] ss:$8 sps:$4 sm:$0xff]  }
 0x4ae   : > { %4089 = vmatpush1.bf16.msra.mxu1 %v16412_v2  ;;  %v16448_v2 = vld [vmem:[#allocation10 + $0xc40] ss:$8 sps:$4 sm:$0xff]  }
 0x4af   : > { %8106 = vmatpush1.bf16.msra.mxu0 %v16415_v8  ;;  %4090 = vmatprep.subr.bf16.mxu1 %v16420_v9  ;;  %v16456_v8 = vld [vmem:[#allocation10 + $0xc54] ss:$8 sps:$4 sm:$0xff]  }
 0x4b0   : > { %8107 = vmatprep.subr.bf16.mxu0 %v16423_v11  ;;  %v16459_v9 = vld [vmem:[#allocation10 + $0x1934] ss:$8 sps:$4 sm:$0xff]   ;;  %v16462_v11 = vld [vmem:[#allocation10 + $0xc64] ss:$8 sps:$4 sm:$0xff]  }
 0x4b2   : > { %4091 = vmatpush1.bf16.msra.mxu1 %v16418_v13  ;;  %v16471_v13 = vld [vmem:[#allocation10 + $0x1954] ss:$8 sps:$4 sm:$0xff]  }
 0x4b3   : > { %8108 = vmatpush1.bf16.msra.mxu0 %v16421_v15  ;;  %4989 = vmatprep.subr.bf16.mxu1 %v16426_v16  ;;  %v16466_v15 = vld [vmem:[#allocation10 + $0xc70] ss:$8 sps:$4 sm:$0xff]  }
 0x4b4   : > { %8109 = vmatprep.subr.bf16.mxu0 %v16429_v21  ;;  %v16469_v16 = vld [vmem:[#allocation10 + $0x1950] ss:$8 sps:$4 sm:$0xff]   ;;  %v16483_v21 = vld [vmem:[#allocation10 + $0x1974] ss:$8 sps:$4 sm:$0xff]  }
 0x4b5   : > { %13729 = vmatmul.mubr.msk.bf16.vlgmr.msra.gmra.mrb[16].mxu1 %vm18260_vm3, %v13728_v24  ;;  %v16489_v24 = vld [vmem:[#allocation10 + $0x1984] ss:$8 sps:$4 sm:$0xff]  }
 0x4b6   : > { %4990 = vmatpush1.bf16.msra.mxu1 %v16424_v22  ;;  %13860 = vmatprep.mubr.msk.bf16.mxu1 %vm18332_vm8, %v13859_v28  ;;  %v16481_v22 = vld [vmem:[#allocation10 + $0x1970] ss:$8 sps:$4 sm:$0xff]  }
 0x4b7   : > { %8110 = vmatpush1.bf16.msra.mxu0 %v16427_v25  ;;  %4991 = vmatprep.subr.bf16.mxu1 %v16432_v19  ;;  %v16484_v25 = vld [vmem:[#allocation10 + $0xca0] ss:$8 sps:$4 sm:$0xff]   ;;  %v16492_v19 = vld [vmem:[#allocation10 + $0xcb4] ss:$8 sps:$4 sm:$0xff]   ;;  %v16490_v28 = vld [vmem:[#allocation10 + $0xcb0] ss:$8 sps:$4 sm:$0xff]  }
 0x4b8   : > { %8111 = vmatprep.subr.bf16.mxu0 %v16435_v35  ;;  %v16493_v35 = vld [vmem:[#allocation10 + $0x1990] ss:$8 sps:$4 sm:$0xff]  }
 0x4ba   : > { %4992 = vmatpush1.bf16.msra.mxu1 %v16430_v33  ;;  %v16504_v33 = vld [vmem:[#allocation10 + $0xcd4] ss:$8 sps:$4 sm:$0xff]  }
 0x4bb   : > { %8112 = vmatpush1.bf16.msra.mxu0 %v16433_v45  ;;  %4993 = vmatprep.subr.bf16.mxu1 %v16438_v37  ;;  %v16505_v45 = vld [vmem:[#allocation10 + $0x19b0] ss:$8 sps:$4 sm:$0xff]   ;;  %v16510_v37 = vld [vmem:[#allocation10 + $0xce4] ss:$8 sps:$4 sm:$0xff]  }
 0x4bc   : > { %8124 = vmatprep.subr.bf16.mxu0 %v16441_v48  ;;  %v4115_v48 = vld [vmem:[#allocation2 + $0x80] sm:$0x7f] }
 0x4bd   : > { %v4164_v50 = vrot.slane %v4115_v48, 7  ;;  %v16553_v48 = vld [vmem:[#allocation10 + $0x1a90] ss:$8 sps:$4 sm:$0xff]  }
 0x4be   : > { %14295 = vmatmul.mubr.msk.bf16.vlgmr.msra.gmra.mrb[0].mxu0 %vm18332_vm8, %v14294_v52  ;;  %4994 = vmatpush1.bf16.msra.mxu1 %v16436_v0  ;;  %v4107_v0 = vld [vmem:[#allocation2] sm:$0x80] }
 0x4bf   : > { %8125 = vmatpush1.bf16.msra.mxu0 %v16439_v51  ;;  %14298 = vmatprep.mubr.msk.bf16.mxu0 %vm18332_vm8, %v14297_v57  ;;  %v16514_v51 = vld [vmem:[#allocation10 + $0xcf0] ss:$8 sps:$4 sm:$0xff]   ;;  %v4140_v52 = vrot.slane %v4107_v0, 7 }
 0x4c0   : > { %4995 = vmatprep.subr.bf16.mxu1 %v16444_v53  ;;  %8126 = vmatprep.subr.bf16.mxu0 %v16447_v54  ;;  %v17481_v53 = vld [vmem:[#allocation2 + $0x40] sm:$0xff]  ;;  %v16517_v57 = vld [vmem:[#allocation10 + $0x19d0] ss:$8 sps:$4 sm:$0xff]  }
 0x4c1   : > { %v4141_v54 = vrot.slane %v17481_v53, 7  ;;  %v16559_v0 = vld [vmem:[#allocation10 + $0x1ab0] ss:$8 sps:$4 sm:$0xff]   ;;  %v16570_v53 = vld [vmem:[#allocation10 + $0x1ae4] ss:$8 sps:$4 sm:$0xff]  }
 0x4c2   : > { %4996 = vmatpush1.bf16.msra.mxu1 %v16442_v58 }
 0x4c3   : > { %8127 = vmatpush1.bf16.msra.mxu0 %v16445_v60  ;;  %4997 = vmatprep.subr.bf16.mxu1 %v16450_v63  ;;  %v4165_v58 = vsel %vm4139_vm7, %v4141_v54, %v4164_v50  ;;  %v16522_v60 = vld [vmem:[#allocation10 + $0x19e4] ss:$8 sps:$4 sm:$0xff]   ;;  %v4142_v63 = vsel %vm4139_vm7, %v4140_v52, %v4141_v54  ;;  %v16562_v50 = vld [vmem:[#allocation10 + $0x1ac0] ss:$8 sps:$4 sm:$0xff]   ;;  %v16565_v52 = vld [vmem:[#allocation10 + $0x1ad0] ss:$8 sps:$4 sm:$0xff]  }
 0x4c4   : > { %8128 = vmatprep.subr.bf16.mxu0 %v16453_v3  ;;  %v7210_v3 = vld [vmem:[#allocation2 + $0xd0] sm:$0x7]  ;;  %v7204_v54 = vld [vmem:[#allocation2 + $0x60] sm:$0xf8] }
 0x4c6   : > { %4998 = vmatpush1.bf16.msra.mxu1 %v16448_v2  ;;  %v13862_v2 = vpack.c.bf16 %v4165_v58, %v4142_v63  ;;  %v16568_v58 = vld [vmem:[#allocation10 + $0x1ae0] ss:$8 sps:$4 sm:$0xff]  }
 0x4c7   : > { %8129 = vmatpush1.bf16.msra.mxu0 %v16451_v6  ;;  %4999 = vmatprep.subr.bf16.mxu1 %v16456_v8  ;;  %v16520_v6 = vld [vmem:[#allocation10 + $0x19e0] ss:$8 sps:$4 sm:$0xff]   ;;  %v7205_v8 = vld [vmem:[#allocation2 + $0x68] sm:$0xf8] }
 0x4c8   : > { %8130 = vmatprep.subr.bf16.mxu0 %v16459_v9  ;;  %v7213_v9 = vld [vmem:[#allocation2 + $0xe8] sm:$0x7]  ;;  %v7215_v63 = vld [vmem:[#allocation2 + $0xf8] sm:$0x7] }
 0x4ca   : > { %5000 = vmatpush1.bf16.msra.mxu1 %v16454_v7  ;;  %v16525_v7 = vld [vmem:[#allocation10 + $0x19f4] ss:$8 sps:$4 sm:$0xff]  }
 0x4cb   : > { %8131 = vmatpush1.bf16.msra.mxu0 %v16457_v10  ;;  %5001 = vmatprep.subr.bf16.mxu1 %v16462_v11  ;;  %v7202_v10 = vld [vmem:[#allocation2 + $0x50] sm:$0xf8] }
 0x4cc   : > { %8132 = vmatprep.subr.bf16.mxu0 %v16465_v59  ;;  %v18539_v11 = vld [vmem:[#allocation2 + $0x90] sm:$0xff] }
 0x4cd   : > { %v7239_v59 = vrot.slane %v18539_v11, 3 }
 0x4ce   : > { %5002 = vmatpush1.bf16.msra.mxu1 %v16460_v12  ;;  %v7260_v12 = vrot.slane %v7210_v3, 3  ;;  %v16573_v3 = vld [vmem:[#allocation10 + $0x1af4] ss:$8 sps:$4 sm:$0xff]  }
 0x4cf   : > { %8133 = vmatpush1.bf16.msra.mxu0 %v16463_v61  ;;  %5003 = vmatprep.subr.bf16.mxu1 %v16468_v62  ;;  %v7247_v61 = vrot.slane %v7205_v8, 3  ;;  %v18542_v62 = vld [vmem:[#allocation2 + $0xa8] sm:$0xff] }
 0x4d0   : > { %8134 = vmatprep.subr.bf16.mxu0 %v16471_v13  ;;  %v7248_v13 = vrot.slane %v18542_v62, 3 }
 0x4d2   : > { %5004 = vmatpush1.bf16.msra.mxu1 %v16466_v15  ;;  %v7266_v15 = vrot.slane %v7213_v9, 3 }
 0x4d3   : > { %8135 = vmatpush1.bf16.msra.mxu0 %v16469_v16  ;;  %5005 = vmatprep.subr.bf16.mxu1 %v16474_v17  ;;  %v16523_v16 = vld [vmem:[#allocation10 + $0x19f0] ss:$8 sps:$4 sm:$0xff]   ;;  %v7238_v17 = vrot.slane %v7202_v10, 3  ;;  %v18556_v10 = vld [vmem:[#allocation2 + $0xb8] sm:$0xff] }
 0x4d4   : > { %8136 = vmatprep.subr.bf16.mxu0 %v16477_v18  ;;  %v16528_v18 = vld [vmem:[#allocation10 + $0x1a04] ss:$8 sps:$4 sm:$0xff]  }
 0x4d6   : > { %5006 = vmatpush1.bf16.msra.mxu1 %v16472_v20  ;;  %v7240_v20 = vsel %vm994_vm9, %v7238_v17, %v7239_v59 }
 0x4d7   : > { %8137 = vmatpush1.bf16.msra.mxu0 %v16475_v29  ;;  %5007 = vmatprep.subr.bf16.mxu1 %v16480_v32  ;;  %v7261_v29 = vsel %vm994_vm9, %v7239_v59, %v7260_v12  ;;  %v7249_v32 = vsel %vm994_vm9, %v7247_v61, %v7248_v13  ;;  %v7254_v59 = vrot.slane %v18556_v10, 3  ;;  %v7270_v12 = vrot.slane %v7215_v63, 3  ;;  %v16571_v61 = vld [vmem:[#allocation10 + $0x1af0] ss:$8 sps:$4 sm:$0xff]   ;;  %v8258_v63 = vld [vmem:[#allocation2 + $0x48] sm:$0xf0] }
 0x4d8   : > { %8138 = vmatprep.subr.bf16.mxu0 %v16483_v21  ;;  %v7267_v21 = vsel %vm994_vm9, %v7248_v13, %v7266_v15  ;;  %v16576_v13 = vld [vmem:[#allocation10 + $0x1b04] ss:$8 sps:$4 sm:$0xff]  }
 0x4da   : > { %5008 = vmatpush1.bf16.msra.mxu1 %v16478_v1  ;;  %v16526_v1 = vld [vmem:[#allocation10 + $0x1a00] ss:$8 sps:$4 sm:$0xff]  }
 0x4db   : > { %8139 = vmatpush1.bf16.msra.mxu0 %v16481_v22  ;;  %5009 = vmatprep.subr.bf16.mxu1 %v16486_v23  ;;  %v14300_v22 = vpack.c.bf16 %v7261_v29, %v7240_v20  ;;  %v16531_v23 = vld [vmem:[#allocation10 + $0x1a14] ss:$8 sps:$4 sm:$0xff]   ;;  %v16574_v20 = vld [vmem:[#allocation10 + $0x1b00] ss:$8 sps:$4 sm:$0xff]  }
 0x4dc   : > { %8140 = vmatprep.subr.bf16.mxu0 %v16489_v24  ;;  %v14303_v24 = vpack.c.bf16 %v7267_v21, %v7249_v32  ;;  %v16579_v32 = vld [vmem:[#allocation10 + $0x1b14] ss:$8 sps:$4 sm:$0xff]  }
 0x4de   : > { %5010 = vmatpush1.bf16.msra.mxu1 %v16484_v25  ;;  %v16529_v25 = vld [vmem:[#allocation10 + $0x1a10] ss:$8 sps:$4 sm:$0xff]  }
 0x4df   : > { %8141 = vmatpush1.bf16.msra.mxu0 %v16487_v26  ;;  %5011 = vmatprep.subr.bf16.mxu1 %v16492_v19  ;;  %v16534_v26 = vld [vmem:[#allocation10 + $0x1a24] ss:$8 sps:$4 sm:$0xff]   ;;  %v16532_v19 = vld [vmem:[#allocation10 + $0x1a20] ss:$8 sps:$4 sm:$0xff]  }
 0x4e0   : > { %8142 = vmatprep.subr.bf16.mxu0 %v16495_v27  ;;  %v16537_v27 = vld [vmem:[#allocation10 + $0x1a34] ss:$8 sps:$4 sm:$0xff]  }
 0x4e2   : > { %5012 = vmatpush1.bf16.msra.mxu1 %v16490_v28  ;;  %v16535_v28 = vld [vmem:[#allocation10 + $0x1a30] ss:$8 sps:$4 sm:$0xff]  }
 0x4e3   : > { %8143 = vmatpush1.bf16.msra.mxu0 %v16493_v35  ;;  %5013 = vmatprep.subr.bf16.mxu1 %v16498_v36  ;;  %v16540_v35 = vld [vmem:[#allocation10 + $0x1a44] ss:$8 sps:$4 sm:$0xff]   ;;  %v16538_v36 = vld [vmem:[#allocation10 + $0x1a40] ss:$8 sps:$4 sm:$0xff]  }
 0x4e4   : > { %8144 = vmatprep.subr.bf16.mxu0 %v16501_v40  ;;  %v16543_v40 = vld [vmem:[#allocation10 + $0x1a54] ss:$8 sps:$4 sm:$0xff]  }
 0x4e6   : > { %5014 = vmatpush1.bf16.msra.mxu1 %v16496_v4  ;;  %v16541_v4 = vld [vmem:[#allocation10 + $0x1a50] ss:$8 sps:$4 sm:$0xff]  }
 0x4e7   : > { %8145 = vmatpush1.bf16.msra.mxu0 %v16499_v55  ;;  %5015 = vmatprep.subr.bf16.mxu1 %v16504_v33  ;;  %v16546_v55 = vld [vmem:[#allocation10 + $0x1a64] ss:$8 sps:$4 sm:$0xff]   ;;  %v16544_v33 = vld [vmem:[#allocation10 + $0x1a60] ss:$8 sps:$4 sm:$0xff]  }
 0x4e8   : > { %8146 = vmatprep.subr.bf16.mxu0 %v16507_v42  ;;  %v16549_v42 = vld [vmem:[#allocation10 + $0x1a74] ss:$8 sps:$4 sm:$0xff]  }
 0x4ea   : > { %5016 = vmatpush1.bf16.msra.mxu1 %v16502_v43  ;;  %v16547_v43 = vld [vmem:[#allocation10 + $0x1a70] ss:$8 sps:$4 sm:$0xff]  }
 0x4eb   : > { %8147 = vmatpush1.bf16.msra.mxu0 %v16505_v45  ;;  %5017 = vmatprep.subr.bf16.mxu1 %v16510_v37  ;;  %v16552_v45 = vld [vmem:[#allocation10 + $0x1a84] ss:$8 sps:$4 sm:$0xff]   ;;  %v16550_v37 = vld [vmem:[#allocation10 + $0x1a80] ss:$8 sps:$4 sm:$0xff]  }
 0x4ec   : > { %8148 = vmatprep.subr.bf16.mxu0 %v16513_v46  ;;  %v16555_v46 = vld [vmem:[#allocation10 + $0x1a94] ss:$8 sps:$4 sm:$0xff]  }
 0x4ee   : > { %5018 = vmatpush1.bf16.msra.mxu1 %v16508_v34  ;;  %v16558_v34 = vld [vmem:[#allocation10 + $0x1aa4] ss:$8 sps:$4 sm:$0xff]  }
 0x4ef   : > { %8149 = vmatpush1.bf16.msra.mxu0 %v16511_v56  ;;  %5019 = vmatprep.subr.bf16.mxu1 %v16516_v49  ;;  %v16556_v56 = vld [vmem:[#allocation10 + $0x1aa0] ss:$8 sps:$4 sm:$0xff]   ;;  %v16561_v49 = vld [vmem:[#allocation10 + $0x1ab4] ss:$8 sps:$4 sm:$0xff]  }
 0x4f0   : > { %8150 = vmatprep.subr.bf16.mxu0 %v16519_v38  ;;  %v16564_v38 = vld [vmem:[#allocation10 + $0x1ac4] ss:$8 sps:$4 sm:$0xff]  }
 0x4f2   : > { %5020 = vmatpush1.bf16.msra.mxu1 %v16514_v51  ;;  %v16567_v51 = vld [vmem:[#allocation10 + $0x1ad4] ss:$8 sps:$4 sm:$0xff]  }
 0x4f3   : > { %8151 = vmatpush1.bf16.msra.mxu0 %v16517_v57  ;;  %v7212_v57 = vld [vmem:[#allocation2 + $0xe0] sm:$0x7] }
 0x4f4   : > { %8152 = vmatprep.subr.bf16.mxu0 %v16522_v60  ;;  %v7207_v60 = vld [vmem:[#allocation2 + $0x78] sm:$0xf8]  ;;  %v7264_v9 = vrot.slane %v7212_v57, 3 }
 0x4f5   : > { %13863 = vmatmul.mubr.msk.bf16.vlgmr.msra.gmra.mrb[16].mxu1 %vm18332_vm8, %v13862_v2  ;;  %v7244_v2 = vrot.slane %v7204_v54, 3  ;;  %v16621_v54 = vld [vmem:[#allocation10 + $0x1bf4] ss:$8 sps:$4 sm:$0xff]  }
 0x4f7   : > { %8153 = vmatpush1.bf16.msra.mxu0 %v16520_v6  ;;  %v18553_v6 = vld [vmem:[#allocation2 + $0xa0] sm:$0xff] }
 0x4f8   : > { %8154 = vmatprep.subr.bf16.mxu0 %v16525_v7  ;;  %v7245_v8 = vrot.slane %v18553_v6, 3  ;;  %v7253_v7 = vrot.slane %v7207_v60, 3 }
 0x4fa   : > { %v7246_v15 = vsel %vm994_vm9, %v7244_v2, %v7245_v8  ;;  %v7255_v17 = vsel %vm994_vm9, %v7253_v7, %v7254_v59 }
 0x4fb   : > { %8155 = vmatpush1.bf16.msra.mxu0 %v16523_v16  ;;  %v7265_v16 = vsel %vm994_vm9, %v7245_v8, %v7264_v9  ;;  %v16619_v8 = vld [vmem:[#allocation10 + $0x1bf0] ss:$8 sps:$4 sm:$0xff]   ;;  %v16624_v9 = vld [vmem:[#allocation10 + $0x1c04] ss:$8 sps:$4 sm:$0xff]  }
 0x4fc   : > { %8167 = vmatprep.subr.bf16.mxu0 %v16528_v18  ;;  %v7271_v18 = vsel %vm994_vm9, %v7254_v59, %v7270_v12  ;;  %v14306_v29 = vpack.c.bf16 %v7265_v16, %v7246_v15  ;;  %v16625_v16 = vld [vmem:[#allocation10 + $0x1c10] ss:$8 sps:$4 sm:$0xff]  }
 0x4fd   : > { %v14309_v21 = vpack.c.bf16 %v7271_v18, %v7255_v17  ;;  %v16630_v17 = vld [vmem:[#allocation10 + $0x1c24] ss:$8 sps:$4 sm:$0xff]   ;;  %v16628_v18 = vld [vmem:[#allocation10 + $0x1c20] ss:$8 sps:$4 sm:$0xff]  }
 0x4fe   : > { %14301 = vmatmul.mubr.msk.bf16.vlgmr.msra.gmra.mrb[0].mxu0 %vm18332_vm8, %v14300_v22  ;;  %v16582_v22 = vld [vmem:[#allocation10 + $0x1b24] ss:$8 sps:$4 sm:$0xff]  }
 0x4ff   : > { %8168 = vmatpush1.bf16.msra.mxu0 %v16526_v1  ;;  %14304 = vmatprep.mubr.msk.bf16.mxu0 %vm18332_vm8, %v14303_v24  ;;  %v16577_v1 = vld [vmem:[#allocation10 + $0x1b10] ss:$8 sps:$4 sm:$0xff]   ;;  %v16585_v24 = vld [vmem:[#allocation10 + $0x1b34] ss:$8 sps:$4 sm:$0xff]  }
 0x500   : > { %8169 = vmatprep.subr.bf16.mxu0 %v16531_v23  ;;  %v16580_v23 = vld [vmem:[#allocation10 + $0x1b20] ss:$8 sps:$4 sm:$0xff]  }
 0x503   : > { %8170 = vmatpush1.bf16.msra.mxu0 %v16529_v25  ;;  %v16583_v25 = vld [vmem:[#allocation10 + $0x1b30] ss:$8 sps:$4 sm:$0xff]  }
 0x504   : > { %8171 = vmatprep.subr.bf16.mxu0 %v16534_v26  ;;  %v16588_v26 = vld [vmem:[#allocation10 + $0x1b44] ss:$8 sps:$4 sm:$0xff]  }
 0x507   : > { %8172 = vmatpush1.bf16.msra.mxu0 %v16532_v19  ;;  %v16586_v19 = vld [vmem:[#allocation10 + $0x1b40] ss:$8 sps:$4 sm:$0xff]  }
 0x508   : > { %8173 = vmatprep.subr.bf16.mxu0 %v16537_v27  ;;  %v16591_v27 = vld [vmem:[#allocation10 + $0x1b54] ss:$8 sps:$4 sm:$0xff]  }
 0x50b   : > { %8174 = vmatpush1.bf16.msra.mxu0 %v16535_v28  ;;  %v16589_v28 = vld [vmem:[#allocation10 + $0x1b50] ss:$8 sps:$4 sm:$0xff]  }
 0x50c   : > { %8175 = vmatprep.subr.bf16.mxu0 %v16540_v35  ;;  %v16594_v35 = vld [vmem:[#allocation10 + $0x1b64] ss:$8 sps:$4 sm:$0xff]  }
 0x50f   : > { %8176 = vmatpush1.bf16.msra.mxu0 %v16538_v36  ;;  %v16592_v36 = vld [vmem:[#allocation10 + $0x1b60] ss:$8 sps:$4 sm:$0xff]  }
 0x510   : > { %8177 = vmatprep.subr.bf16.mxu0 %v16543_v40  ;;  %v16597_v40 = vld [vmem:[#allocation10 + $0x1b74] ss:$8 sps:$4 sm:$0xff]  }
 0x513   : > { %8178 = vmatpush1.bf16.msra.mxu0 %v16541_v4  ;;  %v16595_v4 = vld [vmem:[#allocation10 + $0x1b70] ss:$8 sps:$4 sm:$0xff]  }
 0x514   : > { %8179 = vmatprep.subr.bf16.mxu0 %v16546_v55  ;;  %v16600_v55 = vld [vmem:[#allocation10 + $0x1b84] ss:$8 sps:$4 sm:$0xff]  }
 0x517   : > { %8180 = vmatpush1.bf16.msra.mxu0 %v16544_v33  ;;  %v16598_v33 = vld [vmem:[#allocation10 + $0x1b80] ss:$8 sps:$4 sm:$0xff]  }
 0x518   : > { %8181 = vmatprep.subr.bf16.mxu0 %v16549_v42  ;;  %v16603_v42 = vld [vmem:[#allocation10 + $0x1b94] ss:$8 sps:$4 sm:$0xff]  }
 0x51b   : > { %8182 = vmatpush1.bf16.msra.mxu0 %v16547_v43  ;;  %v16601_v43 = vld [vmem:[#allocation10 + $0x1b90] ss:$8 sps:$4 sm:$0xff]  }
 0x51c   : > { %8183 = vmatprep.subr.bf16.mxu0 %v16552_v45  ;;  %v16606_v45 = vld [vmem:[#allocation10 + $0x1ba4] ss:$8 sps:$4 sm:$0xff]  }
 0x51f   : > { %8184 = vmatpush1.bf16.msra.mxu0 %v16550_v37  ;;  %v16604_v37 = vld [vmem:[#allocation10 + $0x1ba0] ss:$8 sps:$4 sm:$0xff]  }
 0x520   : > { %8185 = vmatprep.subr.bf16.mxu0 %v16555_v46  ;;  %v16609_v46 = vld [vmem:[#allocation10 + $0x1bb4] ss:$8 sps:$4 sm:$0xff]  }
 0x523   : > { %8186 = vmatpush1.bf16.msra.mxu0 %v16553_v48  ;;  %v16607_v48 = vld [vmem:[#allocation10 + $0x1bb0] ss:$8 sps:$4 sm:$0xff]  }
 0x524   : > { %8187 = vmatprep.subr.bf16.mxu0 %v16558_v34  ;;  %v16612_v34 = vld [vmem:[#allocation10 + $0x1bc4] ss:$8 sps:$4 sm:$0xff]  }
 0x527   : > { %8188 = vmatpush1.bf16.msra.mxu0 %v16556_v56  ;;  %v16610_v56 = vld [vmem:[#allocation10 + $0x1bc0] ss:$8 sps:$4 sm:$0xff]  }
 0x528   : > { %8189 = vmatprep.subr.bf16.mxu0 %v16561_v49  ;;  %v16615_v49 = vld [vmem:[#allocation10 + $0x1bd4] ss:$8 sps:$4 sm:$0xff]  }
 0x52b   : > { %8190 = vmatpush1.bf16.msra.mxu0 %v16559_v0  ;;  %v16613_v0 = vld [vmem:[#allocation10 + $0x1bd0] ss:$8 sps:$4 sm:$0xff]  }
 0x52c   : > { %8191 = vmatprep.subr.bf16.mxu0 %v16564_v38  ;;  %v16618_v38 = vld [vmem:[#allocation10 + $0x1be4] ss:$8 sps:$4 sm:$0xff]  }
 0x52f   : > { %8192 = vmatpush1.bf16.msra.mxu0 %v16562_v50  ;;  %v7206_v50 = vld [vmem:[#allocation2 + $0x70] sm:$0xf8] }
 0x530   : > { %8193 = vmatprep.subr.bf16.mxu0 %v16567_v51  ;;  %v7214_v51 = vld [vmem:[#allocation2 + $0xf0] sm:$0x7]  ;;  %v7250_v57 = vrot.slane %v7206_v50, 3  ;;  %v8260_v50 = vld [vmem:[#allocation2 + $0x58] sm:$0xf0] }
 0x531   : > { %v7268_v60 = vrot.slane %v7214_v51, 3  ;;  %v8276_v51 = vpack.c.bf16 %v18524_v41, %v8260_v50  ;;  %v16673_v41 = vld [vmem:[#allocation10 + $0x1d10] ss:$8 sps:$4 sm:$0xff]  }
 0x533   : > { %8194 = vmatpush1.bf16.msra.mxu0 %v16565_v52  ;;  %v16616_v52 = vld [vmem:[#allocation10 + $0x1be0] ss:$8 sps:$4 sm:$0xff]  }
 0x534   : > { %8195 = vmatprep.subr.bf16.mxu0 %v16570_v53  ;;  %v8266_v53 = vld [vmem:[#allocation2 + $0xc8] sm:$0xf] }
 0x535   : > { %v8282_v2 = vpack.c.bf16 %v8266_v53, %v8266_v53  ;;  %v16667_v53 = vld [vmem:[#allocation10 + $0x1cf0] ss:$8 sps:$4 sm:$0xff]  }
 0x537   : > { %8196 = vmatpush1.bf16.msra.mxu0 %v16568_v58  ;;  %v7251_v58 = vrot.slane %v18495_v47, 3  ;;  %v16627_v47 = vld [vmem:[#allocation10 + $0x1c14] ss:$8 sps:$4 sm:$0xff]  }
 0x538   : > { %8197 = vmatprep.subr.bf16.mxu0 %v16573_v3  ;;  %v8274_v3 = vpack.c.bf16 %v18502_v44, %v8258_v63 }
 0x539   : > { %v7252_v7 = vsel %vm994_vm9, %v7250_v57, %v7251_v58  ;;  %v7269_v59 = vsel %vm994_vm9, %v7251_v58, %v7268_v60  ;;  %v8443_v60 = vrot.slane %v8276_v51, 2 }
 0x53a   : > { %v8437_v12 = vrot.slane %v8274_v3, 2  ;;  %v14312_v15 = vpack.c.bf16 %v7269_v59, %v7252_v7  ;;  %v16670_v3 = vld [vmem:[#allocation10 + $0x1d00] ss:$8 sps:$4 sm:$0xff]   ;;  %v16681_v59 = vld [vmem:[#allocation10 + $0x1d34] ss:$8 sps:$4 sm:$0xff]  }
 0x53b   : > { %8198 = vmatpush1.bf16.msra.mxu0 %v16571_v61  ;;  %v8438_v61 = vrot.slane %v8282_v2, 2  ;;  %v16675_v2 = vld [vmem:[#allocation10 + $0x1d14] ss:$8 sps:$4 sm:$0xff]   ;;  %v16676_v7 = vld [vmem:[#allocation10 + $0x1d20] ss:$8 sps:$4 sm:$0xff]  }
 0x53c   : > { %8210 = vmatprep.subr.bf16.mxu0 %v16576_v13  ;;  %v16622_v13 = vld [vmem:[#allocation10 + $0x1c00] ss:$8 sps:$4 sm:$0xff]  }
 0x53d   : > { %v8439_v44 = vsel %vm1380_vm6, %v8437_v12, %v8438_v61  ;;  %v16679_v12 = vld [vmem:[#allocation10 + $0x1d30] ss:$8 sps:$4 sm:$0xff]  }
 0x53e   : > { %14307 = vmatmul.mubr.msk.bf16.vlgmr.msra.gmra.mrb[0].mxu0 %vm18332_vm8, %v14306_v29  ;;  %v16631_v29 = vld [vmem:[#allocation10 + $0x1c30] ss:$8 sps:$4 sm:$0xff]  }
 0x53f   : > { %8211 = vmatpush1.bf16.msra.mxu0 %v16574_v20  ;;  %14310 = vmatprep.mubr.msk.bf16.mxu0 %vm18332_vm8, %v14309_v21  ;;  %v16633_v20 = vld [vmem:[#allocation10 + $0x1c34] ss:$8 sps:$4 sm:$0xff]   ;;  %v16634_v21 = vld [vmem:[#allocation10 + $0x1c40] ss:$8 sps:$4 sm:$0xff]  }
 0x540   : > { %8212 = vmatprep.subr.bf16.mxu0 %v16579_v32  ;;  %v16636_v32 = vld [vmem:[#allocation10 + $0x1c44] ss:$8 sps:$4 sm:$0xff]  }
 0x543   : > { %8213 = vmatpush1.bf16.msra.mxu0 %v16577_v1  ;;  %v16639_v1 = vld [vmem:[#allocation10 + $0x1c54] ss:$8 sps:$4 sm:$0xff]  }
 0x544   : > { %8214 = vmatprep.subr.bf16.mxu0 %v16582_v22  ;;  %v16637_v22 = vld [vmem:[#allocation10 + $0x1c50] ss:$8 sps:$4 sm:$0xff]  }
 0x547   : > { %8215 = vmatpush1.bf16.msra.mxu0 %v16580_v23  ;;  %v16642_v23 = vld [vmem:[#allocation10 + $0x1c64] ss:$8 sps:$4 sm:$0xff]  }
 0x548   : > { %8216 = vmatprep.subr.bf16.mxu0 %v16585_v24  ;;  %v16640_v24 = vld [vmem:[#allocation10 + $0x1c60] ss:$8 sps:$4 sm:$0xff]  }
 0x54b   : > { %8217 = vmatpush1.bf16.msra.mxu0 %v16583_v25  ;;  %v16645_v25 = vld [vmem:[#allocation10 + $0x1c74] ss:$8 sps:$4 sm:$0xff]  }
 0x54c   : > { %8218 = vmatprep.subr.bf16.mxu0 %v16588_v26  ;;  %v16643_v26 = vld [vmem:[#allocation10 + $0x1c70] ss:$8 sps:$4 sm:$0xff]  }
 0x54f   : > { %8219 = vmatpush1.bf16.msra.mxu0 %v16586_v19  ;;  %v16648_v19 = vld [vmem:[#allocation10 + $0x1c84] ss:$8 sps:$4 sm:$0xff]  }
 0x550   : > { %8220 = vmatprep.subr.bf16.mxu0 %v16591_v27  ;;  %v16646_v27 = vld [vmem:[#allocation10 + $0x1c80] ss:$8 sps:$4 sm:$0xff]  }
 0x553   : > { %8221 = vmatpush1.bf16.msra.mxu0 %v16589_v28  ;;  %v16651_v28 = vld [vmem:[#allocation10 + $0x1c94] ss:$8 sps:$4 sm:$0xff]  }
 0x554   : > { %8222 = vmatprep.subr.bf16.mxu0 %v16594_v35  ;;  %v16649_v35 = vld [vmem:[#allocation10 + $0x1c90] ss:$8 sps:$4 sm:$0xff]  }
 0x557   : > { %8223 = vmatpush1.bf16.msra.mxu0 %v16592_v36  ;;  %v16654_v36 = vld [vmem:[#allocation10 + $0x1ca4] ss:$8 sps:$4 sm:$0xff]  }
 0x558   : > { %8224 = vmatprep.subr.bf16.mxu0 %v16597_v40  ;;  %v16652_v40 = vld [vmem:[#allocation10 + $0x1ca0] ss:$8 sps:$4 sm:$0xff]  }
 0x55b   : > { %8225 = vmatpush1.bf16.msra.mxu0 %v16595_v4  ;;  %v16657_v4 = vld [vmem:[#allocation10 + $0x1cb4] ss:$8 sps:$4 sm:$0xff]  }
 0x55c   : > { %8226 = vmatprep.subr.bf16.mxu0 %v16600_v55  ;;  %v16655_v55 = vld [vmem:[#allocation10 + $0x1cb0] ss:$8 sps:$4 sm:$0xff]  }
 0x55f   : > { %8227 = vmatpush1.bf16.msra.mxu0 %v16598_v33  ;;  %v16660_v33 = vld [vmem:[#allocation10 + $0x1cc4] ss:$8 sps:$4 sm:$0xff]  }
 0x560   : > { %8228 = vmatprep.subr.bf16.mxu0 %v16603_v42  ;;  %v16658_v42 = vld [vmem:[#allocation10 + $0x1cc0] ss:$8 sps:$4 sm:$0xff]  }
 0x563   : > { %8229 = vmatpush1.bf16.msra.mxu0 %v16601_v43  ;;  %v16663_v43 = vld [vmem:[#allocation10 + $0x1cd4] ss:$8 sps:$4 sm:$0xff]  }
 0x564   : > { %8230 = vmatprep.subr.bf16.mxu0 %v16606_v45  ;;  %v16661_v45 = vld [vmem:[#allocation10 + $0x1cd0] ss:$8 sps:$4 sm:$0xff]  }
 0x567   : > { %8231 = vmatpush1.bf16.msra.mxu0 %v16604_v37  ;;  %v16666_v37 = vld [vmem:[#allocation10 + $0x1ce4] ss:$8 sps:$4 sm:$0xff]  }
 0x568   : > { %8232 = vmatprep.subr.bf16.mxu0 %v16609_v46  ;;  %v8265_v46 = vld [vmem:[#allocation2 + $0xc0] sm:$0xf] }
 0x56b   : > { %8233 = vmatpush1.bf16.msra.mxu0 %v16607_v48  ;;  %v16664_v48 = vld [vmem:[#allocation10 + $0x1ce0] ss:$8 sps:$4 sm:$0xff]  }
 0x56c   : > { %8234 = vmatprep.subr.bf16.mxu0 %v16612_v34  ;;  %v8268_v34 = vld [vmem:[#allocation2 + $0xd8] sm:$0xf] }
 0x56f   : > { %8235 = vmatpush1.bf16.msra.mxu0 %v16610_v56  ;;  %v16669_v56 = vld [vmem:[#allocation10 + $0x1cf4] ss:$8 sps:$4 sm:$0xff]  }
 0x570   : > { %8236 = vmatprep.subr.bf16.mxu0 %v16615_v49  ;;  %v8257_v49 = vld [vmem:[#allocation2 + $0x40] sm:$0xf0] }
 0x573   : > { %8237 = vmatpush1.bf16.msra.mxu0 %v16613_v0  ;;  %v8273_v0 = vpack.c.bf16 %v18519_v39, %v8257_v49  ;;  %v16715_v49 = vld [vmem:[#allocation10 + $0x1df0] ss:$8 sps:$4 sm:$0xff]  }
 0x574   : > { %8238 = vmatprep.subr.bf16.mxu0 %v16618_v38  ;;  %v8281_v38 = vpack.c.bf16 %v8265_v46, %v8265_v46 }
 0x575   : > { %v8434_v57 = vrot.slane %v8273_v0, 2  ;;  %v16720_v0 = vld [vmem:[#allocation10 + $0x1e04] ss:$8 sps:$4 sm:$0xff]  }
 0x576   : > { %v8435_v58 = vrot.slane %v8281_v38, 2 }
 0x577   : > { %8239 = vmatpush1.bf16.msra.mxu0 %v16616_v52  ;;  %v8284_v52 = vpack.c.bf16 %v8268_v34, %v8268_v34 }
 0x578   : > { %8240 = vmatprep.subr.bf16.mxu0 %v16621_v54  ;;  %v16672_v54 = vld [vmem:[#allocation10 + $0x1d04] ss:$8 sps:$4 sm:$0xff]  }
 0x579   : > { %v8444_v63 = vrot.slane %v8284_v52, 2 }
 0x57b   : > { %8241 = vmatpush1.bf16.msra.mxu0 %v16619_v8  ;;  %v8436_v8 = vsel %vm1380_vm6, %v8434_v57, %v8435_v58  ;;  %v8445_v39 = vsel %vm1380_vm6, %v8443_v60, %v8444_v63  ;;  %v16726_v58 = vld [vmem:[#allocation10 + $0x1e24] ss:$8 sps:$4 sm:$0xff]   ;;  %v16724_v60 = vld [vmem:[#allocation10 + $0x1e20] ss:$8 sps:$4 sm:$0xff]   ;;  %v16729_v63 = vld [vmem:[#allocation10 + $0x1e34] ss:$8 sps:$4 sm:$0xff]  }
 0x57c   : > { %9106 = vmatprep.subr.bf16.mxu0 %v16624_v9  ;;  %v16678_v9 = vld [vmem:[#allocation10 + $0x1d24] ss:$8 sps:$4 sm:$0xff]  }
 0x57e   : > { %14313 = vmatmul.mubr.msk.bf16.vlgmr.msra.gmra.mrb[0].mxu0 %vm18332_vm8, %v14312_v15 }
 0x57f   : > { %9107 = vmatpush1.bf16.msra.mxu0 %v16622_v13  ;;  %9138 = vmatprep.mubr.bf16.mxu0 %v8439_v44  ;;  %v16684_v13 = vld [vmem:[#allocation10 + $0x1d44] ss:$8 sps:$4 sm:$0xff]  }
 0x580   : > { %9108 = vmatprep.subr.bf16.mxu0 %v16627_v47 }
 0x583   : > { %9109 = vmatpush1.bf16.msra.mxu0 %v16625_v16  ;;  %v16682_v16 = vld [vmem:[#allocation10 + $0x1d40] ss:$8 sps:$4 sm:$0xff]  }
 0x584   : > { %9110 = vmatprep.subr.bf16.mxu0 %v16630_v17  ;;  %v16687_v17 = vld [vmem:[#allocation10 + $0x1d54] ss:$8 sps:$4 sm:$0xff]  }
 0x587   : > { %9111 = vmatpush1.bf16.msra.mxu0 %v16628_v18  ;;  %v16685_v18 = vld [vmem:[#allocation10 + $0x1d50] ss:$8 sps:$4 sm:$0xff]  }
 0x588   : > { %9112 = vmatprep.subr.bf16.mxu0 %v16633_v20  ;;  %v16690_v20 = vld [vmem:[#allocation10 + $0x1d64] ss:$8 sps:$4 sm:$0xff]  }
 0x58b   : > { %9113 = vmatpush1.bf16.msra.mxu0 %v16631_v29  ;;  %v16688_v29 = vld [vmem:[#allocation10 + $0x1d60] ss:$8 sps:$4 sm:$0xff]  }
 0x58c   : > { %9114 = vmatprep.subr.bf16.mxu0 %v16636_v32  ;;  %v16693_v32 = vld [vmem:[#allocation10 + $0x1d74] ss:$8 sps:$4 sm:$0xff]  }
 0x58f   : > { %9115 = vmatpush1.bf16.msra.mxu0 %v16634_v21  ;;  %v16691_v21 = vld [vmem:[#allocation10 + $0x1d70] ss:$8 sps:$4 sm:$0xff]  }
 0x590   : > { %9116 = vmatprep.subr.bf16.mxu0 %v16639_v1  ;;  %v16696_v1 = vld [vmem:[#allocation10 + $0x1d84] ss:$8 sps:$4 sm:$0xff]  }
 0x593   : > { %9117 = vmatpush1.bf16.msra.mxu0 %v16637_v22  ;;  %v16694_v22 = vld [vmem:[#allocation10 + $0x1d80] ss:$8 sps:$4 sm:$0xff]  }
 0x594   : > { %9118 = vmatprep.subr.bf16.mxu0 %v16642_v23  ;;  %v16699_v23 = vld [vmem:[#allocation10 + $0x1d94] ss:$8 sps:$4 sm:$0xff]  }
 0x597   : > { %9119 = vmatpush1.bf16.msra.mxu0 %v16640_v24  ;;  %v16697_v24 = vld [vmem:[#allocation10 + $0x1d90] ss:$8 sps:$4 sm:$0xff]  }
 0x598   : > { %9120 = vmatprep.subr.bf16.mxu0 %v16645_v25  ;;  %v16702_v25 = vld [vmem:[#allocation10 + $0x1da4] ss:$8 sps:$4 sm:$0xff]  }
 0x59b   : > { %9121 = vmatpush1.bf16.msra.mxu0 %v16643_v26  ;;  %v16700_v26 = vld [vmem:[#allocation10 + $0x1da0] ss:$8 sps:$4 sm:$0xff]  }
 0x59c   : > { %9122 = vmatprep.subr.bf16.mxu0 %v16648_v19  ;;  %v16705_v19 = vld [vmem:[#allocation10 + $0x1db4] ss:$8 sps:$4 sm:$0xff]  }
 0x59f   : > { %9123 = vmatpush1.bf16.msra.mxu0 %v16646_v27  ;;  %v16703_v27 = vld [vmem:[#allocation10 + $0x1db0] ss:$8 sps:$4 sm:$0xff]  }
 0x5a0   : > { %9124 = vmatprep.subr.bf16.mxu0 %v16651_v28  ;;  %v16708_v28 = vld [vmem:[#allocation10 + $0x1dc4] ss:$8 sps:$4 sm:$0xff]  }
 0x5a3   : > { %9125 = vmatpush1.bf16.msra.mxu0 %v16649_v35  ;;  %v16706_v35 = vld [vmem:[#allocation10 + $0x1dc0] ss:$8 sps:$4 sm:$0xff]  }
 0x5a4   : > { %9126 = vmatprep.subr.bf16.mxu0 %v16654_v36  ;;  %v16711_v36 = vld [vmem:[#allocation10 + $0x1dd4] ss:$8 sps:$4 sm:$0xff]  }
 0x5a7   : > { %9127 = vmatpush1.bf16.msra.mxu0 %v16652_v40  ;;  %v16709_v40 = vld [vmem:[#allocation10 + $0x1dd0] ss:$8 sps:$4 sm:$0xff]  }
 0x5a8   : > { %9128 = vmatprep.subr.bf16.mxu0 %v16657_v4  ;;  %v16714_v4 = vld [vmem:[#allocation10 + $0x1de4] ss:$8 sps:$4 sm:$0xff]  }
 0x5ab   : > { %9129 = vmatpush1.bf16.msra.mxu0 %v16655_v55  ;;  %v8267_v55 = vld [vmem:[#allocation2 + $0xd0] sm:$0xf] }
 0x5ac   : > { %9130 = vmatprep.subr.bf16.mxu0 %v16660_v33  ;;  %v16712_v33 = vld [vmem:[#allocation10 + $0x1de0] ss:$8 sps:$4 sm:$0xff]  }
 0x5af   : > { %9131 = vmatpush1.bf16.msra.mxu0 %v16658_v42  ;;  %v8262_v42 = vld [vmem:[#allocation2 + $0x68] sm:$0xf0] }
 0x5b0   : > { %9132 = vmatprep.subr.bf16.mxu0 %v16663_v43  ;;  %v8270_v43 = vld [vmem:[#allocation2 + $0xe8] sm:$0xf]  ;;  %v8278_v34 = vpack.c.bf16 %v18542_v62, %v8262_v42 }
 0x5b1   : > { %v16721_v62 = vld [vmem:[#allocation10 + $0x1e10] ss:$8 sps:$4 sm:$0xff]  }
 0x5b2   : > { %v8449_v51 = vrot.slane %v8278_v34, 2  ;;  %v16763_v42 = vld [vmem:[#allocation10 + $0x1ef0] ss:$8 sps:$4 sm:$0xff]   ;;  %v16766_v34 = vld [vmem:[#allocation10 + $0x1f00] ss:$8 sps:$4 sm:$0xff]  }
 0x5b3   : > { %9133 = vmatpush1.bf16.msra.mxu0 %v16661_v45  ;;  %v16717_v45 = vld [vmem:[#allocation10 + $0x1df4] ss:$8 sps:$4 sm:$0xff]  }
 0x5b4   : > { %9134 = vmatprep.subr.bf16.mxu0 %v16666_v37  ;;  %v8259_v37 = vld [vmem:[#allocation2 + $0x50] sm:$0xf0] }
 0x5b5   : > { %v8275_v46 = vpack.c.bf16 %v18539_v11, %v8259_v37 }
 0x5b7   : > { %9135 = vmatpush1.bf16.msra.mxu0 %v16664_v48  ;;  %v8283_v48 = vpack.c.bf16 %v8267_v55, %v8267_v55  ;;  %v8440_v38 = vrot.slane %v8275_v46, 2 }
 0x5b8   : > { %9136 = vmatprep.subr.bf16.mxu0 %v16669_v56  ;;  %v8286_v56 = vpack.c.bf16 %v8270_v43, %v8270_v43  ;;  %v16768_v43 = vld [vmem:[#allocation10 + $0x1f04] ss:$8 sps:$4 sm:$0xff]  }
 0x5b9   : > { %v8441_v50 = vrot.slane %v8283_v48, 2 }
 0x5ba   : > { %v8450_v52 = vrot.slane %v8286_v56, 2  ;;  %v16771_v56 = vld [vmem:[#allocation10 + $0x1f14] ss:$8 sps:$4 sm:$0xff]  }
 0x5bb   : > { %9137 = vmatpush1.bf16.msra.mxu0 %v16667_v53  ;;  %v16718_v53 = vld [vmem:[#allocation10 + $0x1e00] ss:$8 sps:$4 sm:$0xff]   ;;  %v8442_v57 = vsel %vm1380_vm6, %v8440_v38, %v8441_v50  ;;  %v16777_v50 = vld [vmem:[#allocation10 + $0x1f34] ss:$8 sps:$4 sm:$0xff]  }
 0x5bc   : > { %9149 = vmatprep.subr.bf16.mxu0 %v16672_v54  ;;  %v16723_v54 = vld [vmem:[#allocation10 + $0x1e14] ss:$8 sps:$4 sm:$0xff]   ;;  %v8451_v11 = vsel %vm1380_vm6, %v8449_v51, %v8450_v52  ;;  %v16772_v38 = vld [vmem:[#allocation10 + $0x1f20] ss:$8 sps:$4 sm:$0xff]   ;;  %v16775_v51 = vld [vmem:[#allocation10 + $0x1f30] ss:$8 sps:$4 sm:$0xff]  }
 0x5bd   : > { %v16780_v52 = vld [vmem:[#allocation10 + $0x1f44] ss:$8 sps:$4 sm:$0xff]  }
 0x5be   : > { %9139 = vmatmul.mubr.bf16.vlgmr.msra.gmra.mrb[0].mxu0 %v8436_v8  ;;  %v16730_v8 = vld [vmem:[#allocation10 + $0x1e40] ss:$8 sps:$4 sm:$0xff]  }
 0x5bf   : > { %9150 = vmatpush1.bf16.msra.mxu0 %v16670_v3  ;;  %9181 = vmatprep.mubr.bf16.mxu0 %v8445_v39  ;;  %v16727_v3 = vld [vmem:[#allocation10 + $0x1e30] ss:$8 sps:$4 sm:$0xff]   ;;  %v16735_v39 = vld [vmem:[#allocation10 + $0x1e54] ss:$8 sps:$4 sm:$0xff]  }
 0x5c0   : > { %9151 = vmatprep.subr.bf16.mxu0 %v16675_v2  ;;  %v16732_v2 = vld [vmem:[#allocation10 + $0x1e44] ss:$8 sps:$4 sm:$0xff]  }
 0x5c3   : > { %9152 = vmatpush1.bf16.msra.mxu0 %v16673_v41  ;;  %v16733_v41 = vld [vmem:[#allocation10 + $0x1e50] ss:$8 sps:$4 sm:$0xff]  }
 0x5c4   : > { %9153 = vmatprep.subr.bf16.mxu0 %v16678_v9  ;;  %v16738_v9 = vld [vmem:[#allocation10 + $0x1e64] ss:$8 sps:$4 sm:$0xff]  }
 0x5c7   : > { %9154 = vmatpush1.bf16.msra.mxu0 %v16676_v7  ;;  %v16736_v7 = vld [vmem:[#allocation10 + $0x1e60] ss:$8 sps:$4 sm:$0xff]  }
 0x5c8   : > { %v18578_v61 = vpop.f32.mrb[16].mxu1  ;;  %9155 = vmatprep.subr.bf16.mxu0 %v16681_v59  ;;  %v16741_v59 = vld [vmem:[#allocation10 + $0x1e74] ss:$8 sps:$4 sm:$0xff]  }
 0x5c9   : > { %v18580_v15 = vpop.f32.mrb[17].mxu1 }
 0x5ca   : > { %v18582_v47 = vpop.f32.mrb[18].mxu1 }
 0x5cb   : > { %9156 = vmatpush1.bf16.msra.mxu0 %v16679_v12  ;;  %v18584_v44 = vpop.f32.mrb[19].mxu1  ;;  %v16739_v12 = vld [vmem:[#allocation10 + $0x1e70] ss:$8 sps:$4 sm:$0xff]  }
 0x5cc   : > { %9157 = vmatprep.subr.bf16.mxu0 %v16684_v13  ;;  %v16744_v13 = vld [vmem:[#allocation10 + $0x1e84] ss:$8 sps:$4 sm:$0xff]  }
 0x5cf   : > { %9158 = vmatpush1.bf16.msra.mxu0 %v16682_v16  ;;  %v16742_v16 = vld [vmem:[#allocation10 + $0x1e80] ss:$8 sps:$4 sm:$0xff]  }
 0x5d0   : > { %9159 = vmatprep.subr.bf16.mxu0 %v16687_v17  ;;  %v16747_v17 = vld [vmem:[#allocation10 + $0x1e94] ss:$8 sps:$4 sm:$0xff]  }
 0x5d3   : > { %9160 = vmatpush1.bf16.msra.mxu0 %v16685_v18  ;;  %v16745_v18 = vld [vmem:[#allocation10 + $0x1e90] ss:$8 sps:$4 sm:$0xff]  }
 0x5d4   : > { %9161 = vmatprep.subr.bf16.mxu0 %v16690_v20  ;;  %v16750_v20 = vld [vmem:[#allocation10 + $0x1ea4] ss:$8 sps:$4 sm:$0xff]  }
 0x5d7   : > { %9162 = vmatpush1.bf16.msra.mxu0 %v16688_v29  ;;  %v16748_v29 = vld [vmem:[#allocation10 + $0x1ea0] ss:$8 sps:$4 sm:$0xff]  }
 0x5d8   : > { %9163 = vmatprep.subr.bf16.mxu0 %v16693_v32  ;;  %v16753_v32 = vld [vmem:[#allocation10 + $0x1eb4] ss:$8 sps:$4 sm:$0xff]  }
 0x5db   : > { %9164 = vmatpush1.bf16.msra.mxu0 %v16691_v21  ;;  %v16751_v21 = vld [vmem:[#allocation10 + $0x1eb0] ss:$8 sps:$4 sm:$0xff]  }
 0x5dc   : > { %9165 = vmatprep.subr.bf16.mxu0 %v16696_v1  ;;  %v16756_v1 = vld [vmem:[#allocation10 + $0x1ec4] ss:$8 sps:$4 sm:$0xff]  }
 0x5df   : > { %9166 = vmatpush1.bf16.msra.mxu0 %v16694_v22  ;;  %v16754_v22 = vld [vmem:[#allocation10 + $0x1ec0] ss:$8 sps:$4 sm:$0xff]  }
 0x5e0   : > { %9167 = vmatprep.subr.bf16.mxu0 %v16699_v23  ;;  %v16759_v23 = vld [vmem:[#allocation10 + $0x1ed4] ss:$8 sps:$4 sm:$0xff]  }
 0x5e3   : > { %9168 = vmatpush1.bf16.msra.mxu0 %v16697_v24  ;;  %v16757_v24 = vld [vmem:[#allocation10 + $0x1ed0] ss:$8 sps:$4 sm:$0xff]  }
 0x5e4   : > { %9169 = vmatprep.subr.bf16.mxu0 %v16702_v25  ;;  %v16762_v25 = vld [vmem:[#allocation10 + $0x1ee4] ss:$8 sps:$4 sm:$0xff]  }
 0x5e7   : > { %9170 = vmatpush1.bf16.msra.mxu0 %v16700_v26  ;;  %v8261_v26 = vld [vmem:[#allocation2 + $0x60] sm:$0xf0] }
 0x5e8   : > { %9171 = vmatprep.subr.bf16.mxu0 %v16705_v19  ;;  %v8269_v19 = vld [vmem:[#allocation2 + $0xe0] sm:$0xf] }
 0x5eb   : > { %9172 = vmatpush1.bf16.msra.mxu0 %v16703_v27  ;;  %v16760_v27 = vld [vmem:[#allocation10 + $0x1ee0] ss:$8 sps:$4 sm:$0xff]  }
 0x5ec   : > { %9173 = vmatprep.subr.bf16.mxu0 %v16708_v28  ;;  %v8264_v28 = vld [vmem:[#allocation2 + $0x78] sm:$0xf0] }
 0x5ed   : > { %v8280_v55 = vpack.c.bf16 %v18556_v10, %v8264_v28  ;;  %v16769_v10 = vld [vmem:[#allocation10 + $0x1f10] ss:$8 sps:$4 sm:$0xff]   ;;  %v16816_v28 = vld [vmem:[#allocation10 + $0x2004] ss:$8 sps:$4 sm:$0xff]  }
 0x5ef   : > { %9174 = vmatpush1.bf16.msra.mxu0 %v16706_v35  ;;  %v8272_v35 = vld [vmem:[#allocation2 + $0xf8] sm:$0xf]  ;;  %v8455_v46 = vrot.slane %v8280_v55, 2 }
 0x5f0   : > { %9175 = vmatprep.subr.bf16.mxu0 %v16711_v36  ;;  %v16765_v36 = vld [vmem:[#allocation10 + $0x1ef4] ss:$8 sps:$4 sm:$0xff]  }
 0x5f3   : > { %9176 = vmatpush1.bf16.msra.mxu0 %v16709_v40  ;;  %v8277_v40 = vpack.c.bf16 %v18553_v6, %v8261_v26 }
 0x5f4   : > { %9177 = vmatprep.subr.bf16.mxu0 %v16714_v4  ;;  %v8285_v4 = vpack.c.bf16 %v8269_v19, %v8269_v19 }
 0x5f6   : > { %v8447_v37 = vrot.slane %v8285_v4, 2 }
 0x5f7   : > { %9178 = vmatpush1.bf16.msra.mxu0 %v16712_v33  ;;  %v8288_v33 = vpack.c.bf16 %v8272_v35, %v8272_v35 }
 0x5f8   : > { %9179 = vmatprep.subr.bf16.mxu0 %v16717_v45  ;;  %v8446_v45 = vrot.slane %v8277_v40, 2 }
 0x5f9   : > { %v8456_v48 = vrot.slane %v8288_v33, 2  ;;  %v16814_v33 = vld [vmem:[#allocation10 + $0x2000] ss:$8 sps:$4 sm:$0xff]  }
 0x5fb   : > { %9180 = vmatpush1.bf16.msra.mxu0 %v16715_v49  ;;  %v8448_v49 = vsel %vm1380_vm6, %v8446_v45, %v8447_v37  ;;  %v8457_v6 = vsel %vm1380_vm6, %v8455_v46, %v8456_v48  ;;  %v16817_v37 = vld [vmem:[#allocation10 + $0x2010] ss:$8 sps:$4 sm:$0xff]   ;;  %v16822_v46 = vld [vmem:[#allocation10 + $0x2024] ss:$8 sps:$4 sm:$0xff]   ;;  %v16820_v48 = vld [vmem:[#allocation10 + $0x2020] ss:$8 sps:$4 sm:$0xff]  }
 0x5fc   : > { %9192 = vmatprep.subr.bf16.mxu0 %v16720_v0  ;;  %v16774_v0 = vld [vmem:[#allocation10 + $0x1f24] ss:$8 sps:$4 sm:$0xff]  }
 0x5fe   : > { %9182 = vmatmul.mubr.bf16.vlgmr.msra.gmra.mrb[0].mxu0 %v8442_v57  ;;  %v16781_v57 = vld [vmem:[#allocation10 + $0x1f50] ss:$8 sps:$4 sm:$0xff]  }
 0x5ff   : > { %9193 = vmatpush1.bf16.msra.mxu0 %v16718_v53  ;;  %9224 = vmatprep.mubr.bf16.mxu0 %v8451_v11  ;;  %v16778_v53 = vld [vmem:[#allocation10 + $0x1f40] ss:$8 sps:$4 sm:$0xff]   ;;  %v16786_v11 = vld [vmem:[#allocation10 + $0x1f64] ss:$8 sps:$4 sm:$0xff]  }
 0x600   : > { %9194 = vmatprep.subr.bf16.mxu0 %v16723_v54  ;;  %v16783_v54 = vld [vmem:[#allocation10 + $0x1f54] ss:$8 sps:$4 sm:$0xff]  }
 0x603   : > { %9195 = vmatpush1.bf16.msra.mxu0 %v16721_v62  ;;  %v16784_v62 = vld [vmem:[#allocation10 + $0x1f60] ss:$8 sps:$4 sm:$0xff]  }
 0x604   : > { %9196 = vmatprep.subr.bf16.mxu0 %v16726_v58  ;;  %v16789_v58 = vld [vmem:[#allocation10 + $0x1f74] ss:$8 sps:$4 sm:$0xff]  }
 0x607   : > { %9197 = vmatpush1.bf16.msra.mxu0 %v16724_v60  ;;  %v16787_v60 = vld [vmem:[#allocation10 + $0x1f70] ss:$8 sps:$4 sm:$0xff]  }
 0x608   : > { %9198 = vmatprep.subr.bf16.mxu0 %v16729_v63  ;;  %v16792_v63 = vld [vmem:[#allocation10 + $0x1f84] ss:$8 sps:$4 sm:$0xff]  }
 0x60b   : > { %9199 = vmatpush1.bf16.msra.mxu0 %v16727_v3  ;;  %v16790_v3 = vld [vmem:[#allocation10 + $0x1f80] ss:$8 sps:$4 sm:$0xff]  }
 0x60c   : > { %9200 = vmatprep.subr.bf16.mxu0 %v16732_v2  ;;  %v16795_v2 = vld [vmem:[#allocation10 + $0x1f94] ss:$8 sps:$4 sm:$0xff]  }
 0x60f   : > { %9201 = vmatpush1.bf16.msra.mxu0 %v16730_v8  ;;  %v16793_v8 = vld [vmem:[#allocation10 + $0x1f90] ss:$8 sps:$4 sm:$0xff]  }
 0x610   : > { %9202 = vmatprep.subr.bf16.mxu0 %v16735_v39  ;;  %v16798_v39 = vld [vmem:[#allocation10 + $0x1fa4] ss:$8 sps:$4 sm:$0xff]  }
 0x613   : > { %9203 = vmatpush1.bf16.msra.mxu0 %v16733_v41  ;;  %v16796_v41 = vld [vmem:[#allocation10 + $0x1fa0] ss:$8 sps:$4 sm:$0xff]  }
 0x614   : > { %9204 = vmatprep.subr.bf16.mxu0 %v16738_v9  ;;  %v16801_v9 = vld [vmem:[#allocation10 + $0x1fb4] ss:$8 sps:$4 sm:$0xff]  }
 0x617   : > { %9205 = vmatpush1.bf16.msra.mxu0 %v16736_v7  ;;  %v16799_v7 = vld [vmem:[#allocation10 + $0x1fb0] ss:$8 sps:$4 sm:$0xff]  }
 0x618   : > { %9206 = vmatprep.subr.bf16.mxu0 %v16741_v59  ;;  %v16804_v59 = vld [vmem:[#allocation10 + $0x1fc4] ss:$8 sps:$4 sm:$0xff]  }
 0x61b   : > { %9207 = vmatpush1.bf16.msra.mxu0 %v16739_v12  ;;  %v16802_v12 = vld [vmem:[#allocation10 + $0x1fc0] ss:$8 sps:$4 sm:$0xff]  }
 0x61c   : > { %9208 = vmatprep.subr.bf16.mxu0 %v16744_v13  ;;  %v16807_v13 = vld [vmem:[#allocation10 + $0x1fd4] ss:$8 sps:$4 sm:$0xff]  }
 0x61f   : > { %9209 = vmatpush1.bf16.msra.mxu0 %v16742_v16  ;;  %v16805_v16 = vld [vmem:[#allocation10 + $0x1fd0] ss:$8 sps:$4 sm:$0xff]  }
 0x620   : > { %9210 = vmatprep.subr.bf16.mxu0 %v16747_v17  ;;  %v16810_v17 = vld [vmem:[#allocation10 + $0x1fe4] ss:$8 sps:$4 sm:$0xff]  }
 0x623   : > { %9211 = vmatpush1.bf16.msra.mxu0 %v16745_v18  ;;  %v8263_v18 = vld [vmem:[#allocation2 + $0x70] sm:$0xf0] }
 0x624   : > { %9212 = vmatprep.subr.bf16.mxu0 %v16750_v20  ;;  %v8271_v20 = vld [vmem:[#allocation2 + $0xf0] sm:$0xf] }
 0x627   : > { %9213 = vmatpush1.bf16.msra.mxu0 %v16748_v29  ;;  %v16808_v29 = vld [vmem:[#allocation10 + $0x1fe0] ss:$8 sps:$4 sm:$0xff]  }
 0x628   : > { %9214 = vmatprep.subr.bf16.mxu0 %v16753_v32  ;;  %v9291_v32 = vld [vmem:[#allocation2 + $0xc8] sm:$0x1f] }
 0x629   : > { %v9340_v19 = vrot.slane %v9291_v32, 5 }
 0x62b   : > { %9215 = vmatpush1.bf16.msra.mxu0 %v16751_v21  ;;  %v16813_v21 = vld [vmem:[#allocation10 + $0x1ff4] ss:$8 sps:$4 sm:$0xff]  }
 0x62c   : > { %9216 = vmatprep.subr.bf16.mxu0 %v16756_v1  ;;  %v18594_v1 = vld [vmem:[#allocation2 + $0xb0] sm:$0xff] }
 0x62f   : > { %9217 = vmatpush1.bf16.msra.mxu0 %v16754_v22  ;;  %v8279_v22 = vpack.c.bf16 %v18594_v1, %v8263_v18 }
 0x630   : > { %9218 = vmatprep.subr.bf16.mxu0 %v16759_v23  ;;  %v8287_v23 = vpack.c.bf16 %v8271_v20, %v8271_v20  ;;  %v9285_v20 = vld [vmem:[#allocation2 + $0x58] sm:$0xe0] }
 0x632   : > { %v8453_v40 = vrot.slane %v8287_v23, 2 }
 0x633   : > { %9219 = vmatpush1.bf16.msra.mxu0 %v16757_v24  ;;  %v9283_v24 = vld [vmem:[#allocation2 + $0x48] sm:$0xe0] }
 0x634   : > { %9220 = vmatprep.subr.bf16.mxu0 %v16762_v25  ;;  %v17487_v25 = vld [vmem:[#allocation2 + $0x88] sm:$0xff]  ;;  %v9317_v35 = vrot.slane %v9283_v24, 5  ;;  %v16864_v24 = vld [vmem:[#allocation10 + $0x2104] ss:$8 sps:$4 sm:$0xff]  }
 0x635   : > { %v9318_v26 = vrot.slane %v17487_v25, 5  ;;  %v9323_v25 = vrot.slane %v9285_v20, 5  ;;  %v16907_v20 = vld [vmem:[#allocation10 + $0x21f0] ss:$8 sps:$4 sm:$0xff]  }
 0x637   : > { %9221 = vmatpush1.bf16.msra.mxu0 %v16760_v27  ;;  %v16811_v27 = vld [vmem:[#allocation10 + $0x1ff0] ss:$8 sps:$4 sm:$0xff]   ;;  %v9319_v4 = vsel %vm3081_vm11, %v9317_v35, %v9318_v26  ;;  %v9341_v55 = vsel %vm3081_vm11, %v9318_v26, %v9340_v19  ;;  %v16862_v35 = vld [vmem:[#allocation10 + $0x2100] ss:$8 sps:$4 sm:$0xff]  }
 0x638   : > { %9222 = vmatprep.subr.bf16.mxu0 %v16765_v36  ;;  %v8452_v36 = vrot.slane %v8279_v22, 2  ;;  %v14571_v45 = vpack.c.bf16 %v9341_v55, %v9319_v4  ;;  %v16859_v22 = vld [vmem:[#allocation10 + $0x20f0] ss:$8 sps:$4 sm:$0xff]  }
 0x639   : > { %v16865_v55 = vld [vmem:[#allocation10 + $0x2110] ss:$8 sps:$4 sm:$0xff]  }
 0x63b   : > { %9223 = vmatpush1.bf16.msra.mxu0 %v16763_v42  ;;  %v16819_v42 = vld [vmem:[#allocation10 + $0x2014] ss:$8 sps:$4 sm:$0xff]  }
 0x63c   : > { %9235 = vmatprep.subr.bf16.mxu0 %v16768_v43  ;;  %v8454_v43 = vsel %vm1380_vm6, %v8452_v36, %v8453_v40  ;;  %v16867_v40 = vld [vmem:[#allocation10 + $0x2114] ss:$8 sps:$4 sm:$0xff]  }
 0x63e   : > { %9225 = vmatmul.mubr.bf16.vlgmr.msra.gmra.mrb[0].mxu0 %v8448_v49  ;;  %v16828_v49 = vld [vmem:[#allocation10 + $0x2044] ss:$8 sps:$4 sm:$0xff]  }
 0x63f   : > { %9236 = vmatpush1.bf16.msra.mxu0 %v16766_v34  ;;  %9267 = vmatprep.mubr.bf16.mxu0 %v8457_v6  ;;  %v16825_v34 = vld [vmem:[#allocation10 + $0x2034] ss:$8 sps:$4 sm:$0xff]   ;;  %v16826_v6 = vld [vmem:[#allocation10 + $0x2040] ss:$8 sps:$4 sm:$0xff]  }
 0x640   : > { %9237 = vmatprep.subr.bf16.mxu0 %v16771_v56  ;;  %v16823_v56 = vld [vmem:[#allocation10 + $0x2030] ss:$8 sps:$4 sm:$0xff]  }
 0x643   : > { %9238 = vmatpush1.bf16.msra.mxu0 %v16769_v10  ;;  %v16831_v10 = vld [vmem:[#allocation10 + $0x2054] ss:$8 sps:$4 sm:$0xff]  }
 0x644   : > { %9239 = vmatprep.subr.bf16.mxu0 %v16774_v0  ;;  %v16829_v0 = vld [vmem:[#allocation10 + $0x2050] ss:$8 sps:$4 sm:$0xff]  }
 0x647   : > { %9240 = vmatpush1.bf16.msra.mxu0 %v16772_v38  ;;  %v16834_v38 = vld [vmem:[#allocation10 + $0x2064] ss:$8 sps:$4 sm:$0xff]  }
 0x648   : > { %9241 = vmatprep.subr.bf16.mxu0 %v16777_v50  ;;  %v16832_v50 = vld [vmem:[#allocation10 + $0x2060] ss:$8 sps:$4 sm:$0xff]  }
 0x64b   : > { %9242 = vmatpush1.bf16.msra.mxu0 %v16775_v51  ;;  %v16837_v51 = vld [vmem:[#allocation10 + $0x2074] ss:$8 sps:$4 sm:$0xff]  }
 0x64c   : > { %9243 = vmatprep.subr.bf16.mxu0 %v16780_v52  ;;  %v16835_v52 = vld [vmem:[#allocation10 + $0x2070] ss:$8 sps:$4 sm:$0xff]  }
 0x64f   : > { %9244 = vmatpush1.bf16.msra.mxu0 %v16778_v53  ;;  %v16840_v53 = vld [vmem:[#allocation10 + $0x2084] ss:$8 sps:$4 sm:$0xff]  }
 0x650   : > { %9245 = vmatprep.subr.bf16.mxu0 %v16783_v54  ;;  %v16838_v54 = vld [vmem:[#allocation10 + $0x2080] ss:$8 sps:$4 sm:$0xff]  }
 0x653   : > { %9246 = vmatpush1.bf16.msra.mxu0 %v16781_v57  ;;  %v16843_v57 = vld [vmem:[#allocation10 + $0x2094] ss:$8 sps:$4 sm:$0xff]  }
 0x654   : > { %9247 = vmatprep.subr.bf16.mxu0 %v16786_v11  ;;  %v16841_v11 = vld [vmem:[#allocation10 + $0x2090] ss:$8 sps:$4 sm:$0xff]  }
 0x657   : > { %9248 = vmatpush1.bf16.msra.mxu0 %v16784_v62  ;;  %v16846_v62 = vld [vmem:[#allocation10 + $0x20a4] ss:$8 sps:$4 sm:$0xff]  }
 0x658   : > { %9249 = vmatprep.subr.bf16.mxu0 %v16789_v58  ;;  %v16844_v58 = vld [vmem:[#allocation10 + $0x20a0] ss:$8 sps:$4 sm:$0xff]  }
 0x65b   : > { %9250 = vmatpush1.bf16.msra.mxu0 %v16787_v60  ;;  %v16849_v60 = vld [vmem:[#allocation10 + $0x20b4] ss:$8 sps:$4 sm:$0xff]  }
 0x65c   : > { %9251 = vmatprep.subr.bf16.mxu0 %v16792_v63  ;;  %v16847_v63 = vld [vmem:[#allocation10 + $0x20b0] ss:$8 sps:$4 sm:$0xff]  }
 0x65f   : > { %9252 = vmatpush1.bf16.msra.mxu0 %v16790_v3  ;;  %v16852_v3 = vld [vmem:[#allocation10 + $0x20c4] ss:$8 sps:$4 sm:$0xff]  }
 0x660   : > { %9253 = vmatprep.subr.bf16.mxu0 %v16795_v2  ;;  %v16850_v2 = vld [vmem:[#allocation10 + $0x20c0] ss:$8 sps:$4 sm:$0xff]  }
 0x663   : > { %9254 = vmatpush1.bf16.msra.mxu0 %v16793_v8  ;;  %v16855_v8 = vld [vmem:[#allocation10 + $0x20d4] ss:$8 sps:$4 sm:$0xff]  }
 0x664   : > { %9255 = vmatprep.subr.bf16.mxu0 %v16798_v39  ;;  %v16853_v39 = vld [vmem:[#allocation10 + $0x20d0] ss:$8 sps:$4 sm:$0xff]  }
 0x667   : > { %9256 = vmatpush1.bf16.msra.mxu0 %v16796_v41  ;;  %v16858_v41 = vld [vmem:[#allocation10 + $0x20e4] ss:$8 sps:$4 sm:$0xff]  }
 0x668   : > { %9257 = vmatprep.subr.bf16.mxu0 %v16801_v9  ;;  %v9290_v9 = vld [vmem:[#allocation2 + $0xc0] sm:$0x1f] }
 0x669   : > { %v9338_v18 = vrot.slane %v9290_v9, 5  ;;  %v9284_v9 = vld [vmem:[#allocation2 + $0x50] sm:$0xe0] }
 0x66b   : > { %9258 = vmatpush1.bf16.msra.mxu0 %v16799_v7  ;;  %v16856_v7 = vld [vmem:[#allocation10 + $0x20e0] ss:$8 sps:$4 sm:$0xff]  }
 0x66c   : > { %9259 = vmatprep.subr.bf16.mxu0 %v16804_v59  ;;  %v9293_v59 = vld [vmem:[#allocation2 + $0xd8] sm:$0x1f] }
 0x66f   : > { %9260 = vmatpush1.bf16.msra.mxu0 %v16802_v12  ;;  %v16861_v12 = vld [vmem:[#allocation10 + $0x20f4] ss:$8 sps:$4 sm:$0xff]  }
 0x670   : > { %9261 = vmatprep.subr.bf16.mxu0 %v16807_v13  ;;  %v9282_v13 = vld [vmem:[#allocation2 + $0x40] sm:$0xe0] }
 0x671   : > { %v9314_v23 = vrot.slane %v9282_v13, 5 }
 0x673   : > { %9262 = vmatpush1.bf16.msra.mxu0 %v16805_v16  ;;  %v17488_v16 = vld [vmem:[#allocation2 + $0x80] sm:$0xff] }
 0x674   : > { %9263 = vmatprep.subr.bf16.mxu0 %v16810_v17  ;;  %v9315_v17 = vrot.slane %v17488_v16, 5  ;;  %v17491_v16 = vld [vmem:[#allocation2 + $0xa8] sm:$0xff] }
 0x676   : > { %v9316_v26 = vsel %vm3081_vm11, %v9314_v23, %v9315_v17  ;;  %v9339_v19 = vsel %vm3081_vm11, %v9315_v17, %v9338_v18  ;;  %v9330_v17 = vrot.slane %v17491_v16, 5  ;;  %v17036_v16 = vld [vmem:[#allocation13 + $0x1a0] ss:$8 sps:$4 sm:$0xff]  }
 0x677   : > { %9264 = vmatpush1.bf16.msra.mxu0 %v16808_v29  ;;  %v17489_v29 = vld [vmem:[#allocation2 + $0x98] sm:$0xff]  ;;  %v14574_v36 = vpack.c.bf16 %v9339_v19, %v9316_v26  ;;  %v16915_v19 = vld [vmem:[#allocation10 + $0x2214] ss:$8 sps:$4 sm:$0xff]  }
 0x678   : > { %9265 = vmatprep.subr.bf16.mxu0 %v16813_v21  ;;  %v9324_v32 = vrot.slane %v17489_v29, 5  ;;  %v9344_v21 = vrot.slane %v9293_v59, 5  ;;  %v9320_v29 = vrot.slane %v9284_v9, 5  ;;  %v16942_v9 = vld [vmem:[#allocation10 + $0x22a4] ss:$8 sps:$4 sm:$0xff]  }
 0x67b   : > { %9266 = vmatpush1.bf16.msra.mxu0 %v16811_v27  ;;  %v9325_v27 = vsel %vm3081_vm11, %v9323_v25, %v9324_v32  ;;  %v16910_v25 = vld [vmem:[#allocation10 + $0x2200] ss:$8 sps:$4 sm:$0xff]  }
 0x67c   : > { %10163 = vmatprep.subr.bf16.mxu0 %v16816_v28  ;;  %v9345_v28 = vsel %vm3081_vm11, %v9324_v32, %v9344_v21  ;;  %v16912_v32 = vld [vmem:[#allocation10 + $0x2204] ss:$8 sps:$4 sm:$0xff]  }
 0x67d   : > { %v14577_v4 = vpack.c.bf16 %v9345_v28, %v9325_v27  ;;  %v17006_v28 = vld [vmem:[#allocation13 + $0x100] ss:$8 sps:$4 sm:$0xff]  }
 0x67e   : > { %9268 = vmatmul.mubr.bf16.vlgmr.msra.gmra.mrb[0].mxu0 %v8454_v43  ;;  %v16873_v43 = vld [vmem:[#allocation10 + $0x2134] ss:$8 sps:$4 sm:$0xff]  }
 0x67f   : > { %10164 = vmatpush1.bf16.msra.mxu0 %v16814_v33  ;;  %14572 = vmatprep.mubr.msk.bf16.mxu0 %vm18260_vm3, %v14571_v45  ;;  %v16870_v33 = vld [vmem:[#allocation10 + $0x2124] ss:$8 sps:$4 sm:$0xff]   ;;  %v16871_v45 = vld [vmem:[#allocation10 + $0x2130] ss:$8 sps:$4 sm:$0xff]  }
 0x680   : > { %10165 = vmatprep.subr.bf16.mxu0 %v16819_v42  ;;  %v16868_v42 = vld [vmem:[#allocation10 + $0x2120] ss:$8 sps:$4 sm:$0xff]  }
 0x683   : > { %10166 = vmatpush1.bf16.msra.mxu0 %v16817_v37  ;;  %v16876_v37 = vld [vmem:[#allocation10 + $0x2144] ss:$8 sps:$4 sm:$0xff]  }
 0x684   : > { %10167 = vmatprep.subr.bf16.mxu0 %v16822_v46  ;;  %v16874_v46 = vld [vmem:[#allocation10 + $0x2140] ss:$8 sps:$4 sm:$0xff]  }
 0x687   : > { %10168 = vmatpush1.bf16.msra.mxu0 %v16820_v48  ;;  %v16879_v48 = vld [vmem:[#allocation10 + $0x2154] ss:$8 sps:$4 sm:$0xff]  }
 0x688   : > { %10169 = vmatprep.subr.bf16.mxu0 %v16825_v34  ;;  %v16877_v34 = vld [vmem:[#allocation10 + $0x2150] ss:$8 sps:$4 sm:$0xff]  }
 0x68b   : > { %10170 = vmatpush1.bf16.msra.mxu0 %v16823_v56  ;;  %v16882_v56 = vld [vmem:[#allocation10 + $0x2164] ss:$8 sps:$4 sm:$0xff]  }
 0x68c   : > { %10171 = vmatprep.subr.bf16.mxu0 %v16828_v49  ;;  %v16880_v49 = vld [vmem:[#allocation10 + $0x2160] ss:$8 sps:$4 sm:$0xff]  }
 0x68f   : > { %10172 = vmatpush1.bf16.msra.mxu0 %v16826_v6  ;;  %v16885_v6 = vld [vmem:[#allocation10 + $0x2174] ss:$8 sps:$4 sm:$0xff]  }
 0x690   : > { %10173 = vmatprep.subr.bf16.mxu0 %v16831_v10  ;;  %v16883_v10 = vld [vmem:[#allocation10 + $0x2170] ss:$8 sps:$4 sm:$0xff]  }
 0x693   : > { %10174 = vmatpush1.bf16.msra.mxu0 %v16829_v0  ;;  %v16888_v0 = vld [vmem:[#allocation10 + $0x2184] ss:$8 sps:$4 sm:$0xff]  }
 0x694   : > { %10175 = vmatprep.subr.bf16.mxu0 %v16834_v38  ;;  %v16886_v38 = vld [vmem:[#allocation10 + $0x2180] ss:$8 sps:$4 sm:$0xff]  }
 0x697   : > { %10176 = vmatpush1.bf16.msra.mxu0 %v16832_v50  ;;  %v16891_v50 = vld [vmem:[#allocation10 + $0x2194] ss:$8 sps:$4 sm:$0xff]  }
 0x698   : > { %10177 = vmatprep.subr.bf16.mxu0 %v16837_v51  ;;  %v16889_v51 = vld [vmem:[#allocation10 + $0x2190] ss:$8 sps:$4 sm:$0xff]  }
 0x69b   : > { %10178 = vmatpush1.bf16.msra.mxu0 %v16835_v52  ;;  %v16894_v52 = vld [vmem:[#allocation10 + $0x21a4] ss:$8 sps:$4 sm:$0xff]  }
 0x69c   : > { %10179 = vmatprep.subr.bf16.mxu0 %v16840_v53  ;;  %v16892_v53 = vld [vmem:[#allocation10 + $0x21a0] ss:$8 sps:$4 sm:$0xff]  }
 0x69f   : > { %10180 = vmatpush1.bf16.msra.mxu0 %v16838_v54  ;;  %v16897_v54 = vld [vmem:[#allocation10 + $0x21b4] ss:$8 sps:$4 sm:$0xff]  }
 0x6a0   : > { %10181 = vmatprep.subr.bf16.mxu0 %v16843_v57  ;;  %v16895_v57 = vld [vmem:[#allocation10 + $0x21b0] ss:$8 sps:$4 sm:$0xff]  }
 0x6a3   : > { %10182 = vmatpush1.bf16.msra.mxu0 %v16841_v11  ;;  %v16900_v11 = vld [vmem:[#allocation10 + $0x21c4] ss:$8 sps:$4 sm:$0xff]  }
 0x6a4   : > { %10183 = vmatprep.subr.bf16.mxu0 %v16846_v62  ;;  %v16898_v62 = vld [vmem:[#allocation10 + $0x21c0] ss:$8 sps:$4 sm:$0xff]  }
 0x6a7   : > { %10184 = vmatpush1.bf16.msra.mxu0 %v16844_v58  ;;  %v16903_v58 = vld [vmem:[#allocation10 + $0x21d4] ss:$8 sps:$4 sm:$0xff]  }
 0x6a8   : > { %10185 = vmatprep.subr.bf16.mxu0 %v16849_v60  ;;  %v16901_v60 = vld [vmem:[#allocation10 + $0x21d0] ss:$8 sps:$4 sm:$0xff]  }
 0x6ab   : > { %10186 = vmatpush1.bf16.msra.mxu0 %v16847_v63  ;;  %v16906_v63 = vld [vmem:[#allocation10 + $0x21e4] ss:$8 sps:$4 sm:$0xff]  }
 0x6ac   : > { %10187 = vmatprep.subr.bf16.mxu0 %v16852_v3  ;;  %v9292_v3 = vld [vmem:[#allocation2 + $0xd0] sm:$0x1f] }
 0x6af   : > { %10188 = vmatpush1.bf16.msra.mxu0 %v16850_v2  ;;  %v16904_v2 = vld [vmem:[#allocation10 + $0x21e0] ss:$8 sps:$4 sm:$0xff]  }
 0x6b0   : > { %10189 = vmatprep.subr.bf16.mxu0 %v16855_v8  ;;  %v9287_v8 = vld [vmem:[#allocation2 + $0x68] sm:$0xe0] }
 0x6b1   : > { %v9329_v13 = vrot.slane %v9287_v8, 5  ;;  %v17030_v8 = vld [vmem:[#allocation13 + $0x180] ss:$8 sps:$4 sm:$0xff]  }
 0x6b3   : > { %10190 = vmatpush1.bf16.msra.mxu0 %v16853_v39  ;;  %v9295_v39 = vld [vmem:[#allocation2 + $0xe8] sm:$0x1f]  ;;  %v9331_v23 = vsel %vm3081_vm11, %v9329_v13, %v9330_v17 }
 0x6b4   : > { %10191 = vmatprep.subr.bf16.mxu0 %v16858_v41  ;;  %v16909_v41 = vld [vmem:[#allocation10 + $0x21f4] ss:$8 sps:$4 sm:$0xff]   ;;  %v9348_v18 = vrot.slane %v9295_v39, 5 }
 0x6b5   : > { %v17035_v39 = vld [vmem:[#allocation13 + $0x194] ss:$8 sps:$4 sm:$0xff]  }
 0x6b6   : > { %v16945_v13 = vld [vmem:[#allocation10 + $0x22b4] ss:$8 sps:$4 sm:$0xff]  }
 0x6b7   : > { %10192 = vmatpush1.bf16.msra.mxu0 %v16856_v7  ;;  %v17490_v7 = vld [vmem:[#allocation2 + $0x90] sm:$0xff] }
 0x6b8   : > { %10193 = vmatprep.subr.bf16.mxu0 %v16861_v12  ;;  %v9321_v59 = vrot.slane %v17490_v7, 5  ;;  %v9342_v12 = vrot.slane %v9292_v3, 5  ;;  %v16934_v3 = vld [vmem:[#allocation10 + $0x2280] ss:$8 sps:$4 sm:$0xff]   ;;  %v17033_v7 = vld [vmem:[#allocation13 + $0x190] ss:$8 sps:$4 sm:$0xff]  }
 0x6ba   : > { %v9322_v21 = vsel %vm3081_vm11, %v9320_v29, %v9321_v59  ;;  %v16951_v29 = vld [vmem:[#allocation10 + $0x22d4] ss:$8 sps:$4 sm:$0xff]  }
 0x6bb   : > { %10194 = vmatpush1.bf16.msra.mxu0 %v16859_v22  ;;  %v9343_v22 = vsel %vm3081_vm11, %v9321_v59, %v9342_v12  ;;  %v17038_v59 = vld [vmem:[#allocation13 + $0x1a4] ss:$8 sps:$4 sm:$0xff]  }
 0x6bc   : > { %10206 = vmatprep.subr.bf16.mxu0 %v16864_v24  ;;  %v9349_v24 = vsel %vm3081_vm11, %v9330_v17, %v9348_v18  ;;  %v14580_v26 = vpack.c.bf16 %v9343_v22, %v9322_v21  ;;  %v16940_v12 = vld [vmem:[#allocation10 + $0x22a0] ss:$8 sps:$4 sm:$0xff]   ;;  %v16943_v17 = vld [vmem:[#allocation10 + $0x22b0] ss:$8 sps:$4 sm:$0xff]   ;;  %v16948_v18 = vld [vmem:[#allocation10 + $0x22c4] ss:$8 sps:$4 sm:$0xff]  }
 0x6bd   : > { %v14583_v27 = vpack.c.bf16 %v9349_v24, %v9331_v23  ;;  %v16954_v21 = vld [vmem:[#allocation10 + $0x22e4] ss:$8 sps:$4 sm:$0xff]   ;;  %v16952_v24 = vld [vmem:[#allocation10 + $0x22e0] ss:$8 sps:$4 sm:$0xff]  }
 0x6be   : > { %14575 = vmatmul.mubr.msk.bf16.vlgmr.msra.gmra.mrb[0].mxu0 %vm18260_vm3, %v14574_v36  ;;  %v16913_v36 = vld [vmem:[#allocation10 + $0x2210] ss:$8 sps:$4 sm:$0xff]   ;;  %v9286_v22 = vld [vmem:[#allocation2 + $0x60] sm:$0xe0]  ;;  %v9294_v23 = vld [vmem:[#allocation2 + $0xe0] sm:$0x1f] }
 0x6bf   : > { %10207 = vmatpush1.bf16.msra.mxu0 %v16862_v35  ;;  %14578 = vmatprep.mubr.msk.bf16.mxu0 %vm18260_vm3, %v14577_v4  ;;  %v17008_v35 = vld [vmem:[#allocation13 + $0x104] ss:$8 sps:$4 sm:$0xff]  }
 0x6c0   : > { %10208 = vmatprep.subr.bf16.mxu0 %v16867_v40  ;;  %v17011_v40 = vld [vmem:[#allocation13 + $0x114] ss:$8 sps:$4 sm:$0xff]   ;;  %v16918_v4 = vld [vmem:[#allocation10 + $0x2224] ss:$8 sps:$4 sm:$0xff]   ;;  %10648 = vmatprep.subr.bf16.mxu1 %v17008_v35 }
 0x6c1   : > { %10649 = vmatpush1.bf16.msra.mxu1 %v17006_v28  ;;  %v17492_v28 = vld [vmem:[#allocation2 + $0xa0] sm:$0xff] }
 0x6c2   : > { %10650 = vmatprep.subr.bf16.mxu1 %v17011_v40  ;;  %v9327_v35 = vrot.slane %v17492_v28, 5  ;;  %v17041_v28 = vld [vmem:[#allocation13 + $0x1b4] ss:$8 sps:$4 sm:$0xff]  }
 0x6c3   : > { %10209 = vmatpush1.bf16.msra.mxu0 %v16865_v55  ;;  %v17009_v55 = vld [vmem:[#allocation13 + $0x110] ss:$8 sps:$4 sm:$0xff]  }
 0x6c4   : > { %10210 = vmatprep.subr.bf16.mxu0 %v16870_v33  ;;  %v17014_v33 = vld [vmem:[#allocation13 + $0x124] ss:$8 sps:$4 sm:$0xff]  }
 0x6c5   : > { %10651 = vmatpush1.bf16.msra.mxu1 %v17009_v55 }
 0x6c6   : > { %10652 = vmatprep.subr.bf16.mxu1 %v17014_v33 }
 0x6c7   : > { %10211 = vmatpush1.bf16.msra.mxu0 %v16868_v42  ;;  %v16916_v42 = vld [vmem:[#allocation10 + $0x2220] ss:$8 sps:$4 sm:$0xff]  }
 0x6c8   : > { %10212 = vmatprep.subr.bf16.mxu0 %v16873_v43  ;;  %v16921_v43 = vld [vmem:[#allocation10 + $0x2234] ss:$8 sps:$4 sm:$0xff]  }
 0x6cb   : > { %10213 = vmatpush1.bf16.msra.mxu0 %v16871_v45  ;;  %v17012_v45 = vld [vmem:[#allocation13 + $0x120] ss:$8 sps:$4 sm:$0xff]  }
 0x6cc   : > { %10214 = vmatprep.subr.bf16.mxu0 %v16876_v37  ;;  %v17017_v37 = vld [vmem:[#allocation13 + $0x134] ss:$8 sps:$4 sm:$0xff]   ;;  %10653 = vmatpush1.bf16.msra.mxu1 %v17012_v45 }
 0x6cd   : > { %10654 = vmatprep.subr.bf16.mxu1 %v17017_v37 }
 0x6cf   : > { %10215 = vmatpush1.bf16.msra.mxu0 %v16874_v46  ;;  %v16919_v46 = vld [vmem:[#allocation10 + $0x2230] ss:$8 sps:$4 sm:$0xff]  }
 0x6d0   : > { %10216 = vmatprep.subr.bf16.mxu0 %v16879_v48  ;;  %v16924_v48 = vld [vmem:[#allocation10 + $0x2244] ss:$8 sps:$4 sm:$0xff]  }
 0x6d3   : > { %10217 = vmatpush1.bf16.msra.mxu0 %v16877_v34  ;;  %v17015_v34 = vld [vmem:[#allocation13 + $0x130] ss:$8 sps:$4 sm:$0xff]  }
 0x6d4   : > { %10218 = vmatprep.subr.bf16.mxu0 %v16882_v56  ;;  %v17020_v56 = vld [vmem:[#allocation13 + $0x144] ss:$8 sps:$4 sm:$0xff]   ;;  %10655 = vmatpush1.bf16.msra.mxu1 %v17015_v34 }
 0x6d5   : > { %10656 = vmatprep.subr.bf16.mxu1 %v17020_v56  ;;  %v16958_v34 = vld [vmem:[#allocation10 + $0x2300] ss:$8 sps:$4 sm:$0xff]  }
 0x6d7   : > { %10219 = vmatpush1.bf16.msra.mxu0 %v16880_v49  ;;  %v16922_v49 = vld [vmem:[#allocation10 + $0x2240] ss:$8 sps:$4 sm:$0xff]  }
 0x6d8   : > { %10220 = vmatprep.subr.bf16.mxu0 %v16885_v6  ;;  %v16927_v6 = vld [vmem:[#allocation10 + $0x2254] ss:$8 sps:$4 sm:$0xff]  }
 0x6db   : > { %10221 = vmatpush1.bf16.msra.mxu0 %v16883_v10  ;;  %v17018_v10 = vld [vmem:[#allocation13 + $0x140] ss:$8 sps:$4 sm:$0xff]  }
 0x6dc   : > { %10222 = vmatprep.subr.bf16.mxu0 %v16888_v0  ;;  %v17023_v0 = vld [vmem:[#allocation13 + $0x154] ss:$8 sps:$4 sm:$0xff]   ;;  %10657 = vmatpush1.bf16.msra.mxu1 %v17018_v10 }
 0x6dd   : > { %10658 = vmatprep.subr.bf16.mxu1 %v17023_v0  ;;  %v16961_v10 = vld [vmem:[#allocation10 + $0x2310] ss:$8 sps:$4 sm:$0xff]   ;;  %v16966_v0 = vld [vmem:[#allocation10 + $0x2324] ss:$8 sps:$4 sm:$0xff]  }
 0x6df   : > { %10223 = vmatpush1.bf16.msra.mxu0 %v16886_v38  ;;  %v16925_v38 = vld [vmem:[#allocation10 + $0x2250] ss:$8 sps:$4 sm:$0xff]  }
 0x6e0   : > { %10224 = vmatprep.subr.bf16.mxu0 %v16891_v50  ;;  %v16930_v50 = vld [vmem:[#allocation10 + $0x2264] ss:$8 sps:$4 sm:$0xff]  }
 0x6e3   : > { %10225 = vmatpush1.bf16.msra.mxu0 %v16889_v51  ;;  %v17021_v51 = vld [vmem:[#allocation13 + $0x150] ss:$8 sps:$4 sm:$0xff]  }
 0x6e4   : > { %10226 = vmatprep.subr.bf16.mxu0 %v16894_v52  ;;  %v17026_v52 = vld [vmem:[#allocation13 + $0x164] ss:$8 sps:$4 sm:$0xff]   ;;  %10659 = vmatpush1.bf16.msra.mxu1 %v17021_v51 }
 0x6e5   : > { %10660 = vmatprep.subr.bf16.mxu1 %v17026_v52  ;;  %v16967_v51 = vld [vmem:[#allocation10 + $0x2330] ss:$8 sps:$4 sm:$0xff]   ;;  %v16972_v52 = vld [vmem:[#allocation10 + $0x2344] ss:$8 sps:$4 sm:$0xff]  }
 0x6e7   : > { %10227 = vmatpush1.bf16.msra.mxu0 %v16892_v53  ;;  %v16928_v53 = vld [vmem:[#allocation10 + $0x2260] ss:$8 sps:$4 sm:$0xff]  }
 0x6e8   : > { %10228 = vmatprep.subr.bf16.mxu0 %v16897_v54  ;;  %v16933_v54 = vld [vmem:[#allocation10 + $0x2274] ss:$8 sps:$4 sm:$0xff]  }
 0x6eb   : > { %10229 = vmatpush1.bf16.msra.mxu0 %v16895_v57  ;;  %v17024_v57 = vld [vmem:[#allocation13 + $0x160] ss:$8 sps:$4 sm:$0xff]  }
 0x6ec   : > { %10230 = vmatprep.subr.bf16.mxu0 %v16900_v11  ;;  %v17029_v11 = vld [vmem:[#allocation13 + $0x174] ss:$8 sps:$4 sm:$0xff]   ;;  %10661 = vmatpush1.bf16.msra.mxu1 %v17024_v57 }
 0x6ed   : > { %10662 = vmatprep.subr.bf16.mxu1 %v17029_v11  ;;  %v16973_v57 = vld [vmem:[#allocation10 + $0x2350] ss:$8 sps:$4 sm:$0xff]   ;;  %v16978_v11 = vld [vmem:[#allocation10 + $0x2364] ss:$8 sps:$4 sm:$0xff]  }
 0x6ef   : > { %10231 = vmatpush1.bf16.msra.mxu0 %v16898_v62  ;;  %v16931_v62 = vld [vmem:[#allocation10 + $0x2270] ss:$8 sps:$4 sm:$0xff]  }
 0x6f0   : > { %10232 = vmatprep.subr.bf16.mxu0 %v16903_v58  ;;  %v16936_v58 = vld [vmem:[#allocation10 + $0x2284] ss:$8 sps:$4 sm:$0xff]  }
 0x6f3   : > { %10233 = vmatpush1.bf16.msra.mxu0 %v16901_v60  ;;  %v17027_v60 = vld [vmem:[#allocation13 + $0x170] ss:$8 sps:$4 sm:$0xff]  }
 0x6f4   : > { %10234 = vmatprep.subr.bf16.mxu0 %v16906_v63  ;;  %v17032_v63 = vld [vmem:[#allocation13 + $0x184] ss:$8 sps:$4 sm:$0xff]   ;;  %10663 = vmatpush1.bf16.msra.mxu1 %v17027_v60 }
 0x6f5   : > { %10664 = vmatprep.subr.bf16.mxu1 %v17032_v63  ;;  %v16979_v60 = vld [vmem:[#allocation10 + $0x2370] ss:$8 sps:$4 sm:$0xff]   ;;  %v16984_v63 = vld [vmem:[#allocation10 + $0x2384] ss:$8 sps:$4 sm:$0xff]  }
 0x6f7   : > { %10235 = vmatpush1.bf16.msra.mxu0 %v16904_v2  ;;  %v16939_v2 = vld [vmem:[#allocation10 + $0x2294] ss:$8 sps:$4 sm:$0xff]  }
 0x6f8   : > { %10236 = vmatprep.subr.bf16.mxu0 %v16909_v41  ;;  %v16937_v41 = vld [vmem:[#allocation10 + $0x2290] ss:$8 sps:$4 sm:$0xff]   ;;  %10665 = vmatpush1.bf16.msra.mxu1 %v17030_v8 }
 0x6f9   : > { %10666 = vmatprep.subr.bf16.mxu1 %v17035_v39  ;;  %v16985_v8 = vld [vmem:[#allocation10 + $0x2390] ss:$8 sps:$4 sm:$0xff]   ;;  %v16990_v39 = vld [vmem:[#allocation10 + $0x23a4] ss:$8 sps:$4 sm:$0xff]  }
 0x6fb   : > { %10237 = vmatpush1.bf16.msra.mxu0 %v16907_v20  ;;  %v16946_v20 = vld [vmem:[#allocation10 + $0x22c0] ss:$8 sps:$4 sm:$0xff]  }
 0x6fc   : > { %10249 = vmatprep.subr.bf16.mxu0 %v16912_v32  ;;  %10667 = vmatpush1.bf16.msra.mxu1 %v17033_v7  ;;  %v16949_v32 = vld [vmem:[#allocation10 + $0x22d0] ss:$8 sps:$4 sm:$0xff]  }
 0x6fd   : > { %10668 = vmatprep.subr.bf16.mxu1 %v17038_v59  ;;  %v16991_v7 = vld [vmem:[#allocation10 + $0x23b0] ss:$8 sps:$4 sm:$0xff]   ;;  %v16996_v59 = vld [vmem:[#allocation10 + $0x23c4] ss:$8 sps:$4 sm:$0xff]  }
 0x6fe   : > { %14581 = vmatmul.mubr.msk.bf16.vlgmr.msra.gmra.mrb[0].mxu0 %vm18260_vm3, %v14580_v26  ;;  %v9297_v26 = vld [vmem:[#allocation2 + $0xf8] sm:$0x1f] }
 0x6ff   : > { %10250 = vmatpush1.bf16.msra.mxu0 %v16910_v25  ;;  %14584 = vmatprep.mubr.msk.bf16.mxu0 %vm18260_vm3, %v14583_v27  ;;  %v9289_v25 = vld [vmem:[#allocation2 + $0x78] sm:$0xe0]  ;;  %v9326_v27 = vrot.slane %v9286_v22, 5  ;;  %v9352_v33 = vrot.slane %v9297_v26, 5  ;;  %v9333_v22 = vrot.slane %v18594_v1, 5 }
 0x700   : > { %10251 = vmatprep.subr.bf16.mxu0 %v16915_v19  ;;  %10669 = vmatpush1.bf16.msra.mxu1 %v17036_v16  ;;  %v16957_v19 = vld [vmem:[#allocation10 + $0x22f4] ss:$8 sps:$4 sm:$0xff]   ;;  %v9335_v40 = vrot.slane %v9289_v25, 5  ;;  %v16997_v16 = vld [vmem:[#allocation10 + $0x23d0] ss:$8 sps:$4 sm:$0xff]  }
 0x701   : > { %v9328_v45 = vsel %vm3081_vm11, %v9326_v27, %v9327_v35  ;;  %v17039_v27 = vld [vmem:[#allocation13 + $0x1b0] ss:$8 sps:$4 sm:$0xff]   ;;  %10670 = vmatprep.subr.bf16.mxu1 %v17041_v28  ;;  %v17047_v1 = vld [vmem:[#allocation13 + $0x1d4] ss:$8 sps:$4 sm:$0xff]  }
 0x702   : > { %v17071_v28 = vld [vmem:[#allocation13 + $0x54] ss:$8 sps:$4 sm:$0xff]  }
 0x703   : > { %10252 = vmatpush1.bf16.msra.mxu0 %v16913_v36  ;;  %v9346_v36 = vrot.slane %v9294_v23, 5 }
 0x704   : > { %10253 = vmatprep.subr.bf16.mxu0 %v16918_v4  ;;  %v17493_v4 = vld [vmem:[#allocation2 + $0xb8] sm:$0xff]  ;;  %10671 = vmatpush1.bf16.msra.mxu1 %v17039_v27 }
 0x705   : > { %v9336_v55 = vrot.slane %v17493_v4, 5  ;;  %v9347_v37 = vsel %vm3081_vm11, %v9327_v35, %v9346_v36  ;;  %v17044_v35 = vld [vmem:[#allocation13 + $0x1c4] ss:$8 sps:$4 sm:$0xff]   ;;  %v17042_v36 = vld [vmem:[#allocation13 + $0x1c0] ss:$8 sps:$4 sm:$0xff]  }
 0x706   : > { %v14586_v56 = vpack.c.bf16 %v9347_v37, %v9328_v45  ;;  %10672 = vmatprep.subr.bf16.mxu1 %v17044_v35  ;;  %v17050_v4 = vld [vmem:[#allocation13 + $0x1e4] ss:$8 sps:$4 sm:$0xff]   ;;  %v10339_v45 = vld [vmem:[#allocation12] sm:$0x3]  ;;  %v17066_v27 = vld [vmem:[#allocation13 + $0x40] ss:$8 sps:$4 sm:$0xff]  }
 0x707   : > { %10254 = vmatpush1.bf16.msra.mxu0 %v16916_v42  ;;  %v16955_v42 = vld [vmem:[#allocation10 + $0x22f0] ss:$8 sps:$4 sm:$0xff]   ;;  %v10344_v37 = vrot.slane %v10339_v45, %v18267_v30 }
 0x708   : > { %10255 = vmatprep.subr.bf16.mxu0 %v16921_v43  ;;  %v16960_v43 = vld [vmem:[#allocation10 + $0x2304] ss:$8 sps:$4 sm:$0xff]   ;;  %10673 = vmatpush1.bf16.msra.mxu1 %v17042_v36  ;;  %v17069_v35 = vld [vmem:[#allocation13 + $0x50] ss:$8 sps:$4 sm:$0xff]  }
 0x709   : > { %10674 = vmatprep.subr.bf16.mxu1 %v17047_v1  ;;  %v17074_v36 = vld [vmem:[#allocation13 + $0x64] ss:$8 sps:$4 sm:$0xff]   ;;  %v17072_v1 = vld [vmem:[#allocation13 + $0x60] ss:$8 sps:$4 sm:$0xff]  }
 0x70b   : > { %10256 = vmatpush1.bf16.msra.mxu0 %v16919_v46  ;;  %v9337_v46 = vsel %vm3081_vm11, %v9335_v40, %v9336_v55  ;;  %v17045_v40 = vld [vmem:[#allocation13 + $0x1d0] ss:$8 sps:$4 sm:$0xff]  }
 0x70c   : > { %10257 = vmatprep.subr.bf16.mxu0 %v16924_v48  ;;  %v9353_v48 = vsel %vm3081_vm11, %v9336_v55, %v9352_v33  ;;  %10675 = vmatpush1.bf16.msra.mxu1 %v17045_v40  ;;  %v17048_v55 = vld [vmem:[#allocation13 + $0x1e0] ss:$8 sps:$4 sm:$0xff]   ;;  %v17053_v33 = vld [vmem:[#allocation13 + $0x1f4] ss:$8 sps:$4 sm:$0xff]  }
 0x70d   : > { %10676 = vmatprep.subr.bf16.mxu1 %v17050_v4  ;;  %v17077_v40 = vld [vmem:[#allocation13 + $0x74] ss:$8 sps:$4 sm:$0xff]   ;;  %v17075_v4 = vld [vmem:[#allocation13 + $0x70] ss:$8 sps:$4 sm:$0xff]  }
 0x70f   : > { %10258 = vmatpush1.bf16.msra.mxu0 %v16922_v49  ;;  %v16963_v49 = vld [vmem:[#allocation10 + $0x2314] ss:$8 sps:$4 sm:$0xff]  }
 0x710   : > { %10259 = vmatprep.subr.bf16.mxu0 %v16927_v6  ;;  %v14589_v6 = vpack.c.bf16 %v9353_v48, %v9337_v46  ;;  %10677 = vmatpush1.bf16.msra.mxu1 %v17048_v55  ;;  %v10348_v48 = vrot.slane %v10339_v45, %v18270_v31  ;;  %v17080_v55 = vld [vmem:[#allocation13 + $0x84] ss:$8 sps:$4 sm:$0xff]  }
 0x711   : > { %10678 = vmatprep.subr.bf16.mxu1 %v17053_v33  ;;  %v17078_v33 = vld [vmem:[#allocation13 + $0x80] ss:$8 sps:$4 sm:$0xff]   ;;  %v17086_v45 = vld [vmem:[#allocation13 + $0xa4] ss:$8 sps:$4 sm:$0xff]  }
 0x713   : > { %10260 = vmatpush1.bf16.msra.mxu0 %v16925_v38  ;;  %v16964_v38 = vld [vmem:[#allocation10 + $0x2320] ss:$8 sps:$4 sm:$0xff]  }
 0x714   : > { %10261 = vmatprep.subr.bf16.mxu0 %v16930_v50  ;;  %v16969_v50 = vld [vmem:[#allocation10 + $0x2334] ss:$8 sps:$4 sm:$0xff]  }
 0x717   : > { %10262 = vmatpush1.bf16.msra.mxu0 %v16928_v53  ;;  %v16970_v53 = vld [vmem:[#allocation10 + $0x2340] ss:$8 sps:$4 sm:$0xff]  }
 0x718   : > { %10263 = vmatprep.subr.bf16.mxu0 %v16933_v54  ;;  %v16975_v54 = vld [vmem:[#allocation10 + $0x2354] ss:$8 sps:$4 sm:$0xff]  }
 0x71b   : > { %10264 = vmatpush1.bf16.msra.mxu0 %v16931_v62  ;;  %v16976_v62 = vld [vmem:[#allocation10 + $0x2360] ss:$8 sps:$4 sm:$0xff]  }
 0x71c   : > { %10265 = vmatprep.subr.bf16.mxu0 %v16936_v58  ;;  %v16981_v58 = vld [vmem:[#allocation10 + $0x2374] ss:$8 sps:$4 sm:$0xff]  }
 0x71f   : > { %10266 = vmatpush1.bf16.msra.mxu0 %v16934_v3  ;;  %v16982_v3 = vld [vmem:[#allocation10 + $0x2380] ss:$8 sps:$4 sm:$0xff]  }
 0x720   : > { %10267 = vmatprep.subr.bf16.mxu0 %v16939_v2  ;;  %v16987_v2 = vld [vmem:[#allocation10 + $0x2394] ss:$8 sps:$4 sm:$0xff]  }
 0x723   : > { %10268 = vmatpush1.bf16.msra.mxu0 %v16937_v41  ;;  %v16988_v41 = vld [vmem:[#allocation10 + $0x23a0] ss:$8 sps:$4 sm:$0xff]  }
 0x724   : > { %10269 = vmatprep.subr.bf16.mxu0 %v16942_v9  ;;  %v16993_v9 = vld [vmem:[#allocation10 + $0x23b4] ss:$8 sps:$4 sm:$0xff]  }
 0x727   : > { %10270 = vmatpush1.bf16.msra.mxu0 %v16940_v12  ;;  %v16994_v12 = vld [vmem:[#allocation10 + $0x23c0] ss:$8 sps:$4 sm:$0xff]  }
 0x728   : > { %10271 = vmatprep.subr.bf16.mxu0 %v16945_v13  ;;  %v16999_v13 = vld [vmem:[#allocation10 + $0x23d4] ss:$8 sps:$4 sm:$0xff]  }
 0x72b   : > { %10272 = vmatpush1.bf16.msra.mxu0 %v16943_v17  ;;  %v17002_v17 = vld [vmem:[#allocation10 + $0x23e4] ss:$8 sps:$4 sm:$0xff]  }
 0x72c   : > { %10273 = vmatprep.subr.bf16.mxu0 %v16948_v18  ;;  %v9288_v18 = vld [vmem:[#allocation2 + $0x70] sm:$0xe0] }
 0x72f   : > { %10274 = vmatpush1.bf16.msra.mxu0 %v16946_v20  ;;  %v9296_v20 = vld [vmem:[#allocation2 + $0xf0] sm:$0x1f] }
 0x730   : > { %10275 = vmatprep.subr.bf16.mxu0 %v16951_v29  ;;  %v17000_v29 = vld [vmem:[#allocation10 + $0x23e0] ss:$8 sps:$4 sm:$0xff]   ;;  %v9350_v23 = vrot.slane %v9296_v20, 5 }
 0x732   : > { %v9351_v26 = vsel %vm3081_vm11, %v9333_v22, %v9350_v23  ;;  %v17062_v23 = vld [vmem:[#allocation13 + $0x24] ss:$8 sps:$4 sm:$0xff]  }
 0x733   : > { %10276 = vmatpush1.bf16.msra.mxu0 %v16949_v32  ;;  %v17005_v32 = vld [vmem:[#allocation10 + $0x23f4] ss:$8 sps:$4 sm:$0xff]  }
 0x734   : > { %10277 = vmatprep.subr.bf16.mxu0 %v16954_v21  ;;  %v9332_v21 = vrot.slane %v9288_v18, 5 }
 0x736   : > { %v9334_v25 = vsel %vm3081_vm11, %v9332_v21, %v9333_v22  ;;  %v17057_v22 = vld [vmem:[#allocation13 + $0x10] ss:$8 sps:$4 sm:$0xff]  }
 0x737   : > { %10278 = vmatpush1.bf16.msra.mxu0 %v16952_v24  ;;  %v17003_v24 = vld [vmem:[#allocation10 + $0x23f0] ss:$8 sps:$4 sm:$0xff]  }
 0x738   : > { %10279 = vmatprep.subr.bf16.mxu0 %v16957_v19  ;;  %v14592_v19 = vpack.c.bf16 %v9351_v26, %v9334_v25  ;;  %v17065_v25 = vld [vmem:[#allocation13 + $0x34] ss:$8 sps:$4 sm:$0xff]   ;;  %v17063_v26 = vld [vmem:[#allocation13 + $0x30] ss:$8 sps:$4 sm:$0xff]  }
 0x73b   : > { %10280 = vmatpush1.bf16.msra.mxu0 %v16955_v42  ;;  %v17051_v42 = vld [vmem:[#allocation13 + $0x1f0] ss:$8 sps:$4 sm:$0xff]  }
 0x73c   : > { %10292 = vmatprep.subr.bf16.mxu0 %v16960_v43  ;;  %v17056_v43 = vld [vmem:[#allocation13 + $0x4] ss:$8 sps:$4 sm:$0xff]   ;;  %10679 = vmatpush1.bf16.msra.mxu1 %v17051_v42  ;;  %v17083_v42 = vld [vmem:[#allocation13 + $0x94] ss:$8 sps:$4 sm:$0xff]  }
 0x73d   : > { %10851 = vmatprep.subr.bf16.mxu1 %v17056_v43  ;;  %v17081_v43 = vld [vmem:[#allocation13 + $0x90] ss:$8 sps:$4 sm:$0xff]  }
 0x73e   : > { %14587 = vmatmul.mubr.msk.bf16.vlgmr.msra.gmra.mrb[0].mxu0 %vm18260_vm3, %v14586_v56 }
 0x73f   : > { %10293 = vmatpush1.bf16.msra.mxu0 %v16958_v34  ;;  %14590 = vmatprep.mubr.msk.bf16.mxu0 %vm18260_vm3, %v14589_v6 }
 0x740   : > { %10294 = vmatprep.subr.bf16.mxu0 %v16963_v49 }
 0x743   : > { %10295 = vmatpush1.bf16.msra.mxu0 %v16961_v10 }
 0x744   : > { %10296 = vmatprep.subr.bf16.mxu0 %v16966_v0 }
 0x747   : > { %10297 = vmatpush1.bf16.msra.mxu0 %v16964_v38 }
 0x748   : > { %10298 = vmatprep.subr.bf16.mxu0 %v16969_v50 }
 0x74b   : > { %10299 = vmatpush1.bf16.msra.mxu0 %v16967_v51 }
 0x74c   : > { %10300 = vmatprep.subr.bf16.mxu0 %v16972_v52 }
 0x74f   : > { %10301 = vmatpush1.bf16.msra.mxu0 %v16970_v53 }
 0x750   : > { %10302 = vmatprep.subr.bf16.mxu0 %v16975_v54 }
 0x753   : > { %10303 = vmatpush1.bf16.msra.mxu0 %v16973_v57 }
 0x754   : > { %10304 = vmatprep.subr.bf16.mxu0 %v16978_v11  ;;  %v10372_v11 = vld [vmem:[#allocation3 + $0x8] sm:$0xf8] }
 0x757   : > { %10305 = vmatpush1.bf16.msra.mxu0 %v16976_v62 }
 0x758   : > { %10306 = vmatprep.subr.bf16.mxu0 %v16981_v58 }
 0x75b   : > { %10307 = vmatpush1.bf16.msra.mxu0 %v16979_v60 }
 0x75c   : > { %10308 = vmatprep.subr.bf16.mxu0 %v16984_v63 }
 0x75f   : > { %10309 = vmatpush1.bf16.msra.mxu0 %v16982_v3 }
 0x760   : > { %10310 = vmatprep.subr.bf16.mxu0 %v16987_v2 }
 0x763   : > { %10311 = vmatpush1.bf16.msra.mxu0 %v16985_v8 }
 0x764   : > { %10312 = vmatprep.subr.bf16.mxu0 %v16990_v39  ;;  %v10386_v39 = vrot.slane %v10372_v11, 3 }
 0x767   : > { %10313 = vmatpush1.bf16.msra.mxu0 %v16988_v41 }
 0x768   : > { %10314 = vmatprep.subr.bf16.mxu0 %v16993_v9 }
 0x76b   : > { %10315 = vmatpush1.bf16.msra.mxu0 %v16991_v7 }
 0x76c   : > { %10316 = vmatprep.subr.bf16.mxu0 %v16996_v59 }
 0x76f   : > { %10317 = vmatpush1.bf16.msra.mxu0 %v16994_v12 }
 0x770   : > { %10318 = vmatprep.subr.bf16.mxu0 %v16999_v13 }
 0x773   : > { %10319 = vmatpush1.bf16.msra.mxu0 %v16997_v16  ;;  %v17054_v16 = vld [vmem:[#allocation13] ss:$8 sps:$4 sm:$0xff]  }
 0x774   : > { %10320 = vmatprep.subr.bf16.mxu0 %v17002_v17 }
 0x777   : > { %10321 = vmatpush1.bf16.msra.mxu0 %v17000_v29  ;;  %v17059_v29 = vld [vmem:[#allocation13 + $0x14] ss:$8 sps:$4 sm:$0xff]  }
 0x778   : > { %10322 = vmatprep.subr.bf16.mxu0 %v17005_v32 }
 0x77b   : > { %10323 = vmatpush1.bf16.msra.mxu0 %v17003_v24  ;;  %v17060_v24 = vld [vmem:[#allocation13 + $0x20] ss:$8 sps:$4 sm:$0xff]  }
 0x77e   : > { %14593 = vmatmul.mubr.msk.bf16.vlgmr.msra.gmra.mrb[0].mxu0 %vm18260_vm3, %v14592_v19  ;;  %v17068_v19 = vld [vmem:[#allocation13 + $0x44] ss:$8 sps:$4 sm:$0xff]  }
 0x851   : > { %v10326_v46 = vpop.f32.mrb[0].mxu0 }
 0x852   : > { %v14966_v34 = vadd.f32 %v10326_v46, %v18578_v61  ;;  %v10328_v56 = vpop.f32.mrb[1].mxu0  ;;  %v17089_v46 = vld [vmem:[#allocation13 + $0xb4] ss:$8 sps:$4 sm:$0xff]  }
 0x853   : > { %v14967_v49 = vadd.f32 %v10328_v56, %v18580_v15  ;;  %v10330_v6 = vpop.f32.mrb[2].mxu0  ;;  %v17090_v56 = vld [vmem:[#allocation13 + $0xc0] ss:$8 sps:$4 sm:$0xff]  }
 0x854   : > { %v10351_v10 = vadd.f32 %v14966_v34, %v10344_v37  ;;  %v14968_v0 = vadd.f32 %v10330_v6, %v18582_v47  ;;  %v10332_v38 = vpop.f32.mrb[3].mxu0  ;;  %v10436_v47 = vld [vmem:[#allocation3 + $0x8] sm:$0xf0]  ;;  %v17092_v34 = vld [vmem:[#allocation13 + $0xc4] ss:$8 sps:$4 sm:$0xff]  }
 0x855   : > { %v10352_v50 = vadd.f32 %v14967_v49, %v10348_v48  ;;  %v14969_v51 = vadd.f32 %v10332_v38, %v18584_v44  ;;  %v10435_v44 = vld [vmem:[#allocation3] sm:$0xf0]  ;;  %v17095_v49 = vld [vmem:[#allocation13 + $0xd4] ss:$8 sps:$4 sm:$0xff]   ;;  %v17093_v6 = vld [vmem:[#allocation13 + $0xd0] ss:$8 sps:$4 sm:$0xff]  }
 0x856   : > { %v18637_v52 = vmax.f32 %v10351_v10, 0.0  ;;  %v18639_v53 = vadd.f32 %v14968_v0, %v10344_v37  ;;  %v17084_v37 = vld [vmem:[#allocation13 + $0xa0] ss:$8 sps:$4 sm:$0xff]   ;;  %v17098_v10 = vld [vmem:[#allocation13 + $0xe4] ss:$8 sps:$4 sm:$0xff]  }
 0x857   : > { %v18641_v54 = vmax.f32 %v10352_v50, 0.0  ;;  %v10354_v57 = vadd.f32 %v14969_v51, %v10348_v48  ;;  %v17087_v48 = vld [vmem:[#allocation13 + $0xb0] ss:$8 sps:$4 sm:$0xff]   ;;  %v17096_v38 = vld [vmem:[#allocation13 + $0xe0] ss:$8 sps:$4 sm:$0xff]  }
 0x858   : > { %10367 = vst [vmem:[#allocation3 + $0x10] sm:$0xff] %v18637_v52  ;;  %v10357_v61 = vmax.f32 %v18639_v53, 0.0  ;;  %v10439_v63 = vpack.c.bf16 %v18637_v52, %v10435_v44  ;;  %v17101_v51 = vld [vmem:[#allocation13 + $0xf4] ss:$8 sps:$4 sm:$0xff]   ;;  %v17255_v53 = vld [vmem:[#allocation13 + $0x530] ss:$8 sps:$4 sm:$0xff]  }
 0x859   : > { %10368 = vst [vmem:[#allocation3 + $0x18] sm:$0xff] %v18641_v54  ;;  %v18646_v15 = vmax.f32 %v10354_v57, 0.0  ;;  %v10440_v62 = vpack.c.bf16 %v18641_v54, %v10436_v47  ;;  %v10387_v41 = vrot.slane %v18641_v54, 3  ;;  %v10371_v57 = vld [vmem:[#allocation3] sm:$0xf8] }
 0x85a   : > { %10369 = vst [vmem:[#allocation3 + $0x20] sm:$0xff] %v10357_v61  ;;  %v10480_v17 = vrot.slane %v10439_v63, 2  ;;  %v10895_v44 = vld [vmem:[#allocation3 + $0x8] sm:$0xe0]  ;;  %v17104_v63 = vld [vmem:[#allocation13 + $0x204] ss:$8 sps:$4 sm:$0xff]  }
 0x85b   : > { %10370 = vst [vmem:[#allocation3 + $0x28] sm:$0xff] %v18646_v15  ;;  %v10483_v59 = vrot.slane %v10440_v62, 2  ;;  %v10388_v20 = vsel %vm994_vm9, %v10386_v39, %v10387_v41  ;;  %v17099_v62 = vld [vmem:[#allocation13 + $0xf0] ss:$8 sps:$4 sm:$0xff]  }
 0x861   : > { %v10437_v58 = vld [vmem:[#allocation3 + $0x20] sm:$0xf] }
 0x862   : > { %v10438_v60 = vld [vmem:[#allocation3 + $0x28] sm:$0xf]  ;;  %v10441_v3 = vpack.c.bf16 %v10437_v58, %v10437_v58  ;;  %v10375_v0 = vld [vmem:[#allocation3 + $0x20] sm:$0x7]  ;;  %v10383_v58 = vrot.slane %v10371_v57, 3 }
 0x863   : > { %v10376_v2 = vld [vmem:[#allocation3 + $0x28] sm:$0x7]  ;;  %v10442_v8 = vpack.c.bf16 %v10438_v60, %v10438_v60  ;;  %v10389_v47 = vrot.slane %v10375_v0, 3  ;;  %v10384_v60 = vrot.slane %v18637_v52, 3 }
 0x864   : > { %v10391_v9 = vrot.slane %v10376_v2, 3  ;;  %v10481_v7 = vrot.slane %v10441_v3, 2  ;;  %v10897_v50 = vld [vmem:[#allocation3 + $0x28] sm:$0x1f]  ;;  %v10905_v3 = vrot.slane %v10895_v44, 5  ;;  %v10906_v2 = vrot.slane %v18641_v54, 5 }
 0x865   : > { %v10484_v12 = vrot.slane %v10442_v8, 2  ;;  %v10910_v11 = vrot.slane %v10897_v50, 5  ;;  %v10390_v8 = vsel %vm994_vm9, %v10384_v60, %v10389_v47  ;;  %v17152_v57 = vld [vmem:[#allocation13 + $0x304] ss:$8 sps:$4 sm:$0xff]   ;;  %v11174_v44 = vrot.slane %v18641_v54, 7 }
 0x866   : > { %v10392_v13 = vsel %vm994_vm9, %v10387_v41, %v10391_v9  ;;  %v10482_v32 = vsel %vm1380_vm6, %v10480_v17, %v10481_v7  ;;  %v10385_v41 = vsel %vm994_vm9, %v10383_v58, %v10384_v60  ;;  %v17102_v9 = vld [vmem:[#allocation13 + $0x200] ss:$8 sps:$4 sm:$0xff]   ;;  %v17110_v17 = vld [vmem:[#allocation13 + $0x224] ss:$8 sps:$4 sm:$0xff]  }
 0x867   : > { %v10485_v18 = vsel %vm1380_vm6, %v10483_v59, %v10484_v12  ;;  %v14659_v21 = vpack.c.bf16 %v10392_v13, %v10388_v20  ;;  %v10911_v39 = vsel %vm3081_vm11, %v10906_v2, %v10910_v11  ;;  %v14662_v7 = vpack.c.bf16 %v10390_v8, %v10385_v41  ;;  %v17107_v12 = vld [vmem:[#allocation13 + $0x214] ss:$8 sps:$4 sm:$0xff]   ;;  %v17150_v60 = vld [vmem:[#allocation13 + $0x300] ss:$8 sps:$4 sm:$0xff]   ;;  %v17158_v41 = vld [vmem:[#allocation13 + $0x324] ss:$8 sps:$4 sm:$0xff]  }
 0x868   : > { %10680 = vmatprep.mubr.bf16.mxu1 %v10485_v18  ;;  %v10907_v59 = vsel %vm3081_vm11, %v10905_v3, %v10906_v2  ;;  %v17108_v18 = vld [vmem:[#allocation13 + $0x220] ss:$8 sps:$4 sm:$0xff]   ;;  %v17113_v20 = vld [vmem:[#allocation13 + $0x234] ss:$8 sps:$4 sm:$0xff]  }
 0x869   : > { %10681 = vmatmul.mubr.bf16.vlgmr.msra.gmra.mrb[20].mxu1 %v10482_v32  ;;  %v14697_v13 = vpack.c.bf16 %v10911_v39, %v10907_v59  ;;  %v17116_v32 = vld [vmem:[#allocation13 + $0x244] ss:$8 sps:$4 sm:$0xff]   ;;  %v17155_v2 = vld [vmem:[#allocation13 + $0x314] ss:$8 sps:$4 sm:$0xff]   ;;  %v17153_v39 = vld [vmem:[#allocation13 + $0x310] ss:$8 sps:$4 sm:$0xff]  }
 0x86a   : > { %10852 = vmatpush1.bf16.msra.mxu1 %v17054_v16  ;;  %14660 = vmatprep.mubr.msk.bf16.mxu1 %vm18332_vm8, %v14659_v21  ;;  %v17105_v16 = vld [vmem:[#allocation13 + $0x210] ss:$8 sps:$4 sm:$0xff]   ;;  %v17114_v21 = vld [vmem:[#allocation13 + $0x240] ss:$8 sps:$4 sm:$0xff]  }
 0x86b   : > { %10853 = vmatprep.subr.bf16.mxu1 %v17059_v29  ;;  %v17111_v29 = vld [vmem:[#allocation13 + $0x230] ss:$8 sps:$4 sm:$0xff]  }
 0x86c   : > { %v17159_v59 = vld [vmem:[#allocation13 + $0x330] ss:$8 sps:$4 sm:$0xff]  }
 0x86e   : > { %10854 = vmatpush1.bf16.msra.mxu1 %v17057_v22  ;;  %v17119_v22 = vld [vmem:[#allocation13 + $0x254] ss:$8 sps:$4 sm:$0xff]  }
 0x86f   : > { %10855 = vmatprep.subr.bf16.mxu1 %v17062_v23  ;;  %v17117_v23 = vld [vmem:[#allocation13 + $0x250] ss:$8 sps:$4 sm:$0xff]  }
 0x872   : > { %10856 = vmatpush1.bf16.msra.mxu1 %v17060_v24  ;;  %v17122_v24 = vld [vmem:[#allocation13 + $0x264] ss:$8 sps:$4 sm:$0xff]  }
 0x873   : > { %10857 = vmatprep.subr.bf16.mxu1 %v17065_v25  ;;  %v17120_v25 = vld [vmem:[#allocation13 + $0x260] ss:$8 sps:$4 sm:$0xff]  }
 0x876   : > { %10858 = vmatpush1.bf16.msra.mxu1 %v17063_v26  ;;  %v17125_v26 = vld [vmem:[#allocation13 + $0x274] ss:$8 sps:$4 sm:$0xff]  }
 0x877   : > { %10859 = vmatprep.subr.bf16.mxu1 %v17068_v19  ;;  %v17123_v19 = vld [vmem:[#allocation13 + $0x270] ss:$8 sps:$4 sm:$0xff]  }
 0x87a   : > { %10860 = vmatpush1.bf16.msra.mxu1 %v17066_v27  ;;  %v17128_v27 = vld [vmem:[#allocation13 + $0x284] ss:$8 sps:$4 sm:$0xff]  }
 0x87b   : > { %10861 = vmatprep.subr.bf16.mxu1 %v17071_v28  ;;  %v17126_v28 = vld [vmem:[#allocation13 + $0x280] ss:$8 sps:$4 sm:$0xff]  }
 0x87e   : > { %10862 = vmatpush1.bf16.msra.mxu1 %v17069_v35  ;;  %v17131_v35 = vld [vmem:[#allocation13 + $0x294] ss:$8 sps:$4 sm:$0xff]  }
 0x87f   : > { %10863 = vmatprep.subr.bf16.mxu1 %v17074_v36  ;;  %v17129_v36 = vld [vmem:[#allocation13 + $0x290] ss:$8 sps:$4 sm:$0xff]  }
 0x882   : > { %10864 = vmatpush1.bf16.msra.mxu1 %v17072_v1  ;;  %v17134_v1 = vld [vmem:[#allocation13 + $0x2a4] ss:$8 sps:$4 sm:$0xff]  }
 0x883   : > { %10865 = vmatprep.subr.bf16.mxu1 %v17077_v40  ;;  %v17132_v40 = vld [vmem:[#allocation13 + $0x2a0] ss:$8 sps:$4 sm:$0xff]  }
 0x886   : > { %10866 = vmatpush1.bf16.msra.mxu1 %v17075_v4  ;;  %v17137_v4 = vld [vmem:[#allocation13 + $0x2b4] ss:$8 sps:$4 sm:$0xff]  }
 0x887   : > { %10867 = vmatprep.subr.bf16.mxu1 %v17080_v55  ;;  %v17135_v55 = vld [vmem:[#allocation13 + $0x2b0] ss:$8 sps:$4 sm:$0xff]  }
 0x88a   : > { %10868 = vmatpush1.bf16.msra.mxu1 %v17078_v33  ;;  %v17140_v33 = vld [vmem:[#allocation13 + $0x2c4] ss:$8 sps:$4 sm:$0xff]  }
 0x88b   : > { %10869 = vmatprep.subr.bf16.mxu1 %v17083_v42  ;;  %v17138_v42 = vld [vmem:[#allocation13 + $0x2c0] ss:$8 sps:$4 sm:$0xff]  }
 0x88e   : > { %10870 = vmatpush1.bf16.msra.mxu1 %v17081_v43  ;;  %v17143_v43 = vld [vmem:[#allocation13 + $0x2d4] ss:$8 sps:$4 sm:$0xff]  }
 0x88f   : > { %10871 = vmatprep.subr.bf16.mxu1 %v17086_v45  ;;  %v17141_v45 = vld [vmem:[#allocation13 + $0x2d0] ss:$8 sps:$4 sm:$0xff]  }
 0x892   : > { %10872 = vmatpush1.bf16.msra.mxu1 %v17084_v37  ;;  %v17146_v37 = vld [vmem:[#allocation13 + $0x2e4] ss:$8 sps:$4 sm:$0xff]  }
 0x893   : > { %10873 = vmatprep.subr.bf16.mxu1 %v17089_v46  ;;  %v10896_v46 = vld [vmem:[#allocation3 + $0x20] sm:$0x1f] }
 0x896   : > { %10874 = vmatpush1.bf16.msra.mxu1 %v17087_v48  ;;  %v17144_v48 = vld [vmem:[#allocation13 + $0x2e0] ss:$8 sps:$4 sm:$0xff]  }
 0x897   : > { %10875 = vmatprep.subr.bf16.mxu1 %v17092_v34  ;;  %v11165_v34 = vld [vmem:[#allocation3 + $0x28] sm:$0x7f] }
 0x898   : > { %v11178_v0 = vrot.slane %v11165_v34, 7 }
 0x89a   : > { %10876 = vmatpush1.bf16.msra.mxu1 %v17090_v56  ;;  %v17149_v56 = vld [vmem:[#allocation13 + $0x2f4] ss:$8 sps:$4 sm:$0xff]  }
 0x89b   : > { %10877 = vmatprep.subr.bf16.mxu1 %v17095_v49  ;;  %v10894_v49 = vld [vmem:[#allocation3] sm:$0xe0] }
 0x89c   : > { %v10902_v50 = vrot.slane %v10894_v49, 5  ;;  %v17198_v49 = vld [vmem:[#allocation13 + $0x400] ss:$8 sps:$4 sm:$0xff]  }
 0x89e   : > { %10878 = vmatpush1.bf16.msra.mxu1 %v17093_v6  ;;  %v10908_v6 = vrot.slane %v10896_v46, 5  ;;  %v11171_v46 = vrot.slane %v18637_v52, 7 }
 0x89f   : > { %10879 = vmatprep.subr.bf16.mxu1 %v17098_v10  ;;  %v11163_v10 = vld [vmem:[#allocation3 + $0x8] sm:$0x80] }
 0x8a0   : > { %v11173_v47 = vrot.slane %v11163_v10, 7  ;;  %v17203_v10 = vld [vmem:[#allocation13 + $0x414] ss:$8 sps:$4 sm:$0xff]  }
 0x8a2   : > { %10880 = vmatpush1.bf16.msra.mxu1 %v17096_v38  ;;  %v17147_v38 = vld [vmem:[#allocation13 + $0x2f0] ss:$8 sps:$4 sm:$0xff]   ;;  %v11175_v3 = vsel %vm4139_vm7, %v11173_v47, %v11174_v44 }
 0x8a3   : > { %10881 = vmatprep.subr.bf16.mxu1 %v17101_v51  ;;  %v10903_v51 = vrot.slane %v18637_v52, 5  ;;  %v17207_v47 = vld [vmem:[#allocation13 + $0x430] ss:$8 sps:$4 sm:$0xff]  }
 0x8a5   : > { %v10909_v11 = vsel %vm3081_vm11, %v10903_v51, %v10908_v6  ;;  %v10904_v58 = vsel %vm3081_vm11, %v10902_v50, %v10903_v51  ;;  %v17206_v50 = vld [vmem:[#allocation13 + $0x424] ss:$8 sps:$4 sm:$0xff]   ;;  %v17204_v51 = vld [vmem:[#allocation13 + $0x420] ss:$8 sps:$4 sm:$0xff]  }
 0x8a6   : > { %10882 = vmatpush1.bf16.msra.mxu1 %v17099_v62  ;;  %v11179_v62 = vsel %vm4139_vm7, %v11174_v44, %v11178_v0  ;;  %v11433_v0 = vpack.c.bf16 %v18646_v15, %v18641_v54  ;;  %v17212_v44 = vld [vmem:[#allocation13 + $0x444] ss:$8 sps:$4 sm:$0xff]   ;;  %v17215_v54 = vld [vmem:[#allocation13 + $0x454] ss:$8 sps:$4 sm:$0xff]  }
 0x8a7   : > { %11115 = vmatprep.subr.bf16.mxu1 %v17104_v63  ;;  %v14700_v63 = vpack.c.bf16 %v10909_v11, %v10904_v58  ;;  %v14735_v8 = vpack.c.bf16 %v11179_v62, %v11175_v3  ;;  %v17210_v11 = vld [vmem:[#allocation13 + $0x440] ss:$8 sps:$4 sm:$0xff]   ;;  %v17213_v62 = vld [vmem:[#allocation13 + $0x450] ss:$8 sps:$4 sm:$0xff]   ;;  %v17218_v58 = vld [vmem:[#allocation13 + $0x464] ss:$8 sps:$4 sm:$0xff]  }
 0x8a8   : > { %v17219_v3 = vld [vmem:[#allocation13 + $0x470] ss:$8 sps:$4 sm:$0xff]  }
 0x8a9   : > { %14663 = vmatmul.mubr.msk.bf16.vlgmr.msra.gmra.mrb[20].mxu1 %vm18332_vm8, %v14662_v7  ;;  %v17161_v7 = vld [vmem:[#allocation13 + $0x334] ss:$8 sps:$4 sm:$0xff]  }
 0x8aa   : > { %11116 = vmatpush1.bf16.msra.mxu1 %v17102_v9  ;;  %14698 = vmatprep.mubr.msk.bf16.mxu1 %vm18260_vm3, %v14697_v13  ;;  %v17156_v9 = vld [vmem:[#allocation13 + $0x320] ss:$8 sps:$4 sm:$0xff]  }
 0x8ab   : > { %11117 = vmatprep.subr.bf16.mxu1 %v17107_v12  ;;  %v17164_v12 = vld [vmem:[#allocation13 + $0x344] ss:$8 sps:$4 sm:$0xff]   ;;  %v17162_v13 = vld [vmem:[#allocation13 + $0x340] ss:$8 sps:$4 sm:$0xff]  }
 0x8ae   : > { %11118 = vmatpush1.bf16.msra.mxu1 %v17105_v16  ;;  %v17167_v16 = vld [vmem:[#allocation13 + $0x354] ss:$8 sps:$4 sm:$0xff]  }
 0x8af   : > { %11119 = vmatprep.subr.bf16.mxu1 %v17110_v17  ;;  %v17165_v17 = vld [vmem:[#allocation13 + $0x350] ss:$8 sps:$4 sm:$0xff]  }
 0x8b2   : > { %11120 = vmatpush1.bf16.msra.mxu1 %v17108_v18  ;;  %v17170_v18 = vld [vmem:[#allocation13 + $0x364] ss:$8 sps:$4 sm:$0xff]  }
 0x8b3   : > { %11121 = vmatprep.subr.bf16.mxu1 %v17113_v20  ;;  %v17168_v20 = vld [vmem:[#allocation13 + $0x360] ss:$8 sps:$4 sm:$0xff]  }
 0x8b6   : > { %11122 = vmatpush1.bf16.msra.mxu1 %v17111_v29  ;;  %v17173_v29 = vld [vmem:[#allocation13 + $0x374] ss:$8 sps:$4 sm:$0xff]  }
 0x8b7   : > { %11123 = vmatprep.subr.bf16.mxu1 %v17116_v32  ;;  %v17171_v32 = vld [vmem:[#allocation13 + $0x370] ss:$8 sps:$4 sm:$0xff]  }
 0x8ba   : > { %11124 = vmatpush1.bf16.msra.mxu1 %v17114_v21  ;;  %v17176_v21 = vld [vmem:[#allocation13 + $0x384] ss:$8 sps:$4 sm:$0xff]  }
 0x8bb   : > { %11125 = vmatprep.subr.bf16.mxu1 %v17119_v22  ;;  %v17174_v22 = vld [vmem:[#allocation13 + $0x380] ss:$8 sps:$4 sm:$0xff]  }
 0x8be   : > { %11126 = vmatpush1.bf16.msra.mxu1 %v17117_v23  ;;  %v17179_v23 = vld [vmem:[#allocation13 + $0x394] ss:$8 sps:$4 sm:$0xff]  }
 0x8bf   : > { %11127 = vmatprep.subr.bf16.mxu1 %v17122_v24  ;;  %v17177_v24 = vld [vmem:[#allocation13 + $0x390] ss:$8 sps:$4 sm:$0xff]  }
 0x8c2   : > { %11128 = vmatpush1.bf16.msra.mxu1 %v17120_v25  ;;  %v17182_v25 = vld [vmem:[#allocation13 + $0x3a4] ss:$8 sps:$4 sm:$0xff]  }
 0x8c3   : > { %11129 = vmatprep.subr.bf16.mxu1 %v17125_v26  ;;  %v17180_v26 = vld [vmem:[#allocation13 + $0x3a0] ss:$8 sps:$4 sm:$0xff]  }
 0x8c6   : > { %11130 = vmatpush1.bf16.msra.mxu1 %v17123_v19  ;;  %v17185_v19 = vld [vmem:[#allocation13 + $0x3b4] ss:$8 sps:$4 sm:$0xff]  }
 0x8c7   : > { %11131 = vmatprep.subr.bf16.mxu1 %v17128_v27  ;;  %v17183_v27 = vld [vmem:[#allocation13 + $0x3b0] ss:$8 sps:$4 sm:$0xff]  }
 0x8ca   : > { %11132 = vmatpush1.bf16.msra.mxu1 %v17126_v28  ;;  %v17188_v28 = vld [vmem:[#allocation13 + $0x3c4] ss:$8 sps:$4 sm:$0xff]  }
 0x8cb   : > { %11133 = vmatprep.subr.bf16.mxu1 %v17131_v35  ;;  %v17186_v35 = vld [vmem:[#allocation13 + $0x3c0] ss:$8 sps:$4 sm:$0xff]  }
 0x8ce   : > { %11134 = vmatpush1.bf16.msra.mxu1 %v17129_v36  ;;  %v17191_v36 = vld [vmem:[#allocation13 + $0x3d4] ss:$8 sps:$4 sm:$0xff]  }
 0x8cf   : > { %11135 = vmatprep.subr.bf16.mxu1 %v17134_v1  ;;  %v17189_v1 = vld [vmem:[#allocation13 + $0x3d0] ss:$8 sps:$4 sm:$0xff]  }
 0x8d2   : > { %11136 = vmatpush1.bf16.msra.mxu1 %v17132_v40  ;;  %v17194_v40 = vld [vmem:[#allocation13 + $0x3e4] ss:$8 sps:$4 sm:$0xff]  }
 0x8d3   : > { %11137 = vmatprep.subr.bf16.mxu1 %v17137_v4  ;;  %v11164_v4 = vld [vmem:[#allocation3 + $0x20] sm:$0x7f] }
 0x8d6   : > { %11138 = vmatpush1.bf16.msra.mxu1 %v17135_v55  ;;  %v17192_v55 = vld [vmem:[#allocation13 + $0x3e0] ss:$8 sps:$4 sm:$0xff]  }
 0x8d7   : > { %11139 = vmatprep.subr.bf16.mxu1 %v17140_v33  ;;  %v17197_v33 = vld [vmem:[#allocation13 + $0x3f4] ss:$8 sps:$4 sm:$0xff]  }
 0x8da   : > { %11140 = vmatpush1.bf16.msra.mxu1 %v17138_v42  ;;  %v11162_v42 = vld [vmem:[#allocation3] sm:$0x80] }
 0x8db   : > { %11141 = vmatprep.subr.bf16.mxu1 %v17143_v43  ;;  %v11176_v43 = vrot.slane %v11164_v4, 7  ;;  %v17249_v4 = vld [vmem:[#allocation13 + $0x510] ss:$8 sps:$4 sm:$0xff]  }
 0x8dd   : > { %v11177_v34 = vsel %vm4139_vm7, %v11171_v46, %v11176_v43  ;;  %v17263_v43 = vld [vmem:[#allocation13 + $0x554] ss:$8 sps:$4 sm:$0xff]  }
 0x8de   : > { %11142 = vmatpush1.bf16.msra.mxu1 %v17141_v45  ;;  %v17195_v45 = vld [vmem:[#allocation13 + $0x3f0] ss:$8 sps:$4 sm:$0xff]  }
 0x8df   : > { %11143 = vmatprep.subr.bf16.mxu1 %v17146_v37  ;;  %v11170_v37 = vrot.slane %v11162_v42, 7  ;;  %v17257_v42 = vld [vmem:[#allocation13 + $0x534] ss:$8 sps:$4 sm:$0xff]  }
 0x8e2   : > { %11144 = vmatpush1.bf16.msra.mxu1 %v17144_v48  ;;  %v17200_v48 = vld [vmem:[#allocation13 + $0x404] ss:$8 sps:$4 sm:$0xff]  }
 0x8e3   : > { %11145 = vmatprep.subr.bf16.mxu1 %v17149_v56  ;;  %v11172_v56 = vsel %vm4139_vm7, %v11170_v37, %v11171_v46  ;;  %v17266_v37 = vld [vmem:[#allocation13 + $0x564] ss:$8 sps:$4 sm:$0xff]   ;;  %v17264_v46 = vld [vmem:[#allocation13 + $0x560] ss:$8 sps:$4 sm:$0xff]  }
 0x8e4   : > { %v14738_v6 = vpack.c.bf16 %v11177_v34, %v11172_v56  ;;  %v17267_v34 = vld [vmem:[#allocation13 + $0x570] ss:$8 sps:$4 sm:$0xff]   ;;  %v17272_v56 = vld [vmem:[#allocation13 + $0x584] ss:$8 sps:$4 sm:$0xff]  }
 0x8e6   : > { %11146 = vmatpush1.bf16.msra.mxu1 %v17147_v38  ;;  %v17201_v38 = vld [vmem:[#allocation13 + $0x410] ss:$8 sps:$4 sm:$0xff]  }
 0x8e7   : > { %11383 = vmatprep.subr.bf16.mxu1 %v17152_v57  ;;  %v17209_v57 = vld [vmem:[#allocation13 + $0x434] ss:$8 sps:$4 sm:$0xff]  }
 0x8e9   : > { %14701 = vmatmul.mubr.msk.bf16.vlgmr.msra.gmra.mrb[20].mxu1 %vm18260_vm3, %v14700_v63  ;;  %v17221_v63 = vld [vmem:[#allocation13 + $0x474] ss:$8 sps:$4 sm:$0xff]  }
 0x8ea   : > { %11384 = vmatpush1.bf16.msra.mxu1 %v17150_v60  ;;  %14736 = vmatprep.mubr.msk.bf16.mxu1 %vm18332_vm8, %v14735_v8  ;;  %v17216_v60 = vld [vmem:[#allocation13 + $0x460] ss:$8 sps:$4 sm:$0xff]  }
 0x8eb   : > { %11385 = vmatprep.subr.bf16.mxu1 %v17155_v2  ;;  %v17224_v2 = vld [vmem:[#allocation13 + $0x484] ss:$8 sps:$4 sm:$0xff]   ;;  %v17222_v8 = vld [vmem:[#allocation13 + $0x480] ss:$8 sps:$4 sm:$0xff]  }
 0x8ee   : > { %11386 = vmatpush1.bf16.msra.mxu1 %v17153_v39  ;;  %v17227_v39 = vld [vmem:[#allocation13 + $0x494] ss:$8 sps:$4 sm:$0xff]  }
 0x8ef   : > { %11387 = vmatprep.subr.bf16.mxu1 %v17158_v41  ;;  %v17225_v41 = vld [vmem:[#allocation13 + $0x490] ss:$8 sps:$4 sm:$0xff]  }
 0x8f2   : > { %11388 = vmatpush1.bf16.msra.mxu1 %v17156_v9  ;;  %v17230_v9 = vld [vmem:[#allocation13 + $0x4a4] ss:$8 sps:$4 sm:$0xff]  }
 0x8f3   : > { %11389 = vmatprep.subr.bf16.mxu1 %v17161_v7  ;;  %v17228_v7 = vld [vmem:[#allocation13 + $0x4a0] ss:$8 sps:$4 sm:$0xff]  }
 0x8f6   : > { %11390 = vmatpush1.bf16.msra.mxu1 %v17159_v59  ;;  %v17233_v59 = vld [vmem:[#allocation13 + $0x4b4] ss:$8 sps:$4 sm:$0xff]  }
 0x8f7   : > { %11391 = vmatprep.subr.bf16.mxu1 %v17164_v12  ;;  %v17231_v12 = vld [vmem:[#allocation13 + $0x4b0] ss:$8 sps:$4 sm:$0xff]  }
 0x8fa   : > { %11392 = vmatpush1.bf16.msra.mxu1 %v17162_v13  ;;  %v17236_v13 = vld [vmem:[#allocation13 + $0x4c4] ss:$8 sps:$4 sm:$0xff]  }
 0x8fb   : > { %11393 = vmatprep.subr.bf16.mxu1 %v17167_v16  ;;  %v17234_v16 = vld [vmem:[#allocation13 + $0x4c0] ss:$8 sps:$4 sm:$0xff]  }
 0x8fe   : > { %11394 = vmatpush1.bf16.msra.mxu1 %v17165_v17  ;;  %v17239_v17 = vld [vmem:[#allocation13 + $0x4d4] ss:$8 sps:$4 sm:$0xff]  }
 0x8ff   : > { %11395 = vmatprep.subr.bf16.mxu1 %v17170_v18  ;;  %v17237_v18 = vld [vmem:[#allocation13 + $0x4d0] ss:$8 sps:$4 sm:$0xff]  }
 0x902   : > { %11396 = vmatpush1.bf16.msra.mxu1 %v17168_v20  ;;  %v17242_v20 = vld [vmem:[#allocation13 + $0x4e4] ss:$8 sps:$4 sm:$0xff]  }
 0x903   : > { %11397 = vmatprep.subr.bf16.mxu1 %v17173_v29  ;;  %v17240_v29 = vld [vmem:[#allocation13 + $0x4e0] ss:$8 sps:$4 sm:$0xff]  }
 0x906   : > { %11398 = vmatpush1.bf16.msra.mxu1 %v17171_v32  ;;  %v11675_v32 = vld [vmem:[#allocation3 + $0x18] sm:$0xfe] }
 0x907   : > { %11399 = vmatprep.subr.bf16.mxu1 %v17176_v21  ;;  %v17245_v21 = vld [vmem:[#allocation13 + $0x4f4] ss:$8 sps:$4 sm:$0xff]  }
 0x90a   : > { %11400 = vmatpush1.bf16.msra.mxu1 %v17174_v22  ;;  %v11679_v22 = vld [vmem:[#allocation3 + $0x38] sm:$0x1] }
 0x90b   : > { %11401 = vmatprep.subr.bf16.mxu1 %v17179_v23  ;;  %v11689_v23 = vrot.slane %v11675_v32, 1 }
 0x90e   : > { %11402 = vmatpush1.bf16.msra.mxu1 %v17177_v24  ;;  %v17243_v24 = vld [vmem:[#allocation13 + $0x4f0] ss:$8 sps:$4 sm:$0xff]  }
 0x90f   : > { %11403 = vmatprep.subr.bf16.mxu1 %v17182_v25  ;;  %v17248_v25 = vld [vmem:[#allocation13 + $0x504] ss:$8 sps:$4 sm:$0xff]  }
 0x912   : > { %11404 = vmatpush1.bf16.msra.mxu1 %v17180_v26  ;;  %v11690_v26 = vrot.slane %v18646_v15, 1 }
 0x913   : > { %11405 = vmatprep.subr.bf16.mxu1 %v17185_v19  ;;  %v11694_v19 = vrot.slane %v11679_v22, 1  ;;  %v17299_v22 = vld [vmem:[#allocation13 + $0x614] ss:$8 sps:$4 sm:$0xff]  }
 0x916   : > { %11406 = vmatpush1.bf16.msra.mxu1 %v17183_v27  ;;  %v11691_v27 = vsel %vm6174_vm10, %v11689_v23, %v11690_v26 }
 0x917   : > { %11407 = vmatprep.subr.bf16.mxu1 %v17188_v28  ;;  %v17246_v28 = vld [vmem:[#allocation13 + $0x500] ss:$8 sps:$4 sm:$0xff]  }
 0x91a   : > { %11408 = vmatpush1.bf16.msra.mxu1 %v17186_v35  ;;  %v11432_v35 = vpack.c.bf16 %v10357_v61, %v18637_v52  ;;  %v17260_v52 = vld [vmem:[#allocation13 + $0x544] ss:$8 sps:$4 sm:$0xff]   ;;  %v17258_v61 = vld [vmem:[#allocation13 + $0x540] ss:$8 sps:$4 sm:$0xff]  }
 0x91b   : > { %11409 = vmatprep.subr.bf16.mxu1 %v17191_v36  ;;  %v11695_v36 = vsel %vm6174_vm10, %v11690_v26, %v11694_v19  ;;  %v17300_v26 = vld [vmem:[#allocation13 + $0x620] ss:$8 sps:$4 sm:$0xff]   ;;  %v17305_v19 = vld [vmem:[#allocation13 + $0x634] ss:$8 sps:$4 sm:$0xff]  }
 0x91e   : > { %11410 = vmatpush1.bf16.msra.mxu1 %v17189_v1  ;;  %v17251_v1 = vld [vmem:[#allocation13 + $0x514] ss:$8 sps:$4 sm:$0xff]  }
 0x91f   : > { %11411 = vmatprep.subr.bf16.mxu1 %v17194_v40  ;;  %v14805_v40 = vpack.c.bf16 %v11695_v36, %v11691_v27  ;;  %v17303_v27 = vld [vmem:[#allocation13 + $0x630] ss:$8 sps:$4 sm:$0xff]   ;;  %v17311_v36 = vld [vmem:[#allocation13 + $0x654] ss:$8 sps:$4 sm:$0xff]  }
 0x922   : > { %11412 = vmatpush1.bf16.msra.mxu1 %v17192_v55  ;;  %v17254_v55 = vld [vmem:[#allocation13 + $0x524] ss:$8 sps:$4 sm:$0xff]  }
 0x923   : > { %11413 = vmatprep.subr.bf16.mxu1 %v17197_v33  ;;  %v17252_v33 = vld [vmem:[#allocation13 + $0x520] ss:$8 sps:$4 sm:$0xff]  }
 0x926   : > { %11414 = vmatpush1.bf16.msra.mxu1 %v17195_v45  ;;  %v17261_v45 = vld [vmem:[#allocation13 + $0x550] ss:$8 sps:$4 sm:$0xff]  }
 0x927   : > { %11627 = vmatprep.subr.bf16.mxu1 %v17200_v48  ;;  %v17269_v48 = vld [vmem:[#allocation13 + $0x574] ss:$8 sps:$4 sm:$0xff]  }
 0x929   : > { %14739 = vmatmul.mubr.msk.bf16.vlgmr.msra.gmra.mrb[20].mxu1 %vm18332_vm8, %v14738_v6  ;;  %v17275_v6 = vld [vmem:[#allocation13 + $0x594] ss:$8 sps:$4 sm:$0xff]  }
 0x92a   : > { %11628 = vmatpush1.bf16.msra.mxu1 %v17198_v49  ;;  %11659 = vmatprep.mubr.bf16.mxu1 %v11433_v0  ;;  %v17270_v49 = vld [vmem:[#allocation13 + $0x580] ss:$8 sps:$4 sm:$0xff]   ;;  %v17278_v0 = vld [vmem:[#allocation13 + $0x5a4] ss:$8 sps:$4 sm:$0xff]  }
 0x92b   : > { %11629 = vmatprep.subr.bf16.mxu1 %v17203_v10  ;;  %v17273_v10 = vld [vmem:[#allocation13 + $0x590] ss:$8 sps:$4 sm:$0xff]  }
 0x92e   : > { %11630 = vmatpush1.bf16.msra.mxu1 %v17201_v38  ;;  %v17276_v38 = vld [vmem:[#allocation13 + $0x5a0] ss:$8 sps:$4 sm:$0xff]  }
 0x92f   : > { %11631 = vmatprep.subr.bf16.mxu1 %v17206_v50  ;;  %v17281_v50 = vld [vmem:[#allocation13 + $0x5b4] ss:$8 sps:$4 sm:$0xff]  }
 0x932   : > { %11632 = vmatpush1.bf16.msra.mxu1 %v17204_v51  ;;  %v17279_v51 = vld [vmem:[#allocation13 + $0x5b0] ss:$8 sps:$4 sm:$0xff]  }
 0x933   : > { %11633 = vmatprep.subr.bf16.mxu1 %v17209_v57  ;;  %v17284_v57 = vld [vmem:[#allocation13 + $0x5c4] ss:$8 sps:$4 sm:$0xff]  }
 0x936   : > { %11634 = vmatpush1.bf16.msra.mxu1 %v17207_v47  ;;  %v17282_v47 = vld [vmem:[#allocation13 + $0x5c0] ss:$8 sps:$4 sm:$0xff]  }
 0x937   : > { %11635 = vmatprep.subr.bf16.mxu1 %v17212_v44  ;;  %v17287_v44 = vld [vmem:[#allocation13 + $0x5d4] ss:$8 sps:$4 sm:$0xff]  }
 0x93a   : > { %11636 = vmatpush1.bf16.msra.mxu1 %v17210_v11  ;;  %v17285_v11 = vld [vmem:[#allocation13 + $0x5d0] ss:$8 sps:$4 sm:$0xff]  }
 0x93b   : > { %11637 = vmatprep.subr.bf16.mxu1 %v17215_v54  ;;  %v17290_v54 = vld [vmem:[#allocation13 + $0x5e4] ss:$8 sps:$4 sm:$0xff]  }
 0x93e   : > { %11638 = vmatpush1.bf16.msra.mxu1 %v17213_v62  ;;  %v18695_v62 = vld [vmem:[#allocation3 + $0x20] sm:$0xff] }
 0x93f   : > { %11639 = vmatprep.subr.bf16.mxu1 %v17218_v58  ;;  %v11678_v58 = vld [vmem:[#allocation3 + $0x30] sm:$0x1] }
 0x942   : > { %11640 = vmatpush1.bf16.msra.mxu1 %v17216_v60  ;;  %v17288_v60 = vld [vmem:[#allocation13 + $0x5e0] ss:$8 sps:$4 sm:$0xff]  }
 0x943   : > { %11641 = vmatprep.subr.bf16.mxu1 %v17221_v63  ;;  %v11947_v63 = vld [vmem:[#allocation3 + $0x18] sm:$0xf8] }
 0x946   : > { %11642 = vmatpush1.bf16.msra.mxu1 %v17219_v3  ;;  %v17293_v3 = vld [vmem:[#allocation13 + $0x5f4] ss:$8 sps:$4 sm:$0xff]  }
 0x947   : > { %11643 = vmatprep.subr.bf16.mxu1 %v17224_v2  ;;  %v11674_v2 = vld [vmem:[#allocation3 + $0x10] sm:$0xfe] }
 0x94a   : > { %11644 = vmatpush1.bf16.msra.mxu1 %v17222_v8  ;;  %v11687_v8 = vrot.slane %v18695_v62, 1 }
 0x94b   : > { %11645 = vmatprep.subr.bf16.mxu1 %v17227_v39  ;;  %v11692_v39 = vrot.slane %v11678_v58, 1  ;;  %v17339_v58 = vld [vmem:[#allocation13 + $0x6f0] ss:$8 sps:$4 sm:$0xff]  }
 0x94e   : > { %11646 = vmatpush1.bf16.msra.mxu1 %v17225_v41  ;;  %v11949_v41 = vld [vmem:[#allocation3 + $0x38] sm:$0x7] }
 0x94f   : > { %11647 = vmatprep.subr.bf16.mxu1 %v17230_v9  ;;  %v11957_v9 = vrot.slane %v11947_v63, 3  ;;  %v17344_v63 = vld [vmem:[#allocation13 + $0x704] ss:$8 sps:$4 sm:$0xff]  }
 0x952   : > { %11648 = vmatpush1.bf16.msra.mxu1 %v17228_v7  ;;  %v17291_v7 = vld [vmem:[#allocation13 + $0x5f0] ss:$8 sps:$4 sm:$0xff]  }
 0x953   : > { %11649 = vmatprep.subr.bf16.mxu1 %v17233_v59  ;;  %v11686_v59 = vrot.slane %v11674_v2, 1 }
 0x956   : > { %11650 = vmatpush1.bf16.msra.mxu1 %v17231_v12  ;;  %v17296_v12 = vld [vmem:[#allocation13 + $0x604] ss:$8 sps:$4 sm:$0xff]  }
 0x957   : > { %11651 = vmatprep.subr.bf16.mxu1 %v17236_v13  ;;  %v11958_v13 = vrot.slane %v18646_v15, 3 }
 0x95a   : > { %11652 = vmatpush1.bf16.msra.mxu1 %v17234_v16  ;;  %v11962_v16 = vrot.slane %v11949_v41, 3  ;;  %v17342_v41 = vld [vmem:[#allocation13 + $0x700] ss:$8 sps:$4 sm:$0xff]  }
 0x95b   : > { %11653 = vmatprep.subr.bf16.mxu1 %v17239_v17  ;;  %v11688_v17 = vsel %vm6174_vm10, %v11686_v59, %v11687_v8  ;;  %v17345_v59 = vld [vmem:[#allocation13 + $0x710] ss:$8 sps:$4 sm:$0xff]  }
 0x95e   : > { %11654 = vmatpush1.bf16.msra.mxu1 %v17237_v18  ;;  %v11693_v18 = vsel %vm6174_vm10, %v11687_v8, %v11692_v39 }
 0x95f   : > { %11655 = vmatprep.subr.bf16.mxu1 %v17242_v20  ;;  %v11959_v20 = vsel %vm994_vm9, %v11957_v9, %v11958_v13  ;;  %v14808_v32 = vpack.c.bf16 %v11693_v18, %v11688_v17  ;;  %v17351_v17 = vld [vmem:[#allocation13 + $0x730] ss:$8 sps:$4 sm:$0xff]   ;;  %v17356_v18 = vld [vmem:[#allocation13 + $0x744] ss:$8 sps:$4 sm:$0xff]  }
 0x962   : > { %11656 = vmatpush1.bf16.msra.mxu1 %v17240_v29  ;;  %v17294_v29 = vld [vmem:[#allocation13 + $0x600] ss:$8 sps:$4 sm:$0xff]  }
 0x963   : > { %11657 = vmatprep.subr.bf16.mxu1 %v17245_v21  ;;  %v11963_v21 = vsel %vm994_vm9, %v11958_v13, %v11962_v16  ;;  %v17348_v13 = vld [vmem:[#allocation13 + $0x720] ss:$8 sps:$4 sm:$0xff]   ;;  %v17353_v16 = vld [vmem:[#allocation13 + $0x734] ss:$8 sps:$4 sm:$0xff]  }
 0x964   : > { %v14843_v23 = vpack.c.bf16 %v11963_v21, %v11959_v20  ;;  %v17354_v20 = vld [vmem:[#allocation13 + $0x740] ss:$8 sps:$4 sm:$0xff]  }
 0x965   : > { %v17360_v21 = vld [vmem:[#allocation13 + $0x760] ss:$8 sps:$4 sm:$0xff]  }
 0x966   : > { %11658 = vmatpush1.bf16.msra.mxu1 %v17243_v24  ;;  %v17297_v24 = vld [vmem:[#allocation13 + $0x610] ss:$8 sps:$4 sm:$0xff]  }
 0x967   : > { %11899 = vmatprep.subr.bf16.mxu1 %v17248_v25  ;;  %v17302_v25 = vld [vmem:[#allocation13 + $0x624] ss:$8 sps:$4 sm:$0xff]  }
 0x969   : > { %11660 = vmatmul.mubr.bf16.vlgmr.msra.gmra.mrb[20].mxu1 %v11432_v35  ;;  %v17306_v35 = vld [vmem:[#allocation13 + $0x640] ss:$8 sps:$4 sm:$0xff]  }
 0x96a   : > { %11900 = vmatpush1.bf16.msra.mxu1 %v17246_v28  ;;  %14806 = vmatprep.mubr.msk.bf16.mxu1 %vm18260_vm3, %v14805_v40  ;;  %v17308_v28 = vld [vmem:[#allocation13 + $0x644] ss:$8 sps:$4 sm:$0xff]  }
 0x96b   : > { %11901 = vmatprep.subr.bf16.mxu1 %v17251_v1  ;;  %v17309_v1 = vld [vmem:[#allocation13 + $0x650] ss:$8 sps:$4 sm:$0xff]   ;;  %v17314_v40 = vld [vmem:[#allocation13 + $0x664] ss:$8 sps:$4 sm:$0xff]  }
 0x96e   : > { %11902 = vmatpush1.bf16.msra.mxu1 %v17249_v4  ;;  %v17312_v4 = vld [vmem:[#allocation13 + $0x660] ss:$8 sps:$4 sm:$0xff]  }
 0x96f   : > { %11903 = vmatprep.subr.bf16.mxu1 %v17254_v55  ;;  %v17317_v55 = vld [vmem:[#allocation13 + $0x674] ss:$8 sps:$4 sm:$0xff]  }
 0x972   : > { %11904 = vmatpush1.bf16.msra.mxu1 %v17252_v33  ;;  %v17315_v33 = vld [vmem:[#allocation13 + $0x670] ss:$8 sps:$4 sm:$0xff]  }
 0x973   : > { %11905 = vmatprep.subr.bf16.mxu1 %v17257_v42  ;;  %v17320_v42 = vld [vmem:[#allocation13 + $0x684] ss:$8 sps:$4 sm:$0xff]  }
 0x976   : > { %11906 = vmatpush1.bf16.msra.mxu1 %v17255_v53  ;;  %v17318_v53 = vld [vmem:[#allocation13 + $0x680] ss:$8 sps:$4 sm:$0xff]  }
 0x977   : > { %11907 = vmatprep.subr.bf16.mxu1 %v17260_v52  ;;  %v17323_v52 = vld [vmem:[#allocation13 + $0x694] ss:$8 sps:$4 sm:$0xff]  }
 0x97a   : > { %11908 = vmatpush1.bf16.msra.mxu1 %v17258_v61  ;;  %v17321_v61 = vld [vmem:[#allocation13 + $0x690] ss:$8 sps:$4 sm:$0xff]  }
 0x97b   : > { %11909 = vmatprep.subr.bf16.mxu1 %v17263_v43  ;;  %v17326_v43 = vld [vmem:[#allocation13 + $0x6a4] ss:$8 sps:$4 sm:$0xff]  }
 0x97e   : > { %11910 = vmatpush1.bf16.msra.mxu1 %v17261_v45  ;;  %v17324_v45 = vld [vmem:[#allocation13 + $0x6a0] ss:$8 sps:$4 sm:$0xff]  }
 0x97f   : > { %11911 = vmatprep.subr.bf16.mxu1 %v17266_v37  ;;  %v17329_v37 = vld [vmem:[#allocation13 + $0x6b4] ss:$8 sps:$4 sm:$0xff]  }
 0x982   : > { %11912 = vmatpush1.bf16.msra.mxu1 %v17264_v46  ;;  %v17327_v46 = vld [vmem:[#allocation13 + $0x6b0] ss:$8 sps:$4 sm:$0xff]  }
 0x983   : > { %11913 = vmatprep.subr.bf16.mxu1 %v17269_v48  ;;  %v17332_v48 = vld [vmem:[#allocation13 + $0x6c4] ss:$8 sps:$4 sm:$0xff]  }
 0x986   : > { %11914 = vmatpush1.bf16.msra.mxu1 %v17267_v34  ;;  %v17330_v34 = vld [vmem:[#allocation13 + $0x6c0] ss:$8 sps:$4 sm:$0xff]  }
 0x987   : > { %11915 = vmatprep.subr.bf16.mxu1 %v17272_v56  ;;  %v17335_v56 = vld [vmem:[#allocation13 + $0x6d4] ss:$8 sps:$4 sm:$0xff]  }
 0x98a   : > { %11916 = vmatpush1.bf16.msra.mxu1 %v17270_v49  ;;  %v17333_v49 = vld [vmem:[#allocation13 + $0x6d0] ss:$8 sps:$4 sm:$0xff]  }
 0x98b   : > { %11917 = vmatprep.subr.bf16.mxu1 %v17275_v6  ;;  %v17338_v6 = vld [vmem:[#allocation13 + $0x6e4] ss:$8 sps:$4 sm:$0xff]  }
 0x98e   : > { %11918 = vmatpush1.bf16.msra.mxu1 %v17273_v10  ;;  %v11948_v10 = vld [vmem:[#allocation3 + $0x30] sm:$0x7] }
 0x98f   : > { %11919 = vmatprep.subr.bf16.mxu1 %v17278_v0  ;;  %v17336_v0 = vld [vmem:[#allocation13 + $0x6e0] ss:$8 sps:$4 sm:$0xff]  }
 0x992   : > { %11920 = vmatpush1.bf16.msra.mxu1 %v17276_v38  ;;  %v12215_v38 = vld [vmem:[#allocation3 + $0x18] sm:$0xf0] }
 0x993   : > { %11921 = vmatprep.subr.bf16.mxu1 %v17281_v50  ;;  %v12217_v50 = vld [vmem:[#allocation3 + $0x38] sm:$0xf] }
 0x996   : > { %11922 = vmatpush1.bf16.msra.mxu1 %v17279_v51  ;;  %v17341_v51 = vld [vmem:[#allocation13 + $0x6f4] ss:$8 sps:$4 sm:$0xff]  }
 0x997   : > { %11923 = vmatprep.subr.bf16.mxu1 %v17284_v57  ;;  %v11946_v57 = vld [vmem:[#allocation3 + $0x10] sm:$0xf8] }
 0x99a   : > { %11924 = vmatpush1.bf16.msra.mxu1 %v17282_v47  ;;  %v11955_v47 = vrot.slane %v18695_v62, 3 }
 0x99b   : > { %11925 = vmatprep.subr.bf16.mxu1 %v17287_v44  ;;  %v11960_v44 = vrot.slane %v11948_v10, 3 }
 0x99d   : > { %v11961_v2 = vsel %vm994_vm9, %v11955_v47, %v11960_v44 }
 0x99e   : > { %11926 = vmatpush1.bf16.msra.mxu1 %v17285_v11  ;;  %v12219_v11 = vpack.c.bf16 %v18646_v15, %v12215_v38 }
 0x99f   : > { %11927 = vmatprep.subr.bf16.mxu1 %v17290_v54  ;;  %v12221_v54 = vpack.c.bf16 %v12217_v50, %v12217_v50 }
 0x9a0   : > { %v12262_v8 = vrot.slane %v12219_v11, 2 }
 0x9a1   : > { %v12263_v39 = vrot.slane %v12221_v54, 2  ;;  %v17393_v54 = vld [vmem:[#allocation13 + $0x810] ss:$8 sps:$4 sm:$0xff]  }
 0x9a2   : > { %11928 = vmatpush1.bf16.msra.mxu1 %v17288_v60  ;;  %v11954_v60 = vrot.slane %v11946_v57, 3 }
 0x9a3   : > { %11929 = vmatprep.subr.bf16.mxu1 %v17293_v3  ;;  %v12264_v15 = vsel %vm1380_vm6, %v12262_v8, %v12263_v39  ;;  %v17402_v8 = vld [vmem:[#allocation13 + $0x840] ss:$8 sps:$4 sm:$0xff]   ;;  %v17407_v39 = vld [vmem:[#allocation13 + $0x854] ss:$8 sps:$4 sm:$0xff]  }
 0x9a4   : > { %v11956_v3 = vsel %vm994_vm9, %v11954_v60, %v11955_v47  ;;  %v17395_v47 = vld [vmem:[#allocation13 + $0x814] ss:$8 sps:$4 sm:$0xff]   ;;  %v17396_v60 = vld [vmem:[#allocation13 + $0x820] ss:$8 sps:$4 sm:$0xff]  }
 0x9a5   : > { %v14846_v9 = vpack.c.bf16 %v11961_v2, %v11956_v3  ;;  %v17399_v3 = vld [vmem:[#allocation13 + $0x830] ss:$8 sps:$4 sm:$0xff]   ;;  %v17404_v2 = vld [vmem:[#allocation13 + $0x844] ss:$8 sps:$4 sm:$0xff]  }
 0x9a6   : > { %11930 = vmatpush1.bf16.msra.mxu1 %v17291_v7  ;;  %v17347_v7 = vld [vmem:[#allocation13 + $0x714] ss:$8 sps:$4 sm:$0xff]  }
 0x9a7   : > { %12167 = vmatprep.subr.bf16.mxu1 %v17296_v12  ;;  %v17350_v12 = vld [vmem:[#allocation13 + $0x724] ss:$8 sps:$4 sm:$0xff]  }
 0x9a9   : > { %14809 = vmatmul.mubr.msk.bf16.vlgmr.msra.gmra.mrb[20].mxu1 %vm18260_vm3, %v14808_v32  ;;  %v17362_v32 = vld [vmem:[#allocation13 + $0x764] ss:$8 sps:$4 sm:$0xff]  }
 0x9aa   : > { %12168 = vmatpush1.bf16.msra.mxu1 %v17294_v29  ;;  %14844 = vmatprep.mubr.msk.bf16.mxu1 %vm18332_vm8, %v14843_v23  ;;  %v17357_v29 = vld [vmem:[#allocation13 + $0x750] ss:$8 sps:$4 sm:$0xff]  }
 0x9ab   : > { %12169 = vmatprep.subr.bf16.mxu1 %v17299_v22  ;;  %v17365_v22 = vld [vmem:[#allocation13 + $0x774] ss:$8 sps:$4 sm:$0xff]   ;;  %v17363_v23 = vld [vmem:[#allocation13 + $0x770] ss:$8 sps:$4 sm:$0xff]  }
 0x9ae   : > { %12170 = vmatpush1.bf16.msra.mxu1 %v17297_v24  ;;  %v17368_v24 = vld [vmem:[#allocation13 + $0x784] ss:$8 sps:$4 sm:$0xff]  }
 0x9af   : > { %12171 = vmatprep.subr.bf16.mxu1 %v17302_v25  ;;  %v17366_v25 = vld [vmem:[#allocation13 + $0x780] ss:$8 sps:$4 sm:$0xff]  }
 0x9b2   : > { %12172 = vmatpush1.bf16.msra.mxu1 %v17300_v26  ;;  %v17371_v26 = vld [vmem:[#allocation13 + $0x794] ss:$8 sps:$4 sm:$0xff]  }
 0x9b3   : > { %12173 = vmatprep.subr.bf16.mxu1 %v17305_v19  ;;  %v17369_v19 = vld [vmem:[#allocation13 + $0x790] ss:$8 sps:$4 sm:$0xff]  }
 0x9b6   : > { %12174 = vmatpush1.bf16.msra.mxu1 %v17303_v27  ;;  %v17374_v27 = vld [vmem:[#allocation13 + $0x7a4] ss:$8 sps:$4 sm:$0xff]  }
 0x9b7   : > { %12175 = vmatprep.subr.bf16.mxu1 %v17308_v28  ;;  %v17372_v28 = vld [vmem:[#allocation13 + $0x7a0] ss:$8 sps:$4 sm:$0xff]  }
 0x9ba   : > { %12176 = vmatpush1.bf16.msra.mxu1 %v17306_v35  ;;  %v17377_v35 = vld [vmem:[#allocation13 + $0x7b4] ss:$8 sps:$4 sm:$0xff]  }
 0x9bb   : > { %12177 = vmatprep.subr.bf16.mxu1 %v17311_v36  ;;  %v17375_v36 = vld [vmem:[#allocation13 + $0x7b0] ss:$8 sps:$4 sm:$0xff]  }
 0x9be   : > { %12178 = vmatpush1.bf16.msra.mxu1 %v17309_v1  ;;  %v17380_v1 = vld [vmem:[#allocation13 + $0x7c4] ss:$8 sps:$4 sm:$0xff]  }
 0x9bf   : > { %12179 = vmatprep.subr.bf16.mxu1 %v17314_v40  ;;  %v17378_v40 = vld [vmem:[#allocation13 + $0x7c0] ss:$8 sps:$4 sm:$0xff]  }
 0x9c2   : > { %12180 = vmatpush1.bf16.msra.mxu1 %v17312_v4  ;;  %v17383_v4 = vld [vmem:[#allocation13 + $0x7d4] ss:$8 sps:$4 sm:$0xff]  }
 0x9c3   : > { %12181 = vmatprep.subr.bf16.mxu1 %v17317_v55  ;;  %v17381_v55 = vld [vmem:[#allocation13 + $0x7d0] ss:$8 sps:$4 sm:$0xff]  }
 0x9c6   : > { %12182 = vmatpush1.bf16.msra.mxu1 %v17315_v33  ;;  %v17386_v33 = vld [vmem:[#allocation13 + $0x7e4] ss:$8 sps:$4 sm:$0xff]  }
 0x9c7   : > { %12183 = vmatprep.subr.bf16.mxu1 %v17320_v42  ;;  %v12216_v42 = vld [vmem:[#allocation3 + $0x30] sm:$0xf] }
 0x9ca   : > { %12184 = vmatpush1.bf16.msra.mxu1 %v17318_v53  ;;  %v17384_v53 = vld [vmem:[#allocation13 + $0x7e0] ss:$8 sps:$4 sm:$0xff]  }
 0x9cb   : > { %12185 = vmatprep.subr.bf16.mxu1 %v17323_v52  ;;  %v12475_v52 = vld [vmem:[#allocation3 + $0x18] sm:$0xe0] }
 0x9ce   : > { %12186 = vmatpush1.bf16.msra.mxu1 %v17321_v61  ;;  %v17389_v61 = vld [vmem:[#allocation13 + $0x7f4] ss:$8 sps:$4 sm:$0xff]  }
 0x9cf   : > { %12187 = vmatprep.subr.bf16.mxu1 %v17326_v43  ;;  %v12214_v43 = vld [vmem:[#allocation3 + $0x10] sm:$0xf0] }
 0x9d2   : > { %12188 = vmatpush1.bf16.msra.mxu1 %v17324_v45  ;;  %v12218_v45 = vpack.c.bf16 %v18695_v62, %v12214_v43  ;;  %v17445_v43 = vld [vmem:[%s18921_s7 + $0x18] sm:$0xff]  }
 0x9d3   : > { %12189 = vmatprep.subr.bf16.mxu1 %v17329_v37  ;;  %v12220_v37 = vpack.c.bf16 %v12216_v42, %v12216_v42 }
 0x9d5   : > { %v12260_v38 = vrot.slane %v12220_v37, 2  ;;  %v17447_v37 = vld [vmem:[%s18921_s7 + $0x20] sm:$0xff]  }
 0x9d6   : > { %12190 = vmatpush1.bf16.msra.mxu1 %v17327_v46  ;;  %v12477_v46 = vld [vmem:[#allocation3 + $0x38] sm:$0x1f] }
 0x9d7   : > { %12191 = vmatprep.subr.bf16.mxu1 %v17332_v48  ;;  %v12485_v48 = vrot.slane %v12475_v52, 5  ;;  %v12490_v10 = vrot.slane %v12477_v46, 5  ;;  %v17442_v52 = vld [vmem:[%s18921_s7 + $0x50] sm:$0xff]   ;;  %v17448_v46 = vld [vmem:[%s18921_s7 + $0x68] sm:$0xff]  }
 0x9da   : > { %12192 = vmatpush1.bf16.msra.mxu1 %v17330_v34  ;;  %v17387_v34 = vld [vmem:[#allocation13 + $0x7f0] ss:$8 sps:$4 sm:$0xff]  }
 0x9db   : > { %12193 = vmatprep.subr.bf16.mxu1 %v17335_v56  ;;  %v17392_v56 = vld [vmem:[#allocation13 + $0x804] ss:$8 sps:$4 sm:$0xff]  }
 0x9de   : > { %12194 = vmatpush1.bf16.msra.mxu1 %v17333_v49  ;;  %v17494_v49 = vld [vmem:[#allocation3 + $0x28] sm:$0xff] }
 0x9df   : > { %12195 = vmatprep.subr.bf16.mxu1 %v17338_v6  ;;  %v12486_v6 = vrot.slane %v17494_v49, 5  ;;  %v17452_v49 = vld [vmem:[%s18921_s7 + $0x78] sm:$0xff]  }
 0x9e1   : > { %v12487_v50 = vsel %vm3081_vm11, %v12485_v48, %v12486_v6  ;;  %v12491_v57 = vsel %vm3081_vm11, %v12486_v6, %v12490_v10  ;;  %v17449_v48 = vld [vmem:[%s18921_s7 + $0x28] sm:$0xff]   ;;  %v17453_v6 = vld [vmem:[%s18921_s7 + $0x38] sm:$0xff]   ;;  %v12996_v10 = vld [vmem:[%s18972_s1] sm:$0xff] }
 0x9e2   : > { %12196 = vmatpush1.bf16.msra.mxu1 %v17336_v0  ;;  %v12259_v0 = vrot.slane %v12218_v45, 2  ;;  %v14913_v11 = vpack.c.bf16 %v12491_v57, %v12487_v50  ;;  %v17446_v45 = vld [vmem:[%s18921_s7 + $0x60] sm:$0xff]   ;;  %13000 = vperm.xlu1 %15276, %v12996_v10   ;;  %v12971_v50 = vld [vmem:[%s18973_s30 + $0x8] sm:$0xff] }
 0x9e3   : > { %12197 = vmatprep.subr.bf16.mxu1 %v17341_v51  ;;  %v17390_v51 = vld [vmem:[#allocation13 + $0x800] ss:$8 sps:$4 sm:$0xff]  }
 0x9e4   : > { %v12261_v44 = vsel %vm1380_vm6, %v12259_v0, %v12260_v38  ;;  %v12970_v0 = vld [vmem:[%s18973_s30] sm:$0xff]  ;;  %v12997_v38 = vld [vmem:[%s18972_s1 + $0x8] sm:$0xff] }
 0x9e5   : > { %12974 = vperm.xlu0 %15275, %v12970_v0  }
 0x9e6   : > { %12198 = vmatpush1.bf16.msra.mxu1 %v17339_v58  ;;  %v17398_v58 = vld [vmem:[#allocation13 + $0x824] ss:$8 sps:$4 sm:$0xff]   ;;  %13005 = vperm.xlu1 %15276, %v12997_v38  }
 0x9e7   : > { %12427 = vmatprep.subr.bf16.mxu1 %v17344_v63  ;;  %v17401_v63 = vld [vmem:[#allocation13 + $0x834] ss:$8 sps:$4 sm:$0xff]  }
 0x9e9   : > { %14847 = vmatmul.mubr.msk.bf16.vlgmr.msra.gmra.mrb[20].mxu1 %vm18332_vm8, %v14846_v9  ;;  %v17410_v9 = vld [vmem:[#allocation13 + $0x864] ss:$8 sps:$4 sm:$0xff]   ;;  %12979 = vperm.xlu0 %15275, %v12971_v50  }
 0x9ea   : > { %12428 = vmatpush1.bf16.msra.mxu1 %v17342_v41  ;;  %12459 = vmatprep.mubr.bf16.mxu1 %v12264_v15  ;;  %v17405_v41 = vld [vmem:[#allocation13 + $0x850] ss:$8 sps:$4 sm:$0xff]   ;;  %v17413_v15 = vld [vmem:[#allocation13 + $0x874] ss:$8 sps:$4 sm:$0xff]  }
 0x9eb   : > { %12429 = vmatprep.subr.bf16.mxu1 %v17347_v7  ;;  %v17408_v7 = vld [vmem:[#allocation13 + $0x860] ss:$8 sps:$4 sm:$0xff]  }
 0x9ee   : > { %12430 = vmatpush1.bf16.msra.mxu1 %v17345_v59  ;;  %v17411_v59 = vld [vmem:[#allocation13 + $0x870] ss:$8 sps:$4 sm:$0xff]  }
 0x9ef   : > { %12431 = vmatprep.subr.bf16.mxu1 %v17350_v12  ;;  %v17416_v12 = vld [vmem:[#allocation13 + $0x884] ss:$8 sps:$4 sm:$0xff]  }
 0x9f2   : > { %12432 = vmatpush1.bf16.msra.mxu1 %v17348_v13  ;;  %v17414_v13 = vld [vmem:[#allocation13 + $0x880] ss:$8 sps:$4 sm:$0xff]  }
 0x9f3   : > { %12433 = vmatprep.subr.bf16.mxu1 %v17353_v16  ;;  %v17419_v16 = vld [vmem:[#allocation13 + $0x894] ss:$8 sps:$4 sm:$0xff]  }
 0x9f6   : > { %12434 = vmatpush1.bf16.msra.mxu1 %v17351_v17  ;;  %v17417_v17 = vld [vmem:[#allocation13 + $0x890] ss:$8 sps:$4 sm:$0xff]  }
 0x9f7   : > { %12435 = vmatprep.subr.bf16.mxu1 %v17356_v18  ;;  %v17422_v18 = vld [vmem:[#allocation13 + $0x8a4] ss:$8 sps:$4 sm:$0xff]  }
 0x9fa   : > { %12436 = vmatpush1.bf16.msra.mxu1 %v17354_v20  ;;  %v17420_v20 = vld [vmem:[#allocation13 + $0x8a0] ss:$8 sps:$4 sm:$0xff]  }
 0x9fb   : > { %12437 = vmatprep.subr.bf16.mxu1 %v17359_v5  ;;  %v17425_v5 = vld [vmem:[#allocation13 + $0x8b4] ss:$8 sps:$4 sm:$0xff]  }
 0x9fe   : > { %12438 = vmatpush1.bf16.msra.mxu1 %v17357_v29  ;;  %v17423_v29 = vld [vmem:[#allocation13 + $0x8b0] ss:$8 sps:$4 sm:$0xff]  }
 0x9ff   : > { %12439 = vmatprep.subr.bf16.mxu1 %v17362_v32  ;;  %v17428_v32 = vld [vmem:[#allocation13 + $0x8c4] ss:$8 sps:$4 sm:$0xff]  }
 0xa02   : > { %12440 = vmatpush1.bf16.msra.mxu1 %v17360_v21  ;;  %v17426_v21 = vld [vmem:[#allocation13 + $0x8c0] ss:$8 sps:$4 sm:$0xff]  }
 0xa03   : > { %12441 = vmatprep.subr.bf16.mxu1 %v17365_v22  ;;  %v17431_v22 = vld [vmem:[#allocation13 + $0x8d4] ss:$8 sps:$4 sm:$0xff]  }
 0xa06   : > { %12442 = vmatpush1.bf16.msra.mxu1 %v17363_v23  ;;  %v17429_v23 = vld [vmem:[#allocation13 + $0x8d0] ss:$8 sps:$4 sm:$0xff]  }
 0xa07   : > { %12443 = vmatprep.subr.bf16.mxu1 %v17368_v24  ;;  %v17434_v24 = vld [vmem:[#allocation13 + $0x8e4] ss:$8 sps:$4 sm:$0xff]  }
 0xa0a   : > { %12444 = vmatpush1.bf16.msra.mxu1 %v17366_v25  ;;  %v12476_v25 = vld [vmem:[#allocation3 + $0x30] sm:$0x1f] }
 0xa0b   : > { %12445 = vmatprep.subr.bf16.mxu1 %v17371_v26  ;;  %v17432_v26 = vld [vmem:[#allocation13 + $0x8e0] ss:$8 sps:$4 sm:$0xff]  }
 0xa0e   : > { %12446 = vmatpush1.bf16.msra.mxu1 %v17369_v19  ;;  %v17437_v19 = vld [vmem:[#allocation13 + $0x8f4] ss:$8 sps:$4 sm:$0xff]  }
 0xa0f   : > { %12447 = vmatprep.subr.bf16.mxu1 %v17374_v27  ;;  %v12474_v27 = vld [vmem:[#allocation3 + $0x10] sm:$0xe0] }
 0xa12   : > { %12448 = vmatpush1.bf16.msra.mxu1 %v17372_v28  ;;  %v12483_v28 = vrot.slane %v18695_v62, 5  ;;  %v17440_v62 = vld [vmem:[%s18921_s7 + $0x48] sm:$0xff]  }
 0xa13   : > { %12449 = vmatprep.subr.bf16.mxu1 %v17377_v35  ;;  %v12488_v35 = vrot.slane %v12476_v25, 5 }
 0xa16   : > { %12450 = vmatpush1.bf16.msra.mxu1 %v17375_v36  ;;  %v17435_v36 = vld [vmem:[#allocation13 + $0x8f0] ss:$8 sps:$4 sm:$0xff]  }
 0xa17   : > { %12451 = vmatprep.subr.bf16.mxu1 %v17380_v1  ;;  %v12482_v1 = vrot.slane %v12474_v27, 5 }
 0xa1a   : > { %12452 = vmatpush1.bf16.msra.mxu1 %v17378_v40  ;;  %v17438_v40 = vld [vmem:[%s18921_s7 + $0x40] sm:$0xff]  }
 0xa1b   : > { %12453 = vmatprep.subr.bf16.mxu1 %v17383_v4  ;;  %v12484_v4 = vsel %vm3081_vm11, %v12482_v1, %v12483_v28 }
 0xa1e   : > { %12454 = vmatpush1.bf16.msra.mxu1 %v17381_v55  ;;  %v12489_v55 = vsel %vm3081_vm11, %v12483_v28, %v12488_v35 }
 0xa1f   : > { %12455 = vmatprep.subr.bf16.mxu1 %v17386_v33  ;;  %v17439_v33 = vld [vmem:[%s18921_s7] sm:$0xff]   ;;  %v14916_v42 = vpack.c.bf16 %v12489_v55, %v12484_v4 }
 0xa22   : > { %12456 = vmatpush1.bf16.msra.mxu1 %v17384_v53  ;;  %v17441_v53 = vld [vmem:[%s18921_s7 + $0x8] sm:$0xff]  }
 0xa23   : > { %12457 = vmatprep.subr.bf16.mxu1 %v17389_v61  ;;  %v17443_v61 = vld [vmem:[%s18921_s7 + $0x10] sm:$0xff]  }
 0xa26   : > { %12458 = vmatpush1.bf16.msra.mxu1 %v17387_v34  ;;  %v17450_v34 = vld [vmem:[%s18921_s7 + $0x70] sm:$0xff]  }
 0xa27   : > { %12695 = vmatprep.subr.bf16.mxu1 %v17392_v56  ;;  %v17451_v56 = vld [vmem:[%s18921_s7 + $0x30] sm:$0xff]  }
 0xa29   : > { %12460 = vmatmul.mubr.bf16.vlgmr.msra.gmra.mrb[20].mxu1 %v12261_v44 }
 0xa2a   : > { %12696 = vmatpush1.bf16.msra.mxu1 %v17390_v51  ;;  %14914 = vmatprep.mubr.msk.bf16.mxu1 %vm18260_vm3, %v14913_v11  ;;  %v12742_v51 = vld [vmem:[#allocation15] sm:$0x3] }
 0xa2b   : > { %12697 = vmatprep.subr.bf16.mxu1 %v17395_v47  ;;  %v12747_v57 = vrot.slane %v12742_v51, %v18267_v30  ;;  %v12751_v47 = vrot.slane %v12742_v51, %v18270_v31  ;;  %v14918_v31 = vld [vmem:[#allocation16] ss:$0 sm:$0xff] }
 0xa2e   : > { %12698 = vmatpush1.bf16.msra.mxu1 %v17393_v54 }
 0xa2f   : > { %12699 = vmatprep.subr.bf16.mxu1 %v17398_v58 }
 0xa32   : > { %12700 = vmatpush1.bf16.msra.mxu1 %v17396_v60 }
 0xa33   : > { %12701 = vmatprep.subr.bf16.mxu1 %v17401_v63 }
 0xa36   : > { %12702 = vmatpush1.bf16.msra.mxu1 %v17399_v3 }
 0xa37   : > { %12703 = vmatprep.subr.bf16.mxu1 %v17404_v2 }
 0xa3a   : > { %12704 = vmatpush1.bf16.msra.mxu1 %v17402_v8 }
 0xa3b   : > { %12705 = vmatprep.subr.bf16.mxu1 %v17407_v39 }
 0xa3e   : > { %12706 = vmatpush1.bf16.msra.mxu1 %v17405_v41 }
 0xa3f   : > { %12707 = vmatprep.subr.bf16.mxu1 %v17410_v9 }
 0xa42   : > { %12708 = vmatpush1.bf16.msra.mxu1 %v17408_v7 }
 0xa43   : > { %12709 = vmatprep.subr.bf16.mxu1 %v17413_v15 }
 0xa46   : > { %12710 = vmatpush1.bf16.msra.mxu1 %v17411_v59 }
 0xa47   : > { %12711 = vmatprep.subr.bf16.mxu1 %v17416_v12 }
 0xa4a   : > { %12712 = vmatpush1.bf16.msra.mxu1 %v17414_v13 }
 0xa4b   : > { %12713 = vmatprep.subr.bf16.mxu1 %v17419_v16 }
 0xa4e   : > { %12714 = vmatpush1.bf16.msra.mxu1 %v17417_v17 }
 0xa4f   : > { %12715 = vmatprep.subr.bf16.mxu1 %v17422_v18 }
 0xa52   : > { %12716 = vmatpush1.bf16.msra.mxu1 %v17420_v20 }
 0xa53   : > { %12717 = vmatprep.subr.bf16.mxu1 %v17425_v5 }
 0xa56   : > { %12718 = vmatpush1.bf16.msra.mxu1 %v17423_v29 }
 0xa57   : > { %12719 = vmatprep.subr.bf16.mxu1 %v17428_v32 }
 0xa5a   : > { %12720 = vmatpush1.bf16.msra.mxu1 %v17426_v21 }
 0xa5b   : > { %12721 = vmatprep.subr.bf16.mxu1 %v17431_v22 }
 0xa5e   : > { %12722 = vmatpush1.bf16.msra.mxu1 %v17429_v23 }
 0xa5f   : > { %12723 = vmatprep.subr.bf16.mxu1 %v17434_v24 }
 0xa62   : > { %12724 = vmatpush1.bf16.msra.mxu1 %v17432_v26 }
 0xa63   : > { %12725 = vmatprep.subr.bf16.mxu1 %v17437_v19 }
 0xa66   : > { %12726 = vmatpush1.bf16.msra.mxu1 %v17435_v36 }
 0xa67   : > { %14944 = vmatprep.subr.bf16.mxu1 %v17438_v40 }
 0xa69   : > { %14917 = vmatmul.mubr.msk.bf16.vlgmr.msra.gmra.mrb[20].mxu1 %vm18260_vm3, %v14916_v42 }
 0xa6a   : > { %14945 = vmatpush3.bf16.msra.mxu1 %v17439_v33 }
 0xa6b   : > { %14946 = vmatprep.subr.bf16.mxu1 %v17440_v62 }
 0xa6e   : > { %14947 = vmatpush3.bf16.msra.mxu1 %v17441_v53 }
 0xa6f   : > { %14948 = vmatprep.subr.bf16.mxu1 %v17442_v52 }
 0xa72   : > { %14949 = vmatpush3.bf16.msra.mxu1 %v17443_v61 }
 0xa73   : > { %14950 = vmatprep.subr.bf16.mxu1 %v17444_v14 }
 0xa76   : > { %14951 = vmatpush3.bf16.msra.mxu1 %v17445_v43 }
 0xa77   : > { %14952 = vmatprep.subr.bf16.mxu1 %v17446_v45 }
 0xa7a   : > { %14953 = vmatpush3.bf16.msra.mxu1 %v17447_v37 }
 0xa7b   : > { %14954 = vmatprep.subr.bf16.mxu1 %v17448_v46 }
 0xa7e   : > { %14955 = vmatpush3.bf16.msra.mxu1 %v17449_v48 }
 0xa7f   : > { %14956 = vmatprep.subr.bf16.mxu1 %v17450_v34 }
 0xa82   : > { %14957 = vmatpush3.bf16.msra.mxu1 %v17451_v56 }
 0xa83   : > { %14958 = vmatprep.subr.bf16.mxu1 %v17452_v49 }
 0xa86   : > { %14959 = vmatpush3.bf16.msra.mxu1 %v17453_v6 }
 0xb3c   : > { %v12729_v44 = vpop.f32.mrb[20].mxu1 }
 0xb3d   : > { %v12754_v11 = vadd.f32 %v12747_v57, %v12729_v44  ;;  %v12731_v54 = vpop.f32.mrb[21].mxu1 }
 0xb3e   : > { %v12755_v58 = vadd.f32 %v12751_v47, %v12731_v54  ;;  %v12733_v60 = vpop.f32.mrb[22].mxu1 }
 0xb3f   : > { %v12756_v63 = vadd.f32 %v12747_v57, %v12733_v60  ;;  %v12735_v3 = vpop.f32.mrb[23].mxu1  ;;  %v12758_v8 = vmax.f32 %v12754_v11, 0.0 }
 0xb40   : > { %v12757_v2 = vadd.f32 %v12751_v47, %v12735_v3  ;;  %v12759_v41 = vmax.f32 %v12755_v58, 0.0 }
 0xb41   : > { %v12760_v39 = vmax.f32 %v12756_v63, 0.0 }
 0xb42   : > { %v12761_v9 = vmax.f32 %v12757_v2, 0.0 }
 0xb43   : > { %v12762_v7 = vpack.c.bf16 %v12760_v39, %v12758_v8 }
 0xb44   : > { %v12763_v15 = vpack.c.bf16 %v12761_v9, %v12759_v41 }
 0xb46   : > { %12931 = vmatprep.mubr.bf16.mxu1 %v12763_v15 }
 0xb47   : > { %12932 = vmatmul.mubr.bf16.vlgmr.msra.gmra.mrb[24].mxu1 %v12762_v7 }
 0xc1a   : > { %v14960_v30 = vpop.f32.mrb[24].mxu1 }
 0xc1b   : > { %v14961_v59 = vpop.f32.mrb[25].mxu1 }
 0xc1c   : > { %v14962_v12 = vadd.f32 %v14961_v59, %v14960_v30  ;;  %v14963_v13 = vpop.f32.mrb[26].mxu1 }
 0xc1d   : > { %v14964_v16 = vpop.f32.mrb[27].mxu1 }
 0xc1e   : > { %v12934_v17 = vadd.f32 %v14962_v12, %v14918_v31  ;;  %v14965_v18 = vadd.f32 %v14964_v16, %v14963_v13 }
 0xc20   : > { %12940 = vst.msk [vmem:[%s556_s12] sm:$0xff] %vm667_vm0, %v12934_v17  ;;  %v12937_v20 = vadd.f32 %v14965_v18, %v14918_v31  ;;  %v12942_v5 = vsel %vm667_vm0, %v12934_v17, -inf }
 0xc22   : > { %12941 = vst.msk [vmem:[%s556_s12 + $0x8] sm:$0xff] %vm667_vm0, %v12937_v20  ;;  %v12943_v29 = vsel %vm667_vm0, %v12937_v20, -inf }
 0xc23   : > { %v12944_v32 = vmax.f32 %v12942_v5, %v12943_v29 }
 0xc24   : > { %17734 = shalt.err (!%p17731_p9)
}
 0xc25   : > { %s17735_s12 = scalar_lea.hbm %s18792_s29, 256  ;;  %s17739_s13 = scalar_lea.hbm %s18974_s24, 512 }
 0xc26   : > { %p17736_p4 = scmp.ne.s32.totalorder %s18792_s29, %s17735_s12  ;;  %p17740_p5 = scmp.lt.u32.totalorder %s18792_s29, %s18974_s24 }
 0xc27   : > { %p17741_p2 = scmp.lt.u32.totalorder %s17739_s13, %s17735_s12  ;;  %p17743_p10 = scmp.lt.u32.totalorder %s17735_s12, %s18792_s29 }
 0xc28   : > { %p17737_p3 = pnand %p17736_p4, %p18975_p1 }
 0xc29   : > { %p17742_p7 = por %p17741_p2, %p17740_p5 }
 0xc2a   : > { %p17738_p0 = pneg %p17737_p3 }
 0xc2b   : > { %p17744_p11 = por %p17743_p10, %p17742_p7 }
 0xc2d   : > { %p17745_p12 = pnand %p17744_p11, %p17738_p0 }
 0xc2f   : > { %17748 = shalt.err (!%p17745_p12)
}
 0xc30   : > { %s17882_s23 = smov 128   ;;  %s17883_s11 = smov 8   ;;  %v12945_v21 = vrot.slane %v12944_v32, 4  ;;  %v13001_v36 = vpop.permute.xlu1 %13000  ;;  %v12975_v1 = vpop.permute.xlu0 %12974  ;;  %vm12994_vm12 = vcmask 122880  }
 0xc31   : > { %s18976_s0 = scalar_lea.sflag [#allocation6], %s18221_s20  ;;  %s14938_s18 = sshll.u32 %s17977_s14, 4 }
 0xc32   : > { %15168 = dma.vmem_to_hbm [thread:$0]  (%p18975_p1), %s18794_s17, 256, %s18792_s29, %s18976_s0, %s17882_s23, %s17882_s23, %s17883_s11   ;;  %v12946_v22 = vmax.f32 %v12944_v32, %v12945_v21 }
 0xc33   : > { %s13026_s0 = sand.u32 1, %s17977_s14   ;;  %s562_s17 = scalar_lea.vmem [#allocation19], %s18221_s20 }
 0xc34   : > { %v12947_v23 = vrot.slane %v12946_v22, 2  ;;  %v13006_v40 = vpop.permute.xlu1 %13005  ;;  %v12980_v4 = vpop.permute.xlu0 %12979  ;;  %s13059_s29 = sshll.u32 %s562_s17, 4  ;;  %s568_s19 = scalar_lea.vmem [#allocation21], %s18221_s20  ;;  %s18839_s29 = int_to_ptr.vmem [resolvable:$true] %s13059_s29 }
 0xc35   : > { %s13072_s12 = sshll.u32 %s568_s19, 4  ;;  %s18977_s21 = sld [smem:[#allocation36_spill]]  ;;  %s18846_s12 = int_to_ptr.vmem [resolvable:$true] %s13072_s12 }
 0xc36   : > { %v12948_v24 = vmax.f32 %v12946_v22, %v12947_v23  ;;  %s18978_s1 = sld [smem:[#allocation37_spill]]  ;;  %s18848_s20 = scalar_lea.sflag [#allocation20], %s13026_s0 }
 0xc37   : > { %s17749_s3 = scalar_lea.vmem %s18839_s29, 16  ;;  %s17884_s15 = smov [#allocation19]  }
 0xc38   : > { %v12949_v25 = vrot.slane %v12948_v24, 1  ;;  %p17750_p13 = scmp.ne.s32.totalorder %s18839_s29, %s17749_s3  ;;  %s17753_s13 = sshll.u32 %s17884_s15, 4  ;;  %s17754_s13 = int_to_ptr.vmem [resolvable:$false] %s17753_s13 }
 0xc39   : > { %s17755_s11 = scalar_lea.vmem %s17754_s13, 32  ;;  %p17756_p9 = scmp.lt.s32.totalorder %s18839_s29, %s17754_s13 }
 0xc3a   : > { %v12950_v26 = vmax.f32 %v12948_v24, %v12949_v25  ;;  %p17751_p8 = pnand %p17750_p13, %p18975_p1  ;;  %p17757_p4 = scmp.lt.s32.totalorder %s17755_s11, %s17749_s3 }
 0xc3b   : > { %s18837_s23 = scalar_lea.hbm %s18977_s21, %s14938_s18 }
 0xc3c   : > { %v12951_v19 = vsub.f32 %v12934_v17, %v12950_v26  ;;  %v12952_v27 = vsub.f32 %v12937_v20, %v12950_v26  ;;  %s18844_s2 = scalar_lea.hbm %s18978_s1, %s14938_s18  ;;  %p17752_p6 = pneg %p17751_p8 }
 0xc3d   : > { %p17758_p3 = por %p17757_p4, %p17756_p9 }
 0xc3e   : > { %v12953_v28 = vmul.f32 1.442695, %v12951_v19  ;;  %v12955_v35 = vmul.f32 1.442695, %v12952_v27 }
 0xc3f   : > { %p17759_p0 = pnand %p17758_p3, %p17752_p6 }
 0xc40   : > { %17454 = vpow2.f32 %v12953_v28 }
 0xc41   : > { %17456 = vpow2.f32 %v12955_v35 }
 0xc4a   : > { %v17455_v55 = vpop.eup %17454 }
 0xc4b   : > { %v17457_v33 = vpop.eup %17456  ;;  %v13008_v42 = vmul.f32 %v17455_v55, %v13001_v36  ;;  %v12982_v62 = vmul.f32 %v17455_v55, %v12975_v1  ;;  %v12957_v53 = vsel %vm667_vm0, %v17455_v55, 0.0 }
 0xc4c   : > { %v12958_v52 = vsel %vm667_vm0, %v17457_v33, 0.0  ;;  %v13009_v61 = vmul.f32 %v17457_v33, %v13006_v40  ;;  %v12983_v14 = vmul.f32 %v17457_v33, %v12980_v4 }
 0xc4d   : > { %v13010_v43 = vsel %vm667_vm0, %v13008_v42, 0.0  ;;  %v12984_v45 = vsel %vm667_vm0, %v12982_v62, 0.0  ;;  %v12959_v37 = vadd.f32 %v12958_v52, %v12957_v53 }
 0xc4e   : > { %v13011_v46 = vsel %vm667_vm0, %v13009_v61, 0.0  ;;  %v12985_v48 = vsel %vm667_vm0, %v12983_v14, 0.0 }
 0xc4f   : > { %v12960_v34 = vrot.slane %v12959_v37, 4  ;;  %v13012_v56 = vadd.f32 %v13011_v46, %v13010_v43  ;;  %v12986_v49 = vadd.f32 %v12985_v48, %v12984_v45 }
 0xc51   : > { %v12961_v6 = vadd.f32 %v12960_v34, %v12959_v37  ;;  %v13013_v38 = vrot.slane %v13012_v56, 4  ;;  %v12987_v50 = vrot.slane %v12986_v49, 4 }
 0xc53   : > { %v12962_v10 = vrot.slane %v12961_v6, 2  ;;  %v13014_v47 = vadd.f32 %v13013_v38, %v13012_v56  ;;  %v12988_v44 = vadd.f32 %v12987_v50, %v12986_v49 }
 0xc55   : > { %v12963_v0 = vadd.f32 %v12962_v10, %v12961_v6  ;;  %v13015_v11 = vrot.slane %v13014_v47, 2  ;;  %v12989_v54 = vrot.slane %v12988_v44, 2 }
 0xc57   : > { %v12964_v51 = vrot.slane %v12963_v0, 1  ;;  %v13016_v58 = vadd.f32 %v13015_v11, %v13014_v47  ;;  %v12990_v60 = vadd.f32 %v12989_v54, %v12988_v44 }
 0xc59   : > { %v12965_v57 = vadd.f32 %v12964_v51, %v12963_v0  ;;  %v13017_v2 = vrot.slane %v13016_v58, 1  ;;  %v12991_v8 = vrot.slane %v12990_v60, 1 }
 0xc5b   : > { %17458 = vrcp.f32 %v12965_v57  ;;  %v13018_v9 = vadd.f32 %v13017_v2, %v13016_v58  ;;  %v12992_v7 = vadd.f32 %v12991_v8, %v12990_v60 }
 0xc65   : > { %v17459_v63 = vpop.eup %17458 }
 0xc66   : > { %v12967_v3 = vmul.f32 %v17459_v63, %v12965_v57 }
 0xc68   : > { %v12968_v39 = vsub.f32 2.0, %v12967_v3 }
 0xc6a   : > { %v12969_v41 = vmul.f32 %v17459_v63, %v12968_v39 }
 0xc6c   : > { %v13019_v15 = vmul.f32 %v13018_v9, %v12969_v41  ;;  %v12993_v30 = vmul.f32 %v12992_v7, %v12969_v41 }
 0xc6e   : > { %12995 = vst.msk [vmem:[%s562_s17] sm:$0x1] %vm12994_vm12, %v12993_v30  ;;  %13020 = vst.msk [vmem:[%s568_s19] sm:$0x1] %vm12994_vm12, %v13019_v15 }
 0xc6f   : > { %17762 = shalt.err (!%p17759_p0)
}
 0xc70   : > { %s17763_s0 = scalar_lea.hbm %s18837_s23, 16  ;;  %s17767_s19 = scalar_lea.hbm %s18977_s21, 32 }
 0xc71   : > { %p17764_p5 = scmp.ne.s32.totalorder %s18837_s23, %s17763_s0  ;;  %p17768_p10 = scmp.lt.u32.totalorder %s18837_s23, %s18977_s21 }
 0xc72   : > { %p17769_p11 = scmp.lt.u32.totalorder %s17767_s19, %s17763_s0  ;;  %p17771_p13 = scmp.lt.u32.totalorder %s17763_s0, %s18837_s23 }
 0xc73   : > { %p17765_p2 = pnand %p17764_p5, %p18975_p1 }
 0xc74   : > { %p17770_p12 = por %p17769_p11, %p17768_p10 }
 0xc75   : > { %p17766_p7 = pneg %p17765_p2 }
 0xc76   : > { %p17772_p8 = por %p17771_p13, %p17770_p12 }
 0xc78   : > { %p17773_p6 = pnand %p17772_p8, %p17766_p7 }
 0xc7a   : > { %17776 = shalt.err (!%p17773_p6)
}
 0xc7b   : > { %15169 = dma.vmem_to_hbm [thread:$0]  (%p18975_p1), %s18839_s29, 16, %s18837_s23, %s18848_s20  }
 0xc7c   : > { %s17777_s3 = scalar_lea.vmem %s18846_s12, 16  ;;  %s17885_s13 = smov [#allocation21]  }
 0xc7d   : > { %p17778_p9 = scmp.ne.s32.totalorder %s18846_s12, %s17777_s3  ;;  %s17781_s11 = sshll.u32 %s17885_s13, 4  ;;  %s17782_s11 = int_to_ptr.vmem [resolvable:$false] %s17781_s11 }
 0xc7e   : > { %s17783_s0 = scalar_lea.vmem %s17782_s11, 32  ;;  %p17784_p0 = scmp.lt.s32.totalorder %s18846_s12, %s17782_s11 }
 0xc7f   : > { %p17779_p4 = pnand %p17778_p9, %p18975_p1  ;;  %p17785_p5 = scmp.lt.s32.totalorder %s17783_s0, %s17777_s3 }
 0xc81   : > { %p17780_p3 = pneg %p17779_p4  ;;  %p17786_p2 = por %p17785_p5, %p17784_p0 }
 0xc83   : > { %p17787_p7 = pnand %p17786_p2, %p17780_p3 }
 0xc85   : > { %17790 = shalt.err (!%p17787_p7)
}
 0xc86   : > { %s17791_s29 = scalar_lea.hbm %s18844_s2, 16  ;;  %s17795_s17 = scalar_lea.hbm %s18978_s1, 32 }
 0xc87   : > { %p17792_p10 = scmp.ne.s32.totalorder %s18844_s2, %s17791_s29  ;;  %p17796_p13 = scmp.lt.u32.totalorder %s18844_s2, %s18978_s1 }
 0xc88   : > { %p17797_p8 = scmp.lt.u32.totalorder %s17795_s17, %s17791_s29  ;;  %p17799_p9 = scmp.lt.u32.totalorder %s17791_s29, %s18844_s2 }
 0xc89   : > { %p17793_p11 = pnand %p17792_p10, %p18975_p1 }
 0xc8a   : > { %p17798_p6 = por %p17797_p8, %p17796_p13 }
 0xc8b   : > { %p17794_p12 = pneg %p17793_p11 }
 0xc8c   : > { %p17800_p4 = por %p17799_p9, %p17798_p6 }
 0xc8e   : > { %p17801_p3 = pnand %p17800_p4, %p17794_p12 }
 0xc90   : > { %17804 = shalt.err (!%p17801_p3)
}
 0xc91   : > { %15170 = dma.vmem_to_hbm [thread:$0]  (%p18975_p1), %s18846_s12, 16, %s18844_s2, %s18848_s20  }
 0xc92 PF: > { %s13084_s15 = sand.u32 1, %s17851_s25   ;;  %p18979_p0 = scmp.ne.s32.totalorder %s18956_s9, 0 }
 0xc93   : > { %p18980_p5 = scmp.ge.s32.totalorder %s17863_s28, 2  ;;  %s13085_s3 = scalar_lea.sflag [#allocation6], %s13084_s15 }
 0xc95   : > { %p15201_p2 = pnand %p18980_p5, %p18979_p0 }
 0xc97   : > { %17842 = dma.done.wait (!%p15201_p2), %s13085_s3, 256  }
 0xc98   : > { %17844 = vsyncadd (!%p15201_p2), %s13085_s3, 4294967040  ;;  %s18981_s13 = sadd.s32 4294967294, %s17863_s28  }
 0xc99   : > { %s13093_s11 = sand.u32 1, %s18981_s13  }
 0xc9a   : > { %s13094_s0 = scalar_lea.sflag [#allocation20], %s13093_s11 }
 0xc9b   : > { %17846 = dma.done.wait (!%p15201_p2), %s13094_s0, 32  }
 0xc9c   : > { %17848 = vsyncadd (!%p15201_p2), %s13094_s0, 4294967264  ;;  %p34_p1 = scmp.ge.s32.totalorder %s18146_s16, 4   ;;  %s18982_s25 = smov %s17855_s26 }
 0xc9d   : > { %s18983_s26 = smov %s17859_s27  ;;  %s18984_s27 = smov %s18158_s22 }
 0xc9e   : > { %s18985_s28 = smov %s18146_s16  ;;  %36 = sbr.rel (!%p34_p1) target bundleno = 21 (0x15), region = 185 }
 0xca5   :  { %13106 = vsyncpa [#allocation5], 1 }
 0xca6   :  { %13108 = vsyncpa [#allocation5 + $0x1], 1 }
 0xca7   :  { %13109 = vsyncpa [#allocation8], 1 }
 0xca8   :  { %13110 = vsyncpa [#allocation11], 1 }
 0xca9   :  { %13111 = vsyncpa [#allocation14], 1 }
 0xcaa   :  { %13112 = vsyncpa [#allocation17], 1 }
 0xcab   :  { %13113 = vsyncpa [#allocation6], 1 }
 0xcac   :  { %13115 = vsyncpa [#allocation6 + $0x1], 1 }
 0xcad   :  { %13116 = vsyncpa [#allocation20], 1 }
 0xcae   :  { %13118 = vsyncpa [#allocation20 + $0x1], 1 }

</bundles_post_ra>
